<compile_context>
chip_gen: v5e
topology: v5e:2x2
jax: 0.10.0
libtpu: 0.0.40
codegen_flags: <defaults>
</compile_context>

<pallas_src>
import jax
import jax.numpy as jnp
from jax.experimental import pallas as pl
from jax.experimental.pallas import tpu as pltpu


def _upblock_kernel(x_ref, w_ref, b_ref, o_ref):
    # x_ref: (1, Hp+2, W+2, Cin)   zero-padded source image (one batch item)
    # w_ref: (16, Cin, Cout)       folded sub-pixel weights, index ((a*2+b)*2+kr)*2+kc
    # b_ref: (1, Cout)             f32 bias
    # o_ref: (1, TS, 2, 2*W*Cout)  o[0,i,a, j*2*Cout + b*Cout + co] = y[2*(i0+i)+a, 2j+b, co]
    TS = o_ref.shape[1]
    W = x_ref.shape[2] - 2
    Cin = x_ref.shape[3]
    Cout = b_ref.shape[1]
    M = TS * W

    t = pl.program_id(1)
    i0 = pl.multiple_of(t * TS, TS)          # first source row of this tile

    bias = b_ref[...]                        # (1, Cout), broadcasts over rows

    # Only the 3 column-shifted slabs are materialized (the column shift touches the
    # sublane axis); row shifts below are free leading-dim slices of these values.
    col = [x_ref[0, pl.ds(i0, TS + 2), pl.ds(c, W), :] for c in (0, 1, 2)]

    # Source row/col offsets per output parity: parity 0 -> {+0,+1}, parity 1 -> {+1,+2}
    # (matches the folded weights built in _fold_weights).
    off = ((0, 1), (1, 2))

    for a in (0, 1):
        sub = []
        for b in (0, 1):
            acc = jnp.zeros((M, Cout), jnp.float32)
            for kr in (0, 1):
                for kc in (0, 1):
                    r = off[a][kr]
                    patch = col[off[b][kc]][r:r + TS]            # (TS, W, Cin)
                    w_idx = ((a * 2 + b) * 2 + kr) * 2 + kc
                    acc = acc + jnp.dot(patch.reshape(M, Cin), w_ref[w_idx],
                                        preferred_element_type=jnp.float32)
            acc = acc + bias
            sub.append(acc.reshape(TS, W, Cout))
        # Interleave b=0 / b=1 per output column -> one lane-dense (TS, 2*W*Cout)
        # store per row parity (no masked / strided partial stores).
        o_ref[0, :, a, :] = (jnp.concatenate(sub, axis=-1)
                             .reshape(TS, 2 * W * Cout)
                             .astype(o_ref.dtype))


def _fold_weights(weight_oihw):
    """Fold the 3x3 OIHW conv weight (applied after 2x nearest upsample) into
    per-sub-pixel 2x2-tap weights, shape (2,2,2,2,Cin,Cout) indexed
    [row_parity a, col_parity b, row_tap kr, col_tap kc]. Exact (pure f32 adds)."""
    w = jnp.transpose(weight_oihw, (2, 3, 1, 0)).astype(jnp.float32)  # (3,3,Cin,Cout) [dy,dx]
    # Fold rows per output-row parity a: (2[a], 2[kr], 3[dx], Cin, Cout)
    row_f = jnp.stack([jnp.stack([w[0], w[1] + w[2]], axis=0),        # a = 0
                       jnp.stack([w[0] + w[1], w[2]], axis=0)],       # a = 1
                      axis=0)
    # Fold cols per output-col parity b: (2[a], 2[b], 2[kr], 2[kc], Cin, Cout)
    return jnp.stack([jnp.stack([row_f[:, :, 0],
                                 row_f[:, :, 1] + row_f[:, :, 2]], axis=2),   # b = 0
                      jnp.stack([row_f[:, :, 0] + row_f[:, :, 1],
                                 row_f[:, :, 2]], axis=2)],                   # b = 1
                     axis=1)


def _vmem_limit_bytes():
    # Use most of physical VMEM (128 MiB on v5e/v6e, 64 MiB on v7x); fall back to a
    # value safe on every generation if the query is unavailable.
    try:
        cap = int(pltpu.get_tpu_info().vmem_capacity_bytes)
    except Exception:
        cap = 0
    if cap <= 0:
        cap = 64 * 1024 * 1024
    return min(int(cap * 0.85), 112 * 1024 * 1024)


def _pick_row_tile(H, W, Cin, Cout, n_batch, in_itemsize, vmem_budget, target_m=512):
    """Pick TS (source rows per grid step; 2*TS output rows) and padded row count Hp."""

    def fits(ts):
        in_blk = (H + 2) * (W + 2) * Cin * in_itemsize         # full padded image block
        w_blk = 16 * Cin * Cout * in_itemsize
        out_blk = ts * 2 * 2 * W * Cout * 4
        live = 3 * (ts + 2) * W * Cin * 4 + 4 * ts * W * Cout * 4
        return 2 * (in_blk + w_blk + out_blk) + live <= vmem_budget

    cap = max(1, min(H, target_m // max(W, 1)))                 # aim TS*W ~ 512
    while cap > 1 and not fits(cap):
        cap = max(1, cap // 2)
    # TODO(synk): if even TS=1 does not fit (very large images), the input needs the
    # halo'd row-window manual-DMA path instead of a full-image block.

    if n_batch == 1 and cap >= H and H > 1:
        cap = max(1, (H + 1) // 2)          # keep >=2 grid points for v7x megacore

    ts = cap
    while H % ts:
        ts -= 1
    if 2 * ts >= cap or ts == H:
        return ts, H
    # Awkward H (e.g. prime): pad the row axis to a multiple of the target tile
    # instead of paying a 10-100x grid-step blowup with TS=1.
    return cap, cap * ((H + cap - 1) // cap)


def up_block(x_nchw, weight_oihw, bias, *, compute_dtype=jnp.bfloat16,
             row_tile=None, out_layout="NCHW"):
    """Forward of UpBlock: conv3x3(pad=1)(nearest_upsample_x2(x)).

    x_nchw:      (N, Cin, H, W)
    weight_oihw: (Cout, Cin, 3, 3)
    bias:        (Cout,)
    returns:     (N, Cout, 2H, 2W) float32 (or NHWC if out_layout="NHWC")
    """
    N, Cin, H, W = x_nchw.shape
    Cout = weight_oihw.shape[0]
    in_itemsize = jnp.dtype(compute_dtype).itemsize
    vmem_budget = _vmem_limit_bytes()

    if row_tile is None:
        ts, h_pad = _pick_row_tile(H, W, Cin, Cout, N, in_itemsize, vmem_budget)
    else:
        ts = max(1, min(int(row_tile), H))
        h_pad = ts * ((H + ts - 1) // ts)
    T = h_pad // ts

    # Layout glue at ORIGINAL resolution only: the 2x-upsampled tensor is never
    # materialized in HBM (the upsample is folded into the weights below).
    # TODO(synk): NHWC-native callers should feed NHWC and use out_layout="NHWC" so
    # neither wrapper transpose round-trips the tensors through HBM.
    x = jnp.transpose(x_nchw, (0, 2, 3, 1))                                  # (N, H, W, Cin)
    xs = jnp.pad(x, ((0, 0), (1, 1 + (h_pad - H)), (1, 1), (0, 0)))
    xs = xs.astype(compute_dtype)                                            # (N, Hp+2, W+2, Cin)

    wf = _fold_weights(weight_oihw).reshape(16, Cin, Cout).astype(compute_dtype)
    b2 = bias.reshape(1, Cout).astype(jnp.float32)

    out = pl.pallas_call(
        _upblock_kernel,
        out_shape=jax.ShapeDtypeStruct((N, h_pad, 2, 2 * W * Cout), jnp.float32),
        grid=(N, T),
        in_specs=[
            # Whole padded image of one batch item; block index constant along t, so
            # it is DMA'd once per batch item.
            pl.BlockSpec((1, h_pad + 2, W + 2, Cin), lambda n, t: (n, 0, 0, 0)),
            pl.BlockSpec((16, Cin, Cout), lambda n, t: (0, 0, 0)),
            pl.BlockSpec((1, Cout), lambda n, t: (0, 0)),
        ],
        out_specs=pl.BlockSpec((1, ts, 2, 2 * W * Cout),
                               lambda n, t: (n, t, 0, 0)),
        compiler_params=pltpu.CompilerParams(
            dimension_semantics=("parallel", "parallel"),
            vmem_limit_bytes=int(vmem_budget)),
    )(xs, wf, b2)

    # Free adjacent-dim merges: (N, Hp, 2, 2*W*Cout) -> (N, 2*Hp, 2*W, Cout) NHWC.
    out_nhwc = out.reshape(N, 2 * h_pad, 2 * W, Cout)[:, :2 * H]
    if out_layout == "NHWC":
        return out_nhwc
    return jnp.transpose(out_nhwc, (0, 3, 1, 2))                             # NCHW


def _reference(x_nchw, weight_oihw, bias):
    # Pure-JAX reference: nearest upsample x2 + conv3x3 SAME (NCHW / OIHW), f32.
    x_up = jnp.repeat(jnp.repeat(x_nchw, 2, axis=2), 2, axis=3)
    y = jax.lax.conv_general_dilated(
        x_up, weight_oihw, window_strides=(1, 1), padding="SAME",
        dimension_numbers=("NCHW", "OIHW", "NCHW"))
    return y + bias[None, :, None, None]


if __name__ == "__main__":
    key = jax.random.PRNGKey(0)
    k_x, k_w, k_b, k_x2 = jax.random.split(key, 4)

    # Case 1: module-like small shapes (N=2, Cin=4, Cout=8, 16x16).
    N, Cin, Cout, H, W = 2, 4, 8, 16, 16
    x = jax.random.normal(k_x, (N, Cin, H, W), dtype=jnp.float32)
    weight = 0.1 * jax.random.normal(k_w, (Cout, Cin, 3, 3), dtype=jnp.float32)
    bias = 0.1 * jax.random.normal(k_b, (Cout,), dtype=jnp.float32)
    ref = jax.block_until_ready(_reference(x, weight, bias))

    # f32 compute path: exact up to summation-order rounding.
    out_f32 = jax.block_until_ready(up_block(x, weight, bias, compute_dtype=jnp.float32))
    assert out_f32.shape == (N, Cout, 2 * H, 2 * W), out_f32.shape
    err = float(jnp.max(jnp.abs(out_f32 - ref)))
    assert jnp.allclose(out_f32, ref, atol=2e-4, rtol=2e-4), err

    # Default bf16-MXU / f32-accumulate path (looser tolerance per bf16 inputs).
    out_bf16 = jax.block_until_ready(up_block(x, weight, bias))
    err = float(jnp.max(jnp.abs(out_bf16 - ref)))
    assert jnp.allclose(out_bf16, ref, atol=5e-2, rtol=5e-2), err

    # Case 2: W >= 128 (lane-dense store), prime H (padded ragged-tile path), N=1
    # (megacore grid split along rows).
    N2, H2, W2 = 1, 5, 128
    x2 = jax.random.normal(k_x2, (N2, Cin, H2, W2), dtype=jnp.float32)
    ref2 = jax.block_until_ready(_reference(x2, weight, bias))
    out2 = jax.block_until_ready(up_block(x2, weight, bias, compute_dtype=jnp.float32))
    assert out2.shape == (N2, Cout, 2 * H2, 2 * W2), out2.shape
    err2 = float(jnp.max(jnp.abs(out2 - ref2)))
    assert jnp.allclose(out2, ref2, atol=2e-4, rtol=2e-4), err2

    print("KERNEL_OK")
</pallas_src>

<mosaic_0001>
module attributes {stable_mosaic.version = 11 : i64} {
  func.func @_upblock_kernel(%arg0: i32, %arg1: i32, %arg2: memref<1x18x18x4xf32, #tpu.memory_space<vmem>>, %arg3: memref<16x4x8xf32, #tpu.memory_space<vmem>>, %arg4: memref<1x8xf32, #tpu.memory_space<vmem>>, %arg5: memref<1x16x2x256xf32, #tpu.memory_space<vmem>>) attributes {dimension_semantics = [#tpu.dimension_semantics<parallel>, #tpu.dimension_semantics<parallel>], iteration_bounds = array<i64: 2, 1>, scalar_prefetch = 0 : i64, scratch_operands = 0 : i64, tpu.core_type = #tpu.core_type<tc>, window_params = [{transform_indices = @transform_0, window_bounds = array<i64: 1, 18, 18, 4>}, {pipeline_mode = #tpu.pipeline_mode<synchronous>, transform_indices = @transform_1, window_bounds = array<i64: 16, 4, 8>}, {pipeline_mode = #tpu.pipeline_mode<synchronous>, transform_indices = @transform_2, window_bounds = array<i64: 1, 8>}, {transform_indices = @transform_3, window_bounds = array<i64: 1, 16, 2, 256>}]} {
    %c16_i32 = arith.constant 16 : i32
    %0 = arith.muli %arg1, %c16_i32 : i32
    %1 = tpu.assume_multiple %0, 16 : i32
    %c0 = arith.constant 0 : index
    %c0_0 = arith.constant 0 : index
    %2 = vector.load %arg4[%c0, %c0_0] : memref<1x8xf32, #tpu.memory_space<vmem>>, vector<1x8xf32>
    %c0_1 = arith.constant 0 : index
    %3 = arith.index_cast %1 : i32 to index
    %c0_2 = arith.constant 0 : index
    %c0_3 = arith.constant 0 : index
    %4 = vector.load %arg2[%c0_1, %3, %c0_2, %c0_3] : memref<1x18x18x4xf32, #tpu.memory_space<vmem>>, vector<1x18x16x4xf32>
    %5 = vector.shape_cast %4 : vector<1x18x16x4xf32> to vector<18x16x4xf32>
    %c0_4 = arith.constant 0 : index
    %6 = arith.index_cast %1 : i32 to index
    %c1 = arith.constant 1 : index
    %c0_5 = arith.constant 0 : index
    %7 = vector.load %arg2[%c0_4, %6, %c1, %c0_5] : memref<1x18x18x4xf32, #tpu.memory_space<vmem>>, vector<1x18x16x4xf32>
    %8 = vector.shape_cast %7 : vector<1x18x16x4xf32> to vector<18x16x4xf32>
    %c0_6 = arith.constant 0 : index
    %9 = arith.index_cast %1 : i32 to index
    %c2 = arith.constant 2 : index
    %c0_7 = arith.constant 0 : index
    %10 = vector.load %arg2[%c0_6, %9, %c2, %c0_7] : memref<1x18x18x4xf32, #tpu.memory_space<vmem>>, vector<1x18x16x4xf32>
    %11 = vector.shape_cast %10 : vector<1x18x16x4xf32> to vector<18x16x4xf32>
    %cst = arith.constant 0.000000e+00 : f32
    %12 = vector.broadcast %cst : f32 to vector<256x8xf32>
    %13 = vector.extract_strided_slice %5 {offsets = [0, 0, 0], sizes = [16, 16, 4], strides = [1, 1, 1]} : vector<18x16x4xf32> to vector<16x16x4xf32>
    %14 = vector.shape_cast %13 : vector<16x16x4xf32> to vector<256x4xf32>
    %c0_8 = arith.constant 0 : index
    %c0_9 = arith.constant 0 : index
    %c0_10 = arith.constant 0 : index
    %15 = vector.load %arg3[%c0_8, %c0_9, %c0_10] : memref<16x4x8xf32, #tpu.memory_space<vmem>>, vector<1x4x8xf32>
    %16 = vector.shape_cast %15 : vector<1x4x8xf32> to vector<4x8xf32>
    %cst_11 = arith.constant dense<0.000000e+00> : vector<256x8xf32>
    %17 = tpu.matmul %14, %16, %cst_11 {dimension_numbers = #tpu.dot_dimension_numbers<[1], [0], [0], [1], [0, 0, 1, 1], [], []>} : vector<256x4xf32>, vector<4x8xf32>, vector<256x8xf32> -> vector<256x8xf32>
    %18 = arith.addf %12, %17 : vector<256x8xf32>
    %19 = vector.extract_strided_slice %8 {offsets = [0, 0, 0], sizes = [16, 16, 4], strides = [1, 1, 1]} : vector<18x16x4xf32> to vector<16x16x4xf32>
    %20 = vector.shape_cast %19 : vector<16x16x4xf32> to vector<256x4xf32>
    %c1_12 = arith.constant 1 : index
    %c0_13 = arith.constant 0 : index
    %c0_14 = arith.constant 0 : index
    %21 = vector.load %arg3[%c1_12, %c0_13, %c0_14] : memref<16x4x8xf32, #tpu.memory_space<vmem>>, vector<1x4x8xf32>
    %22 = vector.shape_cast %21 : vector<1x4x8xf32> to vector<4x8xf32>
    %cst_15 = arith.constant dense<0.000000e+00> : vector<256x8xf32>
    %23 = tpu.matmul %20, %22, %cst_15 {dimension_numbers = #tpu.dot_dimension_numbers<[1], [0], [0], [1], [0, 0, 1, 1], [], []>} : vector<256x4xf32>, vector<4x8xf32>, vector<256x8xf32> -> vector<256x8xf32>
    %24 = arith.addf %18, %23 : vector<256x8xf32>
    %25 = vector.extract_strided_slice %5 {offsets = [1, 0, 0], sizes = [16, 16, 4], strides = [1, 1, 1]} : vector<18x16x4xf32> to vector<16x16x4xf32>
    %26 = vector.shape_cast %25 : vector<16x16x4xf32> to vector<256x4xf32>
    %c2_16 = arith.constant 2 : index
    %c0_17 = arith.constant 0 : index
    %c0_18 = arith.constant 0 : index
    %27 = vector.load %arg3[%c2_16, %c0_17, %c0_18] : memref<16x4x8xf32, #tpu.memory_space<vmem>>, vector<1x4x8xf32>
    %28 = vector.shape_cast %27 : vector<1x4x8xf32> to vector<4x8xf32>
    %cst_19 = arith.constant dense<0.000000e+00> : vector<256x8xf32>
    %29 = tpu.matmul %26, %28, %cst_19 {dimension_numbers = #tpu.dot_dimension_numbers<[1], [0], [0], [1], [0, 0, 1, 1], [], []>} : vector<256x4xf32>, vector<4x8xf32>, vector<256x8xf32> -> vector<256x8xf32>
    %30 = arith.addf %24, %29 : vector<256x8xf32>
    %31 = vector.extract_strided_slice %8 {offsets = [1, 0, 0], sizes = [16, 16, 4], strides = [1, 1, 1]} : vector<18x16x4xf32> to vector<16x16x4xf32>
    %32 = vector.shape_cast %31 : vector<16x16x4xf32> to vector<256x4xf32>
    %c3 = arith.constant 3 : index
    %c0_20 = arith.constant 0 : index
    %c0_21 = arith.constant 0 : index
    %33 = vector.load %arg3[%c3, %c0_20, %c0_21] : memref<16x4x8xf32, #tpu.memory_space<vmem>>, vector<1x4x8xf32>
    %34 = vector.shape_cast %33 : vector<1x4x8xf32> to vector<4x8xf32>
    %cst_22 = arith.constant dense<0.000000e+00> : vector<256x8xf32>
    %35 = tpu.matmul %32, %34, %cst_22 {dimension_numbers = #tpu.dot_dimension_numbers<[1], [0], [0], [1], [0, 0, 1, 1], [], []>} : vector<256x4xf32>, vector<4x8xf32>, vector<256x8xf32> -> vector<256x8xf32>
    %36 = arith.addf %30, %35 : vector<256x8xf32>
    %37 = vector.broadcast %2 : vector<1x8xf32> to vector<256x8xf32>
    %38 = arith.addf %36, %37 : vector<256x8xf32>
    %39 = vector.shape_cast %38 : vector<256x8xf32> to vector<16x16x8xf32>
    %cst_23 = arith.constant 0.000000e+00 : f32
    %40 = vector.broadcast %cst_23 : f32 to vector<256x8xf32>
    %41 = vector.extract_strided_slice %8 {offsets = [0, 0, 0], sizes = [16, 16, 4], strides = [1, 1, 1]} : vector<18x16x4xf32> to vector<16x16x4xf32>
    %42 = vector.shape_cast %41 : vector<16x16x4xf32> to vector<256x4xf32>
    %c4 = arith.constant 4 : index
    %c0_24 = arith.constant 0 : index
    %c0_25 = arith.constant 0 : index
    %43 = vector.load %arg3[%c4, %c0_24, %c0_25] : memref<16x4x8xf32, #tpu.memory_space<vmem>>, vector<1x4x8xf32>
    %44 = vector.shape_cast %43 : vector<1x4x8xf32> to vector<4x8xf32>
    %cst_26 = arith.constant dense<0.000000e+00> : vector<256x8xf32>
    %45 = tpu.matmul %42, %44, %cst_26 {dimension_numbers = #tpu.dot_dimension_numbers<[1], [0], [0], [1], [0, 0, 1, 1], [], []>} : vector<256x4xf32>, vector<4x8xf32>, vector<256x8xf32> -> vector<256x8xf32>
    %46 = arith.addf %40, %45 : vector<256x8xf32>
    %47 = vector.extract_strided_slice %11 {offsets = [0, 0, 0], sizes = [16, 16, 4], strides = [1, 1, 1]} : vector<18x16x4xf32> to vector<16x16x4xf32>
    %48 = vector.shape_cast %47 : vector<16x16x4xf32> to vector<256x4xf32>
    %c5 = arith.constant 5 : index
    %c0_27 = arith.constant 0 : index
    %c0_28 = arith.constant 0 : index
    %49 = vector.load %arg3[%c5, %c0_27, %c0_28] : memref<16x4x8xf32, #tpu.memory_space<vmem>>, vector<1x4x8xf32>
    %50 = vector.shape_cast %49 : vector<1x4x8xf32> to vector<4x8xf32>
    %cst_29 = arith.constant dense<0.000000e+00> : vector<256x8xf32>
    %51 = tpu.matmul %48, %50, %cst_29 {dimension_numbers = #tpu.dot_dimension_numbers<[1], [0], [0], [1], [0, 0, 1, 1], [], []>} : vector<256x4xf32>, vector<4x8xf32>, vector<256x8xf32> -> vector<256x8xf32>
    %52 = arith.addf %46, %51 : vector<256x8xf32>
    %53 = vector.extract_strided_slice %8 {offsets = [1, 0, 0], sizes = [16, 16, 4], strides = [1, 1, 1]} : vector<18x16x4xf32> to vector<16x16x4xf32>
    %54 = vector.shape_cast %53 : vector<16x16x4xf32> to vector<256x4xf32>
    %c6 = arith.constant 6 : index
    %c0_30 = arith.constant 0 : index
    %c0_31 = arith.constant 0 : index
    %55 = vector.load %arg3[%c6, %c0_30, %c0_31] : memref<16x4x8xf32, #tpu.memory_space<vmem>>, vector<1x4x8xf32>
    %56 = vector.shape_cast %55 : vector<1x4x8xf32> to vector<4x8xf32>
    %cst_32 = arith.constant dense<0.000000e+00> : vector<256x8xf32>
    %57 = tpu.matmul %54, %56, %cst_32 {dimension_numbers = #tpu.dot_dimension_numbers<[1], [0], [0], [1], [0, 0, 1, 1], [], []>} : vector<256x4xf32>, vector<4x8xf32>, vector<256x8xf32> -> vector<256x8xf32>
    %58 = arith.addf %52, %57 : vector<256x8xf32>
    %59 = vector.extract_strided_slice %11 {offsets = [1, 0, 0], sizes = [16, 16, 4], strides = [1, 1, 1]} : vector<18x16x4xf32> to vector<16x16x4xf32>
    %60 = vector.shape_cast %59 : vector<16x16x4xf32> to vector<256x4xf32>
    %c7 = arith.constant 7 : index
    %c0_33 = arith.constant 0 : index
    %c0_34 = arith.constant 0 : index
    %61 = vector.load %arg3[%c7, %c0_33, %c0_34] : memref<16x4x8xf32, #tpu.memory_space<vmem>>, vector<1x4x8xf32>
    %62 = vector.shape_cast %61 : vector<1x4x8xf32> to vector<4x8xf32>
    %cst_35 = arith.constant dense<0.000000e+00> : vector<256x8xf32>
    %63 = tpu.matmul %60, %62, %cst_35 {dimension_numbers = #tpu.dot_dimension_numbers<[1], [0], [0], [1], [0, 0, 1, 1], [], []>} : vector<256x4xf32>, vector<4x8xf32>, vector<256x8xf32> -> vector<256x8xf32>
    %64 = arith.addf %58, %63 : vector<256x8xf32>
    %65 = vector.broadcast %2 : vector<1x8xf32> to vector<256x8xf32>
    %66 = arith.addf %64, %65 : vector<256x8xf32>
    %67 = vector.shape_cast %66 : vector<256x8xf32> to vector<16x16x8xf32>
    %68 = tpu.concatenate %39, %67 in 2 : vector<16x16x8xf32>, vector<16x16x8xf32> -> vector<16x16x16xf32>
    %69 = vector.shape_cast %68 : vector<16x16x16xf32> to vector<16x256xf32>
    %c0_36 = arith.constant 0 : index
    %c0_37 = arith.constant 0 : index
    %c0_38 = arith.constant 0 : index
    %c0_39 = arith.constant 0 : index
    %70 = vector.load %arg5[%c0_36, %c0_37, %c0_38, %c0_39] : memref<1x16x2x256xf32, #tpu.memory_space<vmem>>, vector<1x16x1x256xf32>
    %71 = vector.shape_cast %70 : vector<1x16x1x256xf32> to vector<16x256xf32>
    %72 = vector.shape_cast %69 : vector<16x256xf32> to vector<1x16x1x256xf32>
    tpu.vector_store %arg5[%c0_36, %c0_37, %c0_38, %c0_39], %72 {strides = array<i32>} : memref<1x16x2x256xf32, #tpu.memory_space<vmem>>, vector<1x16x1x256xf32>,
    %cst_40 = arith.constant 0.000000e+00 : f32
    %73 = vector.broadcast %cst_40 : f32 to vector<256x8xf32>
    %74 = vector.extract_strided_slice %5 {offsets = [1, 0, 0], sizes = [16, 16, 4], strides = [1, 1, 1]} : vector<18x16x4xf32> to vector<16x16x4xf32>
    %75 = vector.shape_cast %74 : vector<16x16x4xf32> to vector<256x4xf32>
    %c8 = arith.constant 8 : index
    %c0_41 = arith.constant 0 : index
    %c0_42 = arith.constant 0 : index
    %76 = vector.load %arg3[%c8, %c0_41, %c0_42] : memref<16x4x8xf32, #tpu.memory_space<vmem>>, vector<1x4x8xf32>
    %77 = vector.shape_cast %76 : vector<1x4x8xf32> to vector<4x8xf32>
    %cst_43 = arith.constant dense<0.000000e+00> : vector<256x8xf32>
    %78 = tpu.matmul %75, %77, %cst_43 {dimension_numbers = #tpu.dot_dimension_numbers<[1], [0], [0], [1], [0, 0, 1, 1], [], []>} : vector<256x4xf32>, vector<4x8xf32>, vector<256x8xf32> -> vector<256x8xf32>
    %79 = arith.addf %73, %78 : vector<256x8xf32>
    %80 = vector.extract_strided_slice %8 {offsets = [1, 0, 0], sizes = [16, 16, 4], strides = [1, 1, 1]} : vector<18x16x4xf32> to vector<16x16x4xf32>
    %81 = vector.shape_cast %80 : vector<16x16x4xf32> to vector<256x4xf32>
    %c9 = arith.constant 9 : index
    %c0_44 = arith.constant 0 : index
    %c0_45 = arith.constant 0 : index
    %82 = vector.load %arg3[%c9, %c0_44, %c0_45] : memref<16x4x8xf32, #tpu.memory_space<vmem>>, vector<1x4x8xf32>
    %83 = vector.shape_cast %82 : vector<1x4x8xf32> to vector<4x8xf32>
    %cst_46 = arith.constant dense<0.000000e+00> : vector<256x8xf32>
    %84 = tpu.matmul %81, %83, %cst_46 {dimension_numbers = #tpu.dot_dimension_numbers<[1], [0], [0], [1], [0, 0, 1, 1], [], []>} : vector<256x4xf32>, vector<4x8xf32>, vector<256x8xf32> -> vector<256x8xf32>
    %85 = arith.addf %79, %84 : vector<256x8xf32>
    %86 = vector.extract_strided_slice %5 {offsets = [2, 0, 0], sizes = [16, 16, 4], strides = [1, 1, 1]} : vector<18x16x4xf32> to vector<16x16x4xf32>
    %87 = vector.shape_cast %86 : vector<16x16x4xf32> to vector<256x4xf32>
    %c10 = arith.constant 10 : index
    %c0_47 = arith.constant 0 : index
    %c0_48 = arith.constant 0 : index
    %88 = vector.load %arg3[%c10, %c0_47, %c0_48] : memref<16x4x8xf32, #tpu.memory_space<vmem>>, vector<1x4x8xf32>
    %89 = vector.shape_cast %88 : vector<1x4x8xf32> to vector<4x8xf32>
    %cst_49 = arith.constant dense<0.000000e+00> : vector<256x8xf32>
    %90 = tpu.matmul %87, %89, %cst_49 {dimension_numbers = #tpu.dot_dimension_numbers<[1], [0], [0], [1], [0, 0, 1, 1], [], []>} : vector<256x4xf32>, vector<4x8xf32>, vector<256x8xf32> -> vector<256x8xf32>
    %91 = arith.addf %85, %90 : vector<256x8xf32>
    %92 = vector.extract_strided_slice %8 {offsets = [2, 0, 0], sizes = [16, 16, 4], strides = [1, 1, 1]} : vector<18x16x4xf32> to vector<16x16x4xf32>
    %93 = vector.shape_cast %92 : vector<16x16x4xf32> to vector<256x4xf32>
    %c11 = arith.constant 11 : index
    %c0_50 = arith.constant 0 : index
    %c0_51 = arith.constant 0 : index
    %94 = vector.load %arg3[%c11, %c0_50, %c0_51] : memref<16x4x8xf32, #tpu.memory_space<vmem>>, vector<1x4x8xf32>
    %95 = vector.shape_cast %94 : vector<1x4x8xf32> to vector<4x8xf32>
    %cst_52 = arith.constant dense<0.000000e+00> : vector<256x8xf32>
    %96 = tpu.matmul %93, %95, %cst_52 {dimension_numbers = #tpu.dot_dimension_numbers<[1], [0], [0], [1], [0, 0, 1, 1], [], []>} : vector<256x4xf32>, vector<4x8xf32>, vector<256x8xf32> -> vector<256x8xf32>
    %97 = arith.addf %91, %96 : vector<256x8xf32>
    %98 = vector.broadcast %2 : vector<1x8xf32> to vector<256x8xf32>
    %99 = arith.addf %97, %98 : vector<256x8xf32>
    %100 = vector.shape_cast %99 : vector<256x8xf32> to vector<16x16x8xf32>
    %cst_53 = arith.constant 0.000000e+00 : f32
    %101 = vector.broadcast %cst_53 : f32 to vector<256x8xf32>
    %102 = vector.extract_strided_slice %8 {offsets = [1, 0, 0], sizes = [16, 16, 4], strides = [1, 1, 1]} : vector<18x16x4xf32> to vector<16x16x4xf32>
    %103 = vector.shape_cast %102 : vector<16x16x4xf32> to vector<256x4xf32>
    %c12 = arith.constant 12 : index
    %c0_54 = arith.constant 0 : index
    %c0_55 = arith.constant 0 : index
    %104 = vector.load %arg3[%c12, %c0_54, %c0_55] : memref<16x4x8xf32, #tpu.memory_space<vmem>>, vector<1x4x8xf32>
    %105 = vector.shape_cast %104 : vector<1x4x8xf32> to vector<4x8xf32>
    %cst_56 = arith.constant dense<0.000000e+00> : vector<256x8xf32>
    %106 = tpu.matmul %103, %105, %cst_56 {dimension_numbers = #tpu.dot_dimension_numbers<[1], [0], [0], [1], [0, 0, 1, 1], [], []>} : vector<256x4xf32>, vector<4x8xf32>, vector<256x8xf32> -> vector<256x8xf32>
    %107 = arith.addf %101, %106 : vector<256x8xf32>
    %108 = vector.extract_strided_slice %11 {offsets = [1, 0, 0], sizes = [16, 16, 4], strides = [1, 1, 1]} : vector<18x16x4xf32> to vector<16x16x4xf32>
    %109 = vector.shape_cast %108 : vector<16x16x4xf32> to vector<256x4xf32>
    %c13 = arith.constant 13 : index
    %c0_57 = arith.constant 0 : index
    %c0_58 = arith.constant 0 : index
    %110 = vector.load %arg3[%c13, %c0_57, %c0_58] : memref<16x4x8xf32, #tpu.memory_space<vmem>>, vector<1x4x8xf32>
    %111 = vector.shape_cast %110 : vector<1x4x8xf32> to vector<4x8xf32>
    %cst_59 = arith.constant dense<0.000000e+00> : vector<256x8xf32>
    %112 = tpu.matmul %109, %111, %cst_59 {dimension_numbers = #tpu.dot_dimension_numbers<[1], [0], [0], [1], [0, 0, 1, 1], [], []>} : vector<256x4xf32>, vector<4x8xf32>, vector<256x8xf32> -> vector<256x8xf32>
    %113 = arith.addf %107, %112 : vector<256x8xf32>
    %114 = vector.extract_strided_slice %8 {offsets = [2, 0, 0], sizes = [16, 16, 4], strides = [1, 1, 1]} : vector<18x16x4xf32> to vector<16x16x4xf32>
    %115 = vector.shape_cast %114 : vector<16x16x4xf32> to vector<256x4xf32>
    %c14 = arith.constant 14 : index
    %c0_60 = arith.constant 0 : index
    %c0_61 = arith.constant 0 : index
    %116 = vector.load %arg3[%c14, %c0_60, %c0_61] : memref<16x4x8xf32, #tpu.memory_space<vmem>>, vector<1x4x8xf32>
    %117 = vector.shape_cast %116 : vector<1x4x8xf32> to vector<4x8xf32>
    %cst_62 = arith.constant dense<0.000000e+00> : vector<256x8xf32>
    %118 = tpu.matmul %115, %117, %cst_62 {dimension_numbers = #tpu.dot_dimension_numbers<[1], [0], [0], [1], [0, 0, 1, 1], [], []>} : vector<256x4xf32>, vector<4x8xf32>, vector<256x8xf32> -> vector<256x8xf32>
    %119 = arith.addf %113, %118 : vector<256x8xf32>
    %120 = vector.extract_strided_slice %11 {offsets = [2, 0, 0], sizes = [16, 16, 4], strides = [1, 1, 1]} : vector<18x16x4xf32> to vector<16x16x4xf32>
    %121 = vector.shape_cast %120 : vector<16x16x4xf32> to vector<256x4xf32>
    %c15 = arith.constant 15 : index
    %c0_63 = arith.constant 0 : index
    %c0_64 = arith.constant 0 : index
    %122 = vector.load %arg3[%c15, %c0_63, %c0_64] : memref<16x4x8xf32, #tpu.memory_space<vmem>>, vector<1x4x8xf32>
    %123 = vector.shape_cast %122 : vector<1x4x8xf32> to vector<4x8xf32>
    %cst_65 = arith.constant dense<0.000000e+00> : vector<256x8xf32>
    %124 = tpu.matmul %121, %123, %cst_65 {dimension_numbers = #tpu.dot_dimension_numbers<[1], [0], [0], [1], [0, 0, 1, 1], [], []>} : vector<256x4xf32>, vector<4x8xf32>, vector<256x8xf32> -> vector<256x8xf32>
    %125 = arith.addf %119, %124 : vector<256x8xf32>
    %126 = vector.broadcast %2 : vector<1x8xf32> to vector<256x8xf32>
    %127 = arith.addf %125, %126 : vector<256x8xf32>
    %128 = vector.shape_cast %127 : vector<256x8xf32> to vector<16x16x8xf32>
    %129 = tpu.concatenate %100, %128 in 2 : vector<16x16x8xf32>, vector<16x16x8xf32> -> vector<16x16x16xf32>
    %130 = vector.shape_cast %129 : vector<16x16x16xf32> to vector<16x256xf32>
    %c0_66 = arith.constant 0 : index
    %c0_67 = arith.constant 0 : index
    %c1_68 = arith.constant 1 : index
    %c0_69 = arith.constant 0 : index
    %131 = vector.load %arg5[%c0_66, %c0_67, %c1_68, %c0_69] : memref<1x16x2x256xf32, #tpu.memory_space<vmem>>, vector<1x16x1x256xf32>
    %132 = vector.shape_cast %131 : vector<1x16x1x256xf32> to vector<16x256xf32>
    %133 = vector.shape_cast %130 : vector<16x256xf32> to vector<1x16x1x256xf32>
    tpu.vector_store %arg5[%c0_66, %c0_67, %c1_68, %c0_69], %133 {strides = array<i32>} : memref<1x16x2x256xf32, #tpu.memory_space<vmem>>, vector<1x16x1x256xf32>,
    return
  }
  func.func @transform_0(%arg0: i32, %arg1: i32) -> (i32, i32, i32, i32) {
    %c0_i32 = arith.constant 0 : i32
    %c0_i32_0 = arith.constant 0 : i32
    %c0_i32_1 = arith.constant 0 : i32
    %c0_i32_2 = arith.constant 0 : i32
    return %arg0, %c0_i32, %c0_i32_0, %c0_i32_1 : i32, i32, i32, i32
  }
  func.func @transform_1(%arg0: i32, %arg1: i32) -> (i32, i32, i32) {
    %c0_i32 = arith.constant 0 : i32
    %c0_i32_0 = arith.constant 0 : i32
    %c0_i32_1 = arith.constant 0 : i32
    %c0_i32_2 = arith.constant 0 : i32
    return %c0_i32, %c0_i32_0, %c0_i32_1 : i32, i32, i32
  }
  func.func @transform_2(%arg0: i32, %arg1: i32) -> (i32, i32) {
    %c0_i32 = arith.constant 0 : i32
    %c0_i32_0 = arith.constant 0 : i32
    %c0_i32_1 = arith.constant 0 : i32
    return %c0_i32, %c0_i32_0 : i32, i32
  }
  func.func @transform_3(%arg0: i32, %arg1: i32) -> (i32, i32, i32, i32) {
    %c0_i32 = arith.constant 0 : i32
    %c0_i32_0 = arith.constant 0 : i32
    %c0_i32_1 = arith.constant 0 : i32
    return %arg0, %arg1, %c0_i32, %c0_i32_0 : i32, i32, i32, i32
  }
}

</mosaic_0001>

<bundles_post_ra>
// kernel: tpu_custom_call.1
= control target key start
LH: loop header
LB: loop body
LE: loop exit
PB: predicated region body
PF: predicated region fallthrough
CT: control target
= control target key end

     0   :  { %8 = vsyncpa [#allocation3], 0  ;;  %s14328_s0 = inlined_call_operand.vmem [shape: f32[2,18,18,4], index: 0, kind: input, shape index: {}]   ;;  %s14329_s1 = inlined_call_operand.vmem [shape: f32[16,4,8], index: 1, kind: input, shape index: {}]   ;;  %s14330_s2 = inlined_call_operand.vmem [shape: f32[1,8], index: 2, kind: input, shape index: {}]   ;;  %s14331_s3 = inlined_call_operand.hbm [shape: f32[2,16,2,256], index: 3, kind: output, shape index: {}]  }
   0x1   :  { %10 = vsyncpa [#allocation3 + $0x1], 0  ;;  %s9121_s12 = smov 0   ;;  %s9123_s13 = smov 0  }
   0x2   :  { %s9125_s14 = smov 0   ;;  %s9127_s15 = smov 0  }
   0x3   :  { %s9129_s16 = smov 0   ;;  %s9131_s17 = smov 0  }
   0x4 LB: > { %s8219_s18 = sadd.s32 4294967295, %s9088_s17   ;;  %s8220_s19 = sadd.s32 4294967294, %s9088_s17   ;;  %s9088_s17 = sphi %s9131_s17, %s16_s17   ;;  %s9084_s16 = sphi %s9129_s16, %s14665_s16   ;;  %s9080_s15 = sphi %s9127_s15, %s14664_s15   ;;  %s9076_s14 = sphi %s9125_s14, %s14663_s14   ;;  %s9072_s13 = sphi %s9123_s13, %s14662_s13   ;;  %s9068_s12 = sphi %s9121_s12, %s14661_s12  }
   0x5   : > { %s28_s20 = sadd.s32 1, %s9084_s16  ;;  %s105_s21 = sadd.s32 1, %s9076_s14 }
   0x6   : > { %p30_p0 = scmp.ge.s32.totalorder %s28_s20, 2  ;;  %p115_p1 = scmp.ne.s32.totalorder %s9076_s14, %s9072_s13 }
   0x7   : > { %p116_p2 = scmp.eq.s32.totalorder %s8219_s18, 1  ;;  %p121_p3 = scmp.ne.s32.totalorder %s9072_s13, %s9068_s12 }
   0x8   : > { %s14667_s20 = smov (%p30_p0, %s28_s20), 0  ;;  %p122_p5 = scmp.eq.s32.totalorder %s8220_s19, 1 }
   0x9   : > { %p9161_p4 = por %p116_p2, %p115_p1  ;;  %s100_s23 = ssub.s32 %s9084_s16, %s14667_s20 }
   0xa   : > { %p8223_p6 = scmp.ge.s32.totalorder %s9088_s17, 1  ;;  %p103_p7 = scmp.eq.s32.totalorder %s100_s23, 0 }
   0xb   : > { %p9168_p8 = por %p122_p5, %p121_p3  ;;  %p154_p9 = scmp.lt.s32.totalorder %s9088_s17, 3 }
   0xc   : > { %s9174_s25 = scalar_select %p103_p7, %s9076_s14, %s105_s21  }
   0xd   : > { %p155_p10 = pnand %p8223_p6, %p154_p9 }
   0xf   : > { %158 = sbr.rel (%p155_p10) target bundleno = 2067 (0x813), region = 32 }
  0x14   : > { %vm396_vm0 = vcmask 1043456   ;;  %v8293_v0 = vld [vmem:[%s14329_s1 + $0x8] sm:$0xf]  ;;  %p178_p11 = scmp.lt.s32.totalorder %s9080_s15, 1  ;;  %v8429_v1 = vld [vmem:[%s14329_s1 + $0x18] sm:$0xf] }
  0x15   : > { %8294 = vmatpush.msk.msra.mxu2 %vm396_vm0, %v8293_v0  ;;  %v8327_v2 = vld [vmem:[%s14329_s1 + $0xc] sm:$0xf]  ;;  %v8463_v3 = vld [vmem:[%s14329_s1 + $0x1c] sm:$0xf]  ;;  %v8226_v4 = vld [vmem:[%s14329_s1 + $0x4] sm:$0xf] }
  0x16   : > { %s179_s7 = scalar_select %p178_p11, %s9080_s15, 1  ;;  %8328 = vmatpush.msk.msra.mxu3 %vm396_vm0, %v8327_v2  ;;  %v296_v5 = vld [vmem:[%s14329_s1] sm:$0xf]  ;;  %8227 = vmatpush.msk.msra.mxu0 %vm396_vm0, %v8226_v4  ;;  %v8362_v6 = vld [vmem:[%s14329_s1 + $0x14] sm:$0xf]  ;;  %vm299_vm1 = vcmask 31744  }
  0x17   : > { %8430 = vmatpush.msk.msrb.mxu2 %vm396_vm0, %v8429_v1  ;;  %v8361_v7 = vld [vmem:[%s14329_s1 + $0x10] sm:$0xf]  ;;  %8260 = vmatpush.msk.msra.mxu1 %vm396_vm0, %v296_v5  ;;  %s9090_s5 = smov 8   ;;  %vm1870_vm2 = vcmask 64512   ;;  %vm1904_vm3 = vcmask 1047556   ;;  %s9093_s21 = smov 16  }
  0x18   : > { %8464 = vmatpush.msk.msrb.mxu3 %vm396_vm0, %v8463_v3  ;;  %s8806_s26 = smul.u32 432, %s179_s7  ;;  %8363 = vmatpush.msk.msrb.mxu0 %vm396_vm0, %v8362_v6  ;;  %s9094_s23 = smov 48   ;;  %vm4016_vm4 = vcmask 130048   ;;  %vm4033_vm5 = vcmask 261120   ;;  %vm4050_vm6 = vcmask 392192   ;;  %vm4067_vm7 = vcmask 523264  }
  0x19   : > { %8396 = vmatpush.msk.msrb.mxu1 %vm396_vm0, %v8361_v7  ;;  %s9096_s27 = smov 64   ;;  %s9097_s28 = smov 96   ;;  %vm4084_vm8 = vcmask 654336   ;;  %vm4101_vm9 = vcmask 785408   ;;  %vm4118_vm10 = vcmask 916480   ;;  %vm4295_vm11 = vcmask 1040384  }
  0x1a   : > { %s9213_s29 = scalar_lea.vmem %s14328_s0, %s8806_s26  ;;  %s9095_s26 = smov 32  }
  0x1b   : > { %v190_v8 = vld [vmem:[%s9213_s29 + $0x18] sm:$0xff]  ;;  %v9220_v10 = vld [vmem:[%s9213_s29 + $0x1] sm:$0xff]  ;;  %v9234_v14 = vld [vmem:[%s9213_s29 + $0x9] sm:$0xff]  ;;  %s9098_s30 = smov 80   ;;  %s9099_s4 = smov 112  }
  0x1c   : > { %v9217_v9 = vld [vmem:[%s9213_s29 + $0x19] sm:$0xff]  ;;  %8295 = vmatmul.msk.f32.vlgmr.msra.gmra.mxu2 %vm299_vm1, %v190_v8  ;;  %8228 = vmatmul.msk.f32.vlgmr.msra.gmra.mxu0 %vm299_vm1, %v9220_v10  ;;  %v9231_v13 = vld [vmem:[%s9213_s29 + $0x21] sm:$0xff]  ;;  %v192_v16 = vld [vmem:[%s9213_s29 + $0x30] sm:$0xff]  ;;  %s175_s8 = sand.u32 1, %s9072_s13   ;;  %s9030_s19 = scalar_lea.hbm %s14331_s3, 128 }
  0x1d   : > { %8329 = vmatmul.msk.f32.vlgmr.msra.gmra.mxu3 %vm299_vm1, %v9217_v9  ;;  %v188_v11 = vld [vmem:[%s9213_s29] sm:$0xff]  ;;  %v189_v15 = vld [vmem:[%s9213_s29 + $0x8] sm:$0xff]  ;;  %v9245_v17 = vld [vmem:[%s9213_s29 + $0x31] sm:$0xff]  ;;  %s8224_s9 = sshll.u32 %s175_s8, 6 }
  0x1e   : > { %8261 = vmatmul.msk.f32.vlgmr.msra.gmra.mxu1 %vm299_vm1, %v188_v11  ;;  %v191_v12 = vld [vmem:[%s9213_s29 + $0x20] sm:$0xff]  ;;  %v193_v18 = vld [vmem:[%s9213_s29 + $0x38] sm:$0xff]  ;;  %v194_v20 = vld [vmem:[%s9213_s29 + $0x48] sm:$0xff]  ;;  %s10323_s10 = scalar_lea.vmem [#allocation2], %s8224_s9 }
  0x1f   : > { %v9255_v19 = vld [vmem:[%s9213_s29 + $0x39] sm:$0xff]  ;;  %v9265_v21 = vld [vmem:[%s9213_s29 + $0x49] sm:$0xff]  ;;  %v9275_v23 = vld [vmem:[%s9213_s29 + $0x51] sm:$0xff] }
  0x20   : > { %v195_v22 = vld [vmem:[%s9213_s29 + $0x50] sm:$0xff]  ;;  %v196_v24 = vld [vmem:[%s9213_s29 + $0x60] sm:$0xff]  ;;  %v197_v26 = vld [vmem:[%s9213_s29 + $0x68] sm:$0xff] }
  0x21   : > { %v9285_v25 = vld [vmem:[%s9213_s29 + $0x61] sm:$0xff]  ;;  %v9295_v27 = vld [vmem:[%s9213_s29 + $0x69] sm:$0xff]  ;;  %v198_v28 = vld [vmem:[%s9213_s29 + $0x78] sm:$0xff] }
  0x22   : > { %v9305_v29 = vld [vmem:[%s9213_s29 + $0x79] sm:$0xff]  ;;  %v9315_v31 = vld [vmem:[%s9213_s29 + $0x81] sm:$0xff]  ;;  %v200_v32 = vld [vmem:[%s9213_s29 + $0x90] sm:$0xff] }
  0x23   : > { %v199_v30 = vld [vmem:[%s9213_s29 + $0x80] sm:$0xff]  ;;  %v9325_v33 = vld [vmem:[%s9213_s29 + $0x91] sm:$0xff]  ;;  %v202_v36 = vld [vmem:[%s9213_s29 + $0xa8] sm:$0xff] }
  0x24   : > { %8296 = vmatmul.msk.f32.gmra.mxu2 %vm299_vm1, %v191_v12  ;;  %8229 = vmatmul.msk.f32.gmra.mxu0 %vm299_vm1, %v9234_v14  ;;  %v201_v34 = vld [vmem:[%s9213_s29 + $0x98] sm:$0xff]  ;;  %v9345_v37 = vld [vmem:[%s9213_s29 + $0xa9] sm:$0xff]  ;;  %v204_v40 = vld [vmem:[%s9213_s29 + $0xc0] sm:$0xff] }
  0x25   : > { %8330 = vmatmul.msk.f32.gmra.mxu3 %vm299_vm1, %v9231_v13  ;;  %v9335_v35 = vld [vmem:[%s9213_s29 + $0x99] sm:$0xff]  ;;  %v203_v38 = vld [vmem:[%s9213_s29 + $0xb0] sm:$0xff]  ;;  %v9365_v41 = vld [vmem:[%s9213_s29 + $0xc1] sm:$0xff] }
  0x26   : > { %8262 = vmatmul.msk.f32.gmra.mxu1 %vm299_vm1, %v189_v15  ;;  %v9355_v39 = vld [vmem:[%s9213_s29 + $0xb1] sm:$0xff]  ;;  %v205_v42 = vld [vmem:[%s9213_s29 + $0xc8] sm:$0xff]  ;;  %v9385_v45 = vld [vmem:[%s9213_s29 + $0xd9] sm:$0xff] }
  0x27   : > { %v9375_v43 = vld [vmem:[%s9213_s29 + $0xc9] sm:$0xff]  ;;  %v206_v44 = vld [vmem:[%s9213_s29 + $0xd8] sm:$0xff]  ;;  %v207_v52 = vld [vmem:[%s9213_s29 + $0xe0] sm:$0xff] }
  0x28   : > { %v9395_v53 = vld [vmem:[%s9213_s29 + $0xe1] sm:$0xff]  ;;  %v208_v61 = vld [vmem:[%s9213_s29 + $0xf0] sm:$0xff]  ;;  %v209_v6 = vld [vmem:[%s9213_s29 + $0xf8] sm:$0xff] }
  0x29   : > { %v9407_v62 = vld [vmem:[%s9213_s29 + $0xf1] sm:$0xff]  ;;  %v9419_v7 = vld [vmem:[%s9213_s29 + $0xf9] sm:$0xff] }
  0x2c   : > { %8297 = vmatmul.msk.f32.gmra.mxu2 %vm299_vm1, %v192_v16  ;;  %8230 = vmatmul.msk.f32.gmra.mxu0 %vm299_vm1, %v9217_v9 }
  0x2d   : > { %8331 = vmatmul.msk.f32.gmra.mxu3 %vm299_vm1, %v9245_v17 }
  0x2e   : > { %8263 = vmatmul.msk.f32.gmra.mxu1 %vm299_vm1, %v190_v8 }
  0x34   : > { %8298 = vmatmul.msk.f32.gmra.mxu2 %vm299_vm1, %v193_v18  ;;  %8231 = vmatmul.msk.f32.gmra.mxu0 %vm299_vm1, %v9231_v13 }
  0x35   : > { %8332 = vmatmul.msk.f32.gmra.mxu3 %vm299_vm1, %v9255_v19 }
  0x36   : > { %8264 = vmatmul.msk.f32.gmra.mxu1 %vm299_vm1, %v191_v12 }
  0x3c   : > { %8299 = vmatmul.msk.f32.gmra.mxu2 %vm299_vm1, %v194_v20  ;;  %8232 = vmatmul.msk.f32.gmra.mxu0 %vm299_vm1, %v9245_v17 }
  0x3d   : > { %8333 = vmatmul.msk.f32.gmra.mxu3 %vm299_vm1, %v9265_v21 }
  0x3e   : > { %8265 = vmatmul.msk.f32.gmra.mxu1 %vm299_vm1, %v192_v16 }
  0x44   : > { %8300 = vmatmul.msk.f32.gmra.mxu2 %vm299_vm1, %v195_v22  ;;  %8233 = vmatmul.msk.f32.gmra.mxu0 %vm299_vm1, %v9255_v19 }
  0x45   : > { %8334 = vmatmul.msk.f32.gmra.mxu3 %vm299_vm1, %v9275_v23 }
  0x46   : > { %8266 = vmatmul.msk.f32.gmra.mxu1 %vm299_vm1, %v193_v18 }
  0x4c   : > { %8301 = vmatmul.msk.f32.gmra.mxu2 %vm299_vm1, %v196_v24  ;;  %8234 = vmatmul.msk.f32.gmra.mxu0 %vm299_vm1, %v9265_v21 }
  0x4d   : > { %8335 = vmatmul.msk.f32.gmra.mxu3 %vm299_vm1, %v9285_v25 }
  0x4e   : > { %8267 = vmatmul.msk.f32.gmra.mxu1 %vm299_vm1, %v194_v20 }
  0x54   : > { %8302 = vmatmul.msk.f32.gmra.mxu2 %vm299_vm1, %v197_v26  ;;  %8235 = vmatmul.msk.f32.gmra.mxu0 %vm299_vm1, %v9275_v23 }
  0x55   : > { %8336 = vmatmul.msk.f32.gmra.mxu3 %vm299_vm1, %v9295_v27 }
  0x56   : > { %8268 = vmatmul.msk.f32.gmra.mxu1 %vm299_vm1, %v195_v22  ;;  %v210_v22 = vld [vmem:[%s9213_s29 + $0x108] sm:$0xff] }
  0x5c   : > { %8303 = vmatmul.msk.f32.gmra.mxu2 %vm299_vm1, %v198_v28  ;;  %8236 = vmatmul.msk.f32.gmra.mxu0 %vm299_vm1, %v9285_v25 }
  0x5d   : > { %8337 = vmatmul.msk.f32.gmra.mxu3 %vm299_vm1, %v9305_v29 }
  0x5e   : > { %8269 = vmatmul.msk.f32.gmra.mxu1 %vm299_vm1, %v196_v24  ;;  %v9431_v24 = vld [vmem:[%s9213_s29 + $0x109] sm:$0xff] }
  0x64   : > { %8304 = vmatmul.msk.f32.gmra.mxu2 %vm299_vm1, %v199_v30  ;;  %8237 = vmatmul.msk.f32.gmra.mxu0 %vm299_vm1, %v9295_v27 }
  0x65   : > { %8338 = vmatmul.msk.f32.gmra.mxu3 %vm299_vm1, %v9315_v31 }
  0x66   : > { %8270 = vmatmul.msk.f32.gmra.mxu1 %vm299_vm1, %v197_v26 }
  0x6c   : > { %8305 = vmatmul.msk.f32.gmra.mxu2 %vm299_vm1, %v200_v32  ;;  %8238 = vmatmul.msk.f32.gmra.mxu0 %vm299_vm1, %v9305_v29 }
  0x6d   : > { %8339 = vmatmul.msk.f32.gmra.mxu3 %vm299_vm1, %v9325_v33 }
  0x6e   : > { %8271 = vmatmul.msk.f32.gmra.mxu1 %vm299_vm1, %v198_v28 }
  0x74   : > { %8306 = vmatmul.msk.f32.gmra.mxu2 %vm299_vm1, %v201_v34  ;;  %8239 = vmatmul.msk.f32.gmra.mxu0 %vm299_vm1, %v9315_v31 }
  0x75   : > { %8340 = vmatmul.msk.f32.gmra.mxu3 %vm299_vm1, %v9335_v35 }
  0x76   : > { %8272 = vmatmul.msk.f32.gmra.mxu1 %vm299_vm1, %v199_v30 }
  0x7c   : > { %8307 = vmatmul.msk.f32.gmra.mxu2 %vm299_vm1, %v202_v36  ;;  %8240 = vmatmul.msk.f32.gmra.mxu0 %vm299_vm1, %v9325_v33 }
  0x7d   : > { %8341 = vmatmul.msk.f32.gmra.mxu3 %vm299_vm1, %v9345_v37 }
  0x7e   : > { %8273 = vmatmul.msk.f32.gmra.mxu1 %vm299_vm1, %v200_v32 }
  0x84   : > { %8308 = vmatmul.msk.f32.gmra.mxu2 %vm299_vm1, %v203_v38  ;;  %8241 = vmatmul.msk.f32.gmra.mxu0 %vm299_vm1, %v9335_v35 }
  0x85   : > { %8342 = vmatmul.msk.f32.gmra.mxu3 %vm299_vm1, %v9355_v39 }
  0x86   : > { %8274 = vmatmul.msk.f32.gmra.mxu1 %vm299_vm1, %v201_v34 }
  0x8c   : > { %8309 = vmatmul.msk.f32.gmra.mxu2 %vm299_vm1, %v204_v40  ;;  %8242 = vmatmul.msk.f32.gmra.mxu0 %vm299_vm1, %v9345_v37 }
  0x8d   : > { %8343 = vmatmul.msk.f32.gmra.mxu3 %vm299_vm1, %v9365_v41 }
  0x8e   : > { %8275 = vmatmul.msk.f32.gmra.mxu1 %vm299_vm1, %v202_v36 }
  0x94   : > { %8310 = vmatmul.msk.f32.gmra.mxu2 %vm299_vm1, %v205_v42  ;;  %8243 = vmatmul.msk.f32.gmra.mxu0 %vm299_vm1, %v9355_v39 }
  0x95   : > { %8344 = vmatmul.msk.f32.gmra.mxu3 %vm299_vm1, %v9375_v43 }
  0x96   : > { %8276 = vmatmul.msk.f32.gmra.mxu1 %vm299_vm1, %v203_v38 }
  0x99   : > { %v417_v46 = vpop.f32.mrf.mxu0 }
  0x9b   : > { %v629_v47 = vpop.f32.mrf.mxu1 }
  0x9c   : > { %8311 = vmatmul.msk.f32.gmra.mxu2 %vm299_vm1, %v206_v44  ;;  %v630_v48 = vadd.f32 %v629_v47, %v417_v46  ;;  %8244 = vmatmul.msk.f32.gmra.mxu0 %vm299_vm1, %v9365_v41 }
  0x9d   : > { %8345 = vmatmul.msk.f32.gmra.mxu3 %vm299_vm1, %v9385_v45 }
  0x9e   : > { %8277 = vmatmul.msk.f32.gmra.mxu1 %vm299_vm1, %v204_v40  ;;  %v211_v40 = vld [vmem:[%s9213_s29 + $0x110] sm:$0xff] }
  0x9f   : > { %v753_v49 = vpop.f32.mrf.mxu2 }
  0xa0   : > { %v909_v50 = vpop.f32.mrf.mxu3  ;;  %v849_v51 = vadd.f32 %v753_v49, %v630_v48 }
  0xa1   : > { %v420_v55 = vpop.f32.mrf.mxu0 }
  0xa2   : > { %v9397_v54 = vadd.f32 %v909_v50, %v849_v51 }
  0xa3   : > { %v632_v56 = vpop.f32.mrf.mxu1 }
  0xa4   : > { %8312 = vmatmul.msk.f32.gmra.mxu2 %vm299_vm1, %v207_v52  ;;  %v633_v57 = vadd.f32 %v632_v56, %v420_v55  ;;  %8245 = vmatmul.msk.f32.gmra.mxu0 %vm299_vm1, %v9375_v43  ;;  %v9455_v55 = vld [vmem:[%s9213_s29 + $0x121] sm:$0xff] }
  0xa5   : > { %8346 = vmatmul.msk.f32.gmra.mxu3 %vm299_vm1, %v9395_v53 }
  0xa6   : > { %8278 = vmatmul.msk.f32.gmra.mxu1 %vm299_vm1, %v205_v42  ;;  %v9443_v42 = vld [vmem:[%s9213_s29 + $0x111] sm:$0xff] }
  0xa7   : > { %v756_v58 = vpop.f32.mrf.mxu2 }
  0xa8   : > { %v912_v59 = vpop.f32.mrf.mxu3  ;;  %v850_v60 = vadd.f32 %v756_v58, %v633_v57 }
  0xa9   : > { %v423_v0 = vpop.f32.mrf.mxu0 }
  0xaa   : > { %v9409_v63 = vadd.f32 %v912_v59, %v850_v60 }
  0xab   : > { %v635_v1 = vpop.f32.mrf.mxu1 }
  0xac   : > { %8313 = vmatmul.msk.f32.gmra.mxu2 %vm299_vm1, %v208_v61  ;;  %v636_v2 = vadd.f32 %v635_v1, %v423_v0  ;;  %8246 = vmatmul.msk.f32.gmra.mxu0 %vm299_vm1, %v9385_v45  ;;  %v213_v1 = vld [vmem:[%s9213_s29 + $0x128] sm:$0xff] }
  0xad   : > { %8347 = vmatmul.msk.f32.gmra.mxu3 %vm299_vm1, %v9407_v62 }
  0xae   : > { %8279 = vmatmul.msk.f32.gmra.mxu1 %vm299_vm1, %v206_v44 }
  0xaf   : > { %v759_v3 = vpop.f32.mrf.mxu2 }
  0xb0   : > { %v915_v4 = vpop.f32.mrf.mxu3  ;;  %v851_v5 = vadd.f32 %v759_v3, %v636_v2  ;;  %v9467_v2 = vld [vmem:[%s9213_s29 + $0x129] sm:$0xff] }
  0xb1   : > { %v426_v11 = vpop.f32.mrf.mxu0 }
  0xb2   : > { %v9421_v8 = vadd.f32 %v915_v4, %v851_v5 }
  0xb3   : > { %v638_v12 = vpop.f32.mrf.mxu1 }
  0xb4   : > { %8314 = vmatmul.msk.f32.gmra.mxu2 %vm299_vm1, %v209_v6  ;;  %v639_v15 = vadd.f32 %v638_v12, %v426_v11  ;;  %8247 = vmatmul.msk.f32.gmra.mxu0 %vm299_vm1, %v9395_v53 }
  0xb5   : > { %8348 = vmatmul.msk.f32.gmra.mxu3 %vm299_vm1, %v9419_v7 }
  0xb6   : > { %8280 = vmatmul.msk.f32.gmra.mxu1 %vm299_vm1, %v207_v52  ;;  %v212_v52 = vld [vmem:[%s9213_s29 + $0x120] sm:$0xff] }
  0xb7   : > { %v762_v16 = vpop.f32.mrf.mxu2 }
  0xb8   : > { %v918_v18 = vpop.f32.mrf.mxu3  ;;  %v852_v20 = vadd.f32 %v762_v16, %v639_v15  ;;  %v214_v16 = vld [vmem:[%s9213_s29 + $0x138] sm:$0xff] }
  0xb9   : > { %v429_v28 = vpop.f32.mrf.mxu0 }
  0xba   : > { %v9433_v26 = vadd.f32 %v918_v18, %v852_v20  ;;  %v9479_v18 = vld [vmem:[%s9213_s29 + $0x139] sm:$0xff] }
  0xbb   : > { %v641_v30 = vpop.f32.mrf.mxu1 }
  0xbc   : > { %8315 = vmatmul.msk.f32.gmra.mxu2 %vm299_vm1, %v210_v22  ;;  %v642_v32 = vadd.f32 %v641_v30, %v429_v28  ;;  %8248 = vmatmul.msk.f32.gmra.mxu0 %vm299_vm1, %v9407_v62 }
  0xbd   : > { %8349 = vmatmul.msk.f32.gmra.mxu3 %vm299_vm1, %v9431_v24 }
  0xbe   : > { %8281 = vmatmul.msk.f32.gmra.mxu1 %vm299_vm1, %v208_v61 }
  0xbf   : > { %v765_v34 = vpop.f32.mrf.mxu2 }
  0xc0   : > { %v921_v36 = vpop.f32.mrf.mxu3  ;;  %v853_v38 = vadd.f32 %v765_v34, %v642_v32 }
  0xc1   : > { %v432_v46 = vpop.f32.mrf.mxu0 }
  0xc2   : > { %v9445_v44 = vadd.f32 %v921_v36, %v853_v38  ;;  %v215_v38 = vld [vmem:[%s9213_s29 + $0x140] sm:$0xff] }
  0xc3   : > { %v644_v47 = vpop.f32.mrf.mxu1 }
  0xc4   : > { %8316 = vmatmul.msk.f32.gmra.mxu2 %vm299_vm1, %v211_v40  ;;  %v645_v48 = vadd.f32 %v644_v47, %v432_v46  ;;  %8249 = vmatmul.msk.f32.gmra.mxu0 %vm299_vm1, %v9419_v7 }
  0xc5   : > { %8350 = vmatmul.msk.f32.gmra.mxu3 %vm299_vm1, %v9443_v42 }
  0xc6   : > { %8282 = vmatmul.msk.f32.gmra.mxu1 %vm299_vm1, %v209_v6 }
  0xc7   : > { %v768_v49 = vpop.f32.mrf.mxu2 }
  0xc8   : > { %v924_v50 = vpop.f32.mrf.mxu3  ;;  %v854_v51 = vadd.f32 %v768_v49, %v645_v48 }
  0xc9   : > { %v435_v57 = vpop.f32.mrf.mxu0 }
  0xca   : > { %v9457_v56 = vadd.f32 %v924_v50, %v854_v51 }
  0xcb   : > { %v647_v58 = vpop.f32.mrf.mxu1 }
  0xcc   : > { %8317 = vmatmul.msk.f32.gmra.mxu2 %vm299_vm1, %v212_v52  ;;  %v648_v59 = vadd.f32 %v647_v58, %v435_v57  ;;  %8250 = vmatmul.msk.f32.gmra.mxu0 %vm299_vm1, %v9431_v24  ;;  %v216_v57 = vld [vmem:[%s9213_s29 + $0x150] sm:$0xff] }
  0xcd   : > { %8351 = vmatmul.msk.f32.gmra.mxu3 %vm299_vm1, %v9455_v55  ;;  %v9503_v58 = vld [vmem:[%s9213_s29 + $0x151] sm:$0xff] }
  0xce   : > { %8283 = vmatmul.msk.f32.gmra.mxu1 %vm299_vm1, %v210_v22 }
  0xcf   : > { %v771_v60 = vpop.f32.mrf.mxu2 }
  0xd0   : > { %v927_v61 = vpop.f32.mrf.mxu3  ;;  %v855_v0 = vadd.f32 %v771_v60, %v648_v59 }
  0xd1   : > { %v438_v4 = vpop.f32.mrf.mxu0 }
  0xd2   : > { %v9469_v3 = vadd.f32 %v927_v61, %v855_v0 }
  0xd3   : > { %v650_v5 = vpop.f32.mrf.mxu1 }
  0xd4   : > { %8318 = vmatmul.msk.f32.gmra.mxu2 %vm299_vm1, %v213_v1  ;;  %v651_v6 = vadd.f32 %v650_v5, %v438_v4  ;;  %8251 = vmatmul.msk.f32.gmra.mxu0 %vm299_vm1, %v9443_v42 }
  0xd5   : > { %8352 = vmatmul.msk.f32.gmra.mxu3 %vm299_vm1, %v9467_v2 }
  0xd6   : > { %8284 = vmatmul.msk.f32.gmra.mxu1 %vm299_vm1, %v211_v40  ;;  %v9491_v40 = vld [vmem:[%s9213_s29 + $0x141] sm:$0xff] }
  0xd7   : > { %v774_v11 = vpop.f32.mrf.mxu2 }
  0xd8   : > { %v930_v12 = vpop.f32.mrf.mxu3  ;;  %v856_v15 = vadd.f32 %v774_v11, %v651_v6  ;;  %v217_v6 = vld [vmem:[%s9213_s29 + $0x158] sm:$0xff] }
  0xd9   : > { %v441_v22 = vpop.f32.mrf.mxu0  ;;  %v9515_v11 = vld [vmem:[%s9213_s29 + $0x159] sm:$0xff] }
  0xda   : > { %v9481_v20 = vadd.f32 %v930_v12, %v856_v15 }
  0xdb   : > { %v653_v28 = vpop.f32.mrf.mxu1 }
  0xdc   : > { %8319 = vmatmul.msk.f32.gmra.mxu2 %vm299_vm1, %v214_v16  ;;  %v654_v30 = vadd.f32 %v653_v28, %v441_v22  ;;  %8252 = vmatmul.msk.f32.gmra.mxu0 %vm299_vm1, %v9455_v55 }
  0xdd   : > { %8353 = vmatmul.msk.f32.gmra.mxu3 %vm299_vm1, %v9479_v18 }
  0xde   : > { %8285 = vmatmul.msk.f32.gmra.mxu1 %vm299_vm1, %v212_v52 }
  0xdf   : > { %v777_v32 = vpop.f32.mrf.mxu2 }
  0xe0   : > { %v933_v34 = vpop.f32.mrf.mxu3  ;;  %v857_v36 = vadd.f32 %v777_v32, %v654_v30 }
  0xe1   : > { %v444_v47 = vpop.f32.mrf.mxu0 }
  0xe2   : > { %v9493_v46 = vadd.f32 %v933_v34, %v857_v36  ;;  %v218_v34 = vld [vmem:[%s9213_s29 + $0x168] sm:$0xff] }
  0xe3   : > { %v656_v48 = vpop.f32.mrf.mxu1  ;;  %v9527_v36 = vld [vmem:[%s9213_s29 + $0x169] sm:$0xff] }
  0xe4   : > { %8320 = vmatmul.msk.f32.gmra.mxu2 %vm299_vm1, %v215_v38  ;;  %v657_v49 = vadd.f32 %v656_v48, %v444_v47  ;;  %8253 = vmatmul.msk.f32.gmra.mxu0 %vm299_vm1, %v9467_v2 }
  0xe5   : > { %8354 = vmatmul.msk.f32.gmra.mxu3 %vm299_vm1, %v9491_v40 }
  0xe6   : > { %8286 = vmatmul.msk.f32.gmra.mxu1 %vm299_vm1, %v213_v1 }
  0xe7   : > { %v780_v50 = vpop.f32.mrf.mxu2 }
  0xe8   : > { %v936_v51 = vpop.f32.mrf.mxu3  ;;  %v858_v52 = vadd.f32 %v780_v50, %v657_v49 }
  0xe9   : > { %v447_v60 = vpop.f32.mrf.mxu0 }
  0xea   : > { %v9505_v59 = vadd.f32 %v936_v51, %v858_v52 }
  0xeb   : > { %v659_v61 = vpop.f32.mrf.mxu1 }
  0xec   : > { %8321 = vmatmul.msk.f32.gmra.mxu2 %vm299_vm1, %v216_v57  ;;  %v660_v0 = vadd.f32 %v659_v61, %v447_v60  ;;  %8254 = vmatmul.msk.f32.gmra.mxu0 %vm299_vm1, %v9479_v18  ;;  %v219_v60 = vld [vmem:[%s9213_s29 + $0x170] sm:$0xff] }
  0xed   : > { %8355 = vmatmul.msk.f32.gmra.mxu3 %vm299_vm1, %v9503_v58  ;;  %v9539_v61 = vld [vmem:[%s9213_s29 + $0x171] sm:$0xff] }
  0xee   : > { %8287 = vmatmul.msk.f32.gmra.mxu1 %vm299_vm1, %v214_v16 }
  0xef   : > { %v783_v1 = vpop.f32.mrf.mxu2 }
  0xf0   : > { %v939_v4 = vpop.f32.mrf.mxu3  ;;  %v859_v5 = vadd.f32 %v783_v1, %v660_v0 }
  0xf1   : > { %v450_v15 = vpop.f32.mrf.mxu0 }
  0xf2   : > { %v9517_v12 = vadd.f32 %v939_v4, %v859_v5 }
  0xf3   : > { %v662_v22 = vpop.f32.mrf.mxu1 }
  0xf4   : > { %8322 = vmatmul.msk.f32.gmra.mxu2 %vm299_vm1, %v217_v6  ;;  %v663_v28 = vadd.f32 %v662_v22, %v450_v15  ;;  %8255 = vmatmul.msk.f32.gmra.mxu0 %vm299_vm1, %v9491_v40 }
  0xf5   : > { %8356 = vmatmul.msk.f32.gmra.mxu3 %vm299_vm1, %v9515_v11 }
  0xf6   : > { %8288 = vmatmul.msk.f32.gmra.mxu1 %vm299_vm1, %v215_v38 }
  0xf7   : > { %v786_v16 = vpop.f32.mrf.mxu2 }
  0xf8   : > { %v942_v30 = vpop.f32.mrf.mxu3  ;;  %v860_v32 = vadd.f32 %v786_v16, %v663_v28  ;;  %v220_v28 = vld [vmem:[%s9213_s29 + $0x180] sm:$0xff] }
  0xf9   : > { %v453_v48 = vpop.f32.mrf.mxu0  ;;  %v9551_v16 = vld [vmem:[%s9213_s29 + $0x181] sm:$0xff] }
  0xfa   : > { %v9529_v47 = vadd.f32 %v942_v30, %v860_v32 }
  0xfb   : > { %v665_v49 = vpop.f32.mrf.mxu1 }
  0xfc   : > { %8323 = vmatmul.msk.f32.gmra.mxu2 %vm299_vm1, %v218_v34  ;;  %v666_v50 = vadd.f32 %v665_v49, %v453_v48  ;;  %8256 = vmatmul.msk.f32.gmra.mxu0 %vm299_vm1, %v9503_v58 }
  0xfd   : > { %8357 = vmatmul.msk.f32.gmra.mxu3 %vm299_vm1, %v9527_v36 }
  0xfe   : > { %8289 = vmatmul.msk.f32.gmra.mxu1 %vm299_vm1, %v216_v57 }
  0xff   : > { %v789_v38 = vpop.f32.mrf.mxu2 }
 0x100   : > { %v945_v51 = vpop.f32.mrf.mxu3  ;;  %v861_v52 = vadd.f32 %v789_v38, %v666_v50 }
 0x101   : > { %v456_v1 = vpop.f32.mrf.mxu0 }
 0x102   : > { %v9541_v0 = vadd.f32 %v945_v51, %v861_v52  ;;  %v221_v51 = vld [vmem:[%s9213_s29 + $0x188] sm:$0xff] }
 0x103   : > { %v668_v4 = vpop.f32.mrf.mxu1  ;;  %v9563_v52 = vld [vmem:[%s9213_s29 + $0x189] sm:$0xff] }
 0x104   : > { %8324 = vmatmul.msk.f32.gmra.mxu2 %vm299_vm1, %v219_v60  ;;  %v669_v5 = vadd.f32 %v668_v4, %v456_v1  ;;  %8257 = vmatmul.msk.f32.gmra.mxu0 %vm299_vm1, %v9515_v11 }
 0x105   : > { %8358 = vmatmul.msk.f32.gmra.mxu3 %vm299_vm1, %v9539_v61 }
 0x106   : > { %8290 = vmatmul.msk.f32.gmra.mxu1 %vm299_vm1, %v217_v6 }
 0x107   : > { %v792_v57 = vpop.f32.mrf.mxu2 }
 0x108   : > { %v948_v15 = vpop.f32.mrf.mxu3  ;;  %v862_v22 = vadd.f32 %v792_v57, %v669_v5 }
 0x109   : > { %v459_v32 = vpop.f32.mrf.mxu0 }
 0x10a   : > { %v9553_v30 = vadd.f32 %v948_v15, %v862_v22 }
 0x10b   : > { %v671_v48 = vpop.f32.mrf.mxu1 }
 0x10c   : > { %8325 = vmatmul.msk.f32.gmra.mxu2 %vm299_vm1, %v220_v28  ;;  %v672_v49 = vadd.f32 %v671_v48, %v459_v32  ;;  %8258 = vmatmul.msk.f32.gmra.mxu0 %vm299_vm1, %v9527_v36  ;;  %v262_v28 = vld [vmem:[%s9213_s29 + $0x1a] sm:$0xff] }
 0x10d   : > { %8359 = vmatmul.msk.f32.gmra.mxu3 %vm299_vm1, %v9551_v16 }
 0x10e   : > { %8291 = vmatmul.msk.f32.gmra.mxu1 %vm299_vm1, %v218_v34 }
 0x10f   : > { %v795_v6 = vpop.f32.mrf.mxu2 }
 0x110   : > { %v951_v50 = vpop.f32.mrf.mxu3  ;;  %v863_v38 = vadd.f32 %v795_v6, %v672_v49  ;;  %v260_v6 = vld [vmem:[%s9213_s29 + $0x2] sm:$0xff] }
 0x111   : > { %v462_v4 = vpop.f32.mrf.mxu0 }
 0x112   : > { %v9565_v1 = vadd.f32 %v951_v50, %v863_v38 }
 0x113   : > { %v674_v5 = vpop.f32.mrf.mxu1 }
 0x114   : > { %8326 = vmatmul.msk.f32.gmra.mxu2 %vm299_vm1, %v221_v51  ;;  %v675_v57 = vadd.f32 %v674_v5, %v462_v4  ;;  %8259 = vmatmul.msk.f32.gmra.mxu0 %vm299_vm1, %v9539_v61  ;;  %v263_v4 = vld [vmem:[%s9213_s29 + $0x22] sm:$0xff] }
 0x115   : > { %8360 = vmatmul.msk.f32.gmra.mxu3 %vm299_vm1, %v9563_v52 }
 0x116   : > { %8292 = vmatmul.msk.f32.gmra.mxu1 %vm299_vm1, %v219_v60 }
 0x117   : > { %v798_v34 = vpop.f32.mrf.mxu2 }
 0x118   : > { %v954_v15 = vpop.f32.mrf.mxu3  ;;  %v864_v22 = vadd.f32 %v798_v34, %v675_v57 }
 0x119   : > { %v465_v48 = vpop.f32.mrf.mxu0 }
 0x11a   : > { %v9574_v32 = vadd.f32 %v954_v15, %v864_v22  ;;  %v261_v15 = vld [vmem:[%s9213_s29 + $0xa] sm:$0xff] }
 0x11b   : > { %v677_v49 = vpop.f32.mrf.mxu1 }
 0x11c   : > { %8431 = vmatmul.msk.f32.vlgmr.msrb.gmra.mxu2 %vm299_vm1, %v9217_v9  ;;  %v678_v50 = vadd.f32 %v677_v49, %v465_v48  ;;  %8364 = vmatmul.msk.f32.vlgmr.msrb.gmra.mxu0 %vm299_vm1, %v260_v6  ;;  %v264_v6 = vld [vmem:[%s9213_s29 + $0x32] sm:$0xff] }
 0x11d   : > { %8465 = vmatmul.msk.f32.vlgmr.msrb.gmra.mxu3 %vm299_vm1, %v262_v28 }
 0x11e   : > { %8397 = vmatmul.msk.f32.vlgmr.msrb.gmra.mxu1 %vm299_vm1, %v9220_v10 }
 0x11f   : > { %v801_v60 = vpop.f32.mrf.mxu2 }
 0x120   : > { %v957_v38 = vpop.f32.mrf.mxu3  ;;  %v865_v51 = vadd.f32 %v801_v60, %v678_v50 }
 0x121   : > { %v468_v57 = vpop.f32.mrf.mxu0 }
 0x122   : > { %v9584_v5 = vadd.f32 %v957_v38, %v865_v51 }
 0x123   : > { %v680_v34 = vpop.f32.mrf.mxu1 }
 0x124   : > { %8432 = vmatmul.msk.f32.gmra.mxu2 %vm299_vm1, %v9231_v13  ;;  %v681_v22 = vadd.f32 %v680_v34, %v468_v57  ;;  %8365 = vmatmul.msk.f32.gmra.mxu0 %vm299_vm1, %v261_v15  ;;  %v265_v15 = vld [vmem:[%s9213_s29 + $0x3a] sm:$0xff] }
 0x125   : > { %8466 = vmatmul.msk.f32.gmra.mxu3 %vm299_vm1, %v263_v4 }
 0x126   : > { %8398 = vmatmul.msk.f32.gmra.mxu1 %vm299_vm1, %v9234_v14 }
 0x127   : > { %v804_v10 = vpop.f32.mrf.mxu2 }
 0x128   : > { %v960_v48 = vpop.f32.mrf.mxu3  ;;  %v866_v49 = vadd.f32 %v804_v10, %v681_v22 }
 0x129   : > { %v471_v60 = vpop.f32.mrf.mxu0 }
 0x12a   : > { %v9594_v50 = vadd.f32 %v960_v48, %v866_v49 }
 0x12b   : > { %v683_v38 = vpop.f32.mrf.mxu1 }
 0x12c   : > { %8433 = vmatmul.msk.f32.gmra.mxu2 %vm299_vm1, %v9245_v17  ;;  %v684_v51 = vadd.f32 %v683_v38, %v471_v60  ;;  %8366 = vmatmul.msk.f32.gmra.mxu0 %vm299_vm1, %v262_v28  ;;  %v266_v38 = vld [vmem:[%s9213_s29 + $0x4a] sm:$0xff] }
 0x12d   : > { %8467 = vmatmul.msk.f32.gmra.mxu3 %vm299_vm1, %v264_v6 }
 0x12e   : > { %8399 = vmatmul.msk.f32.gmra.mxu1 %vm299_vm1, %v9217_v9 }
 0x12f   : > { %v807_v14 = vpop.f32.mrf.mxu2 }
 0x130   : > { %v963_v57 = vpop.f32.mrf.mxu3  ;;  %v867_v34 = vadd.f32 %v807_v14, %v684_v51 }
 0x131   : > { %v474_v10 = vpop.f32.mrf.mxu0 }
 0x132   : > { %v9603_v22 = vadd.f32 %v963_v57, %v867_v34 }
 0x133   : > { %v686_v48 = vpop.f32.mrf.mxu1 }
 0x134   : > { %8434 = vmatmul.msk.f32.gmra.mxu2 %vm299_vm1, %v9255_v19  ;;  %v687_v49 = vadd.f32 %v686_v48, %v474_v10  ;;  %8367 = vmatmul.msk.f32.gmra.mxu0 %vm299_vm1, %v263_v4  ;;  %v267_v48 = vld [vmem:[%s9213_s29 + $0x52] sm:$0xff] }
 0x135   : > { %8468 = vmatmul.msk.f32.gmra.mxu3 %vm299_vm1, %v265_v15 }
 0x136   : > { %8400 = vmatmul.msk.f32.gmra.mxu1 %vm299_vm1, %v9231_v13 }
 0x137   : > { %v810_v9 = vpop.f32.mrf.mxu2 }
 0x138   : > { %v966_v28 = vpop.f32.mrf.mxu3  ;;  %v868_v60 = vadd.f32 %v810_v9, %v687_v49 }
 0x139   : > { %v477_v14 = vpop.f32.mrf.mxu0 }
 0x13a   : > { %v9612_v51 = vadd.f32 %v966_v28, %v868_v60 }
 0x13b   : > { %v689_v57 = vpop.f32.mrf.mxu1 }
 0x13c   : > { %8435 = vmatmul.msk.f32.gmra.mxu2 %vm299_vm1, %v9265_v21  ;;  %v690_v34 = vadd.f32 %v689_v57, %v477_v14  ;;  %8368 = vmatmul.msk.f32.gmra.mxu0 %vm299_vm1, %v264_v6  ;;  %v268_v57 = vld [vmem:[%s9213_s29 + $0x62] sm:$0xff] }
 0x13d   : > { %8469 = vmatmul.msk.f32.gmra.mxu3 %vm299_vm1, %v266_v38 }
 0x13e   : > { %8401 = vmatmul.msk.f32.gmra.mxu1 %vm299_vm1, %v9245_v17 }
 0x13f   : > { %v813_v13 = vpop.f32.mrf.mxu2 }
 0x140   : > { %v969_v4 = vpop.f32.mrf.mxu3  ;;  %v869_v10 = vadd.f32 %v813_v13, %v690_v34 }
 0x141   : > { %v480_v9 = vpop.f32.mrf.mxu0 }
 0x142   : > { %v9621_v49 = vadd.f32 %v969_v4, %v869_v10 }
 0x143   : > { %v692_v28 = vpop.f32.mrf.mxu1 }
 0x144   : > { %14349 = vst [vmem:[#allocation5_spill] sm:$0xff] %v9621_v49  ;;  %8436 = vmatmul.msk.f32.gmra.mxu2 %vm299_vm1, %v9275_v23  ;;  %v693_v60 = vadd.f32 %v692_v28, %v480_v9  ;;  %8369 = vmatmul.msk.f32.gmra.mxu0 %vm299_vm1, %v265_v15  ;;  %v269_v28 = vld [vmem:[%s9213_s29 + $0x6a] sm:$0xff] }
 0x145   : > { %8470 = vmatmul.msk.f32.gmra.mxu3 %vm299_vm1, %v267_v48 }
 0x146   : > { %8402 = vmatmul.msk.f32.gmra.mxu1 %vm299_vm1, %v9255_v19 }
 0x147   : > { %v816_v17 = vpop.f32.mrf.mxu2 }
 0x148   : > { %v972_v6 = vpop.f32.mrf.mxu3  ;;  %v870_v14 = vadd.f32 %v816_v17, %v693_v60 }
 0x149   : > { %v483_v13 = vpop.f32.mrf.mxu0 }
 0x14a   : > { %v9630_v34 = vadd.f32 %v972_v6, %v870_v14 }
 0x14b   : > { %v695_v4 = vpop.f32.mrf.mxu1 }
 0x14c   : > { %14350 = vst [vmem:[#allocation6_spill] sm:$0xff] %v9630_v34  ;;  %8437 = vmatmul.msk.f32.gmra.mxu2 %vm299_vm1, %v9285_v25  ;;  %v696_v10 = vadd.f32 %v695_v4, %v483_v13  ;;  %8370 = vmatmul.msk.f32.gmra.mxu0 %vm299_vm1, %v266_v38  ;;  %v270_v4 = vld [vmem:[%s9213_s29 + $0x7a] sm:$0xff] }
 0x14d   : > { %8471 = vmatmul.msk.f32.gmra.mxu3 %vm299_vm1, %v268_v57 }
 0x14e   : > { %8403 = vmatmul.msk.f32.gmra.mxu1 %vm299_vm1, %v9265_v21 }
 0x14f   : > { %v819_v19 = vpop.f32.mrf.mxu2 }
 0x150   : > { %v975_v15 = vpop.f32.mrf.mxu3  ;;  %v871_v9 = vadd.f32 %v819_v19, %v696_v10 }
 0x151   : > { %v486_v17 = vpop.f32.mrf.mxu0 }
 0x152   : > { %v9639_v60 = vadd.f32 %v975_v15, %v871_v9 }
 0x153   : > { %v698_v6 = vpop.f32.mrf.mxu1 }
 0x154   : > { %14351 = vst [vmem:[#allocation7_spill] sm:$0xff] %v9639_v60  ;;  %8438 = vmatmul.msk.f32.gmra.mxu2 %vm299_vm1, %v9295_v27  ;;  %v699_v14 = vadd.f32 %v698_v6, %v486_v17  ;;  %8371 = vmatmul.msk.f32.gmra.mxu0 %vm299_vm1, %v267_v48  ;;  %v271_v6 = vld [vmem:[%s9213_s29 + $0x82] sm:$0xff] }
 0x155   : > { %8472 = vmatmul.msk.f32.gmra.mxu3 %vm299_vm1, %v269_v28 }
 0x156   : > { %8404 = vmatmul.msk.f32.gmra.mxu1 %vm299_vm1, %v9275_v23 }
 0x157   : > { %v822_v21 = vpop.f32.mrf.mxu2 }
 0x158   : > { %v978_v38 = vpop.f32.mrf.mxu3  ;;  %v872_v13 = vadd.f32 %v822_v21, %v699_v14 }
 0x159   : > { %v489_v19 = vpop.f32.mrf.mxu0 }
 0x15a   : > { %v9648_v10 = vadd.f32 %v978_v38, %v872_v13 }
 0x15b   : > { %v701_v15 = vpop.f32.mrf.mxu1 }
 0x15c   : > { %14352 = vst [vmem:[#allocation8_spill] sm:$0xff] %v9648_v10  ;;  %8439 = vmatmul.msk.f32.gmra.mxu2 %vm299_vm1, %v9305_v29  ;;  %v702_v9 = vadd.f32 %v701_v15, %v489_v19  ;;  %8372 = vmatmul.msk.f32.gmra.mxu0 %vm299_vm1, %v268_v57  ;;  %v272_v15 = vld [vmem:[%s9213_s29 + $0x92] sm:$0xff] }
 0x15d   : > { %8473 = vmatmul.msk.f32.gmra.mxu3 %vm299_vm1, %v270_v4 }
 0x15e   : > { %8405 = vmatmul.msk.f32.gmra.mxu1 %vm299_vm1, %v9285_v25 }
 0x15f   : > { %v825_v23 = vpop.f32.mrf.mxu2 }
 0x160   : > { %v981_v48 = vpop.f32.mrf.mxu3  ;;  %v873_v17 = vadd.f32 %v825_v23, %v702_v9 }
 0x161   : > { %v492_v21 = vpop.f32.mrf.mxu0 }
 0x162   : > { %v9657_v14 = vadd.f32 %v981_v48, %v873_v17  ;;  %v273_v17 = vld [vmem:[%s9213_s29 + $0x9a] sm:$0xff] }
 0x163   : > { %v704_v38 = vpop.f32.mrf.mxu1 }
 0x164   : > { %14353 = vst [vmem:[#allocation9_spill] sm:$0xff] %v9657_v14  ;;  %8440 = vmatmul.msk.f32.gmra.mxu2 %vm299_vm1, %v9315_v31  ;;  %v705_v13 = vadd.f32 %v704_v38, %v492_v21  ;;  %8373 = vmatmul.msk.f32.gmra.mxu0 %vm299_vm1, %v269_v28  ;;  %v8894_v14 = vld [vmem:[%s9213_s29 + $0x21] sm:$0xff] }
 0x165   : > { %8474 = vmatmul.msk.f32.gmra.mxu3 %vm299_vm1, %v271_v6 }
 0x166   : > { %8406 = vmatmul.msk.f32.gmra.mxu1 %vm299_vm1, %v9295_v27 }
 0x167   : > { %v828_v25 = vpop.f32.mrf.mxu2 }
 0x168   : > { %v984_v57 = vpop.f32.mrf.mxu3  ;;  %v874_v19 = vadd.f32 %v828_v25, %v705_v13  ;;  %v274_v13 = vld [vmem:[%s9213_s29 + $0xaa] sm:$0xff] }
 0x169   : > { %v9668_v23 = vpop.f32.mrf.mxu0 }
 0x16a   : > { %v9666_v9 = vadd.f32 %v984_v57, %v874_v19  ;;  %14355 = vst [vmem:[#allocation11_spill] sm:$0xff] %v9668_v23  ;;  %v275_v19 = vld [vmem:[%s9213_s29 + $0xb2] sm:$0xff] }
 0x16b   : > { %v9670_v48 = vpop.f32.mrf.mxu1 }
 0x16c   : > { %14354 = vst [vmem:[#allocation10_spill] sm:$0xff] %v9666_v9  ;;  %8441 = vmatmul.msk.f32.gmra.mxu2 %vm299_vm1, %v9325_v33  ;;  %8374 = vmatmul.msk.f32.gmra.mxu0 %vm299_vm1, %v270_v4 }
 0x16d   : > { %14356 = vst [vmem:[#allocation12_spill] sm:$0xff] %v9670_v48  ;;  %8475 = vmatmul.msk.f32.gmra.mxu3 %vm299_vm1, %v272_v15 }
 0x16e   : > { %8407 = vmatmul.msk.f32.gmra.mxu1 %vm299_vm1, %v9305_v29 }
 0x16f   : > { %v9678_v27 = vpop.f32.mrf.mxu2 }
 0x170   : > { %14357 = vst [vmem:[#allocation13_spill] sm:$0xff] %v9678_v27  ;;  %v9680_v28 = vpop.f32.mrf.mxu3 }
 0x171   : > { %14358 = vst [vmem:[#allocation14_spill] sm:$0xff] %v9680_v28  ;;  %v9683_v21 = vpop.f32.mrf.mxu0 }
 0x172   : > { %14359 = vst [vmem:[#allocation15_spill] sm:$0xff] %v9683_v21 }
 0x173   : > { %v9685_v38 = vpop.f32.mrf.mxu1 }
 0x174   : > { %14360 = vst [vmem:[#allocation16_spill] sm:$0xff] %v9685_v38  ;;  %8442 = vmatmul.msk.f32.gmra.mxu2 %vm299_vm1, %v9335_v35  ;;  %8375 = vmatmul.msk.f32.gmra.mxu0 %vm299_vm1, %v271_v6 }
 0x175   : > { %8476 = vmatmul.msk.f32.gmra.mxu3 %vm299_vm1, %v273_v17 }
 0x176   : > { %8408 = vmatmul.msk.f32.gmra.mxu1 %vm299_vm1, %v9315_v31 }
 0x177   : > { %v9693_v29 = vpop.f32.mrf.mxu2 }
 0x178   : > { %14361 = vst [vmem:[#allocation17_spill] sm:$0xff] %v9693_v29  ;;  %v9695_v4 = vpop.f32.mrf.mxu3 }
 0x179   : > { %14362 = vst [vmem:[#allocation18_spill] sm:$0xff] %v9695_v4  ;;  %v9698_v25 = vpop.f32.mrf.mxu0 }
 0x17a   : > { %14363 = vst [vmem:[#allocation19_spill] sm:$0xff] %v9698_v25 }
 0x17b   : > { %v9700_v57 = vpop.f32.mrf.mxu1 }
 0x17c   : > { %14364 = vst [vmem:[#allocation20_spill] sm:$0xff] %v9700_v57  ;;  %8443 = vmatmul.msk.f32.gmra.mxu2 %vm299_vm1, %v9345_v37  ;;  %8376 = vmatmul.msk.f32.gmra.mxu0 %vm299_vm1, %v272_v15 }
 0x17d   : > { %8477 = vmatmul.msk.f32.gmra.mxu3 %vm299_vm1, %v274_v13 }
 0x17e   : > { %8409 = vmatmul.msk.f32.gmra.mxu1 %vm299_vm1, %v9325_v33 }
 0x17f   : > { %v9708_v31 = vpop.f32.mrf.mxu2 }
 0x180   : > { %14365 = vst [vmem:[#allocation21_spill] sm:$0xff] %v9708_v31  ;;  %v9710_v6 = vpop.f32.mrf.mxu3 }
 0x181   : > { %14366 = vst [vmem:[#allocation22_spill] sm:$0xff] %v9710_v6  ;;  %v9713_v4 = vpop.f32.mrf.mxu0  ;;  %v276_v6 = vld [vmem:[%s9213_s29 + $0xc2] sm:$0xff] }
 0x182   : > { %14367 = vst [vmem:[#allocation23_spill] sm:$0xff] %v9713_v4 }
 0x183   : > { %v9715_v25 = vpop.f32.mrf.mxu1 }
 0x184   : > { %14368 = vst [vmem:[#allocation24_spill] sm:$0xff] %v9715_v25  ;;  %8444 = vmatmul.msk.f32.gmra.mxu2 %vm299_vm1, %v9355_v39  ;;  %8377 = vmatmul.msk.f32.gmra.mxu0 %vm299_vm1, %v273_v17 }
 0x185   : > { %8478 = vmatmul.msk.f32.gmra.mxu3 %vm299_vm1, %v275_v19 }
 0x186   : > { %8410 = vmatmul.msk.f32.gmra.mxu1 %vm299_vm1, %v9335_v35 }
 0x187   : > { %v9723_v33 = vpop.f32.mrf.mxu2 }
 0x188   : > { %14369 = vst [vmem:[#allocation25_spill] sm:$0xff] %v9723_v33  ;;  %v9725_v15 = vpop.f32.mrf.mxu3 }
 0x189   : > { %14370 = vst [vmem:[#allocation26_spill] sm:$0xff] %v9725_v15  ;;  %v9728_v31 = vpop.f32.mrf.mxu0  ;;  %v277_v15 = vld [vmem:[%s9213_s29 + $0xca] sm:$0xff] }
 0x18a   : > { %14371 = vst [vmem:[#allocation27_spill] sm:$0xff] %v9728_v31 }
 0x18b   : > { %v9730_v4 = vpop.f32.mrf.mxu1 }
 0x18c   : > { %14372 = vst [vmem:[#allocation28_spill] sm:$0xff] %v9730_v4  ;;  %8445 = vmatmul.msk.f32.gmra.mxu2 %vm299_vm1, %v9365_v41  ;;  %8378 = vmatmul.msk.f32.gmra.mxu0 %vm299_vm1, %v274_v13 }
 0x18d   : > { %8479 = vmatmul.msk.f32.gmra.mxu3 %vm299_vm1, %v276_v6 }
 0x18e   : > { %8411 = vmatmul.msk.f32.gmra.mxu1 %vm299_vm1, %v9345_v37 }
 0x18f   : > { %v9738_v35 = vpop.f32.mrf.mxu2 }
 0x190   : > { %14373 = vst [vmem:[#allocation29_spill] sm:$0xff] %v9738_v35  ;;  %v9740_v17 = vpop.f32.mrf.mxu3 }
 0x191   : > { %14374 = vst [vmem:[#allocation30_spill] sm:$0xff] %v9740_v17  ;;  %v9743_v33 = vpop.f32.mrf.mxu0  ;;  %v278_v17 = vld [vmem:[%s9213_s29 + $0xda] sm:$0xff] }
 0x192   : > { %14375 = vst [vmem:[#allocation31_spill] sm:$0xff] %v9743_v33 }
 0x193   : > { %v9745_v31 = vpop.f32.mrf.mxu1 }
 0x194   : > { %14376 = vst [vmem:[#allocation32_spill] sm:$0xff] %v9745_v31  ;;  %8446 = vmatmul.msk.f32.gmra.mxu2 %vm299_vm1, %v9375_v43  ;;  %8379 = vmatmul.msk.f32.gmra.mxu0 %vm299_vm1, %v275_v19 }
 0x195   : > { %8480 = vmatmul.msk.f32.gmra.mxu3 %vm299_vm1, %v277_v15 }
 0x196   : > { %8412 = vmatmul.msk.f32.gmra.mxu1 %vm299_vm1, %v9355_v39 }
 0x197   : > { %v9753_v37 = vpop.f32.mrf.mxu2 }
 0x198   : > { %14377 = vst [vmem:[#allocation33_spill] sm:$0xff] %v9753_v37  ;;  %v9755_v13 = vpop.f32.mrf.mxu3  ;;  %v279_v37 = vld [vmem:[%s9213_s29 + $0xe2] sm:$0xff] }
 0x199   : > { %14378 = vst [vmem:[#allocation34_spill] sm:$0xff] %v9755_v13  ;;  %v1192_v35 = vpop.f32.mrf.mxu0  ;;  %v9768_v13 = vld [vmem:[%s14330_s2] ss:$0 sm:$0xff] }
 0x19b   : > { %v1308_v33 = vpop.f32.mrf.mxu1 }
 0x19c   : > { %v1309_v4 = vadd.f32 %v1308_v33, %v1192_v35  ;;  %8447 = vmatmul.msk.f32.gmra.mxu2 %vm299_vm1, %v9385_v45  ;;  %8380 = vmatmul.msk.f32.gmra.mxu0 %vm299_vm1, %v276_v6 }
 0x19d   : > { %8481 = vmatmul.msk.f32.gmra.mxu3 %vm299_vm1, %v278_v17 }
 0x19e   : > { %8413 = vmatmul.msk.f32.gmra.mxu1 %vm299_vm1, %v9365_v41 }
 0x19f   : > { %v1426_v19 = vpop.f32.mrf.mxu2 }
 0x1a0   : > { %v1582_v39 = vpop.f32.mrf.mxu3  ;;  %v1522_v31 = vadd.f32 %v1426_v19, %v1309_v4 }
 0x1a1   : > { %v1195_v35 = vpop.f32.mrf.mxu0 }
 0x1a2   : > { %v1678_v33 = vadd.f32 %v1582_v39, %v1522_v31 }
 0x1a3   : > { %v1311_v25 = vpop.f32.mrf.mxu1 }
 0x1a4   : > { %v1312_v57 = vadd.f32 %v1311_v25, %v1195_v35  ;;  %v1710_v29 = vadd.f32 %v9768_v13, %v1678_v33  ;;  %8448 = vmatmul.msk.f32.gmra.mxu2 %vm299_vm1, %v9395_v53  ;;  %8381 = vmatmul.msk.f32.gmra.mxu0 %vm299_vm1, %v277_v15 }
 0x1a5   : > { %8482 = vmatmul.msk.f32.gmra.mxu3 %vm299_vm1, %v279_v37 }
 0x1a6   : > { %8414 = vmatmul.msk.f32.gmra.mxu1 %vm299_vm1, %v9375_v43  ;;  %1774 = vrot.lane.b32.xlu0 %v1710_v29, %s9090_s5 }
 0x1a7   : > { %v1429_v41 = vpop.f32.mrf.mxu2 }
 0x1a8   : > { %v1585_v4 = vpop.f32.mrf.mxu3  ;;  %v1523_v31 = vadd.f32 %v1429_v41, %v1312_v57 }
 0x1a9   : > { %v1198_v25 = vpop.f32.mrf.mxu0 }
 0x1aa   : > { %v1679_v6 = vadd.f32 %v1585_v4, %v1523_v31 }
 0x1ab   : > { %v1314_v19 = vpop.f32.mrf.mxu1 }
 0x1ac   : > { %v1711_v39 = vadd.f32 %v9768_v13, %v1679_v6  ;;  %v1315_v33 = vadd.f32 %v1314_v19, %v1198_v25  ;;  %8449 = vmatmul.msk.f32.gmra.mxu2 %vm299_vm1, %v9407_v62  ;;  %8382 = vmatmul.msk.f32.gmra.mxu0 %vm299_vm1, %v278_v17  ;;  %v280_v6 = vld [vmem:[%s9213_s29 + $0xf2] sm:$0xff] }
 0x1ad   : > { %8483 = vmatmul.msk.f32.gmra.mxu3 %vm299_vm1, %v280_v6 }
 0x1ae   : > { %8415 = vmatmul.msk.f32.gmra.mxu1 %vm299_vm1, %v9385_v45  ;;  %1776 = vrot.lane.b32.xlu0 %v1711_v39, %s9090_s5 }
 0x1af   : > { %v1432_v43 = vpop.f32.mrf.mxu2 }
 0x1b0   : > { %v1588_v29 = vpop.f32.mrf.mxu3  ;;  %v1524_v57 = vadd.f32 %v1432_v43, %v1315_v33 }
 0x1b1   : > { %v1201_v35 = vpop.f32.mrf.mxu0 }
 0x1b2   : > { %v1680_v15 = vadd.f32 %v1588_v29, %v1524_v57 }
 0x1b3   : > { %v1317_v41 = vpop.f32.mrf.mxu1 }
 0x1b4   : > { %v1318_v4 = vadd.f32 %v1317_v41, %v1201_v35  ;;  %v1712_v31 = vadd.f32 %v9768_v13, %v1680_v15  ;;  %8450 = vmatmul.msk.f32.gmra.mxu2 %vm299_vm1, %v9419_v7  ;;  %8383 = vmatmul.msk.f32.gmra.mxu0 %vm299_vm1, %v279_v37 }
 0x1b6   : > { %1778 = vrot.lane.b32.xlu1 %v1712_v31, %s9090_s5  ;;  %8416 = vmatmul.msk.f32.gmra.mxu1 %vm299_vm1, %v9395_v53 }
 0x1b7   : > { %v1435_v45 = vpop.f32.mrf.mxu2 }
 0x1b8   : > { %v1591_v17 = vpop.f32.mrf.mxu3  ;;  %v1525_v25 = vadd.f32 %v1435_v45, %v1318_v4  ;;  %v281_v4 = vld [vmem:[%s9213_s29 + $0xfa] sm:$0xff] }
 0x1b9   : > { %v1204_v39 = vpop.f32.mrf.mxu0  ;;  %8484 = vmatmul.msk.f32.gmra.mxu3 %vm299_vm1, %v281_v4 }
 0x1ba   : > { %v1681_v19 = vadd.f32 %v1591_v17, %v1525_v25 }
 0x1bb   : > { %v1320_v33 = vpop.f32.mrf.mxu1 }
 0x1bc   : > { %v1713_v43 = vadd.f32 %v9768_v13, %v1681_v19  ;;  %v1321_v29 = vadd.f32 %v1320_v33, %v1204_v39  ;;  %8451 = vmatmul.msk.f32.gmra.mxu2 %vm299_vm1, %v9431_v24  ;;  %8384 = vmatmul.msk.f32.gmra.mxu0 %vm299_vm1, %v280_v6 }
 0x1be   : > { %1780 = vrot.lane.b32.xlu1 %v1713_v43, %s9090_s5  ;;  %8417 = vmatmul.msk.f32.gmra.mxu1 %vm299_vm1, %v9407_v62 }
 0x1bf   : > { %v1438_v53 = vpop.f32.mrf.mxu2 }
 0x1c0   : > { %v1594_v37 = vpop.f32.mrf.mxu3  ;;  %v1526_v57 = vadd.f32 %v1438_v53, %v1321_v29 }
 0x1c1   : > { %v1207_v35 = vpop.f32.mrf.mxu0 }
 0x1c2   : > { %v1682_v15 = vadd.f32 %v1594_v37, %v1526_v57 }
 0x1c3   : > { %v1323_v41 = vpop.f32.mrf.mxu1 }
 0x1c4   : > { %v1324_v31 = vadd.f32 %v1323_v41, %v1207_v35  ;;  %v1714_v45 = vadd.f32 %v9768_v13, %v1682_v15  ;;  %8452 = vmatmul.msk.f32.gmra.mxu2 %vm299_vm1, %v9443_v42  ;;  %8385 = vmatmul.msk.f32.gmra.mxu0 %vm299_vm1, %v281_v4 }
 0x1c6   : > { %1782 = vrot.lane.b32.xlu2 %v1714_v45, %s9090_s5  ;;  %8418 = vmatmul.msk.f32.gmra.mxu1 %vm299_vm1, %v9419_v7  ;;  %v282_v45 = vld [vmem:[%s9213_s29 + $0x10a] sm:$0xff] }
 0x1c7   : > { %v1441_v62 = vpop.f32.mrf.mxu2  ;;  %8485 = vmatmul.msk.f32.gmra.mxu3 %vm299_vm1, %v282_v45 }
 0x1c8   : > { %v1597_v6 = vpop.f32.mrf.mxu3  ;;  %v1527_v17 = vadd.f32 %v1441_v62, %v1324_v31 }
 0x1c9   : > { %v1210_v19 = vpop.f32.mrf.mxu0 }
 0x1ca   : > { %v1683_v25 = vadd.f32 %v1597_v6, %v1527_v17 }
 0x1cb   : > { %v1326_v39 = vpop.f32.mrf.mxu1 }
 0x1cc   : > { %v1715_v33 = vadd.f32 %v9768_v13, %v1683_v25  ;;  %v1327_v43 = vadd.f32 %v1326_v39, %v1210_v19  ;;  %8453 = vmatmul.msk.f32.gmra.mxu2 %vm299_vm1, %v9455_v55  ;;  %8386 = vmatmul.msk.f32.gmra.mxu0 %vm299_vm1, %v282_v45 }
 0x1ce   : > { %1784 = vrot.lane.b32.xlu2 %v1715_v33, %s9090_s5  ;;  %8419 = vmatmul.msk.f32.gmra.mxu1 %vm299_vm1, %v9431_v24 }
 0x1cf   : > { %v1444_v29 = vpop.f32.mrf.mxu2 }
 0x1d0   : > { %v1600_v7 = vpop.f32.mrf.mxu3  ;;  %v1528_v53 = vadd.f32 %v1444_v29, %v1327_v43 }
 0x1d1   : > { %v1213_v57 = vpop.f32.mrf.mxu0 }
 0x1d2   : > { %v1684_v37 = vadd.f32 %v1600_v7, %v1528_v53 }
 0x1d3   : > { %v1329_v15 = vpop.f32.mrf.mxu1 }
 0x1d4   : > { %v1716_v35 = vadd.f32 %v9768_v13, %v1684_v37  ;;  %v1330_v41 = vadd.f32 %v1329_v15, %v1213_v57  ;;  %8454 = vmatmul.msk.f32.gmra.mxu2 %vm299_vm1, %v9467_v2 }
 0x1d6   : > { %1786 = vrot.lane.b32.xlu0 %v1716_v35, %s9090_s5  ;;  %8420 = vmatmul.msk.f32.gmra.mxu1 %vm299_vm1, %v9443_v42 }
 0x1d7   : > { %v1447_v4 = vpop.f32.mrf.mxu2 }
 0x1d8   : > { %v1603_v31 = vpop.f32.mrf.mxu3  ;;  %v1529_v24 = vadd.f32 %v1447_v4, %v1330_v41 }
 0x1d9   : > { %v1216_v6 = vpop.f32.mrf.mxu0 }
 0x1da   : > { %v1685_v62 = vadd.f32 %v1603_v31, %v1529_v24 }
 0x1db   : > { %v1332_v17 = vpop.f32.mrf.mxu1 }
 0x1dc   : > { %v1717_v25 = vadd.f32 %v9768_v13, %v1685_v62  ;;  %v1333_v19 = vadd.f32 %v1332_v17, %v1216_v6  ;;  %8455 = vmatmul.msk.f32.gmra.mxu2 %vm299_vm1, %v9479_v18 }
 0x1de   : > { %1788 = vrot.lane.b32.xlu1 %v1717_v25, %s9090_s5  ;;  %8421 = vmatmul.msk.f32.gmra.mxu1 %vm299_vm1, %v9455_v55 }
 0x1df   : > { %v1450_v42 = vpop.f32.mrf.mxu2 }
 0x1e0   : > { %v1606_v39 = vpop.f32.mrf.mxu3  ;;  %v1530_v33 = vadd.f32 %v1450_v42, %v1333_v19 }
 0x1e1   : > { %v1219_v29 = vpop.f32.mrf.mxu0 }
 0x1e2   : > { %v1686_v43 = vadd.f32 %v1606_v39, %v1530_v33  ;;  %v8580_v39 = vld [vmem:[%s14329_s1 + $0x28] sm:$0xf]  ;;  %v283_v33 = vld [vmem:[%s9213_s29 + $0x112] sm:$0xff] }
 0x1e3   : > { %v1335_v7 = vpop.f32.mrf.mxu1  ;;  %8581 = vmatpush.msk.msra.mxu2 %vm396_vm0, %v8580_v39  ;;  %8486 = vmatmul.msk.f32.gmra.mxu3 %vm299_vm1, %v283_v33 }
 0x1e4   : > { %v1718_v53 = vadd.f32 %v9768_v13, %v1686_v43  ;;  %v1336_v37 = vadd.f32 %v1335_v7, %v1219_v29  ;;  %8456 = vmatmul.msk.f32.gmra.mxu2 %vm299_vm1, %v9491_v40  ;;  %8387 = vmatmul.msk.f32.gmra.mxu0 %vm299_vm1, %v283_v33  ;;  %v8614_v7 = vld [vmem:[%s14329_s1 + $0x2c] sm:$0xf] }
 0x1e5   : > { %8615 = vmatpush.msk.msra.mxu3 %vm396_vm0, %v8614_v7 }
 0x1e6   : > { %1790 = vrot.lane.b32.xlu2 %v1718_v53, %s9090_s5  ;;  %8422 = vmatmul.msk.f32.gmra.mxu1 %vm299_vm1, %v9467_v2 }
 0x1e7   : > { %v1453_v57 = vpop.f32.mrf.mxu2 }
 0x1e8   : > { %v1609_v15 = vpop.f32.mrf.mxu3  ;;  %v1531_v55 = vadd.f32 %v1453_v57, %v1336_v37 }
 0x1e9   : > { %v1222_v41 = vpop.f32.mrf.mxu0 }
 0x1ea   : > { %v1687_v35 = vadd.f32 %v1609_v15, %v1531_v55 }
 0x1eb   : > { %v1338_v4 = vpop.f32.mrf.mxu1 }
 0x1ec   : > { %v1719_v31 = vadd.f32 %v9768_v13, %v1687_v35  ;;  %v1339_v24 = vadd.f32 %v1338_v4, %v1222_v41  ;;  %8457 = vmatmul.msk.f32.gmra.mxu2 %vm299_vm1, %v9503_v58  ;;  %v8512_v35 = vld [vmem:[%s14329_s1 + $0x20] sm:$0xf] }
 0x1ed   : > { %8547 = vmatpush.msk.msra.mxu1 %vm396_vm0, %v8512_v35  ;;  %v9092_v35 = vmov 1934713408  }
 0x1ee   : > { %1792 = vrot.lane.b32.xlu0 %v1719_v31, %s9090_s5  ;;  %8423 = vmatmul.msk.f32.gmra.mxu1 %vm299_vm1, %v9479_v18 }
 0x1ef   : > { %v1456_v45 = vpop.f32.mrf.mxu2 }
 0x1f0   : > { %v1612_v2 = vpop.f32.mrf.mxu3  ;;  %v1532_v62 = vadd.f32 %v1456_v45, %v1339_v24 }
 0x1f1   : > { %v1225_v17 = vpop.f32.mrf.mxu0 }
 0x1f2   : > { %v1688_v6 = vadd.f32 %v1612_v2, %v1532_v62 }
 0x1f3   : > { %v1341_v25 = vpop.f32.mrf.mxu1 }
 0x1f4   : > { %v1720_v19 = vadd.f32 %v9768_v13, %v1688_v6  ;;  %v1342_v42 = vadd.f32 %v1341_v25, %v1225_v17  ;;  %8458 = vmatmul.msk.f32.gmra.mxu2 %vm299_vm1, %v9515_v11 }
 0x1f6   : > { %1794 = vrot.lane.b32.xlu1 %v1720_v19, %s9090_s5  ;;  %8424 = vmatmul.msk.f32.gmra.mxu1 %vm299_vm1, %v9491_v40  ;;  %v8513_v40 = vld [vmem:[%s14329_s1 + $0x24] sm:$0xf] }
 0x1f7   : > { %v1459_v18 = vpop.f32.mrf.mxu2  ;;  %8514 = vmatpush.msk.msra.mxu0 %vm396_vm0, %v8513_v40 }
 0x1f8   : > { %v1615_v43 = vpop.f32.mrf.mxu3  ;;  %v1533_v29 = vadd.f32 %v1459_v18, %v1342_v42 }
 0x1f9   : > { %v1228_v37 = vpop.f32.mrf.mxu0 }
 0x1fa   : > { %v1689_v53 = vadd.f32 %v1615_v43, %v1533_v29  ;;  %v284_v43 = vld [vmem:[%s9213_s29 + $0x122] sm:$0xff] }
 0x1fb   : > { %v1344_v57 = vpop.f32.mrf.mxu1  ;;  %8487 = vmatmul.msk.f32.gmra.mxu3 %vm299_vm1, %v284_v43  ;;  %8388 = vmatmul.msk.f32.gmra.mxu0 %vm299_vm1, %v284_v43 }
 0x1fc   : > { %v1721_v15 = vadd.f32 %v9768_v13, %v1689_v53  ;;  %v1345_v55 = vadd.f32 %v1344_v57, %v1228_v37  ;;  %8459 = vmatmul.msk.f32.gmra.mxu2 %vm299_vm1, %v9527_v36 }
 0x1fe   : > { %1796 = vrot.lane.b32.xlu2 %v1721_v15, %s9090_s5  ;;  %8425 = vmatmul.msk.f32.gmra.mxu1 %vm299_vm1, %v9503_v58  ;;  %v9091_v15 = vmov 1983009808  }
 0x1ff   : > { %v1462_v41 = vpop.f32.mrf.mxu2 }
 0x200   : > { %v1618_v4 = vpop.f32.mrf.mxu3  ;;  %v1534_v31 = vadd.f32 %v1462_v41, %v1345_v55  ;;  %v1907_v55 = vunpack.c.l.s4 %v9091_v15  ;;  %v1917_v41 = vunpack.c.l.s4 %v9092_v35  ;;  %v285_v35 = vld [vmem:[%s9213_s29 + $0x12a] sm:$0xff] }
 0x201   : > { %v1231_v45 = vpop.f32.mrf.mxu0 }
 0x202   : > { %v1690_v24 = vadd.f32 %v1618_v4, %v1534_v31  ;;  %v9893_v4 = vunpack.c.0.s8 %v1907_v55 }
 0x203   : > { %v1347_v2 = vpop.f32.mrf.mxu1  ;;  %8488 = vmatmul.msk.f32.gmra.mxu3 %vm299_vm1, %v285_v35  ;;  %8389 = vmatmul.msk.f32.gmra.mxu0 %vm299_vm1, %v285_v35  ;;  %v8879_v35 = vld [vmem:[%s9213_s29 + $0x50] sm:$0xff] }
 0x204   : > { %v1722_v62 = vadd.f32 %v9768_v13, %v1690_v24  ;;  %v1348_v6 = vadd.f32 %v1347_v2, %v1231_v45  ;;  %8460 = vmatmul.msk.f32.gmra.mxu2 %vm299_vm1, %v9539_v61  ;;  %v9897_v2 = vunpack.c.0.s8 %v1917_v41 }
 0x206   : > { %1798 = vrot.lane.b32.xlu0 %v1722_v62, %s9090_s5  ;;  %8426 = vmatmul.msk.f32.gmra.mxu1 %vm299_vm1, %v9515_v11 }
 0x207   : > { %v1465_v17 = vpop.f32.mrf.mxu2 }
 0x208   : > { %v1621_v25 = vpop.f32.mrf.mxu3  ;;  %v1535_v19 = vadd.f32 %v1465_v17, %v1348_v6 }
 0x209   : > { %v1234_v58 = vpop.f32.mrf.mxu0 }
 0x20a   : > { %v1691_v42 = vadd.f32 %v1621_v25, %v1535_v19 }
 0x20b   : > { %v1350_v39 = vpop.f32.mrf.mxu1 }
 0x20c   : > { %v1723_v33 = vadd.f32 %v9768_v13, %v1691_v42  ;;  %v1351_v18 = vadd.f32 %v1350_v39, %v1234_v58  ;;  %8461 = vmatmul.msk.f32.gmra.mxu2 %vm299_vm1, %v9551_v16  ;;  %v8874_v39 = vld [vmem:[%s9213_s29 + $0x30] sm:$0xff] }
 0x20e   : > { %1800 = vrot.lane.b32.xlu1 %v1723_v33, %s9090_s5  ;;  %8427 = vmatmul.msk.f32.gmra.mxu1 %vm299_vm1, %v9527_v36  ;;  %v1040_v36 = vadd.f32 %v9768_v13, %v9397_v54 }
 0x20f   : > { %v1468_v29 = vpop.f32.mrf.mxu2 }
 0x210   : > { %v1624_v7 = vpop.f32.mrf.mxu3  ;;  %v1536_v53 = vadd.f32 %v1468_v29, %v1351_v18  ;;  %v1041_v29 = vadd.f32 %v9768_v13, %v9409_v63 }
 0x211   : > { %v1237_v37 = vpop.f32.mrf.mxu0 }
 0x212   : > { %v1692_v11 = vadd.f32 %v1624_v7, %v1536_v53 }
 0x213   : > { %v1353_v57 = vpop.f32.mrf.mxu1 }
 0x214   : > { %v1724_v40 = vadd.f32 %v9768_v13, %v1692_v11  ;;  %v1354_v16 = vadd.f32 %v1353_v57, %v1237_v37  ;;  %8462 = vmatmul.msk.f32.gmra.mxu2 %vm299_vm1, %v9563_v52  ;;  %v8875_v11 = vld [vmem:[%s9213_s29 + $0x18] sm:$0xff] }
 0x216   : > { %1802 = vrot.lane.b32.xlu2 %v1724_v40, %s9090_s5  ;;  %8428 = vmatmul.msk.f32.gmra.mxu1 %vm299_vm1, %v9539_v61 }
 0x217   : > { %v1471_v31 = vpop.f32.mrf.mxu2 }
 0x218   : > { %v1627_v24 = vpop.f32.mrf.mxu3  ;;  %v1537_v45 = vadd.f32 %v1471_v31, %v1354_v16  ;;  %v1775_v62 = vpop.permute.xlu0 %1774 }
 0x219   : > { %v1871_v52 = vsel %vm1870_vm2, %v1040_v36, %v1775_v62  ;;  %v1240_v57 = vpop.f32.mrf.mxu0 }
 0x21a   : > { %v1903_v6 = vrot.slane %v1871_v52, 4  ;;  %v1909_v17 = vperm.slane %v1871_v52, %v9893_v4  ;;  %v1693_v25 = vadd.f32 %v1627_v24, %v1537_v45  ;;  %v8876_v45 = vld [vmem:[%s9213_s29 + $0x38] sm:$0xff] }
 0x21b   : > { %v1356_v15 = vpop.f32.mrf.mxu1 }
 0x21c   : > { %v1905_v54 = vsel %vm1904_vm3, 0.0, %v1903_v6  ;;  %v1914_v19 = vrot.slane %v1909_v17, 4  ;;  %v9905_v42 = vperm.slane %v1909_v17, %v9897_v2  ;;  %v1725_v58 = vadd.f32 %v9768_v13, %v1693_v25  ;;  %8582 = vmatmul.msk.f32.vlgmr.msra.gmra.mxu2 %vm299_vm1, %v8874_v39  ;;  %v8877_v6 = vld [vmem:[%s9213_s29 + $0x20] sm:$0xff] }
 0x21d   : > { %v1913_v61 = vperm.slane %v1905_v54, %v9893_v4  ;;  %v1357_v63 = vadd.f32 %v1356_v15, %v1240_v57 }
 0x21e   : > { %1804 = vrot.lane.b32.xlu0 %v1725_v58, %s9090_s5  ;;  %v1934_v33 = vrot.slane %v9905_v42, 4  ;;  %v1915_v18 = vsel %vm1904_vm3, 0.0, %v1914_v19  ;;  %8548 = vmatmul.msk.f32.vlgmr.msra.gmra.mxu1 %vm299_vm1, %v8875_v11 }
 0x21f   : > { %v1923_v43 = vperm.slane %v1915_v18, %v9897_v2  ;;  %v1924_v55 = vrot.slane %v1913_v61, 4  ;;  %v1929_v36 = vperm.slane %v1913_v61, %v9897_v2  ;;  %v1474_v24 = vpop.f32.mrf.mxu2 }
 0x220   : > { %v1777_v7 = vpop.permute.xlu0 %1776  ;;  %v1935_v53 = vsel %vm1904_vm3, 0.0, %v1934_v33  ;;  %v1538_v52 = vadd.f32 %v1474_v24, %v1357_v63  ;;  %v1630_v54 = vpop.f32.mrf.mxu3 }
 0x221   : > { %3136 = vrot.lane.b32.xlu2 %v1935_v53, %s9093_s21  ;;  %v1936_v37 = vrot.slane %v1923_v43, 4  ;;  %v1872_v40 = vsel %vm1870_vm2, %v1041_v29, %v1777_v7  ;;  %v1925_v31 = vsel %vm1904_vm3, 0.0, %v1924_v55  ;;  %v1938_v25 = vrot.slane %v1929_v36, 4  ;;  %v8878_v29 = vld [vmem:[%s9213_s29 + $0x48] sm:$0xff]  ;;  %v1243_v63 = vpop.f32.mrf.mxu0 }
 0x222   : > { %v1947_v41 = vperm.slane %v1872_v40, %v9893_v4  ;;  %v1933_v62 = vperm.slane %v1925_v31, %v9897_v2  ;;  %v1942_v19 = vrot.slane %v1872_v40, 4  ;;  %v1694_v58 = vadd.f32 %v1630_v54, %v1538_v52 }
 0x223   : > { %v1937_v16 = vsel %vm1904_vm3, 0.0, %v1936_v37  ;;  %v1939_v18 = vsel %vm1904_vm3, 0.0, %v1938_v25  ;;  %v1042_v31 = vadd.f32 %v9768_v13, %v9421_v8 }
 0x224   : > { %3264 = vrot.lane.b32.xlu1 %v1937_v16, %s9094_s23  ;;  %8583 = vmatmul.msk.f32.gmra.mxu2 %vm299_vm1, %v8876_v45  ;;  %v1952_v17 = vrot.slane %v1947_v41, 4  ;;  %v1940_v61 = vrot.slane %v1933_v62, 4  ;;  %v9939_v33 = vperm.slane %v1947_v41, %v9897_v2  ;;  %v1943_v7 = vsel %vm1904_vm3, 0.0, %v1942_v19  ;;  %v286_v16 = vld [vmem:[%s9213_s29 + $0x13a] sm:$0xff] }
 0x225   : > { %v1726_v53 = vadd.f32 %v9768_v13, %v1694_v58  ;;  %v1951_v15 = vperm.slane %v1943_v7, %v9893_v4  ;;  %8489 = vmatmul.msk.f32.gmra.mxu3 %vm299_vm1, %v286_v16  ;;  %8390 = vmatmul.msk.f32.gmra.mxu0 %vm299_vm1, %v286_v16  ;;  %v8880_v58 = vld [vmem:[%s9213_s29 + $0x60] sm:$0xff] }
 0x226   : > { %3200 = vrot.lane.b32.xlu0 %v1923_v43, %s9095_s26  ;;  %8549 = vmatmul.msk.f32.gmra.mxu1 %vm299_vm1, %v8877_v6  ;;  %v1953_v43 = vsel %vm1904_vm3, 0.0, %v1952_v17  ;;  %v1941_v11 = vsel %vm1904_vm3, 0.0, %v1940_v61  ;;  %v1972_v57 = vrot.slane %v9939_v33, 4  ;;  %v287_v16 = vld [vmem:[%s9213_s29 + $0x142] sm:$0xff] }
 0x227   : > { %v1961_v37 = vperm.slane %v1953_v43, %v9897_v2  ;;  %v1962_v41 = vrot.slane %v1951_v15, 4  ;;  %v1477_v17 = vpop.f32.mrf.mxu2  ;;  %v1967_v25 = vperm.slane %v1951_v15, %v9897_v2 }
 0x228   : > { %v1973_v40 = vsel %vm1904_vm3, 0.0, %v1972_v57 }
 0x229   : > { %3328 = vrot.lane.b32.xlu2 %v1929_v36, %s9096_s27  ;;  %v1974_v55 = vrot.slane %v1961_v37, 4  ;;  %v1779_v36 = vpop.permute.xlu1 %1778  ;;  %v1963_v6 = vsel %vm1904_vm3, 0.0, %v1962_v41  ;;  %v1976_v61 = vrot.slane %v1967_v25, 4 }
 0x22a   : > { %v1873_v52 = vsel %vm1870_vm2, %v1042_v31, %v1779_v36  ;;  %v1971_v8 = vperm.slane %v1963_v6, %v9897_v2  ;;  %v1043_v31 = vadd.f32 %v9768_v13, %v9433_v26 }
 0x22b   : > { %v1975_v24 = vsel %vm1904_vm3, 0.0, %v1974_v55  ;;  %v1985_v54 = vperm.slane %v1873_v52, %v9893_v4 }
 0x22c   : > { %3456 = vrot.lane.b32.xlu1 %v1933_v62, %s9097_s28  ;;  %8584 = vmatmul.msk.f32.gmra.mxu2 %vm299_vm1, %v8878_v29 }
 0x22d   : > { %v1990_v43 = vrot.slane %v1985_v54, 4  ;;  %v9982_v57 = vperm.slane %v1985_v54, %v9897_v2  ;;  %8490 = vmatmul.msk.f32.gmra.mxu3 %vm299_vm1, %v287_v16  ;;  %8391 = vmatmul.msk.f32.gmra.mxu0 %vm299_vm1, %v287_v16 }
 0x22e   : > { %3392 = vrot.lane.b32.xlu0 %v1939_v18, %s9098_s30  ;;  %8550 = vmatmul.msk.f32.gmra.mxu1 %vm299_vm1, %v8874_v39  ;;  %v1359_v39 = vpop.f32.mrf.mxu1  ;;  %v1980_v18 = vrot.slane %v1873_v52, 4 }
 0x22f   : > { %v1360_v62 = vadd.f32 %v1359_v39, %v1243_v63  ;;  %v2010_v36 = vrot.slane %v9982_v57, 4 }
 0x231   : > { %3520 = vrot.lane.b32.xlu2 %v1941_v11, %s9099_s4  ;;  %v1539_v19 = vadd.f32 %v1477_v17, %v1360_v62  ;;  %v1977_v11 = vsel %vm1904_vm3, 0.0, %v1976_v61  ;;  %v1781_v41 = vpop.permute.xlu1 %1780  ;;  %v1246_v62 = vpop.f32.mrf.mxu0 }
 0x232   : > { %v1874_v6 = vsel %vm1870_vm2, %v1043_v31, %v1781_v41 }
 0x233   : > { %v2023_v26 = vperm.slane %v1874_v6, %v9893_v4 }
 0x234   : > { %1806 = vrot.lane.b32.xlu1 %v1726_v53, %s9090_s5  ;;  %8585 = vmatmul.msk.f32.gmra.mxu2 %vm299_vm1, %v8879_v35  ;;  %v1978_v53 = vrot.slane %v1971_v8, 4 }
 0x236   : > { %3584 = vrot.lane.b32.xlu0 %v1973_v40, %s9093_s21  ;;  %8551 = vmatmul.msk.f32.gmra.mxu1 %vm299_vm1, %v8876_v45  ;;  %v1633_v45 = vpop.f32.mrf.mxu3  ;;  %v1979_v55 = vsel %vm1904_vm3, 0.0, %v1978_v53  ;;  %v8881_v40 = vld [vmem:[%s9213_s29 + $0x68] sm:$0xff]  ;;  %v1362_v52 = vpop.f32.mrf.mxu1 }
 0x237   : > { %v1695_v7 = vadd.f32 %v1633_v45, %v1539_v19  ;;  %v1363_v54 = vadd.f32 %v1362_v52, %v1246_v62  ;;  %v1480_v19 = vpop.f32.mrf.mxu2 }
 0x239   : > { %3712 = vrot.lane.b32.xlu2 %v1975_v24, %s9094_s23  ;;  %v1727_v15 = vadd.f32 %v9768_v13, %v1695_v7  ;;  %v10012_v7 = vperm.slane %v2023_v26, %v9897_v2  ;;  %v1249_v41 = vpop.f32.mrf.mxu0 }
 0x23b   : > { %v2048_v16 = vrot.slane %v10012_v7, 4 }
 0x23c   : > { %3648 = vrot.lane.b32.xlu1 %v1961_v37, %s9095_s26  ;;  %8586 = vmatmul.msk.f32.gmra.mxu2 %vm299_vm1, %v8880_v58  ;;  %v1981_v37 = vsel %vm1904_vm3, 0.0, %v1980_v18  ;;  %v1783_v18 = vpop.permute.xlu2 %1782 }
 0x23d   : > { %v1989_v63 = vperm.slane %v1981_v37, %v9893_v4 }
 0x23e   : > { %3776 = vrot.lane.b32.xlu0 %v1967_v25, %s9096_s27  ;;  %8552 = vmatmul.msk.f32.gmra.mxu1 %vm299_vm1, %v8878_v29  ;;  %v1991_v29 = vsel %vm1904_vm3, 0.0, %v1990_v43  ;;  %v2011_v25 = vsel %vm1904_vm3, 0.0, %v2010_v36  ;;  %v1540_v43 = vadd.f32 %v1480_v19, %v1363_v54  ;;  %v1365_v36 = vpop.f32.mrf.mxu1  ;;  %v8884_v54 = vld [vmem:[%s9213_s29 + $0x90] sm:$0xff] }
 0x23f   : > { %v1999_v39 = vperm.slane %v1991_v29, %v9897_v2  ;;  %v2005_v24 = vperm.slane %v1989_v63, %v9897_v2  ;;  %v2000_v61 = vrot.slane %v1989_v63, 4  ;;  %v2028_v63 = vrot.slane %v2023_v26, 4 }
 0x240   : > { %v1044_v26 = vadd.f32 %v9768_v13, %v9445_v44 }
 0x241   : > { %3904 = vrot.lane.b32.xlu2 %v1971_v8, %s9097_s28  ;;  %v2012_v17 = vrot.slane %v1999_v39, 4  ;;  %v2014_v8 = vrot.slane %v2005_v24, 4  ;;  %v2001_v37 = vsel %vm1904_vm3, 0.0, %v2000_v61 }
 0x242   : > { %v2009_v29 = vperm.slane %v2001_v37, %v9897_v2  ;;  %v1875_v61 = vsel %vm1870_vm2, %v1044_v26, %v1783_v18 }
 0x243   : > { %v2013_v45 = vsel %vm1904_vm3, 0.0, %v2012_v17  ;;  %v2015_v53 = vsel %vm1904_vm3, 0.0, %v2014_v8  ;;  %v1366_v17 = vadd.f32 %v1365_v36, %v1249_v41  ;;  %v2061_v44 = vperm.slane %v1875_v61, %v9893_v4 }
 0x244   : > { %3840 = vrot.lane.b32.xlu1 %v1977_v11, %s9098_s30  ;;  %8587 = vmatmul.msk.f32.gmra.mxu2 %vm299_vm1, %v8881_v40  ;;  %v1636_v11 = vpop.f32.mrf.mxu3  ;;  %v10026_v62 = vpop.permute.xlu2 %1784 }
 0x246   : > { %3968 = vrot.lane.b32.xlu0 %v1979_v55, %s9099_s4  ;;  %8553 = vmatmul.msk.f32.gmra.mxu1 %vm299_vm1, %v8879_v35  ;;  %v8882_v35 = vld [vmem:[%s9213_s29 + $0x78] sm:$0xff]  ;;  %v8883_v55 = vld [vmem:[%s9213_s29 + $0x80] sm:$0xff]  ;;  %v1368_v26 = vpop.f32.mrf.mxu1 }
 0x249   : > { %1808 = vrot.lane.b32.xlu2 %v1727_v15, %s9090_s5  ;;  %v2018_v15 = vrot.slane %v1874_v6, 4  ;;  %v2029_v6 = vsel %vm1904_vm3, 0.0, %v2028_v63 }
 0x24a   : > { %v2037_v8 = vperm.slane %v2029_v6, %v9897_v2 }
 0x24c   : > { %3202 = vrot.lane.b32.xlu1 %v1999_v39, %s9095_s26  ;;  %8588 = vmatmul.msk.f32.gmra.mxu2 %vm299_vm1, %v8882_v35  ;;  %v2019_v39 = vsel %vm1904_vm3, 0.0, %v2018_v15 }
 0x24d   : > { %v2027_v52 = vperm.slane %v2019_v39, %v9893_v4  ;;  %v8885_v39 = vld [vmem:[%s9213_s29 + $0x98] sm:$0xff] }
 0x24e   : > { %3138 = vrot.lane.b32.xlu0 %v2011_v25, %s9093_s21  ;;  %8554 = vmatmul.msk.f32.gmra.mxu1 %vm299_vm1, %v8880_v58  ;;  %v1696_v58 = vadd.f32 %v1636_v11, %v1540_v43  ;;  %v288_v25 = vld [vmem:[%s9213_s29 + $0x152] sm:$0xff]  ;;  %v2016_v43 = vrot.slane %v2009_v29, 4  ;;  %v10045_v11 = vpop.permute.xlu2 %1790 }
 0x24f   : > { %8491 = vmatmul.msk.f32.gmra.mxu3 %vm299_vm1, %v288_v25  ;;  %8392 = vmatmul.msk.f32.gmra.mxu0 %vm299_vm1, %v288_v25  ;;  %v2043_v19 = vperm.slane %v2027_v52, %v9897_v2  ;;  %v2038_v37 = vrot.slane %v2027_v52, 4  ;;  %v8886_v25 = vld [vmem:[%s9213_s29 + $0xa8] sm:$0xff] }
 0x250   : > { %v1728_v31 = vadd.f32 %v9768_v13, %v1696_v58  ;;  %v2017_v63 = vsel %vm1904_vm3, 0.0, %v2016_v43 }
 0x251   : > { %3266 = vrot.lane.b32.xlu2 %v2013_v45, %s9094_s23  ;;  %v2052_v58 = vrot.slane %v2043_v19, 4  ;;  %v2039_v41 = vsel %vm1904_vm3, 0.0, %v2038_v37 }
 0x252   : > { %v2047_v52 = vperm.slane %v2039_v41, %v9897_v2 }
 0x254   : > { %3394 = vrot.lane.b32.xlu1 %v2015_v53, %s9098_s30  ;;  %8589 = vmatmul.msk.f32.gmra.mxu2 %vm299_vm1, %v8883_v55  ;;  %v1639_v53 = vpop.f32.mrf.mxu3 }
 0x256   : > { %3330 = vrot.lane.b32.xlu0 %v2005_v24, %s9096_s27  ;;  %8555 = vmatmul.msk.f32.gmra.mxu1 %vm299_vm1, %v8881_v40  ;;  %v2049_v24 = vsel %vm1904_vm3, 0.0, %v2048_v16  ;;  %v1483_v40 = vpop.f32.mrf.mxu2  ;;  %v2056_v16 = vrot.slane %v1875_v61, 4 }
 0x257   : > { %v1541_v45 = vadd.f32 %v1483_v40, %v1366_v17 }
 0x258   : > { %v2057_v36 = vsel %vm1904_vm3, 0.0, %v2056_v16 }
 0x259   : > { %3458 = vrot.lane.b32.xlu2 %v2009_v29, %s9097_s28  ;;  %v1697_v15 = vadd.f32 %v1639_v53, %v1541_v45  ;;  %v2053_v29 = vsel %vm1904_vm3, 0.0, %v2052_v58  ;;  %v2065_v6 = vperm.slane %v2057_v36, %v9893_v4  ;;  %v10074_v53 = vperm.slane %v2061_v44, %v9897_v2 }
 0x25b   : > { %v1729_v18 = vadd.f32 %v9768_v13, %v1697_v15  ;;  %v2081_v45 = vperm.slane %v2065_v6, %v9897_v2 }
 0x25c   : > { %3586 = vrot.lane.b32.xlu1 %v2049_v24, %s9093_s21  ;;  %8590 = vmatmul.msk.f32.gmra.mxu2 %vm299_vm1, %v8884_v54  ;;  %v10059_v24 = vpop.permute.xlu2 %1796 }
 0x25d   : > { %v2090_v58 = vrot.slane %v2081_v45, 4 }
 0x25e   : > { %1810 = vrot.lane.b32.xlu0 %v1728_v31, %s9090_s5  ;;  %8556 = vmatmul.msk.f32.gmra.mxu1 %vm299_vm1, %v8882_v35  ;;  %v2066_v35 = vrot.slane %v2061_v44, 4  ;;  %v2050_v31 = vrot.slane %v2037_v8, 4  ;;  %v1486_v43 = vpop.f32.mrf.mxu2  ;;  %v2086_v44 = vrot.slane %v10074_v53, 4 }
 0x25f   : > { %v2091_v41 = vsel %vm1904_vm3, 0.0, %v2090_v58 }
 0x260   : > { %v2067_v17 = vsel %vm1904_vm3, 0.0, %v2066_v35  ;;  %v2051_v40 = vsel %vm1904_vm3, 0.0, %v2050_v31  ;;  %v1045_v35 = vadd.f32 %v9768_v13, %v9457_v56 }
 0x261   : > { %3650 = vrot.lane.b32.xlu2 %v2037_v8, %s9095_s26  ;;  %v2075_v8 = vperm.slane %v2067_v17, %v9897_v2  ;;  %v2087_v17 = vsel %vm1904_vm3, 0.0, %v2086_v44 }
 0x262   : > { %v1876_v36 = vsel %vm1870_vm2, %v1045_v35, %v10026_v62  ;;  %v8888_v62 = vld [vmem:[%s9213_s29 + $0xc0] sm:$0xff] }
 0x264   : > { %3778 = vrot.lane.b32.xlu1 %v2043_v19, %s9096_s27  ;;  %8591 = vmatmul.msk.f32.gmra.mxu2 %vm299_vm1, %v8885_v39  ;;  %v2054_v19 = vrot.slane %v2047_v52, 4 }
 0x266   : > { %3522 = vrot.lane.b32.xlu0 %v2017_v63, %s9099_s4  ;;  %8557 = vmatmul.msk.f32.gmra.mxu1 %vm299_vm1, %v8883_v55  ;;  %v1252_v55 = vpop.f32.mrf.mxu0  ;;  %v2055_v15 = vsel %vm1904_vm3, 0.0, %v2054_v19  ;;  %v8887_v63 = vld [vmem:[%s9213_s29 + $0xb0] sm:$0xff] }
 0x267   : > { %v1369_v61 = vadd.f32 %v1368_v26, %v1252_v55  ;;  %v2076_v55 = vrot.slane %v2065_v6, 4 }
 0x269   : > { %3842 = vrot.lane.b32.xlu2 %v2053_v29, %s9098_s30  ;;  %v1542_v16 = vadd.f32 %v1486_v43, %v1369_v61  ;;  %v1787_v29 = vpop.permute.xlu0 %1786  ;;  %v2094_v61 = vrot.slane %v1876_v36, 4  ;;  %v2077_v6 = vsel %vm1904_vm3, 0.0, %v2076_v55  ;;  %v1046_v55 = vadd.f32 %v9768_v13, %v9469_v3 }
 0x26c   : > { %1812 = vrot.lane.b32.xlu1 %v1729_v18, %s9090_s5  ;;  %8592 = vmatmul.msk.f32.gmra.mxu2 %vm299_vm1, %v8886_v25  ;;  %v289_v18 = vld [vmem:[%s9213_s29 + $0x15a] sm:$0xff] }
 0x26d   : > { %8492 = vmatmul.msk.f32.gmra.mxu3 %vm299_vm1, %v289_v18  ;;  %8393 = vmatmul.msk.f32.gmra.mxu0 %vm299_vm1, %v289_v18  ;;  %v1489_v18 = vpop.f32.mrf.mxu2 }
 0x26e   : > { %3714 = vrot.lane.b32.xlu0 %v2051_v40, %s9094_s23  ;;  %8558 = vmatmul.msk.f32.gmra.mxu1 %vm299_vm1, %v8884_v54  ;;  %v1642_v54 = vpop.f32.mrf.mxu3  ;;  %v2099_v40 = vperm.slane %v1876_v36, %v9893_v4 }
 0x26f   : > { %v1698_v31 = vadd.f32 %v1642_v54, %v1542_v16  ;;  %v2085_v16 = vperm.slane %v2077_v6, %v9897_v2  ;;  %v1255_v6 = vpop.f32.mrf.mxu0 }
 0x270   : > { %v10076_v37 = vpop.permute.xlu2 %1802  ;;  %v2104_v54 = vrot.slane %v2099_v40, 4 }
 0x271   : > { %3204 = vrot.lane.b32.xlu2 %v2075_v8, %s9095_s26  ;;  %v1730_v26 = vadd.f32 %v9768_v13, %v1698_v31  ;;  %v10109_v43 = vpop.permute.xlu0 %1792  ;;  %v2092_v36 = vrot.slane %v2085_v16, 4 }
 0x274   : > { %3970 = vrot.lane.b32.xlu1 %v2055_v15, %s9099_s4  ;;  %8593 = vmatmul.msk.f32.gmra.mxu2 %vm299_vm1, %v8887_v63  ;;  %v2095_v15 = vsel %vm1904_vm3, 0.0, %v2094_v61 }
 0x275   : > { %v2103_v44 = vperm.slane %v2095_v15, %v9893_v4  ;;  %v1877_v15 = vsel %vm1870_vm2, %v1046_v55, %v1787_v29 }
 0x276   : > { %3906 = vrot.lane.b32.xlu0 %v2047_v52, %s9097_s28  ;;  %v2088_v52 = vrot.slane %v2075_v8, 4  ;;  %8559 = vmatmul.msk.f32.gmra.mxu1 %vm299_vm1, %v8885_v39  ;;  %v10103_v8 = vpop.permute.xlu1 %1788  ;;  %v10107_v39 = vperm.slane %v2099_v40, %v9897_v2  ;;  %v1371_v40 = vpop.f32.mrf.mxu1  ;;  %v2137_v29 = vperm.slane %v1877_v15, %v9893_v4 }
 0x277   : > { %v1372_v3 = vadd.f32 %v1371_v40, %v1255_v6  ;;  %v1645_v6 = vpop.f32.mrf.mxu3 }
 0x278   : > { %v2089_v19 = vsel %vm1904_vm3, 0.0, %v2088_v52  ;;  %v2124_v35 = vrot.slane %v10107_v39, 4  ;;  %v2105_v52 = vsel %vm1904_vm3, 0.0, %v2104_v54  ;;  %v2142_v38 = vrot.slane %v2137_v29, 4 }
 0x279   : > { %3396 = vrot.lane.b32.xlu2 %v2091_v41, %s9098_s30  ;;  %v10122_v41 = vld [vmem:[%s9213_s29 + $0xc8] sm:$0xff]  ;;  %v10129_v31 = vpop.permute.xlu0 %1798  ;;  %v2113_v61 = vperm.slane %v2105_v52, %v9897_v2  ;;  %v1543_v55 = vadd.f32 %v1489_v18, %v1372_v3 }
 0x27b   : > { %v10094_v56 = vpop.permute.xlu2 %3136  ;;  %v2126_v13 = vrot.slane %v2113_v61, 4 }
 0x27c   : > { %3140 = vrot.lane.b32.xlu1 %v2087_v17, %s9093_s21  ;;  %8594 = vmatmul.msk.f32.gmra.mxu2 %vm299_vm1, %v8888_v62  ;;  %v2114_v17 = vrot.slane %v2103_v44, 4 }
 0x27e   : > { %3268 = vrot.lane.b32.xlu0 %v2089_v19, %s9094_s23  ;;  %8560 = vmatmul.msk.f32.gmra.mxu1 %vm299_vm1, %v8886_v25  ;;  %v10126_v25 = vpop.permute.xlu1 %1794  ;;  %v2093_v19 = vsel %vm1904_vm3, 0.0, %v2092_v36  ;;  %v2115_v54 = vsel %vm1904_vm3, 0.0, %v2114_v17  ;;  %v10150_v36 = vpop.f32.mrf.mxu2 }
 0x27f   : > { %v2123_v52 = vperm.slane %v2115_v54, %v9897_v2  ;;  %v1374_v40 = vpop.f32.mrf.mxu1  ;;  %v2132_v54 = vrot.slane %v1877_v15, 4  ;;  %v10187_v15 = vld [vmem:[%s14330_s2] ss:$0 sm:$0xff] }
 0x281   : > { %1814 = vrot.lane.b32.xlu2 %v1730_v26, %s9090_s5  ;;  %v2130_v21 = vrot.slane %v2123_v52, 4 }
 0x283   : > { %v10115_v58 = vpop.permute.xlu2 %3328  ;;  %v2131_v3 = vsel %vm1904_vm3, 0.0, %v2130_v21 }
 0x284   : > { %3332 = vrot.lane.b32.xlu1 %v2081_v45, %s9096_s27  ;;  %8595 = vmatmul.msk.f32.gmra.mxu2 %vm299_vm1, %v10122_v41  ;;  %v2125_v45 = vsel %vm1904_vm3, 0.0, %v2124_v35 }
 0x286   : > { %3460 = vrot.lane.b32.xlu0 %v2085_v16, %s9097_s28  ;;  %8561 = vmatmul.msk.f32.gmra.mxu1 %vm299_vm1, %v8887_v63  ;;  %v2119_v16 = vperm.slane %v2103_v44, %v9897_v2  ;;  %v290_v63 = vld [vmem:[%s9213_s29 + $0x16a] sm:$0xff]  ;;  %v10146_v35 = vpop.permute.xlu1 %1800  ;;  %v10215_v48 = vpop.f32.mrf.mxu2 }
 0x287   : > { %8493 = vmatmul.msk.f32.gmra.mxu3 %vm299_vm1, %v290_v63  ;;  %8394 = vmatmul.msk.f32.gmra.mxu0 %vm299_vm1, %v290_v63  ;;  %v291_v63 = vld [vmem:[%s9213_s29 + $0x172] sm:$0xff] }
 0x288   : > { %v2128_v17 = vrot.slane %v2119_v16, 4 }
 0x289   : > { %3588 = vrot.lane.b32.xlu2 %v2125_v45, %s9093_s21  ;;  %v10154_v45 = vld [vmem:[%s9213_s29 + $0xd8] sm:$0xff] }
 0x28a   : > { %v2129_v28 = vsel %vm1904_vm3, 0.0, %v2128_v17 }
 0x28b   : > { %v10137_v26 = vpop.permute.xlu2 %3520 }
 0x28c   : > { %3524 = vrot.lane.b32.xlu1 %v2093_v19, %s9099_s4  ;;  %8596 = vmatmul.msk.f32.gmra.mxu2 %vm299_vm1, %v10154_v45 }
 0x28e   : > { %3652 = vrot.lane.b32.xlu0 %v2113_v61, %s9095_s26  ;;  %8562 = vmatmul.msk.f32.gmra.mxu1 %vm299_vm1, %v8888_v62  ;;  %v2127_v61 = vsel %vm1904_vm3, 0.0, %v2126_v13  ;;  %v10176_v62 = vperm.slane %v2137_v29, %v9897_v2  ;;  %v2143_v13 = vsel %vm1904_vm3, 0.0, %v2142_v38 }
 0x28f   : > { %8494 = vmatmul.msk.f32.gmra.mxu3 %vm299_vm1, %v291_v63  ;;  %8395 = vmatmul.msk.f32.gmra.mxu0 %vm299_vm1, %v291_v63 }
 0x290   : > { %v10159_v44 = vpop.permute.xlu0 %1804  ;;  %v2162_v21 = vrot.slane %v10176_v62, 4 }
 0x291   : > { %3780 = vrot.lane.b32.xlu2 %v2119_v16, %s9096_s27  ;;  %v1699_v16 = vadd.f32 %v1645_v6, %v1543_v55  ;;  %v2151_v55 = vperm.slane %v2143_v13, %v9897_v2 }
 0x292   : > { %v2163_v13 = vsel %vm1904_vm3, 0.0, %v2162_v21  ;;  %v293_v21 = vld [vmem:[%s9213_s29 + $0x18a] sm:$0xff] }
 0x293   : > { %v10164_v19 = vpop.permute.xlu2 %3712  ;;  %v1731_v17 = vadd.f32 %v10187_v15, %v1699_v16  ;;  %v2164_v63 = vrot.slane %v2151_v55, 4  ;;  %v8892_v16 = vld [vmem:[%s9213_s29 + $0x19] sm:$0xff] }
 0x294   : > { %3716 = vrot.lane.b32.xlu1 %v2127_v61, %s9094_s23  ;;  %v292_v61 = vld [vmem:[%s9213_s29 + $0x182] sm:$0xff] }
 0x296   : > { %v10170_v27 = vpop.permute.xlu1 %3264  ;;  %3844 = vrot.lane.b32.xlu0 %v2129_v28, %s9098_s30  ;;  %v2133_v28 = vsel %vm1904_vm3, 0.0, %v2132_v54  ;;  %v10201_v54 = vpop.f32.mrf.mxu1  ;;  %8563 = vmatmul.msk.f32.gmra.mxu1 %vm299_vm1, %v10122_v41  ;;  %v2165_v41 = vsel %vm1904_vm3, 0.0, %v2164_v63 }
 0x297   : > { %v2141_v38 = vperm.slane %v2133_v28, %v9893_v4  ;;  %8495 = vmatmul.msk.f32.gmra.mxu3 %vm299_vm1, %v292_v61  ;;  %8515 = vmatmul.msk.f32.vlgmr.msra.gmra.mxu0 %vm299_vm1, %v8892_v16  ;;  %v1258_v28 = vpop.f32.mrf.mxu0  ;;  %v10218_v16 = vld [vmem:[%s9213_s29 + $0xe0] sm:$0xff] }
 0x298   : > { %v10178_v18 = vpop.permute.xlu0 %3200  ;;  %8597 = vmatmul.msk.f32.gmra.mxu2 %vm299_vm1, %v10218_v16 }
 0x299   : > { %3972 = vrot.lane.b32.xlu2 %v2131_v3, %s9099_s4  ;;  %v2157_v9 = vperm.slane %v2141_v38, %v9897_v2 }
 0x29b   : > { %v10190_v29 = vpop.permute.xlu2 %3904 }
 0x29c   : > { %3908 = vrot.lane.b32.xlu1 %v2123_v52, %s9097_s28  ;;  %v1047_v52 = vadd.f32 %v10187_v15, %v9481_v20 }
 0x29e   : > { %1816 = vrot.lane.b32.xlu0 %v1731_v17, %s9090_s5  ;;  %v10198_v6 = vpop.permute.xlu1 %3456  ;;  %v2152_v17 = vrot.slane %v2141_v38, 4  ;;  %v1878_v61 = vsel %vm1870_vm2, %v1047_v52, %v10103_v8  ;;  %v2166_v38 = vrot.slane %v2157_v9, 4 }
 0x29f   : > { %v2175_v23 = vperm.slane %v1878_v61, %v9893_v4  ;;  %8496 = vmatmul.msk.f32.gmra.mxu3 %vm299_vm1, %v293_v21  ;;  %8516 = vmatmul.msk.f32.gmra.mxu0 %vm299_vm1, %v8894_v14 }
 0x2a0   : > { %v10209_v3 = vpop.permute.xlu0 %3392  ;;  %v2153_v8 = vsel %vm1904_vm3, 0.0, %v2152_v17 }
 0x2a1   : > { %3142 = vrot.lane.b32.xlu2 %v2163_v13, %s9093_s21  ;;  %v1375_v13 = vadd.f32 %v1374_v40, %v1258_v28  ;;  %v2161_v10 = vperm.slane %v2153_v8, %v9897_v2  ;;  %v2180_v28 = vrot.slane %v2175_v23, 4  ;;  %v10243_v60 = vperm.slane %v2175_v23, %v9897_v2 }
 0x2a3   : > { %v10222_v20 = vpop.permute.xlu2 %1808  ;;  %v1544_v40 = vadd.f32 %v10150_v36, %v1375_v13  ;;  %v2168_v14 = vrot.slane %v2161_v10, 4  ;;  %v4017_v36 = vsel %vm4016_vm4, %v9905_v42, %v10094_v56  ;;  %v2181_v13 = vsel %vm1904_vm3, 0.0, %v2180_v28 }
 0x2a4   : > { %3270 = vrot.lane.b32.xlu1 %v2165_v41, %s9094_s23  ;;  %v1648_v41 = vpop.f32.mrf.mxu3 }
 0x2a5   : > { %v1700_v21 = vadd.f32 %v1648_v41, %v1544_v40  ;;  %v8895_v40 = vld [vmem:[%s9213_s29 + $0x31] sm:$0xff] }
 0x2a6   : > { %3206 = vrot.lane.b32.xlu0 %v2151_v55, %s9095_s26  ;;  %v10231_v52 = vpop.permute.xlu1 %1806  ;;  %v2170_v55 = vrot.slane %v1878_v61, 4  ;;  %v4034_v61 = vsel %vm4033_vm5, %v4017_v36, %v10178_v18  ;;  %v2169_v18 = vsel %vm1904_vm3, 0.0, %v2168_v14 }
 0x2a7   : > { %8616 = vmatmul.msk.f32.vlgmr.msra.gmra.mxu3 %vm299_vm1, %v8895_v40  ;;  %8517 = vmatmul.msk.f32.gmra.mxu0 %vm299_vm1, %v8895_v40  ;;  %v1732_v56 = vadd.f32 %v10187_v15, %v1700_v21  ;;  %v4051_v41 = vsel %vm4050_vm6, %v4034_v61, %v10170_v27  ;;  %v4328_v61 = vlaneseq  ;;  %v8896_v40 = vld [vmem:[%s9213_s29 + $0x39] sm:$0xff] }
 0x2a8   : > { %v3585_v63 = vpop.permute.xlu0 %3584  ;;  %v4068_v14 = vsel %vm4067_vm7, %v4051_v41, %v10115_v58  ;;  %v10301_v41 = vld [vmem:[%s9213_s29 + $0xf0] sm:$0xff] }
 0x2a9   : > { %3334 = vrot.lane.b32.xlu2 %v2157_v9, %s9096_s27  ;;  %v2167_v9 = vsel %vm1904_vm3, 0.0, %v2166_v38  ;;  %v4135_v23 = vsel %vm4016_vm4, %v9939_v33, %v3585_v63  ;;  %v2189_v38 = vperm.slane %v2181_v13, %v9897_v2  ;;  %v2200_v33 = vrot.slane %v10243_v60, 4 }
 0x2aa   : > { %v4085_v36 = vsel %vm4084_vm8, %v4068_v14, %v10209_v3  ;;  %v10288_v3 = vpop.f32.mrf.mxu1  ;;  %8564 = vmatmul.msk.f32.gmra.mxu1 %vm299_vm1, %v10154_v45  ;;  %vm10310_vm12 = vcmp.lt.s32.totalorder %v4328_v61, 256  ;;  %v8898_v61 = vld [vmem:[%s9213_s29 + $0x49] sm:$0xff] }
 0x2ab   : > { %v10239_v17 = vpop.permute.xlu2 %3266  ;;  %v2202_v27 = vrot.slane %v2189_v38, 4 }
 0x2ac   : > { %3462 = vrot.lane.b32.xlu1 %v2161_v10, %s9097_s28  ;;  %v2171_v10 = vsel %vm1904_vm3, 0.0, %v2170_v55 }
 0x2ad   : > { %v2179_v63 = vperm.slane %v2171_v10, %v9893_v4  ;;  %v1048_v10 = vadd.f32 %v10187_v15, %v9493_v46  ;;  %v2203_v46 = vsel %vm1904_vm3, 0.0, %v2202_v27 }
 0x2ae   : > { %3398 = vrot.lane.b32.xlu0 %v2167_v9, %s9098_s30  ;;  %v3649_v8 = vpop.permute.xlu1 %3648  ;;  %v2201_v9 = vsel %vm1904_vm3, 0.0, %v2200_v33 }
 0x2af   : > { %v4151_v42 = vsel %vm4033_vm5, %v4135_v23, %v3649_v8  ;;  %v1261_v8 = vpop.f32.mrf.mxu0  ;;  %v2190_v58 = vrot.slane %v2179_v63, 4  ;;  %8617 = vmatmul.msk.f32.gmra.mxu3 %vm299_vm1, %v8896_v40  ;;  %8518 = vmatmul.msk.f32.gmra.mxu0 %vm299_vm1, %v8896_v40  ;;  %v1879_v33 = vsel %vm1870_vm2, %v1048_v10, %v10045_v11 }
 0x2b0   : > { %v3777_v28 = vpop.permute.xlu0 %3776  ;;  %v4167_v55 = vsel %vm4050_vm6, %v4151_v42, %v10164_v19  ;;  %v4102_v42 = vsel %vm4101_vm9, %v4085_v36, %v10198_v6  ;;  %v1378_v6 = vadd.f32 %v10201_v54, %v1261_v8  ;;  %v2213_v11 = vperm.slane %v1879_v33, %v9893_v4 }
 0x2b1   : > { %3526 = vrot.lane.b32.xlu2 %v2169_v18, %s9099_s4  ;;  %v4183_v13 = vsel %vm4067_vm7, %v4167_v55, %v3777_v28  ;;  %v10298_v18 = vpop.f32.mrf.mxu2  ;;  %8598 = vmatmul.msk.f32.gmra.mxu2 %vm299_vm1, %v10301_v41  ;;  %v2191_v14 = vsel %vm1904_vm3, 0.0, %v2190_v58  ;;  %v4119_v27 = vsel %vm4118_vm10, %v4102_v42, %v10137_v26  ;;  %v2208_v8 = vrot.slane %v1879_v33, 4 }
 0x2b2   : > { %v1545_v26 = vadd.f32 %v10215_v48, %v1378_v6  ;;  %v2218_v40 = vrot.slane %v2213_v11, 4  ;;  %v10350_v33 = vpop.f32.mrf.mxu1  ;;  %8565 = vmatmul.msk.f32.gmra.mxu1 %vm299_vm1, %v10218_v16 }
 0x2b3   : > { %v10270_v21 = vpop.permute.xlu2 %3458 }
 0x2b4   : > { %1818 = vrot.lane.b32.xlu1 %v1732_v56, %s9090_s5  ;;  %v2219_v6 = vsel %vm1904_vm3, 0.0, %v2218_v40 }
 0x2b6   : > { %3590 = vrot.lane.b32.xlu0 %v2201_v9, %s9093_s21  ;;  %v3841_v19 = vpop.permute.xlu1 %3840  ;;  %v2195_v9 = vperm.slane %v2179_v63, %v9897_v2  ;;  %v1651_v63 = vpop.f32.mrf.mxu3 }
 0x2b7   : > { %v4199_v23 = vsel %vm4084_vm8, %v4183_v13, %v3841_v19  ;;  %v2199_v13 = vperm.slane %v2191_v14, %v9897_v2  ;;  %8618 = vmatmul.msk.f32.gmra.mxu3 %vm299_vm1, %v8898_v61  ;;  %8519 = vmatmul.msk.f32.gmra.mxu0 %vm299_vm1, %v8898_v61  ;;  %v1701_v10 = vadd.f32 %v1651_v63, %v1545_v26  ;;  %v8899_v14 = vld [vmem:[%s9213_s29 + $0x51] sm:$0xff] }
 0x2b8   : > { %v3969_v56 = vpop.permute.xlu0 %3968  ;;  %v4215_v28 = vsel %vm4101_vm9, %v4199_v23, %v10190_v29  ;;  %v14379_v29 = vmov 0  ;;  %v1049_v26 = vadd.f32 %v10187_v15, %v9505_v59 }
 0x2b9   : > { %v4231_v45 = vsel %vm4118_vm10, %v4215_v28, %v3969_v56  ;;  %3718 = vrot.lane.b32.xlu2 %v2203_v46, %s9094_s23  ;;  %v14380_v29 = vsel %vm10310_vm12, 4294967295, %v14379_v29  ;;  %v2206_v48 = vrot.slane %v2199_v13, 4  ;;  %v2209_v56 = vsel %vm1904_vm3, 0.0, %v2208_v8 }
 0x2ba   : > { %14381 = vst [vmem:[#allocation35_spill] sm:$0xff] %v14380_v29  ;;  %v4279_v55 = vrot.slane %v4231_v45, 7  ;;  %v10345_v28 = vperm.slane %v2213_v11, %v9897_v2  ;;  %v1733_v46 = vadd.f32 %v10187_v15, %v1701_v10  ;;  %v2227_v11 = vperm.slane %v2219_v6, %v9897_v2 }
 0x2bb   : > { %v10317_v36 = vpop.permute.xlu2 %3650  ;;  %v2207_v45 = vsel %vm1904_vm3, 0.0, %v2206_v48  ;;  %v1880_v8 = vsel %vm1870_vm2, %v1049_v26, %v10109_v43 }
 0x2bc   : > { %v4296_v54 = vsel %vm4295_vm11, %v4119_v27, %v4279_v55  ;;  %3654 = vrot.lane.b32.xlu1 %v2189_v38, %s9095_s26  ;;  %v2204_v38 = vrot.slane %v2195_v9, 4  ;;  %v2217_v27 = vperm.slane %v2209_v56, %v9893_v4  ;;  %v2240_v40 = vrot.slane %v2227_v11, 4  ;;  %v8901_v56 = vld [vmem:[%s9213_s29 + $0x61] sm:$0xff] }
 0x2bd   : > { %4332 = vst.msk [vmem:[%s10323_s10] ss:$2 sm:$0x3] %vm10310_vm12, %v4296_v54  ;;  %v10364_v54 = vld [vmem:[%s9213_s29 + $0xf8] sm:$0xff]  ;;  %v2251_v59 = vperm.slane %v1880_v8, %v9893_v4 }
 0x2be   : > { %3782 = vrot.lane.b32.xlu0 %v2195_v9, %s9096_s27  ;;  %v10331_v19 = vpop.permute.xlu1 %3202  ;;  %v2205_v42 = vsel %vm1904_vm3, 0.0, %v2204_v38  ;;  %v10360_v9 = vpop.f32.mrf.mxu2  ;;  %8599 = vmatmul.msk.f32.gmra.mxu2 %vm299_vm1, %v10364_v54  ;;  %v2233_v61 = vperm.slane %v2217_v27, %v9897_v2  ;;  %v2228_v6 = vrot.slane %v2217_v27, 4 }
 0x2bf   : > { %8619 = vmatmul.msk.f32.gmra.mxu3 %vm299_vm1, %v8899_v14  ;;  %8520 = vmatmul.msk.f32.gmra.mxu0 %vm299_vm1, %v8899_v14  ;;  %v1264_v38 = vpop.f32.mrf.mxu0  ;;  %v1654_v26 = vpop.f32.mrf.mxu3 }
 0x2c0   : > { %v10336_v58 = vpop.permute.xlu0 %3138 }
 0x2c1   : > { %3910 = vrot.lane.b32.xlu2 %v2199_v13, %s9097_s28  ;;  %v2238_v13 = vrot.slane %v10345_v28, 4  ;;  %v4018_v34 = vsel %vm4016_vm4, %v9982_v57, %v10336_v58 }
 0x2c3   : > { %v10339_v23 = vpop.permute.xlu2 %3842  ;;  %v2239_v10 = vsel %vm1904_vm3, 0.0, %v2238_v13 }
 0x2c4   : > { %3846 = vrot.lane.b32.xlu1 %v2205_v42, %s9098_s30  ;;  %v1381_v42 = vadd.f32 %v10288_v3, %v1264_v38  ;;  %v10394_v3 = vperm.slane %v2251_v59, %v9897_v2  ;;  %v2246_v38 = vrot.slane %v1880_v8, 4 }
 0x2c6   : > { %3974 = vrot.lane.b32.xlu0 %v2207_v45, %s9099_s4  ;;  %v10355_v55 = vpop.permute.xlu1 %3394  ;;  %v2241_v45 = vsel %vm1904_vm3, 0.0, %v2240_v40  ;;  %v1546_v14 = vadd.f32 %v10298_v18, %v1381_v42  ;;  %v2276_v42 = vrot.slane %v10394_v3, 4  ;;  %v2247_v8 = vsel %vm1904_vm3, 0.0, %v2246_v38 }
 0x2c7   : > { %8620 = vmatmul.msk.f32.gmra.mxu3 %vm299_vm1, %v8901_v56  ;;  %8521 = vmatmul.msk.f32.gmra.mxu0 %vm299_vm1, %v8901_v56  ;;  %v8902_v56 = vld [vmem:[%s9213_s29 + $0x69] sm:$0xff] }
 0x2c8   : > { %v10368_v16 = vpop.permute.xlu0 %3330  ;;  %v1702_v40 = vadd.f32 %v1654_v26, %v1546_v14  ;;  %v10415_v14 = vpop.f32.mrf.mxu2 }
 0x2c9   : > { %1820 = vrot.lane.b32.xlu2 %v1733_v46, %s9090_s5  ;;  %v2242_v46 = vrot.slane %v2233_v61, 4 }
 0x2ca   : > { %v1734_v26 = vadd.f32 %v10187_v15, %v1702_v40 }
 0x2cb   : > { %v10375_v63 = vpop.permute.xlu2 %3204  ;;  %v2243_v13 = vsel %vm1904_vm3, 0.0, %v2242_v46 }
 0x2cc   : > { %3208 = vrot.lane.b32.xlu1 %v2227_v11, %s9095_s26 }
 0x2ce   : > { %3144 = vrot.lane.b32.xlu0 %v2239_v10, %s9093_s21  ;;  %v3587_v48 = vpop.permute.xlu1 %3586  ;;  %v2229_v10 = vsel %vm1904_vm3, 0.0, %v2228_v6  ;;  %v1267_v6 = vpop.f32.mrf.mxu0 }
 0x2cf   : > { %8621 = vmatmul.msk.f32.gmra.mxu3 %vm299_vm1, %v8902_v56  ;;  %v2237_v18 = vperm.slane %v2229_v10, %v9897_v2  ;;  %8522 = vmatmul.msk.f32.gmra.mxu0 %vm299_vm1, %v8902_v56  ;;  %v1384_v56 = vadd.f32 %v10350_v33, %v1267_v6  ;;  %v4136_v49 = vsel %vm4016_vm4, %v10012_v7, %v3587_v48 }
 0x2d0   : > { %v10388_v43 = vpop.permute.xlu0 %1810  ;;  %v4035_v48 = vsel %vm4033_vm5, %v4018_v34, %v10331_v19  ;;  %v4152_v6 = vsel %vm4033_vm5, %v4136_v49, %v10317_v36 }
 0x2d1   : > { %3272 = vrot.lane.b32.xlu2 %v2241_v45, %s9094_s23  ;;  %v10406_v45 = vpop.f32.mrf.mxu1  ;;  %8566 = vmatmul.msk.f32.gmra.mxu1 %vm299_vm1, %v10301_v41  ;;  %v2255_v41 = vperm.slane %v2247_v8, %v9893_v4  ;;  %v8904_v8 = vld [vmem:[%s9213_s29 + $0x79] sm:$0xff]  ;;  %v1547_v58 = vadd.f32 %v10360_v9, %v1384_v56 }
 0x2d3   : > { %v10396_v11 = vpop.permute.xlu2 %3396  ;;  %v2271_v33 = vperm.slane %v2255_v41, %v9897_v2 }
 0x2d4   : > { %3400 = vrot.lane.b32.xlu1 %v2243_v13, %s9098_s30  ;;  %v10418_v13 = vld [vmem:[%s9213_s29 + $0x108] sm:$0xff] }
 0x2d5   : > { %8600 = vmatmul.msk.f32.gmra.mxu2 %vm299_vm1, %v10418_v13  ;;  %v2280_v9 = vrot.slane %v2271_v33, 4 }
 0x2d6   : > { %3336 = vrot.lane.b32.xlu0 %v2233_v61, %s9096_s27  ;;  %v3779_v27 = vpop.permute.xlu1 %3778  ;;  %v2256_v61 = vrot.slane %v2251_v59, 4  ;;  %v2277_v59 = vsel %vm1904_vm3, 0.0, %v2276_v42  ;;  %v1050_v42 = vadd.f32 %v10187_v15, %v9517_v12  ;;  %v2244_v12 = vrot.slane %v2237_v18, 4 }
 0x2d7   : > { %8622 = vmatmul.msk.f32.gmra.mxu3 %vm299_vm1, %v8904_v8  ;;  %8523 = vmatmul.msk.f32.gmra.mxu0 %vm299_vm1, %v8904_v8 }
 0x2d8   : > { %v10412_v46 = vpop.permute.xlu0 %3522  ;;  %v2257_v38 = vsel %vm1904_vm3, 0.0, %v2256_v61  ;;  %v1881_v7 = vsel %vm1870_vm2, %v1050_v42, %v10126_v25  ;;  %v4052_v25 = vsel %vm4050_vm6, %v4035_v48, %v10239_v17  ;;  %v8905_v42 = vld [vmem:[%s9213_s29 + $0x81] sm:$0xff] }
 0x2d9   : > { %3464 = vrot.lane.b32.xlu2 %v2237_v18, %s9097_s28  ;;  %v2265_v61 = vperm.slane %v2257_v38, %v9897_v2  ;;  %v2266_v38 = vrot.slane %v2255_v41, 4  ;;  %v2289_v56 = vperm.slane %v1881_v7, %v9893_v4  ;;  %v2284_v49 = vrot.slane %v1881_v7, 4 }
 0x2da   : > { %v4069_v36 = vsel %vm4067_vm7, %v4052_v25, %v10368_v16  ;;  %v2245_v18 = vsel %vm1904_vm3, 0.0, %v2244_v12 }
 0x2db   : > { %v10424_v10 = vpop.permute.xlu2 %1814  ;;  %v2267_v17 = vsel %vm1904_vm3, 0.0, %v2266_v38  ;;  %v4086_v16 = vsel %vm4084_vm8, %v4069_v36, %v10355_v55  ;;  %v2285_v48 = vsel %vm1904_vm3, 0.0, %v2284_v49  ;;  %v2278_v12 = vrot.slane %v2265_v61, 4  ;;  %v1270_v36 = vpop.f32.mrf.mxu0 }
 0x2dc   : > { %3592 = vrot.lane.b32.xlu1 %v2277_v59, %s9093_s21  ;;  %v4103_v55 = vsel %vm4101_vm9, %v4086_v16, %v10270_v21 }
 0x2dd   : > { %v4120_v25 = vsel %vm4118_vm10, %v4103_v55, %v10412_v46  ;;  %v2279_v49 = vsel %vm1904_vm3, 0.0, %v2278_v12  ;;  %v10525_v12 = vpop.f32.mrf.mxu1  ;;  %8567 = vmatmul.msk.f32.gmra.mxu1 %vm299_vm1, %v10364_v54  ;;  %v8649_v54 = vld [vmem:[%s14329_s1 + $0x34] sm:$0xf] }
 0x2de   : > { %1822 = vrot.lane.b32.xlu0 %v1734_v26, %s9090_s5  ;;  %v10436_v40 = vpop.permute.xlu1 %1812  ;;  %v1657_v26 = vpop.f32.mrf.mxu3  ;;  %8650 = vmatpush.msk.msrb.mxu0 %vm396_vm0, %v8649_v54 }
 0x2df   : > { %v1703_v34 = vadd.f32 %v1657_v26, %v1547_v58  ;;  %8623 = vmatmul.msk.f32.gmra.mxu3 %vm299_vm1, %v8905_v42  ;;  %8524 = vmatmul.msk.f32.gmra.mxu0 %vm299_vm1, %v8905_v42 }
 0x2e0   : > { %v3715_v57 = vpop.permute.xlu0 %3714 }
 0x2e1   : > { %3656 = vrot.lane.b32.xlu2 %v2265_v61, %s9095_s26  ;;  %v4168_v59 = vsel %vm4050_vm6, %v4152_v6, %v3715_v57  ;;  %v2281_v57 = vsel %vm1904_vm3, 0.0, %v2280_v9  ;;  %v2275_v9 = vperm.slane %v2267_v17, %v9897_v2  ;;  %v10510_v17 = vperm.slane %v2289_v56, %v9897_v2 }
 0x2e2   : > { %v4184_v19 = vsel %vm4067_vm7, %v4168_v59, %v3779_v27  ;;  %v1735_v27 = vadd.f32 %v10187_v15, %v1703_v34 }
 0x2e3   : > { %v10454_v8 = vpop.permute.xlu2 %3588  ;;  %v4200_v7 = vsel %vm4084_vm8, %v4184_v19, %v10339_v23  ;;  %v10485_v23 = vperm.slane %v2285_v48, %v9893_v4  ;;  %v8906_v19 = vld [vmem:[%s9213_s29 + $0x91] sm:$0xff] }
 0x2e4   : > { %3784 = vrot.lane.b32.xlu1 %v2271_v33, %s9096_s27  ;;  %v2294_v33 = vrot.slane %v2289_v56, 4  ;;  %v2314_v56 = vrot.slane %v10510_v17, 4  ;;  %v4137_v54 = vsel %vm4016_vm4, %v10107_v39, %v10454_v8 }
 0x2e5   : > { %v2309_v42 = vperm.slane %v10485_v23, %v9897_v2 }
 0x2e6   : > { %3528 = vrot.lane.b32.xlu0 %v2245_v18, %s9099_s4  ;;  %v3971_v41 = vpop.permute.xlu1 %3970  ;;  %v2295_v61 = vsel %vm1904_vm3, 0.0, %v2294_v33  ;;  %v2282_v18 = vrot.slane %v2275_v9, 4  ;;  %v1660_v48 = vpop.f32.mrf.mxu3 }
 0x2e7   : > { %8624 = vmatmul.msk.f32.gmra.mxu3 %vm299_vm1, %v8906_v19  ;;  %v2303_v46 = vperm.slane %v2295_v61, %v9897_v2  ;;  %8525 = vmatmul.msk.f32.gmra.mxu0 %vm299_vm1, %v8906_v19  ;;  %v10544_v61 = vpop.f32.mrf.mxu2 }
 0x2e8   : > { %v3907_v58 = vpop.permute.xlu0 %3906  ;;  %v2283_v16 = vsel %vm1904_vm3, 0.0, %v2282_v18 }
 0x2e9   : > { %v4216_v6 = vsel %vm4101_vm9, %v4200_v7, %v3907_v58  ;;  %3848 = vrot.lane.b32.xlu2 %v2281_v57, %s9098_s30  ;;  %v1387_v57 = vadd.f32 %v10406_v45, %v1270_v36  ;;  %v1051_v45 = vadd.f32 %v10187_v15, %v9529_v47  ;;  %v2315_v36 = vsel %vm1904_vm3, 0.0, %v2314_v56 }
 0x2ea   : > { %v4232_v26 = vsel %vm4118_vm10, %v4216_v6, %v3971_v41  ;;  %v8907_v6 = vld [vmem:[%s9213_s29 + $0x99] sm:$0xff] }
 0x2eb   : > { %v4280_v59 = vrot.slane %v4232_v26, 7  ;;  %v10481_v38 = vpop.permute.xlu2 %3780  ;;  %v1548_v58 = vadd.f32 %v10415_v14, %v1387_v57  ;;  %v8716_v14 = vld [vmem:[%s14329_s1 + $0x38] sm:$0xf]  ;;  %v8750_v26 = vld [vmem:[%s14329_s1 + $0x3c] sm:$0xf] }
 0x2ec   : > { %1824 = vrot.lane.b32.xlu1 %v1735_v27, %s9090_s5  ;;  %v2318_v27 = vrot.slane %v2309_v42, 4  ;;  %8717 = vmatpush.msk.msrb.mxu2 %vm396_vm0, %v8716_v14 }
 0x2ed   : > { %v4297_v34 = vsel %vm4295_vm11, %v4120_v25, %v4280_v59  ;;  %8751 = vmatpush.msk.msrb.mxu3 %vm396_vm0, %v8750_v26  ;;  %v1882_v59 = vsel %vm1870_vm2, %v1051_v45, %v10059_v24  ;;  %v2316_v25 = vrot.slane %v2303_v46, 4  ;;  %v8648_v24 = vld [vmem:[%s14329_s1 + $0x30] sm:$0xf] }
 0x2ee   : > { %8497 = vst.msk [vmem:[%s10323_s10 + $0x4] ss:$2 sm:$0x3] %vm10310_vm12, %v4297_v34  ;;  %3720 = vrot.lane.b32.xlu0 %v2279_v49, %s9094_s23  ;;  %v10497_v21 = vpop.permute.xlu1 %3140  ;;  %v2319_v47 = vsel %vm1904_vm3, 0.0, %v2318_v27  ;;  %v10547_v34 = vld [vmem:[%s9213_s29 + $0x110] sm:$0xff]  ;;  %8683 = vmatpush.msk.msrb.mxu1 %vm396_vm0, %v8648_v24  ;;  %v2327_v19 = vperm.slane %v1882_v59, %v9893_v4 }
 0x2ef   : > { %8625 = vmatmul.msk.f32.gmra.mxu3 %vm299_vm1, %v8907_v6  ;;  %8526 = vmatmul.msk.f32.gmra.mxu0 %vm299_vm1, %v8907_v6  ;;  %v2317_v57 = vsel %vm1904_vm3, 0.0, %v2316_v25  ;;  %v1273_v25 = vpop.f32.mrf.mxu0 }
 0x2f0   : > { %v10503_v41 = vpop.permute.xlu0 %3268  ;;  %8601 = vmatmul.msk.f32.gmra.mxu2 %vm299_vm1, %v10547_v34  ;;  %v2332_v26 = vrot.slane %v2327_v19, 4 }
 0x2f1   : > { %3210 = vrot.lane.b32.xlu2 %v2303_v46, %s9095_s26  ;;  %v2304_v46 = vrot.slane %v10485_v23, 4 }
 0x2f2   : > { %v2333_v39 = vsel %vm1904_vm3, 0.0, %v2332_v26 }
 0x2f3   : > { %v10512_v33 = vpop.permute.xlu2 %3972  ;;  %v2305_v23 = vsel %vm1904_vm3, 0.0, %v2304_v46 }
 0x2f4   : > { %3976 = vrot.lane.b32.xlu1 %v2283_v16, %s9099_s4  ;;  %v2322_v16 = vrot.slane %v1882_v59, 4  ;;  %v2313_v14 = vperm.slane %v2305_v23, %v9897_v2 }
 0x2f6   : > { %3912 = vrot.lane.b32.xlu0 %v2275_v9, %s9097_s28  ;;  %v10518_v7 = vpop.permute.xlu1 %3332  ;;  %v1704_v9 = vadd.f32 %v1660_v48, %v1548_v58  ;;  %v8909_v58 = vld [vmem:[%s9213_s29 + $0xa9] sm:$0xff]  ;;  %v10574_v48 = vperm.slane %v2327_v19, %v9897_v2  ;;  %v2323_v45 = vsel %vm1904_vm3, 0.0, %v2322_v16  ;;  %v1052_v16 = vadd.f32 %v10187_v15, %v9541_v0 }
 0x2f7   : > { %8626 = vmatmul.msk.f32.gmra.mxu3 %vm299_vm1, %v8909_v58  ;;  %8527 = vmatmul.msk.f32.gmra.mxu0 %vm299_vm1, %v8909_v58  ;;  %v10619_v26 = vpop.f32.mrf.mxu0 }
 0x2f8   : > { %v10536_v55 = vpop.permute.xlu0 %3460  ;;  %v1736_v18 = vadd.f32 %v10187_v15, %v1704_v9  ;;  %v2352_v59 = vrot.slane %v10574_v48, 4  ;;  %v2331_v9 = vperm.slane %v2323_v45, %v9893_v4  ;;  %v1883_v0 = vsel %vm1870_vm2, %v1052_v16, %v10129_v31 }
 0x2f9   : > { %3402 = vrot.lane.b32.xlu2 %v2319_v47, %s9098_s30  ;;  %v4019_v47 = vsel %vm4016_vm4, %v10074_v53, %v10497_v21 }
 0x2fa   : > { %v4036_v53 = vsel %vm4033_vm5, %v4019_v47, %v10375_v63  ;;  %v2342_v8 = vrot.slane %v2331_v9, 4 }
 0x2fb   : > { %v10557_v49 = vpop.permute.xlu2 %3142  ;;  %v4053_v63 = vsel %vm4050_vm6, %v4036_v53, %v10503_v41  ;;  %v2347_v41 = vperm.slane %v2331_v9, %v9897_v2  ;;  %v1390_v9 = vadd.f32 %v10525_v12, %v1273_v25 }
 0x2fc   : > { %3146 = vrot.lane.b32.xlu1 %v2315_v36, %s9093_s21  ;;  %v8910_v36 = vld [vmem:[%s9213_s29 + $0xb1] sm:$0xff]  ;;  %v4070_v58 = vsel %vm4067_vm7, %v4053_v63, %v10518_v7  ;;  %v2343_v7 = vsel %vm1904_vm3, 0.0, %v2342_v8 }
 0x2fd   : > { %v4087_v47 = vsel %vm4084_vm8, %v4070_v58, %v10396_v11  ;;  %v2365_v11 = vperm.slane %v1883_v0, %v9893_v4  ;;  %v2351_v25 = vperm.slane %v2343_v7, %v9897_v2  ;;  %v1549_v8 = vadd.f32 %v10544_v61, %v1390_v9  ;;  %v8913_v7 = vld [vmem:[%s9213_s29 + $0xc9] sm:$0xff] }
 0x2fe   : > { %3274 = vrot.lane.b32.xlu0 %v2317_v57, %s9094_s23  ;;  %v10568_v27 = vpop.permute.xlu1 %3524  ;;  %v1663_v57 = vpop.f32.mrf.mxu3 }
 0x2ff   : > { %8627 = vmatmul.msk.f32.gmra.mxu3 %vm299_vm1, %v8910_v36  ;;  %8528 = vmatmul.msk.f32.gmra.mxu0 %vm299_vm1, %v8910_v36  ;;  %v2370_v58 = vrot.slane %v2365_v11, 4 }
 0x300   : > { %v3653_v6 = vpop.permute.xlu0 %3652 }
 0x301   : > { %1826 = vrot.lane.b32.xlu2 %v1736_v18, %s9090_s5  ;;  %v4153_v21 = vsel %vm4033_vm5, %v4137_v54, %v3653_v6  ;;  %v2353_v18 = vsel %vm1904_vm3, 0.0, %v2352_v59  ;;  %v8911_v54 = vld [vmem:[%s9213_s29 + $0xc1] sm:$0xff] }
 0x303   : > { %v10579_v56 = vpop.permute.xlu2 %3334 }
 0x304   : > { %3338 = vrot.lane.b32.xlu1 %v2309_v42, %s9096_s27  ;;  %v2320_v42 = vrot.slane %v2313_v14, 4 }
 0x306   : > { %3466 = vrot.lane.b32.xlu0 %v2313_v14, %s9097_s28  ;;  %v3717_v24 = vpop.permute.xlu1 %3716  ;;  %v2321_v45 = vsel %vm1904_vm3, 0.0, %v2320_v42  ;;  %v2341_v14 = vperm.slane %v2333_v39, %v9897_v2  ;;  %v4104_v42 = vsel %vm4101_vm9, %v4087_v47, %v10536_v55  ;;  %v2358_v55 = vrot.slane %v2351_v25, 4 }
 0x307   : > { %v4169_v19 = vsel %vm4050_vm6, %v4153_v21, %v3717_v24  ;;  %8628 = vmatmul.msk.f32.gmra.mxu3 %vm299_vm1, %v8911_v54  ;;  %v10632_v24 = vpop.f32.mrf.mxu2  ;;  %8529 = vmatmul.msk.f32.gmra.mxu0 %vm299_vm1, %v8911_v54  ;;  %v4121_v39 = vsel %vm4118_vm10, %v4104_v42, %v10568_v27 }
 0x308   : > { %v3845_v46 = vpop.permute.xlu0 %3844  ;;  %v4185_v6 = vsel %vm4067_vm7, %v4169_v19, %v10481_v38  ;;  %v10621_v38 = vpop.f32.mrf.mxu1  ;;  %8568 = vmatmul.msk.f32.gmra.mxu1 %vm299_vm1, %v10418_v13  ;;  %v2354_v53 = vrot.slane %v2341_v14, 4  ;;  %v8912_v13 = vld [vmem:[%s9213_s29 + $0x120] sm:$0xff] }
 0x309   : > { %3594 = vrot.lane.b32.xlu2 %v2353_v18, %s9093_s21  ;;  %v4201_v59 = vsel %vm4084_vm8, %v4185_v6, %v3845_v46  ;;  %8602 = vmatmul.msk.f32.gmra.mxu2 %vm299_vm1, %v8912_v13  ;;  %v2356_v46 = vrot.slane %v2347_v41, 4  ;;  %v2360_v6 = vrot.slane %v1883_v0, 4  ;;  %v8914_v0 = vld [vmem:[%s9213_s29 + $0x128] sm:$0xff] }
 0x30a   : > { %v10647_v18 = vpop.f32.mrf.mxu3  ;;  %v2355_v63 = vsel %vm1904_vm3, 0.0, %v2354_v53 }
 0x30b   : > { %v10610_v23 = vpop.permute.xlu2 %3526  ;;  %v2357_v27 = vsel %vm1904_vm3, 0.0, %v2356_v46  ;;  %v2361_v9 = vsel %vm1904_vm3, 0.0, %v2360_v6 }
 0x30c   : > { %3530 = vrot.lane.b32.xlu1 %v2321_v45, %s9099_s4  ;;  %v10661_v45 = vpop.f32.mrf.mxu0 }
 0x30e   : > { %3658 = vrot.lane.b32.xlu0 %v2341_v14, %s9095_s26  ;;  %v3909_v31 = vpop.permute.xlu1 %3908 }
 0x30f   : > { %v4217_v36 = vsel %vm4101_vm9, %v4201_v59, %v3909_v31  ;;  %8629 = vmatmul.msk.f32.gmra.mxu3 %vm299_vm1, %v8913_v7  ;;  %v10672_v47 = vpop.f32.mrf.mxu2  ;;  %8530 = vmatmul.msk.f32.gmra.mxu0 %vm299_vm1, %v8913_v7  ;;  %v10678_v59 = vperm.slane %v2365_v11, %v9897_v2 }
 0x310   : > { %v4233_v21 = vsel %vm4118_vm10, %v4217_v36, %v10512_v33  ;;  %v10641_v12 = vpop.permute.xlu0 %1816  ;;  %v10663_v61 = vpop.f32.mrf.mxu1  ;;  %8569 = vmatmul.msk.f32.gmra.mxu1 %vm299_vm1, %v10547_v34  ;;  %v2359_v34 = vsel %vm1904_vm3, 0.0, %v2358_v55 }
 0x311   : > { %14382 = vst [vmem:[#allocation36_spill] sm:$0xff] %v10641_v12  ;;  %v4281_v19 = vrot.slane %v4233_v21, 7  ;;  %3786 = vrot.lane.b32.xlu2 %v2347_v41, %s9096_s27  ;;  %v1705_v41 = vadd.f32 %v1663_v57, %v1549_v8  ;;  %8603 = vmatmul.msk.f32.gmra.mxu2 %vm299_vm1, %v8914_v0  ;;  %v2371_v57 = vsel %vm1904_vm3, 0.0, %v2370_v58  ;;  %v2369_v21 = vperm.slane %v2361_v9, %v9893_v4  ;;  %v8915_v8 = vld [vmem:[%s9213_s29 + $0xd9] sm:$0xff] }
 0x312   : > { %v10686_v54 = vpop.f32.mrf.mxu3  ;;  %v2379_v11 = vperm.slane %v2371_v57, %v9897_v2  ;;  %v2390_v42 = vrot.slane %v10678_v59, 4  ;;  %v1053_v58 = vadd.f32 %v10187_v15, %v9553_v30  ;;  %v1393_v30 = vadd.f32 %v10621_v38, %v10619_v26 }
 0x313   : > { %v4298_v33 = vsel %vm4295_vm11, %v4121_v39, %v4281_v19  ;;  %v10653_v16 = vpop.permute.xlu2 %3718  ;;  %v1737_v36 = vadd.f32 %v10187_v15, %v1705_v41  ;;  %v2380_v6 = vrot.slane %v2369_v21, 4 }
 0x314   : > { %8498 = vst.msk [vmem:[%s10323_s10 + $0x8] ss:$2 sm:$0x3] %vm10310_vm12, %v4298_v33  ;;  %3722 = vrot.lane.b32.xlu1 %v2355_v63, %s9094_s23  ;;  %v10695_v19 = vpop.f32.mrf.mxu0  ;;  %v2392_v63 = vrot.slane %v2379_v11, 4  ;;  %v1884_v41 = vsel %vm1870_vm2, %v1053_v58, %v10146_v35 }
 0x315   : > { %v2381_v57 = vsel %vm1904_vm3, 0.0, %v2380_v6  ;;  %v2403_v9 = vperm.slane %v1884_v41, %v9893_v4 }
 0x316   : > { %3850 = vrot.lane.b32.xlu0 %v2357_v27, %s9098_s30  ;;  %v10668_v14 = vpop.permute.xlu1 %3270  ;;  %v2389_v38 = vperm.slane %v2381_v57, %v9897_v2 }
 0x317   : > { %8630 = vmatmul.msk.f32.gmra.mxu3 %vm299_vm1, %v8915_v8  ;;  %v10705_v33 = vpop.f32.mrf.mxu2  ;;  %8531 = vmatmul.msk.f32.gmra.mxu0 %vm299_vm1, %v8915_v8 }
 0x318   : > { %v10680_v31 = vpop.permute.xlu0 %3206  ;;  %v10697_v46 = vpop.f32.mrf.mxu1  ;;  %8570 = vmatmul.msk.f32.gmra.mxu1 %vm299_vm1, %v8912_v13  ;;  %v2391_v13 = vsel %vm1904_vm3, 0.0, %v2390_v42 }
 0x319   : > { %3978 = vrot.lane.b32.xlu2 %v2359_v34, %s9099_s4  ;;  %v2393_v34 = vsel %vm1904_vm3, 0.0, %v2392_v63  ;;  %v8917_v63 = vld [vmem:[%s9213_s29 + $0xe1] sm:$0xff] }
 0x31a   : > { %v10716_v27 = vpop.f32.mrf.mxu3 }
 0x31b   : > { %v10689_v53 = vpop.permute.xlu2 %3910 }
 0x31c   : > { %3914 = vrot.lane.b32.xlu1 %v2351_v25, %s9097_s28  ;;  %v8916_v25 = vld [vmem:[%s9213_s29 + $0x138] sm:$0xff]  ;;  %v10729_v42 = vpop.f32.mrf.mxu0 }
 0x31d   : > { %8604 = vmatmul.msk.f32.gmra.mxu2 %vm299_vm1, %v8916_v25 }
 0x31e   : > { %1828 = vrot.lane.b32.xlu0 %v1737_v36, %s9090_s5  ;;  %v10701_v39 = vpop.permute.xlu1 %3462  ;;  %v2385_v36 = vperm.slane %v2369_v21, %v9897_v2  ;;  %v8918_v21 = vld [vmem:[%s9213_s29 + $0x140] sm:$0xff] }
 0x31f   : > { %8631 = vmatmul.msk.f32.gmra.mxu3 %vm299_vm1, %v8917_v63  ;;  %v10739_v26 = vpop.f32.mrf.mxu2  ;;  %8532 = vmatmul.msk.f32.gmra.mxu0 %vm299_vm1, %v8917_v63  ;;  %v10754_v63 = vperm.slane %v2403_v9, %v9897_v2 }
 0x320   : > { %v10712_v55 = vpop.permute.xlu0 %3398  ;;  %v10731_v8 = vpop.f32.mrf.mxu1  ;;  %8571 = vmatmul.msk.f32.gmra.mxu1 %vm299_vm1, %v8914_v0  ;;  %v2408_v0 = vrot.slane %v2403_v9, 4 }
 0x321   : > { %3148 = vrot.lane.b32.xlu2 %v2391_v13, %s9093_s21  ;;  %v1550_v13 = vadd.f32 %v10632_v24, %v1393_v30  ;;  %v4020_v24 = vsel %vm4016_vm4, %v10176_v62, %v10557_v49 }
 0x322   : > { %v10747_v6 = vpop.f32.mrf.mxu3 }
 0x323   : > { %v10720_v7 = vpop.permute.xlu2 %1820  ;;  %v1706_v57 = vadd.f32 %v10647_v18, %v1550_v13  ;;  %v8919_v13 = vld [vmem:[%s9213_s29 + $0xf1] sm:$0xff] }
 0x324   : > { %14383 = vst [vmem:[#allocation37_spill] sm:$0xff] %v10720_v7  ;;  %3276 = vrot.lane.b32.xlu1 %v2393_v34, %s9094_s23  ;;  %v2398_v34 = vrot.slane %v1884_v41, 4  ;;  %v2409_v41 = vsel %vm1904_vm3, 0.0, %v2408_v0 }
 0x325   : > { %8605 = vmatmul.msk.f32.gmra.mxu2 %vm299_vm1, %v8918_v21 }
 0x326   : > { %3212 = vrot.lane.b32.xlu0 %v2379_v11, %s9095_s26  ;;  %v10735_v35 = vpop.permute.xlu1 %1818  ;;  %v2394_v11 = vrot.slane %v2385_v36, 4  ;;  %v2399_v49 = vsel %vm1904_vm3, 0.0, %v2398_v34 }
 0x327   : > { %14384 = vst [vmem:[#allocation38_spill] sm:$0xff] %v10735_v35  ;;  %v2396_v35 = vrot.slane %v2389_v38, 4  ;;  %8632 = vmatmul.msk.f32.gmra.mxu3 %vm299_vm1, %v8919_v13  ;;  %v4627_v62 = vpop.f32.mrf.mxu2  ;;  %8533 = vmatmul.msk.f32.gmra.mxu0 %vm299_vm1, %v8919_v13 }
 0x328   : > { %v3591_v58 = vpop.permute.xlu0 %3590  ;;  %v2395_v30 = vsel %vm1904_vm3, 0.0, %v2394_v11  ;;  %v4503_v12 = vpop.f32.mrf.mxu1  ;;  %8572 = vmatmul.msk.f32.gmra.mxu1 %vm299_vm1, %v8916_v25  ;;  %v10773_v25 = vld [vmem:[%s9213_s29 + $0x150] sm:$0xff] }
 0x329   : > { %3340 = vrot.lane.b32.xlu2 %v2385_v36, %s9096_s27  ;;  %v4387_v36 = vpop.f32.mrf.mxu0  ;;  %v4138_v0 = vsel %vm4016_vm4, %v10243_v60, %v3591_v58  ;;  %v2397_v11 = vsel %vm1904_vm3, 0.0, %v2396_v35  ;;  %v2428_v35 = vrot.slane %v10754_v63, 4 }
 0x32a   : > { %v4504_v9 = vadd.f32 %v4503_v12, %v4387_v36  ;;  %v4783_v58 = vpop.f32.mrf.mxu3  ;;  %v2407_v36 = vperm.slane %v2399_v49, %v9893_v4 }
 0x32b   : > { %v10749_v7 = vpop.permute.xlu2 %3272 }
 0x32c   : > { %3468 = vrot.lane.b32.xlu1 %v2389_v38, %s9097_s28  ;;  %v4037_v38 = vsel %vm4033_vm5, %v4020_v24, %v10680_v31  ;;  %v1738_v31 = vadd.f32 %v10187_v15, %v1706_v57  ;;  %v4723_v34 = vadd.f32 %v4627_v62, %v4504_v9  ;;  %v2429_v9 = vsel %vm1904_vm3, 0.0, %v2428_v35 }
 0x32d   : > { %8606 = vmatmul.msk.f32.gmra.mxu2 %vm299_vm1, %v10773_v25  ;;  %v4054_v60 = vsel %vm4050_vm6, %v4037_v38, %v10668_v14 }
 0x32e   : > { %3404 = vrot.lane.b32.xlu0 %v2395_v30, %s9098_s30  ;;  %v3655_v18 = vpop.permute.xlu1 %3654  ;;  %v2417_v30 = vperm.slane %v2409_v41, %v9897_v2  ;;  %v10785_v13 = vadd.f32 %v4783_v58, %v4723_v34  ;;  %v4071_v41 = vsel %vm4067_vm7, %v4054_v60, %v10579_v56  ;;  %v1054_v56 = vadd.f32 %v10187_v15, %v9565_v1  ;;  %v8922_v1 = vld [vmem:[%s9213_s29 + $0x158] sm:$0xff] }
 0x32f   : > { %v4154_v12 = vsel %vm4033_vm5, %v4138_v0, %v3655_v18  ;;  %v4088_v38 = vsel %vm4084_vm8, %v4071_v41, %v10712_v55  ;;  %v8921_v0 = vld [vmem:[%s9213_s29 + $0xf9] sm:$0xff]  ;;  %v4630_v58 = vpop.f32.mrf.mxu2  ;;  %v1396_v15 = vadd.f32 %v10663_v61, %v10661_v45  ;;  %v2423_v45 = vperm.slane %v2407_v36, %v9897_v2 }
 0x330   : > { %v3783_v24 = vpop.permute.xlu0 %3782  ;;  %14385 = vst [vmem:[#allocation39_spill] sm:$0xff] %v10785_v13  ;;  %v4170_v57 = vsel %vm4050_vm6, %v4154_v12, %v10653_v16  ;;  %v2430_v14 = vrot.slane %v2417_v30, 4  ;;  %v2418_v16 = vrot.slane %v2407_v36, 4  ;;  %8633 = vmatmul.msk.f32.gmra.mxu3 %vm299_vm1, %v8921_v0  ;;  %8534 = vmatmul.msk.f32.gmra.mxu0 %vm299_vm1, %v8921_v0  ;;  %v4105_v55 = vsel %vm4101_vm9, %v4088_v38, %v10701_v39  ;;  %v8923_v36 = vld [vmem:[%s9213_s29 + $0x109] sm:$0xff] }
 0x331   : > { %3532 = vrot.lane.b32.xlu2 %v2397_v11, %s9099_s4  ;;  %v4186_v62 = vsel %vm4067_vm7, %v4170_v57, %v3783_v24  ;;  %v4390_v12 = vpop.f32.mrf.mxu0  ;;  %v1885_v39 = vsel %vm1870_vm2, %v1054_v56, %v10076_v37 }
 0x332   : > { %v2431_v60 = vsel %vm1904_vm3, 0.0, %v2430_v14  ;;  %v4122_v14 = vsel %vm4118_vm10, %v4105_v55, %v10610_v23  ;;  %v4786_v61 = vpop.f32.mrf.mxu3  ;;  %v2441_v37 = vperm.slane %v1885_v39, %v9893_v4 }
 0x333   : > { %v10789_v18 = vpop.permute.xlu2 %3464 }
 0x334   : > { %1830 = vrot.lane.b32.xlu1 %v1738_v31, %s9090_s5  ;;  %v4506_v31 = vpop.f32.mrf.mxu1  ;;  %8573 = vmatmul.msk.f32.gmra.mxu1 %vm299_vm1, %v8918_v21 }
 0x335   : > { %v4507_v35 = vadd.f32 %v4506_v31, %v4390_v12  ;;  %8607 = vmatmul.msk.f32.gmra.mxu2 %vm299_vm1, %v8922_v1  ;;  %v2446_v31 = vrot.slane %v2441_v37, 4 }
 0x336   : > { %3596 = vrot.lane.b32.xlu0 %v2429_v9, %s9093_s21  ;;  %v3847_v49 = vpop.permute.xlu1 %3846 }
 0x337   : > { %v4202_v11 = vsel %vm4084_vm8, %v4186_v62, %v3847_v49  ;;  %v4724_v41 = vadd.f32 %v4630_v58, %v4507_v35  ;;  %v1551_v49 = vadd.f32 %v10672_v47, %v1396_v15  ;;  %v2436_v47 = vrot.slane %v1885_v39, 4 }
 0x338   : > { %v3975_v24 = vpop.permute.xlu0 %3974  ;;  %v4218_v34 = vsel %vm4101_vm9, %v4202_v11, %v10689_v53  ;;  %v2419_v53 = vsel %vm1904_vm3, 0.0, %v2418_v16  ;;  %8634 = vmatmul.msk.f32.gmra.mxu3 %vm299_vm1, %v8923_v36  ;;  %8535 = vmatmul.msk.f32.gmra.mxu0 %vm299_vm1, %v8923_v36 }
 0x339   : > { %v4234_v21 = vsel %vm4118_vm10, %v4218_v34, %v3975_v24  ;;  %3724 = vrot.lane.b32.xlu2 %v2431_v60, %s9094_s23  ;;  %v10827_v62 = vadd.f32 %v4786_v61, %v4724_v41  ;;  %v2427_v23 = vperm.slane %v2419_v53, %v9897_v2  ;;  %v4393_v0 = vpop.f32.mrf.mxu0  ;;  %v1707_v55 = vadd.f32 %v10686_v54, %v1551_v49  ;;  %v4633_v34 = vpop.f32.mrf.mxu2  ;;  %v8924_v60 = vld [vmem:[%s9213_s29 + $0x168] sm:$0xff]  ;;  %v10860_v54 = vld [vmem:[%s14330_s2] ss:$0 sm:$0xff]  ;;  %v8926_v61 = vld [vmem:[%s9213_s29 + $0x111] sm:$0xff] }
 0x33a   : > { %v4282_v57 = vrot.slane %v4234_v21, 7  ;;  %v2437_v15 = vsel %vm1904_vm3, 0.0, %v2436_v47  ;;  %v10855_v21 = vperm.slane %v2441_v37, %v9897_v2  ;;  %v2447_v53 = vsel %vm1904_vm3, 0.0, %v2446_v31  ;;  %v4789_v41 = vpop.f32.mrf.mxu3 }
 0x33b   : > { %v10822_v38 = vpop.permute.xlu2 %3656  ;;  %14386 = vst [vmem:[#allocation40_spill] sm:$0xff] %v10827_v62  ;;  %v2434_v24 = vrot.slane %v2427_v23, 4  ;;  %v1739_v39 = vadd.f32 %v10860_v54, %v1707_v55  ;;  %v2455_v36 = vperm.slane %v2447_v53, %v9897_v2 }
 0x33c   : > { %v4299_v9 = vsel %vm4295_vm11, %v4122_v14, %v4282_v57  ;;  %3660 = vrot.lane.b32.xlu1 %v2417_v30, %s9095_s26  ;;  %v2432_v30 = vrot.slane %v2423_v45, 4  ;;  %v4509_v56 = vpop.f32.mrf.mxu1  ;;  %8574 = vmatmul.msk.f32.gmra.mxu1 %vm299_vm1, %v10773_v25 }
 0x33d   : > { %8499 = vst.msk [vmem:[%s10323_s10 + $0xc] ss:$2 sm:$0x3] %vm10310_vm12, %v4299_v9  ;;  %v4510_v12 = vadd.f32 %v4509_v56, %v4393_v0  ;;  %8608 = vmatmul.msk.f32.gmra.mxu2 %vm299_vm1, %v8924_v60  ;;  %v2435_v57 = vsel %vm1904_vm3, 0.0, %v2434_v24  ;;  %v2445_v9 = vperm.slane %v2437_v15, %v9893_v4  ;;  %v2466_v0 = vrot.slane %v10855_v21, 4 }
 0x33e   : > { %3788 = vrot.lane.b32.xlu0 %v2423_v45, %s9096_s27  ;;  %v10836_v16 = vpop.permute.xlu1 %3208  ;;  %v2433_v58 = vsel %vm1904_vm3, 0.0, %v2432_v30  ;;  %v1055_v56 = vadd.f32 %v10860_v54, %v9574_v32  ;;  %v1399_v32 = vadd.f32 %v10697_v46, %v10695_v19 }
 0x33f   : > { %v4725_v25 = vadd.f32 %v4633_v34, %v4510_v12  ;;  %v8927_v12 = vld [vmem:[%s9213_s29 + $0x170] sm:$0xff]  ;;  %v2468_v34 = vrot.slane %v2455_v36, 4  ;;  %v2456_v46 = vrot.slane %v2445_v9, 4 }
 0x340   : > { %v10843_v11 = vpop.permute.xlu0 %3144  ;;  %8635 = vmatmul.msk.f32.gmra.mxu3 %vm299_vm1, %v8926_v61  ;;  %8536 = vmatmul.msk.f32.gmra.mxu0 %vm299_vm1, %v8926_v61  ;;  %v1886_v24 = vsel %vm1870_vm2, %v1055_v56, %v10159_v44 }
 0x341   : > { %3916 = vrot.lane.b32.xlu2 %v2427_v23, %s9097_s28  ;;  %v10868_v45 = vadd.f32 %v4789_v41, %v4725_v25  ;;  %v4396_v37 = vpop.f32.mrf.mxu0  ;;  %v4636_v47 = vpop.f32.mrf.mxu2  ;;  %v2479_v44 = vperm.slane %v1886_v24, %v9893_v4  ;;  %v2469_v19 = vsel %vm1904_vm3, 0.0, %v2468_v34  ;;  %v2474_v34 = vrot.slane %v1886_v24, 4 }
 0x342   : > { %v4792_v25 = vpop.f32.mrf.mxu3 }
 0x343   : > { %v10849_v35 = vpop.permute.xlu2 %3848  ;;  %14387 = vst [vmem:[#allocation41_spill] sm:$0xff] %v10868_v45  ;;  %v10909_v56 = vperm.slane %v2479_v44, %v9897_v2 }
 0x344   : > { %3852 = vrot.lane.b32.xlu1 %v2433_v58, %s9098_s30  ;;  %v4512_v49 = vpop.f32.mrf.mxu1  ;;  %8575 = vmatmul.msk.f32.gmra.mxu1 %vm299_vm1, %v8922_v1  ;;  %v2461_v1 = vperm.slane %v2445_v9, %v9897_v2  ;;  %v2467_v58 = vsel %vm1904_vm3, 0.0, %v2466_v0  ;;  %v8929_v0 = vld [vmem:[%s9213_s29 + $0x180] sm:$0xff]  ;;  %v2457_v9 = vsel %vm1904_vm3, 0.0, %v2456_v46 }
 0x345   : > { %v4513_v30 = vadd.f32 %v4512_v49, %v4396_v37  ;;  %8609 = vmatmul.msk.f32.gmra.mxu2 %vm299_vm1, %v8927_v12  ;;  %v2504_v24 = vrot.slane %v10909_v56, 4 }
 0x346   : > { %3980 = vrot.lane.b32.xlu0 %v2435_v57, %s9099_s4  ;;  %v10866_v14 = vpop.permute.xlu1 %3400  ;;  %v8928_v57 = vld [vmem:[%s9213_s29 + $0x121] sm:$0xff]  ;;  %v2470_v53 = vrot.slane %v2461_v1, 4 }
 0x347   : > { %v4726_v55 = vadd.f32 %v4636_v47, %v4513_v30 }
 0x348   : > { %v10875_v23 = vpop.permute.xlu0 %3336  ;;  %8636 = vmatmul.msk.f32.gmra.mxu3 %vm299_vm1, %v8928_v57  ;;  %8537 = vmatmul.msk.f32.gmra.mxu0 %vm299_vm1, %v8928_v57  ;;  %v8930_v57 = vld [vmem:[%s9213_s29 + $0x129] sm:$0xff] }
 0x349   : > { %1832 = vrot.lane.b32.xlu2 %v1739_v39, %s9090_s5  ;;  %v10894_v39 = vadd.f32 %v4792_v25, %v4726_v55  ;;  %v4399_v41 = vpop.f32.mrf.mxu0  ;;  %v4639_v30 = vpop.f32.mrf.mxu2 }
 0x34b   : > { %v10884_v31 = vpop.permute.xlu2 %3210  ;;  %14388 = vst [vmem:[#allocation42_spill] sm:$0xff] %v10894_v39 }
 0x34c   : > { %3214 = vrot.lane.b32.xlu1 %v2455_v36, %s9095_s26  ;;  %v4515_v61 = vpop.f32.mrf.mxu1  ;;  %8576 = vmatmul.msk.f32.gmra.mxu1 %vm299_vm1, %v8924_v60  ;;  %v1552_v36 = vadd.f32 %v10705_v33, %v1399_v32  ;;  %v2471_v60 = vsel %vm1904_vm3, 0.0, %v2470_v53  ;;  %v2465_v53 = vperm.slane %v2457_v9, %v9897_v2 }
 0x34d   : > { %v4516_v49 = vadd.f32 %v4515_v61, %v4399_v41  ;;  %8610 = vmatmul.msk.f32.gmra.mxu2 %vm299_vm1, %v8929_v0 }
 0x34e   : > { %3150 = vrot.lane.b32.xlu0 %v2467_v58, %s9093_s21  ;;  %v3593_v15 = vpop.permute.xlu1 %3592  ;;  %v4795_v58 = vpop.f32.mrf.mxu3  ;;  %v1708_v33 = vadd.f32 %v10716_v27, %v1552_v36  ;;  %v2475_v27 = vsel %vm1904_vm3, 0.0, %v2474_v34 }
 0x34f   : > { %v4727_v55 = vadd.f32 %v4639_v30, %v4516_v49  ;;  %v8931_v30 = vld [vmem:[%s9213_s29 + $0x188] sm:$0xff] }
 0x350   : > { %v10901_v37 = vpop.permute.xlu0 %1822  ;;  %8637 = vmatmul.msk.f32.gmra.mxu3 %vm299_vm1, %v8930_v57  ;;  %8538 = vmatmul.msk.f32.gmra.mxu0 %vm299_vm1, %v8930_v57  ;;  %v1740_v49 = vadd.f32 %v10860_v54, %v1708_v33  ;;  %v4021_v57 = vsel %vm4016_vm4, %v10345_v28, %v10843_v11 }
 0x351   : > { %3278 = vrot.lane.b32.xlu2 %v2469_v19, %s9094_s23  ;;  %v10918_v32 = vadd.f32 %v4795_v58, %v4727_v55  ;;  %v4402_v41 = vpop.f32.mrf.mxu0  ;;  %v4642_v36 = vpop.f32.mrf.mxu2  ;;  %v1056_v58 = vadd.f32 %v10860_v54, %v9584_v5 }
 0x353   : > { %v10911_v47 = vpop.permute.xlu2 %3402  ;;  %14389 = vst [vmem:[#allocation43_spill] sm:$0xff] %v10918_v32  ;;  %v1887_v28 = vsel %vm1870_vm2, %v1056_v58, %v10231_v52 }
 0x354   : > { %3406 = vrot.lane.b32.xlu1 %v2471_v60, %s9098_s30  ;;  %v4518_v61 = vpop.f32.mrf.mxu1  ;;  %8577 = vmatmul.msk.f32.gmra.mxu1 %vm299_vm1, %v8927_v12  ;;  %v2483_v60 = vperm.slane %v2475_v27, %v9893_v4  ;;  %v2505_v12 = vsel %vm1904_vm3, 0.0, %v2504_v24  ;;  %v10972_v52 = vperm.slane %v1887_v28, %v9893_v4 }
 0x355   : > { %v4519_v46 = vadd.f32 %v4518_v61, %v4402_v41  ;;  %8611 = vmatmul.msk.f32.gmra.mxu2 %vm299_vm1, %v8931_v30  ;;  %v4139_v41 = vsel %vm4016_vm4, %v10394_v3, %v3593_v15  ;;  %v4038_v15 = vsel %vm4033_vm5, %v4021_v57, %v10836_v16 }
 0x356   : > { %3342 = vrot.lane.b32.xlu0 %v2461_v1, %s9096_s27  ;;  %v3785_v25 = vpop.permute.xlu1 %3784  ;;  %v2484_v1 = vrot.slane %v2479_v44, 4  ;;  %v1402_v44 = vadd.f32 %v10731_v8, %v10729_v42  ;;  %v4798_v33 = vpop.f32.mrf.mxu3  ;;  %v8932_v8 = vld [vmem:[%s9213_s29 + $0x139] sm:$0xff]  ;;  %v2499_v5 = vperm.slane %v2483_v60, %v9897_v2 }
 0x357   : > { %v4728_v34 = vadd.f32 %v4642_v36, %v4519_v46  ;;  %v4155_v46 = vsel %vm4033_vm5, %v4139_v41, %v10822_v38  ;;  %v4055_v38 = vsel %vm4050_vm6, %v4038_v15, %v10749_v7  ;;  %v2522_v7 = vrot.slane %v10972_v52, 4 }
 0x358   : > { %v10927_v19 = vpop.permute.xlu0 %3528  ;;  %v2485_v9 = vsel %vm1904_vm3, 0.0, %v2484_v1  ;;  %8638 = vmatmul.msk.f32.gmra.mxu3 %vm299_vm1, %v8932_v8  ;;  %8539 = vmatmul.msk.f32.gmra.mxu0 %vm299_vm1, %v8932_v8  ;;  %v1553_v3 = vadd.f32 %v10739_v26, %v1402_v44  ;;  %v2508_v44 = vrot.slane %v2499_v5, 4  ;;  %v4072_v58 = vsel %vm4067_vm7, %v4055_v38, %v10875_v23 }
 0x359   : > { %3470 = vrot.lane.b32.xlu2 %v2465_v53, %s9097_s28  ;;  %v10951_v42 = vadd.f32 %v4798_v33, %v4728_v34  ;;  %v10956_v61 = vperm.slane %v2485_v9, %v9897_v2  ;;  %v4405_v27 = vpop.f32.mrf.mxu0  ;;  %v2494_v34 = vrot.slane %v2483_v60, 4 }
 0x35a   : > { %v1709_v9 = vadd.f32 %v10747_v6, %v1553_v3  ;;  %v8933_v6 = vld [vmem:[%s9213_s29 + $0x141] sm:$0xff] }
 0x35b   : > { %v10934_v55 = vpop.permute.xlu2 %1826  ;;  %14390 = vst [vmem:[#allocation44_spill] sm:$0xff] %v10951_v42  ;;  %v14452_v42 = vld [vmem:[#allocation32_spill] sm:$0xff] }
 0x35c   : > { %3598 = vrot.lane.b32.xlu1 %v2505_v12, %s9093_s21  ;;  %v4521_v1 = vpop.f32.mrf.mxu1  ;;  %8578 = vmatmul.msk.f32.gmra.mxu1 %vm299_vm1, %v8929_v0  ;;  %v4645_v0 = vpop.f32.mrf.mxu2 }
 0x35d   : > { %v4522_v36 = vadd.f32 %v4521_v1, %v4405_v27  ;;  %v2495_v27 = vsel %vm1904_vm3, 0.0, %v2494_v34 }
 0x35e   : > { %1834 = vrot.lane.b32.xlu0 %v1740_v49, %s9090_s5  ;;  %v10949_v24 = vpop.permute.xlu1 %1824  ;;  %v2472_v49 = vrot.slane %v2465_v53, 4  ;;  %v2512_v53 = vrot.slane %v1887_v28, 4  ;;  %v4801_v57 = vpop.f32.mrf.mxu3  ;;  %v4089_v28 = vsel %vm4084_vm8, %v4072_v58, %v10866_v14 }
 0x35f   : > { %v4729_v16 = vadd.f32 %v4645_v0, %v4522_v36  ;;  %v2506_v36 = vrot.slane %v10956_v61, 4  ;;  %v4106_v14 = vsel %vm4101_vm9, %v4089_v28, %v10789_v18  ;;  %v11045_v28 = vperm.slane %v10972_v52, %v9897_v2 }
 0x360   : > { %v3721_v11 = vpop.permute.xlu0 %3720  ;;  %v2473_v33 = vsel %vm1904_vm3, 0.0, %v2472_v49  ;;  %8639 = vmatmul.msk.f32.gmra.mxu3 %vm299_vm1, %v8933_v6  ;;  %8540 = vmatmul.msk.f32.gmra.mxu0 %vm299_vm1, %v8933_v6 }
 0x361   : > { %3662 = vrot.lane.b32.xlu2 %v10956_v61, %s9095_s26  ;;  %v4171_v12 = vsel %vm4050_vm6, %v4155_v46, %v3721_v11  ;;  %v10985_v8 = vadd.f32 %v4801_v57, %v4729_v16  ;;  %v4408_v23 = vpop.f32.mrf.mxu0  ;;  %v2513_v46 = vsel %vm1904_vm3, 0.0, %v2512_v53  ;;  %v2523_v61 = vsel %vm1904_vm3, 0.0, %v2522_v7 }
 0x362   : > { %v4187_v60 = vsel %vm4067_vm7, %v4171_v12, %v3785_v25  ;;  %v1741_v25 = vadd.f32 %v10860_v54, %v1709_v9  ;;  %v11010_v16 = vperm.slane %v2513_v46, %v9893_v4  ;;  %v4123_v9 = vsel %vm4118_vm10, %v4106_v14, %v10927_v19  ;;  %v8934_v19 = vld [vmem:[%s9213_s29 + $0x151] sm:$0xff] }
 0x363   : > { %v10974_v26 = vpop.permute.xlu2 %3594  ;;  %14391 = vst [vmem:[#allocation45_spill] sm:$0xff] %v10985_v8  ;;  %v4203_v11 = vsel %vm4084_vm8, %v4187_v60, %v10849_v35  ;;  %v2503_v35 = vperm.slane %v2495_v27, %v9897_v2  ;;  %v2507_v38 = vsel %vm1904_vm3, 0.0, %v2506_v36  ;;  %v2531_v57 = vperm.slane %v2523_v61, %v9897_v2  ;;  %v14451_v8 = vld [vmem:[#allocation31_spill] sm:$0xff] }
 0x364   : > { %3790 = vrot.lane.b32.xlu1 %v2499_v5, %s9096_s27  ;;  %v2509_v5 = vsel %vm1904_vm3, 0.0, %v2508_v44  ;;  %v4524_v1 = vpop.f32.mrf.mxu1  ;;  %8579 = vmatmul.msk.f32.gmra.mxu1 %vm299_vm1, %v8931_v30  ;;  %v4648_v12 = vpop.f32.mrf.mxu2  ;;  %v2542_v14 = vrot.slane %v11045_v28, 4  ;;  %v723_v32 = vadd.f32 %v14452_v42, %v14451_v8  ;;  %v14453_v42 = vld [vmem:[#allocation33_spill] sm:$0xff] }
 0x365   : > { %v4525_v15 = vadd.f32 %v4524_v1, %v4408_v23  ;;  %v11038_v23 = vperm.slane %v11010_v16, %v9897_v2 }
 0x366   : > { %3534 = vrot.lane.b32.xlu0 %v2473_v33, %s9099_s4  ;;  %v3977_v41 = vpop.permute.xlu1 %3976  ;;  %v4804_v53 = vpop.f32.mrf.mxu3  ;;  %v1057_v33 = vadd.f32 %v10860_v54, %v9594_v50  ;;  %v880_v8 = vadd.f32 %v14453_v42, %v723_v32  ;;  %v14455_v42 = vld [vmem:[#allocation34_spill] sm:$0xff] }
 0x367   : > { %v4730_v44 = vadd.f32 %v4648_v12, %v4525_v15  ;;  %v8936_v12 = vld [vmem:[%s9213_s29 + $0x159] sm:$0xff] }
 0x368   : > { %v3913_v3 = vpop.permute.xlu0 %3912  ;;  %8640 = vmatmul.msk.f32.gmra.mxu3 %vm299_vm1, %v8934_v19  ;;  %8541 = vmatmul.msk.f32.gmra.mxu0 %vm299_vm1, %v8934_v19  ;;  %v1888_v50 = vsel %vm1870_vm2, %v1057_v33, %v10222_v20 }
 0x369   : > { %v4219_v49 = vsel %vm4101_vm9, %v4203_v11, %v3913_v3  ;;  %3854 = vrot.lane.b32.xlu2 %v2509_v5, %s9098_s30  ;;  %v11024_v60 = vadd.f32 %v4804_v53, %v4730_v44  ;;  %v4411_v6 = vpop.f32.mrf.mxu0  ;;  %v8935_v5 = vld [vmem:[%s9213_s29 + $0x19] sm:$0xff]  ;;  %v2555_v46 = vperm.slane %v1888_v50, %v9893_v4  ;;  %v2550_v36 = vrot.slane %v1888_v50, 4 }
 0x36a   : > { %v4235_v30 = vsel %vm4118_vm10, %v4219_v49, %v3977_v41  ;;  %v2510_v41 = vrot.slane %v2503_v35, 4  ;;  %v2546_v49 = vrot.slane %v11038_v23, 4  ;;  %v2544_v53 = vrot.slane %v2531_v57, 4 }
 0x36b   : > { %v4283_v0 = vrot.slane %v4235_v30, 7  ;;  %v11006_v34 = vpop.permute.xlu2 %3786  ;;  %14392 = vst [vmem:[#allocation46_spill] sm:$0xff] %v11024_v60  ;;  %v11065_v61 = vperm.slane %v2555_v46, %v9897_v2  ;;  %v2551_v19 = vsel %vm1904_vm3, 0.0, %v2550_v36  ;;  %v11089_v36 = vld [vmem:[%s9213_s29 + $0x31] sm:$0xff] }
 0x36c   : > { %1836 = vrot.lane.b32.xlu1 %v1741_v25, %s9090_s5  ;;  %v4527_v7 = vpop.f32.mrf.mxu1  ;;  %8684 = vmatmul.msk.f32.vlgmr.msrb.gmra.mxu1 %vm299_vm1, %v8935_v5  ;;  %v4651_v25 = vpop.f32.mrf.mxu2  ;;  %v2511_v11 = vsel %vm1904_vm3, 0.0, %v2510_v41  ;;  %v2532_v5 = vrot.slane %v11010_v16, 4  ;;  %v2559_v50 = vperm.slane %v2551_v19, %v9893_v4 }
 0x36d   : > { %v4300_v18 = vsel %vm4295_vm11, %v4123_v9, %v4283_v0  ;;  %v4528_v1 = vadd.f32 %v4527_v7, %v4411_v6  ;;  %v8937_v9 = vld [vmem:[%s9213_s29 + $0x21] sm:$0xff]  ;;  %v2543_v6 = vsel %vm1904_vm3, 0.0, %v2542_v14 }
 0x36e   : > { %8500 = vst.msk [vmem:[%s10323_s10 + $0x10] ss:$2 sm:$0x3] %vm10310_vm12, %v4300_v18  ;;  %3726 = vrot.lane.b32.xlu0 %v2507_v38, %s9094_s23  ;;  %v11022_v58 = vpop.permute.xlu1 %3146  ;;  %v4807_v20 = vpop.f32.mrf.mxu3  ;;  %v2547_v18 = vsel %vm1904_vm3, 0.0, %v2546_v49  ;;  %v8938_v49 = vld [vmem:[%s9213_s29 + $0x169] sm:$0xff] }
 0x36f   : > { %v4731_v15 = vadd.f32 %v4651_v25, %v4528_v1  ;;  %v2580_v1 = vrot.slane %v11065_v61, 4  ;;  %v2545_v25 = vsel %vm1904_vm3, 0.0, %v2544_v53 }
 0x370   : > { %v11034_v27 = vpop.permute.xlu0 %3274  ;;  %8641 = vmatmul.msk.f32.gmra.mxu3 %vm299_vm1, %v8936_v12  ;;  %8542 = vmatmul.msk.f32.gmra.mxu0 %vm299_vm1, %v8936_v12 }
 0x371   : > { %3216 = vrot.lane.b32.xlu2 %v2531_v57, %s9095_s26  ;;  %v11056_v52 = vadd.f32 %v4807_v20, %v4731_v15  ;;  %v4414_v0 = vpop.f32.mrf.mxu0  ;;  %v2581_v14 = vsel %vm1904_vm3, 0.0, %v2580_v1 }
 0x373   : > { %v11047_v3 = vpop.permute.xlu2 %3978  ;;  %14393 = vst [vmem:[#allocation47_spill] sm:$0xff] %v11056_v52 }
 0x374   : > { %3982 = vrot.lane.b32.xlu1 %v2511_v11, %s9099_s4  ;;  %v4530_v44 = vpop.f32.mrf.mxu1  ;;  %8685 = vmatmul.msk.f32.gmra.mxu1 %vm299_vm1, %v8937_v9  ;;  %v4654_v33 = vpop.f32.mrf.mxu2  ;;  %v2570_v9 = vrot.slane %v2559_v50, 4 }
 0x375   : > { %v4531_v38 = vadd.f32 %v4530_v44, %v4414_v0  ;;  %v2533_v0 = vsel %vm1904_vm3, 0.0, %v2532_v5 }
 0x376   : > { %3918 = vrot.lane.b32.xlu0 %v2503_v35, %s9097_s28  ;;  %v11054_v30 = vpop.permute.xlu1 %3338  ;;  %v4810_v57 = vpop.f32.mrf.mxu3  ;;  %v2541_v19 = vperm.slane %v2533_v0, %v9897_v2 }
 0x377   : > { %v4732_v7 = vadd.f32 %v4654_v33, %v4531_v38 }
 0x378   : > { %v11067_v35 = vpop.permute.xlu0 %3466  ;;  %8642 = vmatmul.msk.f32.gmra.mxu3 %vm299_vm1, %v8938_v49  ;;  %8543 = vmatmul.msk.f32.gmra.mxu0 %vm299_vm1, %v8938_v49 }
 0x379   : > { %3408 = vrot.lane.b32.xlu2 %v2547_v18, %s9098_s30  ;;  %v11083_v15 = vadd.f32 %v4810_v57, %v4732_v7  ;;  %v4417_v20 = vpop.f32.mrf.mxu0  ;;  %v2560_v18 = vrot.slane %v2555_v46, 4  ;;  %v2571_v7 = vsel %vm1904_vm3, 0.0, %v2570_v9  ;;  %v1058_v46 = vadd.f32 %v10860_v54, %v9603_v22 }
 0x37a   : > { %v2575_v22 = vperm.slane %v2559_v50, %v9897_v2 }
 0x37b   : > { %v11072_v41 = vpop.permute.xlu2 %3148  ;;  %14394 = vst [vmem:[#allocation48_spill] sm:$0xff] %v11083_v15  ;;  %v2561_v1 = vsel %vm1904_vm3, 0.0, %v2560_v18  ;;  %v1889_v50 = vsel %vm1870_vm2, %v1058_v46, %v10388_v43 }
 0x37c   : > { %3152 = vrot.lane.b32.xlu1 %v2543_v6, %s9093_s21  ;;  %v4533_v16 = vpop.f32.mrf.mxu1  ;;  %8686 = vmatmul.msk.f32.gmra.mxu1 %vm299_vm1, %v11089_v36  ;;  %v4657_v38 = vpop.f32.mrf.mxu2  ;;  %v4022_v6 = vsel %vm4016_vm4, %v10510_v17, %v11022_v58  ;;  %v8940_v58 = vld [vmem:[%s9213_s29 + $0x171] sm:$0xff]  ;;  %v2569_v9 = vperm.slane %v2561_v1, %v9897_v2  ;;  %v2588_v46 = vrot.slane %v1889_v50, 4 }
 0x37d   : > { %v4534_v44 = vadd.f32 %v4533_v16, %v4417_v20  ;;  %v2548_v20 = vrot.slane %v2541_v19, 4 }
 0x37e   : > { %3280 = vrot.lane.b32.xlu0 %v2545_v25, %s9094_s23  ;;  %v11081_v11 = vpop.permute.xlu1 %3530  ;;  %v4813_v5 = vpop.f32.mrf.mxu3  ;;  %v4140_v25 = vsel %vm4016_vm4, %v10574_v48, %v10974_v26  ;;  %v11122_v48 = vld [vmem:[%s9213_s29 + $0x39] sm:$0xff] }
 0x37f   : > { %v4733_v33 = vadd.f32 %v4657_v38, %v4534_v44  ;;  %v11128_v44 = vperm.slane %v2571_v7, %v9897_v2  ;;  %v2593_v7 = vperm.slane %v1889_v50, %v9893_v4 }
 0x380   : > { %v3659_v12 = vpop.permute.xlu0 %3658  ;;  %8643 = vmatmul.msk.f32.gmra.mxu3 %vm299_vm1, %v8940_v58  ;;  %8544 = vmatmul.msk.f32.gmra.mxu0 %vm299_vm1, %v8940_v58 }
 0x381   : > { %3600 = vrot.lane.b32.xlu2 %v2581_v14, %s9093_s21  ;;  %v11112_v17 = vadd.f32 %v4813_v5, %v4733_v33  ;;  %v4156_v49 = vsel %vm4033_vm5, %v4140_v25, %v3659_v12  ;;  %v4420_v16 = vpop.f32.mrf.mxu0 }
 0x383   : > { %v11096_v53 = vpop.permute.xlu2 %3340  ;;  %14395 = vst [vmem:[#allocation49_spill] sm:$0xff] %v11112_v17 }
 0x384   : > { %3344 = vrot.lane.b32.xlu1 %v11038_v23, %s9096_s27  ;;  %v4039_v23 = vsel %vm4033_vm5, %v4022_v6, %v10884_v31  ;;  %v4536_v14 = vpop.f32.mrf.mxu1  ;;  %8687 = vmatmul.msk.f32.gmra.mxu1 %vm299_vm1, %v11122_v48  ;;  %v4660_v18 = vpop.f32.mrf.mxu2  ;;  %v2549_v6 = vsel %vm1904_vm3, 0.0, %v2548_v20 }
 0x385   : > { %v4537_v31 = vadd.f32 %v4536_v14, %v4420_v16  ;;  %v4056_v12 = vsel %vm4050_vm6, %v4039_v23, %v11034_v27  ;;  %v2586_v27 = vrot.slane %v11128_v44, 4  ;;  %v2582_v23 = vrot.slane %v2569_v9, 4  ;;  %v11157_v16 = vld [vmem:[%s9213_s29 + $0x49] sm:$0xff] }
 0x386   : > { %3472 = vrot.lane.b32.xlu0 %v2541_v19, %s9097_s28  ;;  %v3723_v57 = vpop.permute.xlu1 %3722  ;;  %v4073_v38 = vsel %vm4067_vm7, %v4056_v12, %v11054_v30  ;;  %v4816_v5 = vpop.f32.mrf.mxu3 }
 0x387   : > { %v4172_v26 = vsel %vm4050_vm6, %v4156_v49, %v3723_v57  ;;  %v4734_v43 = vadd.f32 %v4660_v18, %v4537_v31  ;;  %v4090_v30 = vsel %vm4084_vm8, %v4073_v38, %v10911_v47  ;;  %v8942_v57 = vld [vmem:[%s9213_s29 + $0x181] sm:$0xff]  ;;  %v11162_v47 = vperm.slane %v2593_v7, %v9897_v2 }
 0x388   : > { %v3851_v0 = vpop.permute.xlu0 %3850  ;;  %v4188_v19 = vsel %vm4067_vm7, %v4172_v26, %v11006_v34  ;;  %8644 = vmatmul.msk.f32.gmra.mxu3 %vm299_vm1, %v8942_v57  ;;  %8545 = vmatmul.msk.f32.gmra.mxu0 %vm299_vm1, %v8942_v57  ;;  %v4107_v50 = vsel %vm4101_vm9, %v4090_v30, %v11067_v35  ;;  %v2589_v18 = vsel %vm1904_vm3, 0.0, %v2588_v46  ;;  %v2598_v35 = vrot.slane %v2593_v7, 4 }
 0x389   : > { %3792 = vrot.lane.b32.xlu2 %v2575_v22, %s9096_s27  ;;  %v4204_v1 = vsel %vm4084_vm8, %v4188_v19, %v3851_v0  ;;  %v11150_v25 = vadd.f32 %v4816_v5, %v4734_v43  ;;  %v4423_v49 = vpop.f32.mrf.mxu0  ;;  %v2587_v0 = vsel %vm1904_vm3, 0.0, %v2586_v27  ;;  %v4124_v38 = vsel %vm4118_vm10, %v4107_v50, %v11081_v11 }
 0x38a   : > { %v2583_v43 = vsel %vm1904_vm3, 0.0, %v2582_v23  ;;  %v2597_v11 = vperm.slane %v2589_v18, %v9893_v4  ;;  %v1059_v23 = vadd.f32 %v10860_v54, %v9612_v51 }
 0x38b   : > { %v11140_v33 = vpop.permute.xlu2 %3532  ;;  %14396 = vst [vmem:[#allocation50_spill] sm:$0xff] %v11150_v25 }
 0x38c   : > { %3536 = vrot.lane.b32.xlu1 %v2549_v6, %s9099_s4  ;;  %v4539_v20 = vpop.f32.mrf.mxu1  ;;  %8688 = vmatmul.msk.f32.gmra.mxu1 %vm299_vm1, %v11157_v16  ;;  %v1890_v50 = vsel %vm1870_vm2, %v1059_v23, %v10436_v40  ;;  %v258_v40 = vld [vmem:[%s9213_s29 + $0x199] sm:$0xff]  ;;  %v11231_v23 = vld [vmem:[%s9213_s29 + $0x61] sm:$0xff] }
 0x38d   : > { %v4540_v31 = vadd.f32 %v4539_v20, %v4423_v49  ;;  %v2599_v49 = vsel %vm1904_vm3, 0.0, %v2598_v35 }
 0x38e   : > { %v3915_v34 = vpop.permute.xlu1 %3914  ;;  %3664 = vrot.lane.b32.xlu0 %v2569_v9, %s9095_s26  ;;  %v2584_v9 = vrot.slane %v2575_v22, 4  ;;  %v2618_v22 = vrot.slane %v11162_v47, 4  ;;  %v4819_v46 = vpop.f32.mrf.mxu3  ;;  %v2607_v51 = vperm.slane %v2599_v49, %v9897_v2 }
 0x38f   : > { %v4220_v58 = vsel %vm4101_vm9, %v4204_v1, %v3915_v34  ;;  %v8944_v34 = vld [vmem:[%s9213_s29 + $0x189] sm:$0xff] }
 0x390   : > { %v4236_v14 = vsel %vm4118_vm10, %v4220_v58, %v11047_v3  ;;  %v11166_v26 = vpop.permute.xlu0 %1828  ;;  %v4663_v3 = vpop.f32.mrf.mxu2  ;;  %v2585_v5 = vsel %vm1904_vm3, 0.0, %v2584_v9  ;;  %8645 = vmatmul.msk.f32.gmra.mxu3 %vm299_vm1, %v8944_v34  ;;  %8546 = vmatmul.msk.f32.gmra.mxu0 %vm299_vm1, %v8944_v34  ;;  %v11195_v58 = vld [vmem:[%s9213_s29 + $0x51] sm:$0xff] }
 0x391   : > { %v4284_v12 = vrot.slane %v4236_v14, 7  ;;  %3984 = vrot.lane.b32.xlu2 %v2587_v0, %s9099_s4  ;;  %v4735_v27 = vadd.f32 %v4663_v3, %v4540_v31  ;;  %v4426_v7 = vpop.f32.mrf.mxu0  ;;  %v2619_v14 = vsel %vm1904_vm3, 0.0, %v2618_v22  ;;  %v2608_v31 = vrot.slane %v2597_v11, 4 }
 0x392   : > { %v2613_v3 = vperm.slane %v2597_v11, %v9897_v2  ;;  %v8946_v11 = vld [vmem:[%s9213_s29 + $0x1a] sm:$0xff] }
 0x393   : > { %v4301_v19 = vsel %vm4295_vm11, %v4124_v38, %v4284_v12  ;;  %v11176_v6 = vpop.permute.xlu2 %3724  ;;  %v11189_v1 = vadd.f32 %v4819_v46, %v4735_v27  ;;  %v2631_v38 = vperm.slane %v1890_v50, %v9893_v4  ;;  %v222_v27 = vld [vmem:[%s9213_s29 + $0x198] sm:$0xff] }
 0x394   : > { %8501 = vst.msk [vmem:[%s10323_s10 + $0x14] ss:$2 sm:$0x3] %vm10310_vm12, %v4301_v19  ;;  %3728 = vrot.lane.b32.xlu1 %v2583_v43, %s9094_s23  ;;  %v4542_v57 = vpop.f32.mrf.mxu1  ;;  %8689 = vmatmul.msk.f32.gmra.mxu1 %vm299_vm1, %v11195_v58  ;;  %v2609_v19 = vsel %vm1904_vm3, 0.0, %v2608_v31  ;;  %v2626_v31 = vrot.slane %v1890_v50, 4 }
 0x395   : > { %14397 = vst [vmem:[#allocation51_spill] sm:$0xff] %v11189_v1  ;;  %v4543_v0 = vadd.f32 %v4542_v57, %v4426_v7  ;;  %8612 = vmatmul.msk.f32.gmra.mxu2 %vm299_vm1, %v222_v27  ;;  %v2617_v7 = vperm.slane %v2609_v19, %v9897_v2  ;;  %v2636_v49 = vrot.slane %v2631_v38, 4  ;;  %v259_v27 = vld [vmem:[%s9213_s29 + $0x1a1] sm:$0xff] }
 0x396   : > { %v11186_v30 = vpop.permute.xlu1 %3276  ;;  %3856 = vrot.lane.b32.xlu0 %v2585_v5, %s9098_s30  ;;  %v4822_v43 = vpop.f32.mrf.mxu3  ;;  %v2620_v5 = vrot.slane %v2607_v51, 4 }
 0x397   : > { %v2624_v19 = vrot.slane %v2617_v7, 4 }
 0x398   : > { %v11202_v20 = vpop.permute.xlu0 %3212  ;;  %v4666_v12 = vpop.f32.mrf.mxu2  ;;  %8646 = vmatmul.msk.f32.gmra.mxu3 %vm299_vm1, %v258_v40  ;;  %8651 = vmatmul.msk.f32.vlgmr.msrb.gmra.mxu0 %vm299_vm1, %v8946_v11  ;;  %v2637_v40 = vsel %vm1904_vm3, 0.0, %v2636_v49  ;;  %v2627_v11 = vsel %vm1904_vm3, 0.0, %v2626_v31  ;;  %v14400_v49 = vld [vmem:[#allocation5_spill] sm:$0xff] }
 0x399   : > { %3154 = vrot.lane.b32.xlu2 %v2619_v14, %s9093_s21  ;;  %v4736_v18 = vadd.f32 %v4666_v12, %v4543_v0  ;;  %v2622_v14 = vrot.slane %v2613_v3, 4 }
 0x39b   : > { %v11208_v9 = vpop.permute.xlu2 %3916  ;;  %v11221_v22 = vadd.f32 %v4822_v43, %v4736_v18  ;;  %v223_v43 = vld [vmem:[%s9213_s29 + $0x1a0] sm:$0xff] }
 0x39c   : > { %3920 = vrot.lane.b32.xlu1 %v11128_v44, %s9097_s28  ;;  %v4429_v44 = vpop.f32.mrf.mxu0  ;;  %v4545_v46 = vpop.f32.mrf.mxu1  ;;  %8690 = vmatmul.msk.f32.gmra.mxu1 %vm299_vm1, %v11231_v23 }
 0x39d   : > { %14398 = vst [vmem:[#allocation52_spill] sm:$0xff] %v11221_v22  ;;  %v4546_v57 = vadd.f32 %v4545_v46, %v4429_v44  ;;  %v11244_v44 = vperm.slane %v2631_v38, %v9897_v2  ;;  %8613 = vmatmul.msk.f32.gmra.mxu2 %vm299_vm1, %v223_v43  ;;  %v8948_v38 = vld [vmem:[%s9213_s29 + $0x22] sm:$0xff]  ;;  %v2625_v22 = vsel %vm1904_vm3, 0.0, %v2624_v19 }
 0x39e   : > { %v11218_v35 = vpop.permute.xlu1 %3468  ;;  %3218 = vrot.lane.b32.xlu0 %v2607_v51, %s9095_s26  ;;  %v2621_v51 = vsel %vm1904_vm3, 0.0, %v2620_v5  ;;  %v4825_v50 = vpop.f32.mrf.mxu3 }
 0x39f   : > { %v2656_v31 = vrot.slane %v11244_v44, 4 }
 0x3a0   : > { %v11227_v34 = vpop.permute.xlu0 %3404  ;;  %v4669_v0 = vpop.f32.mrf.mxu2  ;;  %8647 = vmatmul.msk.f32.gmra.mxu3 %vm299_vm1, %v259_v27  ;;  %8652 = vmatmul.msk.f32.gmra.mxu0 %vm299_vm1, %v8948_v38 }
 0x3a1   : > { %3346 = vrot.lane.b32.xlu2 %v2613_v3, %s9096_s27  ;;  %v4737_v18 = vadd.f32 %v4669_v0, %v4546_v57  ;;  %v2623_v3 = vsel %vm1904_vm3, 0.0, %v2622_v14  ;;  %v1060_v14 = vadd.f32 %v10860_v54, %v14400_v49 }
 0x3a3   : > { %v11236_v12 = vpop.permute.xlu2 %1832  ;;  %v11250_v5 = vadd.f32 %v4825_v50, %v4737_v18  ;;  %v2645_v18 = vperm.slane %v2637_v40, %v9897_v2  ;;  %v11270_v27 = vsel %vm1870_vm2, %v1060_v14, %v10424_v10  ;;  %v2635_v50 = vperm.slane %v2627_v11, %v9893_v4 }
 0x3a4   : > { %3282 = vrot.lane.b32.xlu1 %v2621_v51, %s9094_s23  ;;  %v4432_v57 = vpop.f32.mrf.mxu0  ;;  %v4548_v0 = vpop.f32.mrf.mxu1  ;;  %v2657_v10 = vsel %vm1904_vm3, 0.0, %v2656_v31  ;;  %v8950_v31 = vld [vmem:[%s9213_s29 + $0x32] sm:$0xff] }
 0x3a5   : > { %14399 = vst [vmem:[#allocation53_spill] sm:$0xff] %v11250_v5  ;;  %v4549_v43 = vadd.f32 %v4548_v0, %v4432_v57  ;;  %v2658_v49 = vrot.slane %v2645_v18, 4  ;;  %v4023_v57 = vsel %vm4016_vm4, %v10678_v59, %v11072_v41  ;;  %v2646_v11 = vrot.slane %v2635_v50, 4  ;;  %8718 = vmatmul.msk.f32.vlgmr.msrb.gmra.mxu2 %vm299_vm1, %v11089_v36 }
 0x3a6   : > { %v11247_v46 = vpop.permute.xlu1 %1830  ;;  %3410 = vrot.lane.b32.xlu0 %v2623_v3, %s9098_s30  ;;  %v11262_v3 = vld [vmem:[%s9213_s29 + $0x69] sm:$0xff]  ;;  %v4828_v0 = vpop.f32.mrf.mxu3  ;;  %v4040_v14 = vsel %vm4033_vm5, %v4023_v57, %v11202_v20 }
 0x3a7   : > { %8691 = vmatmul.msk.f32.gmra.mxu1 %vm299_vm1, %v11262_v3  ;;  %v4057_v36 = vsel %vm4050_vm6, %v4040_v14, %v11186_v30  ;;  %v2664_v30 = vrot.slane %v11270_v27, 4 }
 0x3a8   : > { %v3597_v51 = vpop.permute.xlu0 %3596  ;;  %v4672_v38 = vpop.f32.mrf.mxu2  ;;  %8752 = vmatmul.msk.f32.vlgmr.msrb.gmra.mxu3 %vm299_vm1, %v8950_v31  ;;  %8653 = vmatmul.msk.f32.gmra.mxu0 %vm299_vm1, %v8950_v31 }
 0x3a9   : > { %3538 = vrot.lane.b32.xlu2 %v2625_v22, %s9099_s4  ;;  %v4738_v40 = vadd.f32 %v4672_v38, %v4549_v43  ;;  %v11278_v22 = vperm.slane %v11270_v27, %v9893_v4  ;;  %v4141_v38 = vsel %vm4016_vm4, %v10754_v63, %v3597_v51  ;;  %v2647_v51 = vsel %vm1904_vm3, 0.0, %v2646_v11 }
 0x3ab   : > { %v11273_v19 = vpop.permute.xlu2 %3278  ;;  %v2674_v63 = vrot.slane %v11278_v22, 4 }
 0x3ac   : > { %3474 = vrot.lane.b32.xlu1 %v2617_v7, %s9097_s28  ;;  %v11287_v7 = vadd.f32 %v4828_v0, %v4738_v40  ;;  %v4435_v59 = vpop.f32.mrf.mxu0  ;;  %v4551_v41 = vpop.f32.mrf.mxu1  ;;  %v11299_v0 = vld [vmem:[%s9213_s29 + $0x79] sm:$0xff] }
 0x3ad   : > { %v4552_v40 = vadd.f32 %v4551_v41, %v4435_v59  ;;  %v4074_v41 = vsel %vm4067_vm7, %v4057_v36, %v11096_v53  ;;  %v2675_v14 = vsel %vm1904_vm3, 0.0, %v2674_v63  ;;  %8719 = vmatmul.msk.f32.gmra.mxu2 %vm299_vm1, %v11122_v48 }
 0x3ae   : > { %v3661_v43 = vpop.permute.xlu1 %3660  ;;  %3602 = vrot.lane.b32.xlu0 %v2657_v10, %s9093_s21  ;;  %14401 = vst [vmem:[#allocation5_spill] sm:$0xff] %v11287_v7  ;;  %v2659_v10 = vsel %vm1904_vm3, 0.0, %v2658_v49  ;;  %v4091_v11 = vsel %vm4084_vm8, %v4074_v41, %v11227_v34  ;;  %v8952_v34 = vld [vmem:[%s9213_s29 + $0x3a] sm:$0xff] }
 0x3af   : > { %v4157_v20 = vsel %vm4033_vm5, %v4141_v38, %v3661_v43  ;;  %8692 = vmatmul.msk.f32.gmra.mxu1 %vm299_vm1, %v11299_v0  ;;  %v2651_v38 = vperm.slane %v2635_v50, %v9897_v2 }
 0x3b0   : > { %v3789_v57 = vpop.permute.xlu0 %3788  ;;  %v4675_v31 = vpop.f32.mrf.mxu2  ;;  %v4173_v43 = vsel %vm4050_vm6, %v4157_v20, %v11176_v6  ;;  %v2655_v6 = vperm.slane %v2647_v51, %v9897_v2  ;;  %8753 = vmatmul.msk.f32.gmra.mxu3 %vm299_vm1, %v8952_v34  ;;  %8654 = vmatmul.msk.f32.gmra.mxu0 %vm299_vm1, %v8952_v34  ;;  %v14404_v34 = vld [vmem:[#allocation6_spill] sm:$0xff] }
 0x3b1   : > { %3730 = vrot.lane.b32.xlu2 %v2659_v10, %s9094_s23  ;;  %v4739_v59 = vadd.f32 %v4675_v31, %v4552_v40  ;;  %v4831_v20 = vpop.f32.mrf.mxu3  ;;  %v4189_v10 = vsel %vm4067_vm7, %v4173_v43, %v3789_v57  ;;  %v2660_v27 = vrot.slane %v2651_v38, 4  ;;  %v4108_v57 = vsel %vm4101_vm9, %v4091_v11, %v11218_v35  ;;  %v11337_v43 = vld [vmem:[%s9213_s29 + $0x81] sm:$0xff] }
 0x3b2   : > { %v2683_v31 = vperm.slane %v2675_v14, %v9897_v2  ;;  %v2662_v35 = vrot.slane %v2655_v6, 4 }
 0x3b3   : > { %v11310_v49 = vpop.permute.xlu2 %3470  ;;  %v11323_v53 = vadd.f32 %v4831_v20, %v4739_v59  ;;  %v2661_v20 = vsel %vm1904_vm3, 0.0, %v2660_v27 }
 0x3b4   : > { %3666 = vrot.lane.b32.xlu1 %v2645_v18, %s9095_s26  ;;  %v4438_v40 = vpop.f32.mrf.mxu0  ;;  %v4554_v63 = vpop.f32.mrf.mxu1 }
 0x3b5   : > { %14402 = vst [vmem:[#allocation54_spill] sm:$0xff] %v11323_v53  ;;  %v4555_v48 = vadd.f32 %v4554_v63, %v4438_v40  ;;  %8720 = vmatmul.msk.f32.gmra.mxu2 %vm299_vm1, %v11157_v16  ;;  %v14405_v16 = vld [vmem:[#allocation36_spill] sm:$0xff] }
 0x3b6   : > { %v3853_v50 = vpop.permute.xlu1 %3852  ;;  %3794 = vrot.lane.b32.xlu0 %v2651_v38, %s9096_s27  ;;  %v2665_v38 = vsel %vm1904_vm3, 0.0, %v2664_v30 }
 0x3b7   : > { %v4205_v18 = vsel %vm4084_vm8, %v4189_v10, %v3853_v50  ;;  %8693 = vmatmul.msk.f32.gmra.mxu1 %vm299_vm1, %v11337_v43  ;;  %v2673_v50 = vperm.slane %v2665_v38, %v9893_v4 }
 0x3b8   : > { %v3981_v36 = vpop.permute.xlu0 %3980  ;;  %v4221_v51 = vsel %vm4101_vm9, %v4205_v18, %v11208_v9  ;;  %v4678_v11 = vpop.f32.mrf.mxu2  ;;  %v4125_v9 = vsel %vm4118_vm10, %v4108_v57, %v11140_v33  ;;  %v2696_v18 = vrot.slane %v2683_v31, 4  ;;  %v2663_v33 = vsel %vm1904_vm3, 0.0, %v2662_v35 }
 0x3b9   : > { %v4237_v59 = vsel %vm4118_vm10, %v4221_v51, %v3981_v36  ;;  %3922 = vrot.lane.b32.xlu2 %v2655_v6, %s9097_s28  ;;  %v4740_v10 = vadd.f32 %v4678_v11, %v4555_v48  ;;  %v11354_v6 = vperm.slane %v11278_v22, %v9897_v2  ;;  %v4834_v27 = vpop.f32.mrf.mxu3  ;;  %v1061_v22 = vadd.f32 %v10860_v54, %v14404_v34  ;;  %v8954_v51 = vld [vmem:[%s9213_s29 + $0x4a] sm:$0xff] }
 0x3ba   : > { %v4285_v41 = vrot.slane %v4237_v59, 7  ;;  %8754 = vmatmul.msk.f32.gmra.mxu3 %vm299_vm1, %v8954_v51  ;;  %8655 = vmatmul.msk.f32.gmra.mxu0 %vm299_vm1, %v8954_v51  ;;  %v2684_v48 = vrot.slane %v2673_v50, 4  ;;  %v2697_v59 = vsel %vm1904_vm3, 0.0, %v2696_v18 }
 0x3bb   : > { %v11346_v14 = vpop.permute.xlu2 %3662  ;;  %v11363_v63 = vadd.f32 %v4834_v27, %v4740_v10  ;;  %v1892_v11 = vsel %vm1870_vm2, %v1061_v22, %v14405_v16 }
 0x3bc   : > { %v4302_v30 = vsel %vm4295_vm11, %v4125_v9, %v4285_v41  ;;  %3858 = vrot.lane.b32.xlu1 %v2661_v20, %s9098_s30  ;;  %v4441_v57 = vpop.f32.mrf.mxu0  ;;  %v4557_v36 = vpop.f32.mrf.mxu1  ;;  %v11376_v41 = vld [vmem:[%s9213_s29 + $0x91] sm:$0xff]  ;;  %v2694_v9 = vrot.slane %v11354_v6, 4  ;;  %v2685_v27 = vsel %vm1904_vm3, 0.0, %v2684_v48  ;;  %v2702_v34 = vrot.slane %v1892_v11, 4 }
 0x3bd   : > { %8502 = vst.msk [vmem:[%s10323_s10 + $0x18] ss:$2 sm:$0x3] %vm10310_vm12, %v4302_v30  ;;  %v4558_v35 = vadd.f32 %v4557_v36, %v4441_v57  ;;  %v2689_v30 = vperm.slane %v2673_v50, %v9897_v2  ;;  %8721 = vmatmul.msk.f32.gmra.mxu2 %vm299_vm1, %v11195_v58  ;;  %v2693_v50 = vperm.slane %v2685_v27, %v9897_v2  ;;  %v8956_v48 = vld [vmem:[%s9213_s29 + $0x52] sm:$0xff] }
 0x3be   : > { %v11360_v40 = vpop.permute.xlu1 %3214  ;;  %3986 = vrot.lane.b32.xlu0 %v2663_v33, %s9099_s4  ;;  %14403 = vst [vmem:[#allocation55_spill] sm:$0xff] %v11363_v63  ;;  %v2707_v33 = vperm.slane %v1892_v11, %v9893_v4  ;;  %v2695_v22 = vsel %vm1904_vm3, 0.0, %v2694_v9  ;;  %v2703_v58 = vsel %vm1904_vm3, 0.0, %v2702_v34  ;;  %v14408_v63 = vld [vmem:[#allocation7_spill] sm:$0xff] }
 0x3bf   : > { %8694 = vmatmul.msk.f32.gmra.mxu1 %vm299_vm1, %v11376_v41 }
 0x3c0   : > { %v11372_v38 = vpop.permute.xlu0 %3150  ;;  %v4681_v20 = vpop.f32.mrf.mxu2  ;;  %v2712_v16 = vrot.slane %v2707_v33, 4  ;;  %v11412_v27 = vperm.slane %v2707_v33, %v9897_v2 }
 0x3c1   : > { %3284 = vrot.lane.b32.xlu2 %v2697_v59, %s9094_s23  ;;  %v4741_v18 = vadd.f32 %v4681_v20, %v4558_v35  ;;  %v4837_v57 = vpop.f32.mrf.mxu3  ;;  %v2698_v59 = vrot.slane %v2689_v30, 4  ;;  %v11405_v20 = vld [vmem:[%s9213_s29 + $0x99] sm:$0xff] }
 0x3c2   : > { %8755 = vmatmul.msk.f32.gmra.mxu3 %vm299_vm1, %v8956_v48  ;;  %8656 = vmatmul.msk.f32.gmra.mxu0 %vm299_vm1, %v8956_v48 }
 0x3c3   : > { %v11384_v10 = vpop.permute.xlu2 %3854  ;;  %v11394_v51 = vadd.f32 %v4837_v57, %v4741_v18  ;;  %v2699_v57 = vsel %vm1904_vm3, 0.0, %v2698_v59  ;;  %v1062_v59 = vadd.f32 %v10860_v54, %v14408_v63  ;;  %v14409_v54 = vld [vmem:[#allocation38_spill] sm:$0xff] }
 0x3c4   : > { %3220 = vrot.lane.b32.xlu1 %v2683_v31, %s9095_s26  ;;  %v4444_v31 = vpop.f32.mrf.mxu0  ;;  %v4560_v35 = vpop.f32.mrf.mxu1 }
 0x3c5   : > { %14406 = vst [vmem:[#allocation6_spill] sm:$0xff] %v11394_v51  ;;  %v4561_v9 = vadd.f32 %v4560_v35, %v4444_v31  ;;  %v2711_v31 = vperm.slane %v2703_v58, %v9893_v4  ;;  %v2713_v35 = vsel %vm1904_vm3, 0.0, %v2712_v16  ;;  %8722 = vmatmul.msk.f32.gmra.mxu2 %vm299_vm1, %v11231_v23  ;;  %v2732_v16 = vrot.slane %v11412_v27, 4  ;;  %v11438_v23 = vld [vmem:[%s9213_s29 + $0xa9] sm:$0xff] }
 0x3c6   : > { %v11391_v36 = vpop.permute.xlu1 %3406  ;;  %3156 = vrot.lane.b32.xlu0 %v2695_v22, %s9093_s21  ;;  %v1893_v63 = vsel %vm1870_vm2, %v1062_v59, %v14409_v54 }
 0x3c7   : > { %8695 = vmatmul.msk.f32.gmra.mxu1 %vm299_vm1, %v11405_v20  ;;  %v2722_v5 = vrot.slane %v2711_v31, 4  ;;  %v2740_v1 = vrot.slane %v1893_v63, 4 }
 0x3c8   : > { %v11402_v11 = vpop.permute.xlu0 %3342  ;;  %v4684_v18 = vpop.f32.mrf.mxu2 }
 0x3c9   : > { %3476 = vrot.lane.b32.xlu2 %v2693_v50, %s9097_s28  ;;  %v4742_v48 = vadd.f32 %v4684_v18, %v4561_v9  ;;  %v4840_v51 = vpop.f32.mrf.mxu3  ;;  %v2721_v9 = vperm.slane %v2713_v35, %v9897_v2  ;;  %v2700_v35 = vrot.slane %v2693_v50, 4 }
 0x3cb   : > { %v11414_v22 = vpop.permute.xlu2 %3216  ;;  %v11423_v33 = vadd.f32 %v4840_v51, %v4742_v48  ;;  %v2727_v51 = vperm.slane %v2711_v31, %v9897_v2  ;;  %v2701_v25 = vsel %vm1904_vm3, 0.0, %v2700_v35 }
 0x3cc   : > { %3412 = vrot.lane.b32.xlu1 %v2699_v57, %s9098_s30  ;;  %v4447_v58 = vpop.f32.mrf.mxu0  ;;  %v4563_v18 = vpop.f32.mrf.mxu1  ;;  %v8958_v57 = vld [vmem:[%s9213_s29 + $0x62] sm:$0xff] }
 0x3cd   : > { %14407 = vst [vmem:[#allocation36_spill] sm:$0xff] %v11423_v33  ;;  %8756 = vmatmul.msk.f32.gmra.mxu3 %vm299_vm1, %v8958_v57  ;;  %8657 = vmatmul.msk.f32.gmra.mxu0 %vm299_vm1, %v8958_v57  ;;  %v4564_v48 = vadd.f32 %v4563_v18, %v4447_v58  ;;  %v2733_v57 = vsel %vm1904_vm3, 0.0, %v2732_v16  ;;  %v2745_v58 = vperm.slane %v1893_v63, %v9893_v4  ;;  %v2736_v18 = vrot.slane %v2727_v51, 4  ;;  %v8960_v16 = vld [vmem:[%s9213_s29 + $0x6a] sm:$0xff] }
 0x3ce   : > { %v11420_v34 = vpop.permute.xlu1 %3598  ;;  %3348 = vrot.lane.b32.xlu0 %v2689_v30, %s9096_s27  ;;  %8723 = vmatmul.msk.f32.gmra.mxu2 %vm299_vm1, %v11262_v3  ;;  %v2741_v3 = vsel %vm1904_vm3, 0.0, %v2740_v1  ;;  %v11483_v1 = vld [vmem:[%s14330_s2] ss:$0 sm:$0xff] }
 0x3cf   : > { %8696 = vmatmul.msk.f32.gmra.mxu1 %vm299_vm1, %v11438_v23  ;;  %v2737_v35 = vsel %vm1904_vm3, 0.0, %v2736_v18  ;;  %v11476_v18 = vperm.slane %v2741_v3, %v9893_v4 }
 0x3d0   : > { %v11434_v30 = vpop.permute.xlu0 %1834  ;;  %v4687_v33 = vpop.f32.mrf.mxu2 }
 0x3d1   : > { %3668 = vrot.lane.b32.xlu2 %v2721_v9, %s9095_s26  ;;  %v4743_v7 = vadd.f32 %v4687_v33, %v4564_v48  ;;  %v4843_v59 = vpop.f32.mrf.mxu3  ;;  %v2750_v48 = vrot.slane %v2745_v58, 4 }
 0x3d3   : > { %v11445_v53 = vpop.permute.xlu2 %3408  ;;  %v11454_v50 = vadd.f32 %v4843_v59, %v4743_v7  ;;  %v11466_v7 = vld [vmem:[%s9213_s29 + $0xb1] sm:$0xff]  ;;  %v2734_v59 = vrot.slane %v2721_v9, 4 }
 0x3d4   : > { %3604 = vrot.lane.b32.xlu1 %v2733_v57, %s9093_s21  ;;  %v4450_v31 = vpop.f32.mrf.mxu0  ;;  %v4566_v33 = vpop.f32.mrf.mxu1  ;;  %v2723_v57 = vsel %vm1904_vm3, 0.0, %v2722_v5  ;;  %v2751_v5 = vsel %vm1904_vm3, 0.0, %v2750_v48  ;;  %v14411_v9 = vld [vmem:[#allocation8_spill] sm:$0xff]  ;;  %v4142_v48 = vsel %vm4016_vm4, %v10909_v56, %v11420_v34  ;;  %v14413_v56 = vld [vmem:[#allocation37_spill] sm:$0xff] }
 0x3d5   : > { %14410 = vst [vmem:[#allocation7_spill] sm:$0xff] %v11454_v50  ;;  %8757 = vmatmul.msk.f32.gmra.mxu3 %vm299_vm1, %v8960_v16  ;;  %8658 = vmatmul.msk.f32.gmra.mxu0 %vm299_vm1, %v8960_v16  ;;  %v2731_v17 = vperm.slane %v2723_v57, %v9897_v2 }
 0x3d6   : > { %v11451_v54 = vpop.permute.xlu1 %3790  ;;  %3540 = vrot.lane.b32.xlu0 %v2701_v25, %s9099_s4  ;;  %v4567_v25 = vadd.f32 %v4566_v33, %v4450_v31  ;;  %v1063_v31 = vadd.f32 %v11483_v1, %v14411_v9  ;;  %v2735_v33 = vsel %vm1904_vm3, 0.0, %v2734_v59  ;;  %8724 = vmatmul.msk.f32.gmra.mxu2 %vm299_vm1, %v11299_v0 }
 0x3d7   : > { %8697 = vmatmul.msk.f32.gmra.mxu1 %vm299_vm1, %v11466_v7  ;;  %v2738_v3 = vrot.slane %v2731_v17, 4 }
 0x3d8   : > { %v11461_v63 = vpop.permute.xlu0 %3534  ;;  %v4690_v50 = vpop.f32.mrf.mxu2  ;;  %v1894_v34 = vsel %vm1870_vm2, %v1063_v31, %v14413_v56 }
 0x3d9   : > { %3860 = vrot.lane.b32.xlu2 %v2737_v35, %s9098_s30  ;;  %v4744_v15 = vadd.f32 %v4690_v50, %v4567_v25  ;;  %v4846_v35 = vpop.f32.mrf.mxu3  ;;  %v4024_v50 = vsel %vm4016_vm4, %v10855_v21, %v11372_v38  ;;  %v11502_v25 = vperm.slane %v2751_v5, %v9897_v2  ;;  %v8963_v38 = vld [vmem:[%s9213_s29 + $0x7a] sm:$0xff]  ;;  %v11526_v56 = vperm.slane %v1894_v34, %v9893_v4 }
 0x3da   : > { %v4041_v5 = vsel %vm4033_vm5, %v4024_v50, %v11360_v40 }
 0x3db   : > { %v11472_v16 = vpop.permute.xlu2 %3600  ;;  %v11497_v57 = vadd.f32 %v4846_v35, %v4744_v15  ;;  %v11511_v15 = vperm.slane %v11476_v18, %v9897_v2  ;;  %v4158_v35 = vsel %vm4033_vm5, %v4142_v48, %v11346_v14  ;;  %v4058_v14 = vsel %vm4050_vm6, %v4041_v5, %v11273_v19 }
 0x3dc   : > { %3796 = vrot.lane.b32.xlu1 %v2727_v51, %s9096_s27  ;;  %v4453_v59 = vpop.f32.mrf.mxu0  ;;  %v4569_v21 = vpop.f32.mrf.mxu1  ;;  %v4075_v48 = vsel %vm4067_vm7, %v4058_v14, %v11402_v11  ;;  %v11549_v19 = vperm.slane %v11526_v56, %v9897_v2  ;;  %v2772_v14 = vrot.slane %v11502_v25, 4 }
 0x3dd   : > { %14412 = vst [vmem:[#allocation38_spill] sm:$0xff] %v11497_v57  ;;  %8758 = vmatmul.msk.f32.gmra.mxu3 %vm299_vm1, %v8963_v38  ;;  %8659 = vmatmul.msk.f32.gmra.mxu0 %vm299_vm1, %v8963_v38  ;;  %v4570_v0 = vadd.f32 %v4569_v21, %v4453_v59  ;;  %v11529_v59 = vperm.slane %v2745_v58, %v9897_v2  ;;  %v2739_v57 = vsel %vm1904_vm3, 0.0, %v2738_v3  ;;  %v2774_v50 = vrot.slane %v11511_v15, 4 }
 0x3de   : > { %v11494_v51 = vpop.permute.xlu1 %1836  ;;  %3732 = vrot.lane.b32.xlu0 %v2735_v33, %s9094_s23  ;;  %v11514_v33 = vld [vmem:[%s9213_s29 + $0xc1] sm:$0xff]  ;;  %8725 = vmatmul.msk.f32.gmra.mxu2 %vm299_vm1, %v11337_v43 }
 0x3df   : > { %8698 = vmatmul.msk.f32.gmra.mxu1 %vm299_vm1, %v11514_v33  ;;  %v2770_v11 = vrot.slane %v11529_v59, 4  ;;  %v2775_v5 = vsel %vm1904_vm3, 0.0, %v2774_v50 }
 0x3e0   : > { %v3727_v9 = vpop.permute.xlu0 %3726  ;;  %v4693_v38 = vpop.f32.mrf.mxu2 }
 0x3e1   : > { %3222 = vrot.lane.b32.xlu2 %v11502_v25, %s9095_s26  ;;  %v4174_v31 = vsel %vm4050_vm6, %v4158_v35, %v3727_v9  ;;  %v4745_v40 = vadd.f32 %v4693_v38, %v4570_v0  ;;  %v4849_v9 = vpop.f32.mrf.mxu3  ;;  %v2778_v35 = vrot.slane %v1894_v34, 4  ;;  %v11561_v38 = vld [vmem:[%s9213_s29 + $0xc9] sm:$0xff] }
 0x3e2   : > { %v4190_v58 = vsel %vm4067_vm7, %v4174_v31, %v11451_v54  ;;  %v8965_v54 = vld [vmem:[%s9213_s29 + $0x82] sm:$0xff] }
 0x3e3   : > { %v11531_v21 = vpop.permute.xlu2 %3792  ;;  %v11543_v3 = vadd.f32 %v4849_v9, %v4745_v40  ;;  %v4206_v43 = vsel %vm4084_vm8, %v4190_v58, %v11384_v10 }
 0x3e4   : > { %3988 = vrot.lane.b32.xlu1 %v2739_v57, %s9099_s4  ;;  %v4456_v57 = vpop.f32.mrf.mxu0  ;;  %v4572_v0 = vpop.f32.mrf.mxu1 }
 0x3e5   : > { %14414 = vst [vmem:[#allocation8_spill] sm:$0xff] %v11543_v3  ;;  %8759 = vmatmul.msk.f32.gmra.mxu3 %vm299_vm1, %v8965_v54  ;;  %8660 = vmatmul.msk.f32.gmra.mxu0 %vm299_vm1, %v8965_v54  ;;  %v4573_v31 = vadd.f32 %v4572_v0, %v4456_v57  ;;  %v2771_v57 = vsel %vm1904_vm3, 0.0, %v2770_v11  ;;  %v2760_v54 = vrot.slane %v11476_v18, 4 }
 0x3e6   : > { %v3983_v52 = vpop.permute.xlu1 %3982  ;;  %3924 = vrot.lane.b32.xlu0 %v2731_v17, %s9097_s28  ;;  %v4092_v17 = vsel %vm4084_vm8, %v4075_v48, %v11391_v36  ;;  %v2779_v36 = vsel %vm1904_vm3, 0.0, %v2778_v35  ;;  %8726 = vmatmul.msk.f32.gmra.mxu2 %vm299_vm1, %v11376_v41 }
 0x3e7   : > { %8699 = vmatmul.msk.f32.gmra.mxu1 %vm299_vm1, %v11561_v38  ;;  %v4109_v50 = vsel %vm4101_vm9, %v4092_v17, %v11310_v49  ;;  %v2787_v35 = vperm.slane %v2779_v36, %v9893_v4  ;;  %v2773_v17 = vsel %vm1904_vm3, 0.0, %v2772_v14  ;;  %v2761_v14 = vsel %vm1904_vm3, 0.0, %v2760_v54 }
 0x3e8   : > { %v3919_v34 = vpop.permute.xlu0 %3918  ;;  %v4696_v10 = vpop.f32.mrf.mxu2  ;;  %v4126_v25 = vsel %vm4118_vm10, %v4109_v50, %v11461_v63 }
 0x3e9   : > { %v4222_v40 = vsel %vm4101_vm9, %v4206_v43, %v3919_v34  ;;  %3414 = vrot.lane.b32.xlu2 %v2775_v5, %s9098_s30  ;;  %v4746_v0 = vadd.f32 %v4696_v10, %v4573_v31  ;;  %v4852_v34 = vpop.f32.mrf.mxu3  ;;  %v8967_v5 = vld [vmem:[%s9213_s29 + $0x92] sm:$0xff]  ;;  %v2798_v41 = vrot.slane %v2787_v35, 4 }
 0x3ea   : > { %v4238_v48 = vsel %vm4118_vm10, %v4222_v40, %v3983_v52  ;;  %v2808_v52 = vrot.slane %v11549_v19, 4 }
 0x3eb   : > { %v4286_v58 = vrot.slane %v4238_v48, 7  ;;  %v11572_v9 = vpop.permute.xlu2 %3984  ;;  %v11589_v63 = vadd.f32 %v4852_v34, %v4746_v0  ;;  %v11601_v48 = vld [vmem:[%s9213_s29 + $0xd9] sm:$0xff]  ;;  %v2788_v0 = vrot.slane %v11526_v56, 4  ;;  %v2799_v54 = vsel %vm1904_vm3, 0.0, %v2798_v41  ;;  %v11633_v41 = vld [vmem:[%s9213_s29 + $0xe1] sm:$0xff] }
 0x3ec   : > { %3158 = vrot.lane.b32.xlu1 %v2771_v57, %s9093_s21  ;;  %v4459_v18 = vpop.f32.mrf.mxu0  ;;  %v4575_v43 = vpop.f32.mrf.mxu1  ;;  %v2809_v40 = vsel %vm1904_vm3, 0.0, %v2808_v52  ;;  %v2803_v56 = vperm.slane %v2787_v35, %v9897_v2 }
 0x3ed   : > { %v4303_v49 = vsel %vm4295_vm11, %v4126_v25, %v4286_v58  ;;  %14415 = vst [vmem:[#allocation37_spill] sm:$0xff] %v11589_v63  ;;  %8760 = vmatmul.msk.f32.gmra.mxu3 %vm299_vm1, %v8967_v5  ;;  %8661 = vmatmul.msk.f32.gmra.mxu0 %vm299_vm1, %v8967_v5  ;;  %v4576_v36 = vadd.f32 %v4575_v43, %v4459_v18  ;;  %v8969_v5 = vld [vmem:[%s9213_s29 + $0x9a] sm:$0xff] }
 0x3ee   : > { %8503 = vst.msk [vmem:[%s10323_s10 + $0x1c] ss:$2 sm:$0x3] %vm10310_vm12, %v4303_v49  ;;  %v11586_v11 = vpop.permute.xlu1 %3152  ;;  %3286 = vrot.lane.b32.xlu0 %v2773_v17, %s9094_s23  ;;  %v2769_v58 = vperm.slane %v2761_v14, %v9897_v2  ;;  %8727 = vmatmul.msk.f32.gmra.mxu2 %vm299_vm1, %v11405_v20  ;;  %v14417_v17 = vld [vmem:[#allocation9_spill] sm:$0xff] }
 0x3ef   : > { %8700 = vmatmul.msk.f32.gmra.mxu1 %vm299_vm1, %v11601_v48  ;;  %v1064_v34 = vadd.f32 %v11483_v1, %v14417_v17 }
 0x3f0   : > { %v11596_v31 = vpop.permute.xlu0 %3280  ;;  %v4699_v10 = vpop.f32.mrf.mxu2  ;;  %v2776_v18 = vrot.slane %v2769_v58, 4 }
 0x3f1   : > { %3606 = vrot.lane.b32.xlu2 %v2809_v40, %s9093_s21  ;;  %v4747_v57 = vadd.f32 %v4699_v10, %v4576_v36  ;;  %v4855_v25 = vpop.f32.mrf.mxu3  ;;  %v2789_v40 = vsel %vm1904_vm3, 0.0, %v2788_v0  ;;  %v11630_v36 = vperm.slane %v2799_v54, %v9897_v2  ;;  %v1895_v35 = vsel %vm1870_vm2, %v1064_v34, %v10901_v37 }
 0x3f2   : > { %v2797_v0 = vperm.slane %v2789_v40, %v9897_v2  ;;  %v2816_v37 = vrot.slane %v1895_v35, 4 }
 0x3f3   : > { %v11606_v50 = vpop.permute.xlu2 %3154  ;;  %v11616_v49 = vadd.f32 %v4855_v25, %v4747_v57  ;;  %v2777_v57 = vsel %vm1904_vm3, 0.0, %v2776_v18  ;;  %v2821_v25 = vperm.slane %v1895_v35, %v9893_v4  ;;  %v2814_v17 = vrot.slane %v11630_v36, 4 }
 0x3f4   : > { %3350 = vrot.lane.b32.xlu1 %v11511_v15, %s9096_s27  ;;  %v4462_v15 = vpop.f32.mrf.mxu0  ;;  %v4578_v43 = vpop.f32.mrf.mxu1  ;;  %v2810_v18 = vrot.slane %v2797_v0, 4 }
 0x3f5   : > { %14416 = vst [vmem:[#allocation56_spill] sm:$0xff] %v11616_v49  ;;  %8761 = vmatmul.msk.f32.gmra.mxu3 %vm299_vm1, %v8969_v5  ;;  %8662 = vmatmul.msk.f32.gmra.mxu0 %vm299_vm1, %v8969_v5  ;;  %v4579_v20 = vadd.f32 %v4578_v43, %v4462_v15  ;;  %v2826_v3 = vrot.slane %v2821_v25, 4 }
 0x3f6   : > { %v11613_v52 = vpop.permute.xlu1 %3344  ;;  %3478 = vrot.lane.b32.xlu0 %v2769_v58, %s9097_s28  ;;  %8728 = vmatmul.msk.f32.gmra.mxu2 %vm299_vm1, %v11438_v23  ;;  %v2812_v23 = vrot.slane %v2803_v56, 4 }
 0x3f7   : > { %8701 = vmatmul.msk.f32.gmra.mxu1 %vm299_vm1, %v11633_v41 }
 0x3f8   : > { %v11627_v14 = vpop.permute.xlu0 %3472  ;;  %v4702_v10 = vpop.f32.mrf.mxu2 }
 0x3f9   : > { %3798 = vrot.lane.b32.xlu2 %v2803_v56, %s9096_s27  ;;  %v4748_v54 = vadd.f32 %v4702_v10, %v4579_v20  ;;  %v4858_v15 = vpop.f32.mrf.mxu3  ;;  %v8971_v20 = vld [vmem:[%s9213_s29 + $0xaa] sm:$0xff]  ;;  %v11658_v10 = vperm.slane %v2821_v25, %v9897_v2 }
 0x3fb   : > { %v11640_v58 = vpop.permute.xlu2 %3346  ;;  %v11650_v43 = vadd.f32 %v4858_v15, %v4748_v54  ;;  %v11662_v54 = vld [vmem:[%s9213_s29 + $0xf1] sm:$0xff] }
 0x3fc   : > { %3542 = vrot.lane.b32.xlu1 %v2777_v57, %s9099_s4  ;;  %v4465_v5 = vpop.f32.mrf.mxu0  ;;  %v4581_v40 = vpop.f32.mrf.mxu1  ;;  %v2815_v57 = vsel %vm1904_vm3, 0.0, %v2814_v17  ;;  %v4025_v17 = vsel %vm4016_vm4, %v11045_v28, %v11586_v11  ;;  %v14420_v28 = vld [vmem:[#allocation10_spill] sm:$0xff] }
 0x3fd   : > { %14418 = vst [vmem:[#allocation9_spill] sm:$0xff] %v11650_v43  ;;  %8762 = vmatmul.msk.f32.gmra.mxu3 %vm299_vm1, %v8971_v20  ;;  %8663 = vmatmul.msk.f32.gmra.mxu0 %vm299_vm1, %v8971_v20  ;;  %v4582_v49 = vadd.f32 %v4581_v40, %v4465_v5  ;;  %v2811_v20 = vsel %vm1904_vm3, 0.0, %v2810_v18  ;;  %v2846_v5 = vrot.slane %v11658_v10, 4  ;;  %v4143_v18 = vsel %vm4016_vm4, %v11065_v61, %v11472_v16  ;;  %v8973_v61 = vld [vmem:[%s9213_s29 + $0xb2] sm:$0xff] }
 0x3fe   : > { %v11647_v34 = vpop.permute.xlu1 %3536  ;;  %3670 = vrot.lane.b32.xlu0 %v2797_v0, %s9095_s26  ;;  %v2817_v0 = vsel %vm1904_vm3, 0.0, %v2816_v37  ;;  %v2813_v37 = vsel %vm1904_vm3, 0.0, %v2812_v23  ;;  %8729 = vmatmul.msk.f32.gmra.mxu2 %vm299_vm1, %v11466_v7  ;;  %v1065_v11 = vadd.f32 %v11483_v1, %v14420_v28  ;;  %v2827_v16 = vsel %vm1904_vm3, 0.0, %v2826_v3 }
 0x3ff   : > { %8702 = vmatmul.msk.f32.gmra.mxu1 %vm299_vm1, %v11662_v54  ;;  %v2825_v56 = vperm.slane %v2817_v0, %v9893_v4  ;;  %v2835_v28 = vperm.slane %v2827_v16, %v9897_v2 }
 0x400   : > { %v3665_v35 = vpop.permute.xlu0 %3664  ;;  %v4705_v15 = vpop.f32.mrf.mxu2 }
 0x401   : > { %3990 = vrot.lane.b32.xlu2 %v2815_v57, %s9099_s4  ;;  %v4749_v63 = vadd.f32 %v4705_v15, %v4582_v49  ;;  %v4861_v40 = vpop.f32.mrf.mxu3  ;;  %v4042_v57 = vsel %vm4033_vm5, %v4025_v17, %v11414_v22  ;;  %v4159_v23 = vsel %vm4033_vm5, %v4143_v18, %v3665_v35  ;;  %v2836_v22 = vrot.slane %v2825_v56, 4 }
 0x402   : > { %v1896_v35 = vsel %vm1870_vm2, %v1065_v11, %v10949_v24  ;;  %v4059_v3 = vsel %vm4050_vm6, %v4042_v57, %v11596_v31  ;;  %v2841_v31 = vperm.slane %v2825_v56, %v9897_v2  ;;  %v2848_v56 = vrot.slane %v2835_v28, 4 }
 0x403   : > { %v11668_v43 = vpop.permute.xlu2 %3538  ;;  %v11682_v25 = vadd.f32 %v4861_v40, %v4749_v63  ;;  %v11698_v40 = vld [vmem:[%s9213_s29 + $0xf9] sm:$0xff]  ;;  %v4076_v18 = vsel %vm4067_vm7, %v4059_v3, %v11613_v52  ;;  %v2859_v24 = vperm.slane %v1896_v35, %v9893_v4  ;;  %v2837_v52 = vsel %vm1904_vm3, 0.0, %v2836_v22  ;;  %v8975_v22 = vld [vmem:[%s9213_s29 + $0xc2] sm:$0xff] }
 0x404   : > { %3734 = vrot.lane.b32.xlu1 %v2811_v20, %s9094_s23  ;;  %v4468_v0 = vpop.f32.mrf.mxu0  ;;  %v4584_v15 = vpop.f32.mrf.mxu1  ;;  %v2847_v20 = vsel %vm1904_vm3, 0.0, %v2846_v5 }
 0x405   : > { %14419 = vst [vmem:[#allocation57_spill] sm:$0xff] %v11682_v25  ;;  %8763 = vmatmul.msk.f32.gmra.mxu3 %vm299_vm1, %v8973_v61  ;;  %8664 = vmatmul.msk.f32.gmra.mxu0 %vm299_vm1, %v8973_v61  ;;  %v14430_v25 = vld [vmem:[#allocation17_spill] sm:$0xff] }
 0x406   : > { %v3729_v49 = vpop.permute.xlu1 %3728  ;;  %3862 = vrot.lane.b32.xlu0 %v2813_v37, %s9098_s30  ;;  %v4585_v37 = vadd.f32 %v4584_v15, %v4468_v0  ;;  %v14421_v0 = vld [vmem:[#allocation11_spill] sm:$0xff]  ;;  %v14422_v15 = vld [vmem:[#allocation12_spill] sm:$0xff]  ;;  %8730 = vmatmul.msk.f32.gmra.mxu2 %vm299_vm1, %v11514_v33 }
 0x407   : > { %v4175_v63 = vsel %vm4050_vm6, %v4159_v23, %v3729_v49  ;;  %8703 = vmatmul.msk.f32.gmra.mxu1 %vm299_vm1, %v11698_v40  ;;  %v708_v61 = vadd.f32 %v14422_v15, %v14421_v0  ;;  %v2850_v15 = vrot.slane %v2841_v31, 4 }
 0x408   : > { %v3857_v7 = vpop.permute.xlu0 %3856  ;;  %v4708_v17 = vpop.f32.mrf.mxu2  ;;  %v4191_v5 = vsel %vm4067_vm7, %v4175_v63, %v11531_v21  ;;  %v4093_v21 = vsel %vm4084_vm8, %v4076_v18, %v11445_v53  ;;  %v14424_v53 = vld [vmem:[#allocation13_spill] sm:$0xff]  ;;  %v2845_v18 = vperm.slane %v2837_v52, %v9897_v2  ;;  %v2854_v52 = vrot.slane %v1896_v35, 4 }
 0x409   : > { %3160 = vrot.lane.b32.xlu2 %v2847_v20, %s9093_s21  ;;  %v4750_v23 = vadd.f32 %v4708_v17, %v4585_v37  ;;  %v4864_v11 = vpop.f32.mrf.mxu3  ;;  %v4207_v57 = vsel %vm4084_vm8, %v4191_v5, %v3857_v7  ;;  %v875_v7 = vadd.f32 %v14424_v53, %v708_v61  ;;  %v11740_v5 = vld [vmem:[%s9213_s29 + $0x109] sm:$0xff]  ;;  %v11760_v35 = vperm.slane %v2859_v24, %v9897_v2 }
 0x40a   : > { %v2855_v53 = vsel %vm1904_vm3, 0.0, %v2854_v52 }
 0x40b   : > { %v11711_v49 = vpop.permute.xlu2 %3730  ;;  %v11725_v63 = vadd.f32 %v4864_v11, %v4750_v23  ;;  %v4110_v23 = vsel %vm4101_vm9, %v4093_v21, %v11627_v14  ;;  %v2852_v14 = vrot.slane %v2845_v18, 4  ;;  %v2863_v52 = vperm.slane %v2855_v53, %v9893_v4 }
 0x40c   : > { %3926 = vrot.lane.b32.xlu1 %v11630_v36, %s9097_s28  ;;  %v4471_v20 = vpop.f32.mrf.mxu0  ;;  %v4587_v37 = vpop.f32.mrf.mxu1 }
 0x40d   : > { %14423 = vst [vmem:[#allocation10_spill] sm:$0xff] %v11725_v63  ;;  %8764 = vmatmul.msk.f32.gmra.mxu3 %vm299_vm1, %v8975_v22  ;;  %8665 = vmatmul.msk.f32.gmra.mxu0 %vm299_vm1, %v8975_v22  ;;  %v4588_v33 = vadd.f32 %v4587_v37, %v4471_v20  ;;  %v14425_v20 = vld [vmem:[#allocation14_spill] sm:$0xff] }
 0x40e   : > { %v3921_v16 = vpop.permute.xlu1 %3920  ;;  %3224 = vrot.lane.b32.xlu0 %v2835_v28, %s9095_s26  ;;  %v2864_v28 = vrot.slane %v2859_v24, 4  ;;  %v1031_v37 = vadd.f32 %v14425_v20, %v875_v7  ;;  %8731 = vmatmul.msk.f32.gmra.mxu2 %vm299_vm1, %v11561_v38  ;;  %v2884_v38 = vrot.slane %v11760_v35, 4 }
 0x40f   : > { %v4223_v36 = vsel %vm4101_vm9, %v4207_v57, %v3921_v16  ;;  %8704 = vmatmul.msk.f32.gmra.mxu1 %vm299_vm1, %v11740_v5  ;;  %v2849_v16 = vsel %vm1904_vm3, 0.0, %v2848_v56 }
 0x410   : > { %v4239_v3 = vsel %vm4118_vm10, %v4223_v36, %v11572_v9  ;;  %v11736_v17 = vpop.permute.xlu0 %3218  ;;  %v4127_v9 = vsel %vm4118_vm10, %v4110_v23, %v11647_v34  ;;  %v4711_v61 = vpop.f32.mrf.mxu2  ;;  %v2865_v34 = vsel %vm1904_vm3, 0.0, %v2864_v28  ;;  %v1066_v24 = vadd.f32 %v11483_v1, %v1031_v37 }
 0x411   : > { %v4287_v0 = vrot.slane %v4239_v3, 7  ;;  %3352 = vrot.lane.b32.xlu2 %v2841_v31, %s9096_s27  ;;  %v4751_v36 = vadd.f32 %v4711_v61, %v4588_v33  ;;  %v2851_v31 = vsel %vm1904_vm3, 0.0, %v2850_v15  ;;  %v4867_v21 = vpop.f32.mrf.mxu3  ;;  %v8977_v33 = vld [vmem:[%s9213_s29 + $0xca] sm:$0xff]  ;;  %v2853_v23 = vsel %vm1904_vm3, 0.0, %v2852_v14 }
 0x412   : > { %v1897_v61 = vsel %vm1870_vm2, %v1066_v24, %v10934_v55  ;;  %v2885_v14 = vsel %vm1904_vm3, 0.0, %v2884_v38  ;;  %v14429_v38 = vld [vmem:[#allocation16_spill] sm:$0xff] }
 0x413   : > { %v4304_v11 = vsel %vm4295_vm11, %v4127_v9, %v4287_v0  ;;  %v11750_v57 = vpop.permute.xlu2 %3922  ;;  %v11766_v22 = vadd.f32 %v4867_v21, %v4751_v36  ;;  %v2873_v0 = vperm.slane %v2865_v34, %v9897_v2  ;;  %v11780_v9 = vld [vmem:[%s9213_s29 + $0x111] sm:$0xff]  ;;  %v11793_v37 = vperm.slane %v1897_v61, %v9893_v4 }
 0x414   : > { %8504 = vst.msk [vmem:[%s10323_s10 + $0x20] ss:$2 sm:$0x3] %vm10310_vm12, %v4304_v11  ;;  %3288 = vrot.lane.b32.xlu1 %v2849_v16, %s9094_s23  ;;  %v4474_v7 = vpop.f32.mrf.mxu0  ;;  %v4590_v3 = vpop.f32.mrf.mxu1 }
 0x415   : > { %14426 = vst [vmem:[#allocation11_spill] sm:$0xff] %v11766_v22  ;;  %8765 = vmatmul.msk.f32.gmra.mxu3 %vm299_vm1, %v8977_v33  ;;  %8666 = vmatmul.msk.f32.gmra.mxu0 %vm299_vm1, %v8977_v33  ;;  %v4591_v15 = vadd.f32 %v4590_v3, %v4474_v7  ;;  %v2886_v20 = vrot.slane %v2873_v0, 4  ;;  %v8979_v7 = vld [vmem:[%s9213_s29 + $0xda] sm:$0xff] }
 0x416   : > { %v11763_v56 = vpop.permute.xlu1 %3282  ;;  %3416 = vrot.lane.b32.xlu0 %v2851_v31, %s9098_s30  ;;  %v2874_v31 = vrot.slane %v2863_v52, 4  ;;  %8732 = vmatmul.msk.f32.gmra.mxu2 %vm299_vm1, %v11601_v48  ;;  %v14428_v48 = vld [vmem:[#allocation15_spill] sm:$0xff] }
 0x417   : > { %8705 = vmatmul.msk.f32.gmra.mxu1 %vm299_vm1, %v11780_v9  ;;  %v2887_v33 = vsel %vm1904_vm3, 0.0, %v2886_v20  ;;  %v2879_v20 = vperm.slane %v2863_v52, %v9897_v2 }
 0x418   : > { %v11775_v28 = vpop.permute.xlu0 %3410  ;;  %v4714_v11 = vpop.f32.mrf.mxu2 }
 0x419   : > { %3544 = vrot.lane.b32.xlu2 %v2853_v23, %s9099_s4  ;;  %v4752_v36 = vadd.f32 %v4714_v11, %v4591_v15  ;;  %v4870_v34 = vpop.f32.mrf.mxu3  ;;  %v11808_v23 = vld [vmem:[%s9213_s29 + $0x121] sm:$0xff]  ;;  %v2902_v15 = vrot.slane %v11793_v37, 4  ;;  %v711_v11 = vadd.f32 %v14429_v38, %v14428_v48 }
 0x41a   : > { %v8981_v38 = vld [vmem:[%s9213_s29 + $0xe2] sm:$0xff] }
 0x41b   : > { %v11789_v16 = vpop.permute.xlu2 %3284  ;;  %v11799_v55 = vadd.f32 %v4870_v34, %v4752_v36  ;;  %v2875_v36 = vsel %vm1904_vm3, 0.0, %v2874_v31  ;;  %v2892_v34 = vrot.slane %v1897_v61, 4 }
 0x41c   : > { %3480 = vrot.lane.b32.xlu1 %v2845_v18, %s9097_s28  ;;  %v4477_v53 = vpop.f32.mrf.mxu0  ;;  %v4593_v18 = vpop.f32.mrf.mxu1  ;;  %v2883_v63 = vperm.slane %v2875_v36, %v9897_v2 }
 0x41d   : > { %14427 = vst [vmem:[#allocation12_spill] sm:$0xff] %v11799_v55  ;;  %8766 = vmatmul.msk.f32.gmra.mxu3 %vm299_vm1, %v8979_v7  ;;  %8667 = vmatmul.msk.f32.gmra.mxu0 %vm299_vm1, %v8979_v7  ;;  %v4594_v24 = vadd.f32 %v4593_v18, %v4477_v53  ;;  %v2903_v18 = vsel %vm1904_vm3, 0.0, %v2902_v15  ;;  %v876_v55 = vadd.f32 %v14430_v25, %v711_v11  ;;  %v2893_v61 = vsel %vm1904_vm3, 0.0, %v2892_v34  ;;  %v14432_v34 = vld [vmem:[#allocation18_spill] sm:$0xff] }
 0x41e   : > { %v11796_v21 = vpop.permute.xlu1 %3474  ;;  %3608 = vrot.lane.b32.xlu0 %v2885_v14, %s9093_s21  ;;  %8733 = vmatmul.msk.f32.gmra.mxu2 %vm299_vm1, %v11633_v41 }
 0x41f   : > { %8706 = vmatmul.msk.f32.gmra.mxu1 %vm299_vm1, %v11808_v23 }
 0x420   : > { %v3603_v3 = vpop.permute.xlu0 %3602  ;;  %v4717_v14 = vpop.f32.mrf.mxu2 }
 0x421   : > { %3736 = vrot.lane.b32.xlu2 %v2887_v33, %s9094_s23  ;;  %v4753_v53 = vadd.f32 %v4717_v14, %v4594_v24  ;;  %v4873_v33 = vpop.f32.mrf.mxu3  ;;  %v4144_v52 = vsel %vm4016_vm4, %v11244_v44, %v3603_v3  ;;  %v2888_v24 = vrot.slane %v2879_v20, 4  ;;  %v2911_v14 = vperm.slane %v2903_v18, %v9897_v2 }
 0x422   : > { %v2890_v3 = vrot.slane %v2883_v63, 4 }
 0x423   : > { %v11817_v7 = vpop.permute.xlu2 %3476  ;;  %v11825_v31 = vadd.f32 %v4873_v33, %v4753_v53  ;;  %v2901_v53 = vperm.slane %v2893_v61, %v9893_v4 }
 0x424   : > { %3672 = vrot.lane.b32.xlu1 %v2873_v0, %s9095_s26  ;;  %v4026_v0 = vsel %vm4016_vm4, %v11162_v47, %v11606_v50  ;;  %v4480_v25 = vpop.f32.mrf.mxu0  ;;  %v4596_v15 = vpop.f32.mrf.mxu1  ;;  %v11843_v50 = vld [vmem:[%s9213_s29 + $0x129] sm:$0xff] }
 0x425   : > { %14431 = vst [vmem:[#allocation13_spill] sm:$0xff] %v11825_v31  ;;  %8767 = vmatmul.msk.f32.gmra.mxu3 %vm299_vm1, %v8981_v38  ;;  %8668 = vmatmul.msk.f32.gmra.mxu0 %vm299_vm1, %v8981_v38  ;;  %v4043_v41 = vsel %vm4033_vm5, %v4026_v0, %v11736_v17  ;;  %v4597_v47 = vadd.f32 %v4596_v15, %v4480_v25  ;;  %v2912_v15 = vrot.slane %v2901_v53, 4 }
 0x426   : > { %v3667_v48 = vpop.permute.xlu1 %3666  ;;  %3800 = vrot.lane.b32.xlu0 %v2879_v20, %s9096_s27  ;;  %v4060_v44 = vsel %vm4050_vm6, %v4043_v41, %v11763_v56  ;;  %v1032_v20 = vadd.f32 %v14432_v34, %v876_v55  ;;  %v11862_v56 = vperm.slane %v11793_v37, %v9897_v2  ;;  %v2891_v55 = vsel %vm1904_vm3, 0.0, %v2890_v3  ;;  %8734 = vmatmul.msk.f32.gmra.mxu2 %vm299_vm1, %v11662_v54 }
 0x427   : > { %v4160_v11 = vsel %vm4033_vm5, %v4144_v52, %v3667_v48  ;;  %8707 = vmatmul.msk.f32.gmra.mxu1 %vm299_vm1, %v11843_v50  ;;  %v2889_v48 = vsel %vm1904_vm3, 0.0, %v2888_v24  ;;  %v4077_v52 = vsel %vm4067_vm7, %v4060_v44, %v11640_v58 }
 0x428   : > { %v3795_v36 = vpop.permute.xlu0 %3794  ;;  %v4720_v17 = vpop.f32.mrf.mxu2  ;;  %v4176_v18 = vsel %vm4050_vm6, %v4160_v11, %v11711_v49  ;;  %14433 = vst [vmem:[#allocation14_spill] sm:$0xff] %v11862_v56  ;;  %v1067_v58 = vadd.f32 %v11483_v1, %v1032_v20  ;;  %v4094_v37 = vsel %vm4084_vm8, %v4077_v52, %v11775_v28  ;;  %v11884_v28 = vld [vmem:[%s9213_s29 + $0x139] sm:$0xff] }
 0x429   : > { %3928 = vrot.lane.b32.xlu2 %v2883_v63, %s9097_s28  ;;  %v4754_v0 = vadd.f32 %v4720_v17, %v4597_v47  ;;  %v2924_v63 = vrot.slane %v2911_v14, 4  ;;  %v4876_v61 = vpop.f32.mrf.mxu3  ;;  %v4192_v49 = vsel %vm4067_vm7, %v4176_v18, %v3795_v36  ;;  %v8983_v36 = vld [vmem:[%s9213_s29 + $0xf2] sm:$0xff]  ;;  %v4111_v47 = vsel %vm4101_vm9, %v4094_v37, %v11796_v21 }
 0x42a   : > { %v1898_v20 = vsel %vm1870_vm2, %v1067_v58, %v11166_v26  ;;  %v2922_v21 = vrot.slane %v11862_v56, 4  ;;  %v2913_v58 = vsel %vm1904_vm3, 0.0, %v2912_v15  ;;  %v1036_v56 = vadd.f32 %v14455_v42, %v880_v8  ;;  %v9001_v8 = vld [vmem:[%s9213_s29 + $0x15a] sm:$0xff] }
 0x42b   : > { %v11854_v33 = vpop.permute.xlu2 %3668  ;;  %v11867_v24 = vadd.f32 %v4876_v61, %v4754_v0  ;;  %v2925_v3 = vsel %vm1904_vm3, 0.0, %v2924_v63  ;;  %v14436_v0 = vld [vmem:[#allocation20_spill] sm:$0xff]  ;;  %v4128_v63 = vsel %vm4118_vm10, %v4111_v47, %v11668_v43  ;;  %v2917_v61 = vperm.slane %v2901_v53, %v9897_v2 }
 0x42c   : > { %3864 = vrot.lane.b32.xlu1 %v2889_v48, %s9098_s30  ;;  %v4967_v41 = vpop.f32.mrf.mxu0  ;;  %v5083_v11 = vpop.f32.mrf.mxu1  ;;  %v14435_v48 = vld [vmem:[#allocation19_spill] sm:$0xff]  ;;  %v2930_v37 = vrot.slane %v1898_v20, 4  ;;  %v2923_v43 = vsel %vm1904_vm3, 0.0, %v2922_v21  ;;  %v2921_v15 = vperm.slane %v2913_v58, %v9897_v2 }
 0x42d   : > { %14434 = vst [vmem:[#allocation15_spill] sm:$0xff] %v11867_v24  ;;  %8768 = vmatmul.msk.f32.gmra.mxu3 %vm299_vm1, %v8983_v36  ;;  %8669 = vmatmul.msk.f32.gmra.mxu0 %vm299_vm1, %v8983_v36  ;;  %v5084_v34 = vadd.f32 %v5083_v11, %v4967_v41  ;;  %v714_v52 = vadd.f32 %v14436_v0, %v14435_v48  ;;  %v2926_v36 = vrot.slane %v2917_v61, 4 }
 0x42e   : > { %v3859_v25 = vpop.permute.xlu1 %3858  ;;  %3992 = vrot.lane.b32.xlu0 %v2891_v55, %s9099_s4  ;;  %8735 = vmatmul.msk.f32.gmra.mxu2 %vm299_vm1, %v11698_v40  ;;  %v2931_v40 = vsel %vm1904_vm3, 0.0, %v2930_v37 }
 0x42f   : > { %v4208_v38 = vsel %vm4084_vm8, %v4192_v49, %v3859_v25  ;;  %8708 = vmatmul.msk.f32.gmra.mxu1 %vm299_vm1, %v11884_v28  ;;  %v2935_v49 = vperm.slane %v1898_v20, %v9893_v4 }
 0x430   : > { %v3987_v44 = vpop.permute.xlu0 %3986  ;;  %v4224_v54 = vsel %vm4101_vm9, %v4208_v38, %v11750_v57  ;;  %v5201_v57 = vpop.f32.mrf.mxu2 }
 0x431   : > { %v4240_v17 = vsel %vm4118_vm10, %v4224_v54, %v3987_v44  ;;  %3290 = vrot.lane.b32.xlu2 %v2925_v3, %s9094_s23  ;;  %v5297_v26 = vadd.f32 %v5201_v57, %v5084_v34  ;;  %v5357_v38 = vpop.f32.mrf.mxu3  ;;  %v8985_v54 = vld [vmem:[%s9213_s29 + $0xfa] sm:$0xff]  ;;  %v2940_v3 = vrot.slane %v2935_v49, 4  ;;  %v11931_v48 = vperm.slane %v2935_v49, %v9897_v2 }
 0x432   : > { %v4288_v18 = vrot.slane %v4240_v17, 7  ;;  %v11923_v17 = vld [vmem:[%s9213_s29 + $0x141] sm:$0xff] }
 0x433   : > { %v11897_v55 = vpop.permute.xlu2 %3860  ;;  %v11911_v53 = vadd.f32 %v5357_v38, %v5297_v26  ;;  %14439 = vst [vmem:[#allocation16_spill] sm:$0xff] %v11931_v48  ;;  %v2939_v26 = vperm.slane %v2931_v40, %v9893_v4 }
 0x434   : > { %v4305_v25 = vsel %vm4295_vm11, %v4128_v63, %v4288_v18  ;;  %3226 = vrot.lane.b32.xlu1 %v2911_v14, %s9095_s26  ;;  %v14437_v14 = vld [vmem:[#allocation21_spill] sm:$0xff]  ;;  %v4970_v47 = vpop.f32.mrf.mxu0  ;;  %v5086_v44 = vpop.f32.mrf.mxu1  ;;  %v14438_v18 = vld [vmem:[#allocation22_spill] sm:$0xff] }
 0x435   : > { %8505 = vst.msk [vmem:[%s10323_s10 + $0x24] ss:$2 sm:$0x3] %vm10310_vm12, %v4305_v25  ;;  %v877_v11 = vadd.f32 %v14437_v14, %v714_v52  ;;  %8769 = vmatmul.msk.f32.gmra.mxu3 %vm299_vm1, %v8985_v54  ;;  %8670 = vmatmul.msk.f32.gmra.mxu0 %vm299_vm1, %v8985_v54  ;;  %v5087_v20 = vadd.f32 %v5086_v44, %v4970_v47  ;;  %v2927_v52 = vsel %vm1904_vm3, 0.0, %v2926_v36  ;;  %v2941_v25 = vsel %vm1904_vm3, 0.0, %v2940_v3  ;;  %v8987_v47 = vld [vmem:[%s9213_s29 + $0x10a] sm:$0xff] }
 0x436   : > { %v11908_v41 = vpop.permute.xlu1 %3220  ;;  %3162 = vrot.lane.b32.xlu0 %v2923_v43, %s9093_s21  ;;  %8736 = vmatmul.msk.f32.gmra.mxu2 %vm299_vm1, %v11740_v5  ;;  %v2949_v38 = vperm.slane %v2941_v25, %v9897_v2  ;;  %v2960_v14 = vrot.slane %v11931_v48, 4  ;;  %v11956_v3 = vld [vmem:[%s9213_s29 + $0x151] sm:$0xff] }
 0x437   : > { %8709 = vmatmul.msk.f32.gmra.mxu1 %vm299_vm1, %v11923_v17  ;;  %v1033_v57 = vadd.f32 %v14438_v18, %v877_v11  ;;  %v14441_v18 = vld [vmem:[#allocation24_spill] sm:$0xff] }
 0x438   : > { %v11920_v34 = vpop.permute.xlu0 %3156  ;;  %v5204_v21 = vpop.f32.mrf.mxu2 }
 0x439   : > { %3482 = vrot.lane.b32.xlu2 %v2921_v15, %s9097_s28  ;;  %v5298_v63 = vadd.f32 %v5204_v21, %v5087_v20  ;;  %v5360_v58 = vpop.f32.mrf.mxu3  ;;  %v1068_v43 = vadd.f32 %v11483_v1, %v1033_v57  ;;  %v2928_v20 = vrot.slane %v2921_v15, 4  ;;  %v14440_v21 = vld [vmem:[#allocation23_spill] sm:$0xff] }
 0x43a   : > { %v717_v57 = vadd.f32 %v14441_v18, %v14440_v21  ;;  %v8989_v18 = vld [vmem:[%s9213_s29 + $0x112] sm:$0xff] }
 0x43b   : > { %v11933_v0 = vpop.permute.xlu2 %3222  ;;  %v11942_v49 = vadd.f32 %v5360_v58, %v5298_v63  ;;  %v1899_v5 = vsel %vm1870_vm2, %v1068_v43, %v11247_v46  ;;  %v2961_v63 = vsel %vm1904_vm3, 0.0, %v2960_v14  ;;  %v2950_v58 = vrot.slane %v2939_v26, 4  ;;  %v14442_v14 = vld [vmem:[#allocation25_spill] sm:$0xff] }
 0x43c   : > { %3418 = vrot.lane.b32.xlu1 %v2927_v52, %s9098_s30  ;;  %v4973_v11 = vpop.f32.mrf.mxu0  ;;  %v5089_v36 = vpop.f32.mrf.mxu1  ;;  %v2968_v46 = vrot.slane %v1899_v5, 4  ;;  %v2929_v43 = vsel %vm1904_vm3, 0.0, %v2928_v20 }
 0x43d   : > { %8770 = vmatmul.msk.f32.gmra.mxu3 %vm299_vm1, %v8987_v47  ;;  %8671 = vmatmul.msk.f32.gmra.mxu0 %vm299_vm1, %v8987_v47  ;;  %v5090_v54 = vadd.f32 %v5089_v36, %v4973_v11  ;;  %v2973_v11 = vperm.slane %v1899_v5, %v9893_v4 }
 0x43e   : > { %v11939_v37 = vpop.permute.xlu1 %3412  ;;  %3354 = vrot.lane.b32.xlu0 %v2917_v61, %s9096_s27  ;;  %v2955_v61 = vperm.slane %v2939_v26, %v9897_v2  ;;  %8737 = vmatmul.msk.f32.gmra.mxu2 %vm299_vm1, %v11780_v9  ;;  %v878_v26 = vadd.f32 %v14442_v14, %v717_v57  ;;  %v2969_v9 = vsel %vm1904_vm3, 0.0, %v2968_v46  ;;  %v2962_v57 = vrot.slane %v2949_v38, 4 }
 0x43f   : > { %8710 = vmatmul.msk.f32.gmra.mxu1 %vm299_vm1, %v11956_v3  ;;  %v2978_v5 = vrot.slane %v2973_v11, 4 }
 0x440   : > { %v11952_v44 = vpop.permute.xlu0 %3348  ;;  %v5207_v40 = vpop.f32.mrf.mxu2  ;;  %v2964_v36 = vrot.slane %v2955_v61, 4  ;;  %v2963_v46 = vsel %vm1904_vm3, 0.0, %v2962_v57 }
 0x441   : > { %3674 = vrot.lane.b32.xlu2 %v2949_v38, %s9095_s26  ;;  %v5299_v25 = vadd.f32 %v5207_v40, %v5090_v54  ;;  %v5363_v15 = vpop.f32.mrf.mxu3  ;;  %v4027_v38 = vsel %vm4016_vm4, %v11354_v6, %v11920_v34  ;;  %v8991_v34 = vld [vmem:[%s9213_s29 + $0x122] sm:$0xff] }
 0x443   : > { %v11965_v52 = vpop.permute.xlu2 %3414  ;;  %v11972_v21 = vadd.f32 %v5363_v15, %v5299_v25  ;;  %v2951_v25 = vsel %vm1904_vm3, 0.0, %v2950_v58  ;;  %v11985_v15 = vld [vmem:[%s9213_s29 + $0x159] sm:$0xff]  ;;  %v11996_v58 = vperm.slane %v2969_v9, %v9893_v4 }
 0x444   : > { %3610 = vrot.lane.b32.xlu1 %v2961_v63, %s9093_s21  ;;  %v4976_v54 = vpop.f32.mrf.mxu0  ;;  %v5092_v40 = vpop.f32.mrf.mxu1  ;;  %v2965_v63 = vsel %vm1904_vm3, 0.0, %v2964_v36  ;;  %v2959_v36 = vperm.slane %v2951_v25, %v9897_v2 }
 0x445   : > { %8771 = vmatmul.msk.f32.gmra.mxu3 %vm299_vm1, %v8989_v18  ;;  %8672 = vmatmul.msk.f32.gmra.mxu0 %vm299_vm1, %v8989_v18  ;;  %v14443_v18 = vld [vmem:[#allocation26_spill] sm:$0xff] }
 0x446   : > { %v3605_v47 = vpop.permute.xlu1 %3604  ;;  %3546 = vrot.lane.b32.xlu0 %v2929_v43, %s9099_s4  ;;  %v5093_v43 = vadd.f32 %v5092_v40, %v4976_v54  ;;  %v1034_v24 = vadd.f32 %v14443_v18, %v878_v26  ;;  %v2979_v54 = vsel %vm1904_vm3, 0.0, %v2978_v5  ;;  %8738 = vmatmul.msk.f32.gmra.mxu2 %vm299_vm1, %v11808_v23  ;;  %v12025_v23 = vld [vmem:[%s9213_s29 + $0x169] sm:$0xff]  ;;  %v12040_v18 = vperm.slane %v2973_v11, %v9897_v2 }
 0x447   : > { %8711 = vmatmul.msk.f32.gmra.mxu1 %vm299_vm1, %v11985_v15  ;;  %v4145_v26 = vsel %vm4016_vm4, %v11412_v27, %v3605_v47  ;;  %v2987_v5 = vperm.slane %v2979_v54, %v9897_v2 }
 0x448   : > { %v11980_v20 = vpop.permute.xlu0 %3540  ;;  %v5210_v14 = vpop.f32.mrf.mxu2  ;;  %v4161_v47 = vsel %vm4033_vm5, %v4145_v26, %v11854_v33  ;;  %14444 = vst [vmem:[#allocation17_spill] sm:$0xff] %v12040_v18 }
 0x449   : > { %3866 = vrot.lane.b32.xlu2 %v2965_v63, %s9098_s30  ;;  %v5300_v22 = vadd.f32 %v5210_v14, %v5093_v43  ;;  %v5366_v40 = vpop.f32.mrf.mxu3  ;;  %v2966_v43 = vrot.slane %v2959_v36, 4 }
 0x44b   : > { %v11992_v31 = vpop.permute.xlu2 %3606  ;;  %v12007_v25 = vadd.f32 %v5366_v40, %v5300_v22  ;;  %v12022_v22 = vperm.slane %v11996_v58, %v9897_v2 }
 0x44c   : > { %3802 = vrot.lane.b32.xlu1 %v2955_v61, %s9096_s27  ;;  %v1069_v61 = vadd.f32 %v11483_v1, %v1034_v24  ;;  %v12013_v9 = vpop.f32.mrf.mxu0  ;;  %v12015_v6 = vpop.f32.mrf.mxu1  ;;  %v4044_v24 = vsel %vm4033_vm5, %v4027_v38, %v11908_v41 }
 0x44d   : > { %8772 = vmatmul.msk.f32.gmra.mxu3 %vm299_vm1, %v8991_v34  ;;  %8673 = vmatmul.msk.f32.gmra.mxu0 %vm299_vm1, %v8991_v34  ;;  %v4061_v33 = vsel %vm4050_vm6, %v4044_v24, %v11789_v16  ;;  %v3002_v41 = vrot.slane %v12022_v22, 4  ;;  %v2998_v16 = vrot.slane %v12040_v18, 4  ;;  %v12078_v24 = vld [vmem:[%s9213_s29 + $0x171] sm:$0xff] }
 0x44e   : > { %v3797_v63 = vpop.permute.xlu1 %3796  ;;  %3738 = vrot.lane.b32.xlu0 %v2963_v46, %s9094_s23  ;;  %v1900_v1 = vsel %vm1870_vm2, %v1069_v61, %v11236_v12  ;;  %v2967_v12 = vsel %vm1904_vm3, 0.0, %v2966_v43  ;;  %v4078_v40 = vsel %vm4067_vm7, %v4061_v33, %v11952_v44  ;;  %8739 = vmatmul.msk.f32.gmra.mxu2 %vm299_vm1, %v11843_v50 }
 0x44f   : > { %8712 = vmatmul.msk.f32.gmra.mxu1 %vm299_vm1, %v12025_v23  ;;  %v12046_v46 = vperm.slane %v1900_v1, %v9893_v4  ;;  %v3006_v26 = vrot.slane %v1900_v1, 4  ;;  %v3003_v1 = vsel %vm1904_vm3, 0.0, %v3002_v41 }
 0x450   : > { %v3733_v27 = vpop.permute.xlu0 %3732  ;;  %v12037_v14 = vpop.f32.mrf.mxu2 }
 0x451   : > { %3228 = vrot.lane.b32.xlu2 %v2987_v5, %s9095_s26  ;;  %v4177_v57 = vsel %vm4050_vm6, %v4161_v47, %v3733_v27  ;;  %v12055_v38 = vpop.f32.mrf.mxu3  ;;  %v8993_v27 = vld [vmem:[%s9213_s29 + $0x12a] sm:$0xff]  ;;  %v12070_v44 = vperm.slane %v12046_v46, %v9897_v2 }
 0x452   : > { %v4193_v11 = vsel %vm4067_vm7, %v4177_v57, %v3797_v63  ;;  %v3000_v57 = vrot.slane %v2987_v5, 4  ;;  %v2988_v5 = vrot.slane %v11996_v58, 4 }
 0x453   : > { %v12042_v54 = vpop.permute.xlu2 %3798  ;;  %14445 = vst [vmem:[#allocation18_spill] sm:$0xff] %v12070_v44  ;;  %v4209_v50 = vsel %vm4084_vm8, %v4193_v11, %v11897_v55  ;;  %v14446_v55 = vld [vmem:[#allocation27_spill] sm:$0xff] }
 0x454   : > { %3994 = vrot.lane.b32.xlu1 %v2967_v12, %s9099_s4  ;;  %v12061_v43 = vpop.f32.mrf.mxu0  ;;  %v12063_v34 = vpop.f32.mrf.mxu1  ;;  %v3007_v12 = vsel %vm1904_vm3, 0.0, %v3006_v26 }
 0x455   : > { %8773 = vmatmul.msk.f32.gmra.mxu3 %vm299_vm1, %v8993_v27  ;;  %8674 = vmatmul.msk.f32.gmra.mxu0 %vm299_vm1, %v8993_v27 }
 0x456   : > { %v3989_v61 = vpop.permute.xlu1 %3988  ;;  %3930 = vrot.lane.b32.xlu0 %v2959_v36, %s9097_s28  ;;  %v4095_v36 = vsel %vm4084_vm8, %v4078_v40, %v11939_v37  ;;  %v14447_v40 = vld [vmem:[#allocation28_spill] sm:$0xff]  ;;  %8740 = vmatmul.msk.f32.gmra.mxu2 %vm299_vm1, %v11884_v28 }
 0x457   : > { %8713 = vmatmul.msk.f32.gmra.mxu1 %vm299_vm1, %v12078_v24  ;;  %v720_v41 = vadd.f32 %v14447_v40, %v14446_v55  ;;  %v4112_v11 = vsel %vm4101_vm9, %v4095_v36, %v11817_v7  ;;  %v3001_v7 = vsel %vm1904_vm3, 0.0, %v3000_v57  ;;  %v2989_v40 = vsel %vm1904_vm3, 0.0, %v2988_v5 }
 0x458   : > { %v3925_v63 = vpop.permute.xlu0 %3924  ;;  %v12086_v33 = vpop.f32.mrf.mxu2  ;;  %v4129_v26 = vsel %vm4118_vm10, %v4112_v11, %v11980_v20  ;;  %v14448_v20 = vld [vmem:[#allocation29_spill] sm:$0xff] }
 0x459   : > { %v4225_v47 = vsel %vm4101_vm9, %v4209_v50, %v3925_v63  ;;  %3420 = vrot.lane.b32.xlu2 %v3003_v1, %s9098_s30  ;;  %v2999_v63 = vsel %vm1904_vm3, 0.0, %v2998_v16  ;;  %v3015_v50 = vperm.slane %v3007_v12, %v9893_v4  ;;  %v12103_v36 = vpop.f32.mrf.mxu3  ;;  %v879_v16 = vadd.f32 %v14448_v20, %v720_v41  ;;  %v12126_v11 = vld [vmem:[%s9213_s29 + $0x181] sm:$0xff]  ;;  %v12149_v20 = vld [vmem:[%s14330_s2] ss:$0 sm:$0xff] }
 0x45a   : > { %v4241_v37 = vsel %vm4118_vm10, %v4225_v47, %v3989_v61  ;;  %v3036_v61 = vrot.slane %v12070_v44, 4  ;;  %v14449_v41 = vld [vmem:[#allocation30_spill] sm:$0xff] }
 0x45b   : > { %v4289_v27 = vrot.slane %v4241_v37, 7  ;;  %v12092_v60 = vpop.permute.xlu2 %3990  ;;  %v8995_v37 = vld [vmem:[%s9213_s29 + $0x13a] sm:$0xff]  ;;  %v3026_v28 = vrot.slane %v3015_v50, 4 }
 0x45c   : > { %3164 = vrot.lane.b32.xlu1 %v2999_v63, %s9093_s21  ;;  %v12114_v47 = vpop.f32.mrf.mxu0  ;;  %v12116_v12 = vpop.f32.mrf.mxu1  ;;  %v3037_v55 = vsel %vm1904_vm3, 0.0, %v3036_v61  ;;  %v3016_v61 = vrot.slane %v12046_v46, 4 }
 0x45d   : > { %v4306_v1 = vsel %vm4295_vm11, %v4129_v26, %v4289_v27  ;;  %8774 = vmatmul.msk.f32.gmra.mxu3 %vm299_vm1, %v8995_v37  ;;  %8675 = vmatmul.msk.f32.gmra.mxu0 %vm299_vm1, %v8995_v37  ;;  %v1035_v27 = vadd.f32 %v14449_v41, %v879_v16  ;;  %v2997_v26 = vperm.slane %v2989_v40, %v9897_v2  ;;  %v3027_v5 = vsel %vm1904_vm3, 0.0, %v3026_v28  ;;  %v8998_v40 = vld [vmem:[%s9213_s29 + $0x142] sm:$0xff] }
 0x45e   : > { %8506 = vst.msk [vmem:[%s10323_s10 + $0x28] ss:$2 sm:$0x3] %vm10310_vm12, %v4306_v1  ;;  %v12108_v58 = vpop.permute.xlu1 %3158  ;;  %3292 = vrot.lane.b32.xlu0 %v3001_v7, %s9094_s23  ;;  %8741 = vmatmul.msk.f32.gmra.mxu2 %vm299_vm1, %v11923_v17  ;;  %v3031_v16 = vperm.slane %v3015_v50, %v9897_v2  ;;  %v3017_v17 = vsel %vm1904_vm3, 0.0, %v3016_v61  ;;  %v12164_v41 = vperm.slane %v3027_v5, %v9897_v2  ;;  %v12169_v50 = vld [vmem:[%s9213_s29 + $0x189] sm:$0xff] }
 0x45f   : > { %8714 = vmatmul.msk.f32.gmra.mxu1 %vm299_vm1, %v12126_v11  ;;  %v1070_v46 = vadd.f32 %v12149_v20, %v1035_v27  ;;  %v3025_v5 = vperm.slane %v3017_v17, %v9897_v2  ;;  %v9000_v17 = vld [vmem:[%s9213_s29 + $0x152] sm:$0xff] }
 0x460   : > { %v12121_v57 = vpop.permute.xlu0 %3286  ;;  %v12135_v1 = vpop.f32.mrf.mxu2  ;;  %v3042_v45 = vrot.slane %v12164_v41, 4  ;;  %v3040_v44 = vrot.slane %v3031_v16, 4 }
 0x461   : > { %3612 = vrot.lane.b32.xlu2 %v3037_v55, %s9093_s21  ;;  %v12153_v37 = vpop.f32.mrf.mxu3 }
 0x462   : > { %14450 = vst [vmem:[#allocation19_spill] sm:$0xff] %v12153_v37 }
 0x463   : > { %v12132_v63 = vpop.permute.xlu2 %3160 }
 0x464   : > { %3356 = vrot.lane.b32.xlu1 %v12022_v22, %s9096_s27  ;;  %v3004_v22 = vrot.slane %v2997_v26, 4  ;;  %v12155_v55 = vpop.f32.mrf.mxu0  ;;  %v12166_v27 = vpop.f32.mrf.mxu1 }
 0x465   : > { %8775 = vmatmul.msk.f32.gmra.mxu3 %vm299_vm1, %v8998_v40  ;;  %8676 = vmatmul.msk.f32.gmra.mxu0 %vm299_vm1, %v8998_v40 }
 0x466   : > { %v12141_v7 = vpop.permute.xlu1 %3350  ;;  %3484 = vrot.lane.b32.xlu0 %v2997_v26, %s9097_s28  ;;  %v1901_v26 = vsel %vm1870_vm2, %v1070_v46, %v11434_v30  ;;  %v3005_v61 = vsel %vm1904_vm3, 0.0, %v3004_v22  ;;  %8742 = vmatmul.msk.f32.gmra.mxu2 %vm299_vm1, %v11956_v3  ;;  %v3038_v22 = vrot.slane %v3025_v5, 4 }
 0x467   : > { %8715 = vmatmul.msk.f32.gmra.mxu1 %vm299_vm1, %v12169_v50  ;;  %v3049_v39 = vperm.slane %v1901_v26, %v9893_v4  ;;  %v3044_v30 = vrot.slane %v1901_v26, 4  ;;  %v3043_v26 = vsel %vm1904_vm3, 0.0, %v3042_v45  ;;  %v4028_v45 = vsel %vm4016_vm4, %v11529_v59, %v12108_v58 }
 0x468   : > { %v12161_v28 = vpop.permute.xlu0 %3478  ;;  %v12185_v62 = vpop.f32.mrf.mxu2 }
 0x469   : > { %3804 = vrot.lane.b32.xlu2 %v3031_v16, %s9096_s27  ;;  %v12201_v18 = vpop.f32.mrf.mxu3  ;;  %v3045_v3 = vsel %vm1904_vm3, 0.0, %v3044_v30  ;;  %v3054_v37 = vrot.slane %v3049_v39, 4 }
 0x46a   : > { %14454 = vst [vmem:[#allocation20_spill] sm:$0xff] %v12201_v18  ;;  %v3053_v30 = vperm.slane %v3045_v3, %v9893_v4 }
 0x46b   : > { %v12176_v40 = vpop.permute.xlu2 %3352 }
 0x46c   : > { %3548 = vrot.lane.b32.xlu1 %v3005_v61, %s9099_s4  ;;  %v12197_v61 = vperm.slane %v3049_v39, %v9897_v2  ;;  %v12209_v32 = vpop.f32.mrf.mxu1  ;;  %v4045_v39 = vsel %vm4033_vm5, %v4028_v45, %v11933_v0 }
 0x46d   : > { %8776 = vmatmul.msk.f32.gmra.mxu3 %vm299_vm1, %v9000_v17  ;;  %8677 = vmatmul.msk.f32.gmra.mxu0 %vm299_vm1, %v9000_v17  ;;  %v3039_v17 = vsel %vm1904_vm3, 0.0, %v3038_v22  ;;  %v4146_v22 = vsel %vm4016_vm4, %v11549_v19, %v11992_v31  ;;  %v1071_v19 = vadd.f32 %v12149_v20, %v1036_v56  ;;  %v3055_v31 = vsel %vm1904_vm3, 0.0, %v3054_v37 }
 0x46e   : > { %v12187_v46 = vpop.permute.xlu1 %3542  ;;  %3676 = vrot.lane.b32.xlu0 %v3025_v5, %s9095_s26  ;;  %v12204_v5 = vpop.f32.mrf.mxu0  ;;  %v3074_v16 = vrot.slane %v12197_v61, 4  ;;  %8743 = vmatmul.msk.f32.gmra.mxu2 %vm299_vm1, %v11985_v15  ;;  %v4062_v0 = vsel %vm4050_vm6, %v4045_v39, %v12121_v57  ;;  %v3069_v57 = vperm.slane %v3053_v30, %v9897_v2 }
 0x46f   : > { %v4079_v42 = vsel %vm4067_vm7, %v4062_v0, %v12141_v7 }
 0x470   : > { %v3671_v13 = vpop.permute.xlu0 %3670  ;;  %v12228_v58 = vpop.f32.mrf.mxu2  ;;  %v3075_v15 = vsel %vm1904_vm3, 0.0, %v3074_v16 }
 0x471   : > { %3996 = vrot.lane.b32.xlu2 %v3043_v26, %s9099_s4  ;;  %v3041_v26 = vsel %vm1904_vm3, 0.0, %v3040_v44  ;;  %v4162_v59 = vsel %vm4033_vm5, %v4146_v22, %v3671_v13  ;;  %v1902_v13 = vsel %vm1870_vm2, %v1071_v19, %v11494_v51  ;;  %v12249_v45 = vpop.f32.mrf.mxu3 }
 0x472   : > { %v3087_v51 = vperm.slane %v1902_v13, %v9893_v4  ;;  %v3082_v0 = vrot.slane %v1902_v13, 4 }
 0x473   : > { %v12206_v48 = vpop.permute.xlu2 %3544 }
 0x474   : > { %3740 = vrot.lane.b32.xlu1 %v3039_v17, %s9094_s23  ;;  %v3064_v17 = vrot.slane %v3053_v30, 4 }
 0x475   : > { %8777 = vmatmul.msk.f32.gmra.mxu3 %vm299_vm1, %v9001_v8  ;;  %8678 = vmatmul.msk.f32.gmra.mxu0 %vm299_vm1, %v9001_v8 }
 0x476   : > { %v3735_v18 = vpop.permute.xlu1 %3734  ;;  %3868 = vrot.lane.b32.xlu0 %v3041_v26, %s9098_s30  ;;  %v3065_v16 = vsel %vm1904_vm3, 0.0, %v3064_v17  ;;  %v12256_v7 = vpop.f32.mrf.mxu0  ;;  %8744 = vmatmul.msk.f32.gmra.mxu2 %vm299_vm1, %v12025_v23 }
 0x477   : > { %v4178_v44 = vsel %vm4050_vm6, %v4162_v59, %v3735_v18  ;;  %v3063_v18 = vperm.slane %v3055_v31, %v9897_v2  ;;  %v12258_v26 = vpop.f32.mrf.mxu1  ;;  %v9002_v59 = vld [vmem:[%s9213_s29 + $0x16a] sm:$0xff]  ;;  %v3073_v19 = vperm.slane %v3065_v16, %v9897_v2  ;;  %v3092_v31 = vrot.slane %v3087_v51, 4 }
 0x478   : > { %v3863_v3 = vpop.permute.xlu0 %3862  ;;  %v4194_v56 = vsel %vm4067_vm7, %v4178_v44, %v12042_v54  ;;  %v4096_v54 = vsel %vm4084_vm8, %v4079_v42, %v11965_v52 }
 0x479   : > { %3166 = vrot.lane.b32.xlu2 %v3075_v15, %s9093_s21  ;;  %v4210_v22 = vsel %vm4084_vm8, %v4194_v56, %v3863_v3  ;;  %v3076_v30 = vrot.slane %v3063_v18, 4  ;;  %v4113_v23 = vsel %vm4101_vm9, %v4096_v54, %v12161_v28  ;;  %v3078_v3 = vrot.slane %v3069_v57, 4  ;;  %v12278_v15 = vpop.f32.mrf.mxu2  ;;  %v12295_v13 = vpop.f32.mrf.mxu3 }
 0x47a   : > { %v4130_v17 = vsel %vm4118_vm10, %v4113_v23, %v12187_v46  ;;  %v3080_v28 = vrot.slane %v3073_v19, 4  ;;  %v3083_v54 = vsel %vm1904_vm3, 0.0, %v3082_v0 }
 0x47b   : > { %v12246_v37 = vpop.permute.xlu2 %3736  ;;  %v3077_v56 = vsel %vm1904_vm3, 0.0, %v3076_v30  ;;  %v3079_v46 = vsel %vm1904_vm3, 0.0, %v3078_v3 }
 0x47c   : > { %3932 = vrot.lane.b32.xlu1 %v12164_v41, %s9097_s28  ;;  %v3081_v30 = vsel %vm1904_vm3, 0.0, %v3080_v28 }
 0x47d   : > { %8778 = vmatmul.msk.f32.gmra.mxu3 %vm299_vm1, %v9002_v59  ;;  %8679 = vmatmul.msk.f32.gmra.mxu0 %vm299_vm1, %v9002_v59 }
 0x47e   : > { %v3927_v39 = vpop.permute.xlu1 %3926  ;;  %3230 = vrot.lane.b32.xlu0 %v3063_v18, %s9095_s26  ;;  %v3093_v18 = vsel %vm1904_vm3, 0.0, %v3092_v31  ;;  %8745 = vmatmul.msk.f32.gmra.mxu2 %vm299_vm1, %v12078_v24 }
 0x47f   : > { %v4226_v41 = vsel %vm4101_vm9, %v4210_v22, %v3927_v39  ;;  %v12301_v22 = vpop.f32.mrf.mxu0  ;;  %v12303_v39 = vpop.f32.mrf.mxu1  ;;  %v3101_v59 = vperm.slane %v3093_v18, %v9897_v2 }
 0x480   : > { %v4242_v52 = vsel %vm4118_vm10, %v4226_v41, %v12092_v60  ;;  %v12272_v8 = vpop.permute.xlu0 %3224  ;;  %v9003_v41 = vld [vmem:[%s9213_s29 + $0x172] sm:$0xff] }
 0x481   : > { %v4290_v44 = vrot.slane %v4242_v52, 7  ;;  %3358 = vrot.lane.b32.xlu2 %v3069_v57, %s9096_s27  ;;  %v12292_v57 = vperm.slane %v3087_v51, %v9897_v2  ;;  %v3091_v52 = vperm.slane %v3083_v54, %v9893_v4  ;;  %v12315_v31 = vpop.f32.mrf.mxu2  ;;  %v3114_v23 = vrot.slane %v3101_v59, 4 }
 0x483   : > { %v4307_v60 = vsel %vm4295_vm11, %v4130_v17, %v4290_v44  ;;  %v12283_v42 = vpop.permute.xlu2 %3928  ;;  %v3112_v24 = vrot.slane %v12292_v57, 4  ;;  %v3102_v17 = vrot.slane %v3091_v52, 4  ;;  %v3115_v28 = vsel %vm1904_vm3, 0.0, %v3114_v23 }
 0x484   : > { %8507 = vst.msk [vmem:[%s10323_s10 + $0x2c] ss:$2 sm:$0x3] %vm10310_vm12, %v4307_v60  ;;  %3294 = vrot.lane.b32.xlu1 %v3077_v56, %s9094_s23  ;;  %v12324_v60 = vpop.f32.mrf.mxu3  ;;  %v9004_v56 = vld [vmem:[%s9213_s29 + $0x182] sm:$0xff]  ;;  %v4029_v23 = vsel %vm4016_vm4, %v11658_v10, %v12132_v63  ;;  %v5096_v10 = vadd.f32 %v12015_v6, %v12013_v9  ;;  %v5486_v6 = vadd.f32 %v12149_v20, %v11942_v49 }
 0x485   : > { %8779 = vmatmul.msk.f32.gmra.mxu3 %vm299_vm1, %v9003_v41  ;;  %8680 = vmatmul.msk.f32.gmra.mxu0 %vm299_vm1, %v9003_v41  ;;  %v3113_v3 = vsel %vm1904_vm3, 0.0, %v3112_v24  ;;  %v3103_v54 = vsel %vm1904_vm3, 0.0, %v3102_v17  ;;  %v9005_v17 = vld [vmem:[%s9213_s29 + $0x18a] sm:$0xff] }
 0x486   : > { %v3289_v16 = vpop.permute.xlu1 %3288  ;;  %3422 = vrot.lane.b32.xlu0 %v3079_v46, %s9098_s30  ;;  %8746 = vmatmul.msk.f32.gmra.mxu2 %vm299_vm1, %v12126_v11  ;;  %v3107_v11 = vperm.slane %v3091_v52, %v9897_v2  ;;  %v3111_v41 = vperm.slane %v3103_v54, %v9897_v2 }
 0x487   : > { %v12331_v18 = vpop.f32.mrf.mxu0  ;;  %v12333_v46 = vpop.f32.mrf.mxu1 }
 0x488   : > { %v12308_v51 = vpop.permute.xlu0 %3416 }
 0x489   : > { %3550 = vrot.lane.b32.xlu2 %v3081_v30, %s9099_s4  ;;  %v12339_v30 = vpop.f32.mrf.mxu2 }
 0x48b   : > { %v12318_v44 = vpop.permute.xlu2 %3290 }
 0x48c   : > { %3486 = vrot.lane.b32.xlu1 %v3073_v19, %s9097_s28 }
 0x48d   : > { %8780 = vmatmul.msk.f32.gmra.mxu3 %vm299_vm1, %v9004_v56  ;;  %8681 = vmatmul.msk.f32.gmra.mxu0 %vm299_vm1, %v9004_v56  ;;  %v4046_v56 = vsel %vm4033_vm5, %v4029_v23, %v12272_v8 }
 0x48e   : > { %v3481_v0 = vpop.permute.xlu1 %3480  ;;  %3614 = vrot.lane.b32.xlu0 %v3113_v3, %s9093_s21  ;;  %8747 = vmatmul.msk.f32.gmra.mxu2 %vm299_vm1, %v12169_v50  ;;  %v4063_v63 = vsel %vm4050_vm6, %v4046_v56, %v3289_v16  ;;  %v5301_v16 = vadd.f32 %v12037_v14, %v5096_v10  ;;  %v5485_v10 = vadd.f32 %v12149_v20, %v11911_v53 }
 0x48f   : > { %v12366_v8 = vpop.f32.mrf.mxu0  ;;  %v4080_v9 = vsel %vm4067_vm7, %v4063_v63, %v12176_v40 }
 0x490   : > { %v3609_v19 = vpop.permute.xlu0 %3608  ;;  %v4097_v40 = vsel %vm4084_vm8, %v4080_v9, %v12308_v51 }
 0x491   : > { %3742 = vrot.lane.b32.xlu2 %v3115_v28, %s9094_s23  ;;  %v4147_v3 = vsel %vm4016_vm4, %v11760_v35, %v3609_v19  ;;  %v3118_v35 = vrot.slane %v3111_v41, 4  ;;  %v12361_v19 = vpop.f32.mrf.mxu3  ;;  %v4114_v14 = vsel %vm4101_vm9, %v4097_v40, %v3481_v0  ;;  %v5487_v0 = vadd.f32 %v12149_v20, %v11972_v21 }
 0x492   : > { %v4131_v63 = vsel %vm4118_vm10, %v4114_v14, %v12206_v48 }
 0x493   : > { %v12349_v52 = vpop.permute.xlu2 %3482 }
 0x494   : > { %3678 = vrot.lane.b32.xlu1 %v3101_v59, %s9095_s26  ;;  %v3116_v59 = vrot.slane %v3107_v11, 4 }
 0x495   : > { %8781 = vmatmul.msk.f32.gmra.mxu3 %vm299_vm1, %v9005_v17  ;;  %8682 = vmatmul.msk.f32.gmra.mxu0 %vm299_vm1, %v9005_v17  ;;  %v12386_v17 = vpop.f32.mrf.mxu2 }
 0x496   : > { %v3673_v24 = vpop.permute.xlu1 %3672  ;;  %3806 = vrot.lane.b32.xlu0 %v3107_v11, %s9096_s27  ;;  %v3117_v11 = vsel %vm1904_vm3, 0.0, %v3116_v59  ;;  %v9006_v59 = vld [vmem:[%s9213_s29 + $0x199] sm:$0xff] }
 0x497   : > { %v4163_v50 = vsel %vm4033_vm5, %v4147_v3, %v3673_v24  ;;  %v12368_v24 = vpop.f32.mrf.mxu1  ;;  %8748 = vmatmul.msk.f32.gmra.mxu2 %vm299_vm1, %v9006_v59 }
 0x498   : > { %v3801_v28 = vpop.permute.xlu0 %3800  ;;  %v4179_v54 = vsel %vm4050_vm6, %v4163_v50, %v12246_v37  ;;  %v5099_v37 = vadd.f32 %v12063_v34, %v12061_v43  ;;  %v5457_v34 = vadd.f32 %v12055_v38, %v5301_v16  ;;  %v5105_v50 = vadd.f32 %v12166_v27, %v12155_v55  ;;  %v14456_v16 = vld [vmem:[#allocation20_spill] sm:$0xff] }
 0x499   : > { %3934 = vrot.lane.b32.xlu2 %v3111_v41, %s9097_s28  ;;  %v3119_v41 = vsel %vm1904_vm3, 0.0, %v3118_v35  ;;  %v4195_v23 = vsel %vm4067_vm7, %v4179_v54, %v3801_v28  ;;  %v12405_v55 = vpop.f32.mrf.mxu3  ;;  %v5102_v27 = vadd.f32 %v12116_v12, %v12114_v47  ;;  %v9007_v47 = vld [vmem:[%s9213_s29 + $0x1a1] sm:$0xff] }
 0x49a   : > { %v5489_v53 = vadd.f32 %v12149_v20, %v5457_v34  ;;  %v5304_v21 = vadd.f32 %v12185_v62, %v5105_v50  ;;  %v5488_v62 = vadd.f32 %v12149_v20, %v12007_v25  ;;  %v5111_v25 = vadd.f32 %v12258_v26, %v12256_v7 }
 0x49b   : > { %v12394_v28 = vpop.permute.xlu2 %3674  ;;  %v5303_v12 = vadd.f32 %v12135_v1, %v5102_v27 }
 0x49c   : > { %3870 = vrot.lane.b32.xlu1 %v3117_v11, %s9098_s30  ;;  %v5108_v11 = vadd.f32 %v12209_v32, %v12204_v5  ;;  %v5306_v7 = vadd.f32 %v12278_v15, %v5111_v25 }
 0x49d   : > { %v5240_v5 = vpop.f32.mrf.mxu2 }
 0x49e   : > { %v3865_v3 = vpop.permute.xlu1 %3864  ;;  %3998 = vrot.lane.b32.xlu0 %v3119_v41, %s9099_s4  ;;  %v5460_v41 = vadd.f32 %v14456_v16, %v5304_v21 }
 0x49f   : > { %v4211_v49 = vsel %vm4084_vm8, %v4195_v23, %v3865_v3  ;;  %v5122_v54 = vpop.f32.mrf.mxu1  ;;  %8749 = vmatmul.msk.f32.gmra.mxu2 %vm299_vm1, %v9007_v47  ;;  %v14457_v3 = vld [vmem:[#allocation19_spill] sm:$0xff]  ;;  %v14459_v47 = vld [vmem:[#allocation16_spill] sm:$0xff] }
 0x4a0   : > { %v3993_v56 = vpop.permute.xlu0 %3992  ;;  %v4227_v43 = vsel %vm4101_vm9, %v4211_v49, %v12283_v42  ;;  %v5302_v42 = vadd.f32 %v12086_v33, %v5099_v37  ;;  %v5006_v33 = vpop.f32.mrf.mxu0  ;;  %v5305_v37 = vadd.f32 %v12228_v58, %v5108_v11  ;;  %v5459_v59 = vadd.f32 %v14457_v3, %v5303_v12  ;;  %v14458_v11 = vld [vmem:[#allocation14_spill] sm:$0xff] }
 0x4a1   : > { %v4243_v51 = vsel %vm4118_vm10, %v4227_v43, %v3993_v56  ;;  %5551 = vrot.lane.b32.xlu2 %v5486_v6, %s9090_s5  ;;  %v5492_v1 = vadd.f32 %v12149_v20, %v5460_v41  ;;  %v5117_v49 = vadd.f32 %v12333_v46, %v12331_v18  ;;  %v5462_v46 = vadd.f32 %v12295_v13, %v5306_v7 }
 0x4a2   : > { %v4291_v38 = vrot.slane %v4243_v51, 7  ;;  %v5458_v48 = vadd.f32 %v12103_v36, %v5302_v42  ;;  %v5114_v36 = vadd.f32 %v12303_v39, %v12301_v22  ;;  %v5396_v39 = vpop.f32.mrf.mxu3  ;;  %v5461_v40 = vadd.f32 %v12249_v45, %v5305_v37 }
 0x4a3   : > { %v12433_v23 = vpop.permute.xlu2 %3866  ;;  %v5491_v43 = vadd.f32 %v12149_v20, %v5459_v59  ;;  %v5308_v50 = vadd.f32 %v12339_v30, %v5117_v49  ;;  %v5120_v51 = vadd.f32 %v12368_v24, %v12366_v8 }
 0x4a4   : > { %v4308_v35 = vsel %vm4295_vm11, %v4131_v63, %v4291_v38  ;;  %5549 = vrot.lane.b32.xlu1 %v5485_v10, %s9090_s5  ;;  %v5490_v32 = vadd.f32 %v12149_v20, %v5458_v48  ;;  %v5307_v22 = vadd.f32 %v12315_v31, %v5114_v36  ;;  %v5123_v31 = vadd.f32 %v5122_v54, %v5006_v33 }
 0x4a5   : > { %8508 = vst.msk [vmem:[%s10323_s10 + $0x30] ss:$2 sm:$0x3] %vm10310_vm12, %v4308_v35  ;;  %v5493_v45 = vadd.f32 %v12149_v20, %v5461_v40  ;;  %v5243_v18 = vpop.f32.mrf.mxu2  ;;  %v5494_v63 = vadd.f32 %v12149_v20, %v5462_v46  ;;  %v5309_v13 = vadd.f32 %v12386_v17, %v5120_v51 }
 0x4a6   : > { %v12419_v9 = vpop.permute.xlu1 %3226  ;;  %5553 = vrot.lane.b32.xlu0 %v5487_v0, %s9090_s5  ;;  %v5463_v34 = vadd.f32 %v12324_v60, %v5307_v22  ;;  %v5310_v60 = vadd.f32 %v5240_v5, %v5123_v31  ;;  %v5464_v0 = vadd.f32 %v12361_v19, %v5308_v50 }
 0x4a7   : > { %v5125_v56 = vpop.f32.mrf.mxu1  ;;  %v5465_v19 = vadd.f32 %v12405_v55, %v5309_v13 }
 0x4a8   : > { %v3163_v6 = vpop.permute.xlu0 %3162  ;;  %v5009_v14 = vpop.f32.mrf.mxu0  ;;  %v5495_v15 = vadd.f32 %v12149_v20, %v5463_v34  ;;  %v5466_v8 = vadd.f32 %v5396_v39, %v5310_v60  ;;  %v14460_v60 = vld [vmem:[#allocation17_spill] sm:$0xff] }
 0x4a9   : > { %5557 = vrot.lane.b32.xlu2 %v5489_v53, %s9090_s5  ;;  %v5126_v38 = vadd.f32 %v5125_v56, %v5009_v14  ;;  %v5496_v53 = vadd.f32 %v12149_v20, %v5464_v0  ;;  %v4030_v17 = vsel %vm4016_vm4, %v14458_v11, %v3163_v6  ;;  %v5497_v36 = vadd.f32 %v12149_v20, %v5465_v19  ;;  %v14461_v0 = vld [vmem:[#allocation18_spill] sm:$0xff] }
 0x4aa   : > { %v5399_v30 = vpop.f32.mrf.mxu3  ;;  %v5498_v54 = vadd.f32 %v12149_v20, %v5466_v8 }
 0x4ab   : > { %v12456_v10 = vpop.permute.xlu2 %3228  ;;  %v5311_v21 = vadd.f32 %v5243_v18, %v5126_v38 }
 0x4ac   : > { %5555 = vrot.lane.b32.xlu1 %v5488_v62, %s9090_s5 }
 0x4ad   : > { %v5246_v48 = vpop.f32.mrf.mxu2  ;;  %v5467_v16 = vadd.f32 %v5399_v30, %v5311_v21 }
 0x4ae   : > { %v3419_v58 = vpop.permute.xlu1 %3418  ;;  %5559 = vrot.lane.b32.xlu0 %v5490_v32, %s9090_s5  ;;  %v4047_v32 = vsel %vm4033_vm5, %v4030_v17, %v12419_v9 }
 0x4af   : > { %v5128_v35 = vpop.f32.mrf.mxu1  ;;  %v5499_v3 = vadd.f32 %v12149_v20, %v5467_v16  ;;  %v4064_v25 = vsel %vm4050_vm6, %v4047_v32, %v12318_v44 }
 0x4b0   : > { %v3355_v26 = vpop.permute.xlu0 %3354  ;;  %v5012_v24 = vpop.f32.mrf.mxu0 }
 0x4b1   : > { %5563 = vrot.lane.b32.xlu2 %v5492_v1, %s9090_s5  ;;  %v5129_v33 = vadd.f32 %v5128_v35, %v5012_v24  ;;  %v4081_v22 = vsel %vm4067_vm7, %v4064_v25, %v3355_v26 }
 0x4b2   : > { %v5402_v6 = vpop.f32.mrf.mxu3 }
 0x4b3   : > { %v3421_v41 = vpop.permute.xlu2 %3420  ;;  %v5312_v5 = vadd.f32 %v5246_v48, %v5129_v33 }
 0x4b4   : > { %5561 = vrot.lane.b32.xlu1 %v5491_v43, %s9090_s5 }
 0x4b5   : > { %v5468_v1 = vadd.f32 %v5402_v6, %v5312_v5 }
 0x4b6   : > { %v3611_v42 = vpop.permute.xlu1 %3610  ;;  %5565 = vrot.lane.b32.xlu0 %v5493_v45, %s9090_s5 }
 0x4b7   : > { %v4148_v62 = vsel %vm4016_vm4, %v14459_v47, %v3611_v42  ;;  %v5500_v40 = vadd.f32 %v12149_v20, %v5468_v1 }
 0x4b8   : > { %v3547_v27 = vpop.permute.xlu0 %3546  ;;  %v4164_v37 = vsel %vm4033_vm5, %v4148_v62, %v12394_v28  ;;  %v4098_v28 = vsel %vm4084_vm8, %v4081_v22, %v3419_v58 }
 0x4b9   : > { %5569 = vrot.lane.b32.xlu2 %v5495_v15, %s9090_s5  ;;  %v4115_v7 = vsel %vm4101_vm9, %v4098_v28, %v12349_v52 }
 0x4ba   : > { %v4132_v34 = vsel %vm4118_vm10, %v4115_v7, %v3547_v27 }
 0x4bb   : > { %v3613_v44 = vpop.permute.xlu2 %3612 }
 0x4bc   : > { %5567 = vrot.lane.b32.xlu1 %v5494_v63, %s9090_s5  ;;  %v4149_v42 = vsel %vm4016_vm4, %v14461_v0, %v3613_v44 }
 0x4be   : > { %v3803_v12 = vpop.permute.xlu1 %3802  ;;  %5571 = vrot.lane.b32.xlu0 %v5496_v53, %s9090_s5 }
 0x4c0   : > { %v3739_v55 = vpop.permute.xlu0 %3738 }
 0x4c1   : > { %5575 = vrot.lane.b32.xlu2 %v5498_v54, %s9090_s5  ;;  %v4180_v59 = vsel %vm4050_vm6, %v4164_v37, %v3739_v55 }
 0x4c2   : > { %v4196_v9 = vsel %vm4067_vm7, %v4180_v59, %v3803_v12 }
 0x4c3   : > { %v4212_v14 = vsel %vm4084_vm8, %v4196_v9, %v12433_v23  ;;  %v3805_v45 = vpop.permute.xlu2 %3804 }
 0x4c4   : > { %5573 = vrot.lane.b32.xlu1 %v5497_v36, %s9090_s5 }
 0x4c6   : > { %v3995_v39 = vpop.permute.xlu1 %3994  ;;  %5577 = vrot.lane.b32.xlu0 %v5499_v3, %s9090_s5 }
 0x4c8   : > { %v3931_v49 = vpop.permute.xlu0 %3930 }
 0x4c9   : > { %v4228_v56 = vsel %vm4101_vm9, %v4212_v14, %v3931_v49 }
 0x4ca   : > { %v4244_v43 = vsel %vm4118_vm10, %v4228_v56, %v3995_v39 }
 0x4cb   : > { %v4292_v26 = vrot.slane %v4244_v43, 7  ;;  %v3997_v46 = vpop.permute.xlu2 %3996 }
 0x4cc   : > { %5579 = vrot.lane.b32.xlu1 %v5500_v40, %s9090_s5 }
 0x4cd   : > { %v4309_v58 = vsel %vm4295_vm11, %v4132_v34, %v4292_v26 }
 0x4ce   : > { %8509 = vst.msk [vmem:[%s10323_s10 + $0x34] ss:$2 sm:$0x3] %vm10310_vm12, %v4309_v58  ;;  %v3165_v31 = vpop.permute.xlu1 %3164  ;;  %v14462_v58 = vld [vmem:[#allocation39_spill] sm:$0xff] }
 0x4cf   : > { %v4031_v52 = vsel %vm4016_vm4, %v14460_v60, %v3165_v31  ;;  %v4911_v31 = vadd.f32 %v12149_v20, %v14462_v58 }
 0x4d0   : > { %v3293_v23 = vpop.permute.xlu0 %3292  ;;  %v4048_v30 = vsel %vm4033_vm5, %v4031_v52, %v12456_v10 }
 0x4d1   : > { %v4065_v24 = vsel %vm4050_vm6, %v4048_v30, %v3293_v23 }
 0x4d3   : > { %v3167_v63 = vpop.permute.xlu2 %3166 }
 0x4d4   : > { %v4032_v6 = vsel %vm4016_vm4, %v12197_v61, %v3167_v63 }
 0x4d6   : > { %v3357_v50 = vpop.permute.xlu1 %3356 }
 0x4d7   : > { %v4082_v35 = vsel %vm4067_vm7, %v4065_v24, %v3357_v50 }
 0x4d8   : > { %v3485_v18 = vpop.permute.xlu0 %3484  ;;  %v4099_v21 = vsel %vm4084_vm8, %v4082_v35, %v3421_v41 }
 0x4d9   : > { %v4116_v11 = vsel %vm4101_vm9, %v4099_v21, %v3485_v18  ;;  %v5015_v21 = vpop.f32.mrf.mxu0 }
 0x4db   : > { %v3359_v17 = vpop.permute.xlu2 %3358 }
 0x4de   : > { %v3549_v51 = vpop.permute.xlu1 %3548 }
 0x4df   : > { %v4133_v62 = vsel %vm4118_vm10, %v4116_v11, %v3549_v51 }
 0x4e0   : > { %v3677_v15 = vpop.permute.xlu0 %3676 }
 0x4e1   : > { %v4165_v13 = vsel %vm4033_vm5, %v4149_v42, %v3677_v15 }
 0x4e3   : > { %v3551_v36 = vpop.permute.xlu2 %3550 }
 0x4e6   : > { %v3741_v38 = vpop.permute.xlu1 %3740 }
 0x4e7   : > { %v4181_v27 = vsel %vm4050_vm6, %v4165_v13, %v3741_v38  ;;  %v14463_v38 = vld [vmem:[#allocation40_spill] sm:$0xff] }
 0x4e8   : > { %v3869_v8 = vpop.permute.xlu0 %3868  ;;  %v4197_v53 = vsel %vm4067_vm7, %v4181_v27, %v3805_v45  ;;  %v4912_v30 = vadd.f32 %v12149_v20, %v14463_v38 }
 0x4e9   : > { %v4213_v19 = vsel %vm4084_vm8, %v4197_v53, %v3869_v8 }
 0x4eb   : > { %v3743_v32 = vpop.permute.xlu2 %3742 }
 0x4ee   : > { %v3933_v33 = vpop.permute.xlu1 %3932 }
 0x4ef   : > { %v4229_v10 = vsel %vm4101_vm9, %v4213_v19, %v3933_v33  ;;  %v5131_v19 = vpop.f32.mrf.mxu1 }
 0x4f0   : > { %v4245_v54 = vsel %vm4118_vm10, %v4229_v10, %v3997_v46  ;;  %v3231_v48 = vpop.permute.xlu0 %3230 }
 0x4f1   : > { %v4293_v47 = vrot.slane %v4245_v54, 7  ;;  %v4049_v59 = vsel %vm4033_vm5, %v4032_v6, %v3231_v48  ;;  %v5132_v54 = vadd.f32 %v5131_v19, %v5015_v21 }
 0x4f3   : > { %v4310_v12 = vsel %vm4295_vm11, %v4133_v62, %v4293_v47  ;;  %v3935_v49 = vpop.permute.xlu2 %3934  ;;  %v5249_v47 = vpop.f32.mrf.mxu2 }
 0x4f4   : > { %8510 = vst.msk [vmem:[%s10323_s10 + $0x38] ss:$2 sm:$0x3] %vm10310_vm12, %v4310_v12 }
 0x4f6   : > { %v3295_v16 = vpop.permute.xlu1 %3294 }
 0x4f7   : > { %v4066_v22 = vsel %vm4050_vm6, %v4049_v59, %v3295_v16  ;;  %v5313_v16 = vadd.f32 %v5249_v47, %v5132_v54 }
 0x4f8   : > { %v3423_v41 = vpop.permute.xlu0 %3422  ;;  %v4083_v39 = vsel %vm4067_vm7, %v4066_v22, %v3359_v17 }
 0x4f9   : > { %v4100_v61 = vsel %vm4084_vm8, %v4083_v39, %v3423_v41 }
 0x4fb   : > { %v5552_v0 = vpop.permute.xlu2 %5551 }
 0x4fc   : > { %v5646_v27 = vsel %vm1870_vm2, %v4912_v30, %v5552_v0 }
 0x4fd   : > { %v5720_v53 = vperm.slane %v5646_v27, %v9893_v4 }
 0x4fe   : > { %v3487_v55 = vpop.permute.xlu1 %3486 }
 0x4ff   : > { %v4117_v14 = vsel %vm4101_vm9, %v4100_v61, %v3487_v55  ;;  %v5725_v11 = vrot.slane %v5720_v53, 4  ;;  %v12567_v62 = vperm.slane %v5720_v53, %v9897_v2 }
 0x500   : > { %v3615_v5 = vpop.permute.xlu0 %3614  ;;  %v4134_v26 = vsel %vm4118_vm10, %v4117_v14, %v3551_v36  ;;  %v5715_v36 = vrot.slane %v5646_v27, 4  ;;  %v5134_v14 = vpop.f32.mrf.mxu1 }
 0x501   : > { %v4150_v3 = vsel %vm4016_vm4, %v12292_v57, %v3615_v5  ;;  %14464 = vst [vmem:[#allocation21_spill] sm:$0xff] %v12567_v62  ;;  %v5726_v55 = vsel %vm1904_vm3, 0.0, %v5725_v11  ;;  %v5405_v5 = vpop.f32.mrf.mxu3 }
 0x502   : > { %v5469_v6 = vadd.f32 %v5405_v5, %v5313_v16  ;;  %v5734_v59 = vperm.slane %v5726_v55, %v9897_v2  ;;  %v5716_v22 = vsel %vm1904_vm3, 0.0, %v5715_v36 }
 0x506   : > { %v3679_v37 = vpop.permute.xlu1 %3678 }
 0x507   : > { %v4166_v25 = vsel %vm4033_vm5, %v4150_v3, %v3679_v37 }
 0x508   : > { %v3807_v1 = vpop.permute.xlu0 %3806  ;;  %v4182_v9 = vsel %vm4050_vm6, %v4166_v25, %v3743_v32  ;;  %v5745_v32 = vrot.slane %v12567_v62, 4  ;;  %v14465_v25 = vld [vmem:[#allocation41_spill] sm:$0xff] }
 0x509   : > { %v4198_v28 = vsel %vm4067_vm7, %v4182_v9, %v3807_v1  ;;  %v4913_v1 = vadd.f32 %v12149_v20, %v14465_v25 }
 0x50a   : > { %v5746_v9 = vsel %vm1904_vm3, 0.0, %v5745_v32 }
 0x50e   : > { %v3871_v40 = vpop.permute.xlu1 %3870 }
 0x50f   : > { %v4214_v57 = vsel %vm4084_vm8, %v4198_v28, %v3871_v40  ;;  %v5724_v28 = vperm.slane %v5716_v22, %v9893_v4  ;;  %v5501_v40 = vadd.f32 %v12149_v20, %v5469_v6 }
 0x510   : > { %v3999_v44 = vpop.permute.xlu0 %3998  ;;  %v4230_v56 = vsel %vm4101_vm9, %v4214_v57, %v3935_v49  ;;  %v5747_v49 = vrot.slane %v5734_v59, 4  ;;  %v5018_v57 = vpop.f32.mrf.mxu0 }
 0x511   : > { %v4246_v43 = vsel %vm4118_vm10, %v4230_v56, %v3999_v44  ;;  %v5735_v44 = vrot.slane %v5724_v28, 4 }
 0x512   : > { %v4294_v7 = vrot.slane %v4246_v43, 7  ;;  %v5748_v56 = vsel %vm1904_vm3, 0.0, %v5747_v49  ;;  %v5740_v43 = vperm.slane %v5724_v28, %v9897_v2 }
 0x513   : > { %v5736_v58 = vsel %vm1904_vm3, 0.0, %v5735_v44 }
 0x514   : > { %v4311_v34 = vsel %vm4295_vm11, %v4134_v26, %v4294_v7  ;;  %v5135_v7 = vadd.f32 %v5134_v14, %v5018_v57  ;;  %v5749_v38 = vrot.slane %v5740_v43, 4 }
 0x515   : > { %8511 = vst.msk [vmem:[%s10323_s10 + $0x3c] ss:$2 sm:$0x3] %vm10310_vm12, %v4311_v34  ;;  %v5252_v34 = vpop.f32.mrf.mxu2 }
 0x516   : > { %v5550_v23 = vpop.permute.xlu1 %5549 }
 0x517   : > { %v5645_v45 = vsel %vm1870_vm2, %v4911_v31, %v5550_v23  ;;  %v5314_v31 = vadd.f32 %v5252_v34, %v5135_v7 }
 0x518   : > { %v5677_v50 = vrot.slane %v5645_v45, 4  ;;  %v5682_v18 = vperm.slane %v5645_v45, %v9893_v4  ;;  %v5554_v37 = vpop.permute.xlu0 %5553 }
 0x519   : > { %v5647_v39 = vsel %vm1870_vm2, %v4913_v1, %v5554_v37  ;;  %v5558_v1 = vpop.permute.xlu2 %5557 }
 0x51a   : > { %v5678_v46 = vsel %vm1904_vm3, 0.0, %v5677_v50  ;;  %v5687_v51 = vrot.slane %v5682_v18, 4  ;;  %v12547_v15 = vperm.slane %v5682_v18, %v9897_v2  ;;  %v5758_v61 = vperm.slane %v5647_v39, %v9893_v4  ;;  %v5408_v50 = vpop.f32.mrf.mxu3 }
 0x51b   : > { %v5686_v42 = vperm.slane %v5678_v46, %v9893_v4  ;;  %v5753_v23 = vrot.slane %v5647_v39, 4  ;;  %v12597_v18 = vperm.slane %v5736_v58, %v9897_v2  ;;  %v5021_v46 = vpop.f32.mrf.mxu0 }
 0x51c   : > { %v5688_v60 = vsel %vm1904_vm3, 0.0, %v5687_v51  ;;  %v5707_v52 = vrot.slane %v12547_v15, 4  ;;  %v12591_v26 = vperm.slane %v5758_v61, %v9897_v2  ;;  %v5137_v51 = vpop.f32.mrf.mxu1 }
 0x51d   : > { %v5696_v13 = vperm.slane %v5688_v60, %v9897_v2  ;;  %v5702_v8 = vperm.slane %v5686_v42, %v9897_v2  ;;  %v5697_v24 = vrot.slane %v5686_v42, 4  ;;  %v5763_v60 = vrot.slane %v5758_v61, 4 }
 0x51e   : > { %v5708_v63 = vsel %vm1904_vm3, 0.0, %v5707_v52  ;;  %v5783_v45 = vrot.slane %v12591_v26, 4  ;;  %v5470_v52 = vadd.f32 %v5408_v50, %v5314_v31  ;;  %v5754_v0 = vsel %vm1904_vm3, 0.0, %v5753_v23  ;;  %v5556_v19 = vpop.permute.xlu1 %5555 }
 0x51f   : > { %6909 = vrot.lane.b32.xlu0 %v5708_v63, %s9093_s21  ;;  %6973 = vrot.lane.b32.xlu1 %v5696_v13, %s9095_s26  ;;  %v5709_v35 = vrot.slane %v5696_v13, 4  ;;  %v5711_v10 = vrot.slane %v5702_v8, 4  ;;  %v5698_v48 = vsel %vm1904_vm3, 0.0, %v5697_v24  ;;  %v5138_v30 = vadd.f32 %v5137_v51, %v5021_v46  ;;  %v5255_v63 = vpop.f32.mrf.mxu2 }
 0x520   : > { %v5706_v17 = vperm.slane %v5698_v48, %v9897_v2  ;;  %v5784_v42 = vsel %vm1904_vm3, 0.0, %v5783_v45  ;;  %v5762_v13 = vperm.slane %v5754_v0, %v9893_v4  ;;  %v5764_v27 = vsel %vm1904_vm3, 0.0, %v5763_v60 }
 0x521   : > { %v5710_v33 = vsel %vm1904_vm3, 0.0, %v5709_v35  ;;  %v5712_v12 = vsel %vm1904_vm3, 0.0, %v5711_v10  ;;  %v5750_v24 = vsel %vm1904_vm3, 0.0, %v5749_v38  ;;  %v5315_v35 = vadd.f32 %v5255_v63, %v5138_v30  ;;  %v14466_v10 = vld [vmem:[#allocation42_spill] sm:$0xff] }
 0x522   : > { %7037 = vrot.lane.b32.xlu2 %v5710_v33, %s9094_s23  ;;  %v5713_v41 = vrot.slane %v5706_v17, 4  ;;  %v5411_v53 = vpop.f32.mrf.mxu3  ;;  %v5772_v21 = vperm.slane %v5764_v27, %v9897_v2  ;;  %v5778_v33 = vperm.slane %v5762_v13, %v9897_v2  ;;  %v4914_v54 = vadd.f32 %v12149_v20, %v14466_v10 }
 0x523   : > { %v5773_v48 = vrot.slane %v5762_v13, 4  ;;  %v5471_v11 = vadd.f32 %v5411_v53, %v5315_v35  ;;  %v5024_v14 = vpop.f32.mrf.mxu0  ;;  %v5560_v53 = vpop.permute.xlu0 %5559 }
 0x524   : > { %v5714_v3 = vsel %vm1904_vm3, 0.0, %v5713_v41  ;;  %v5785_v47 = vrot.slane %v5772_v21, 4  ;;  %v5787_v32 = vrot.slane %v5778_v33, 4  ;;  %v5140_v44 = vpop.f32.mrf.mxu1 }
 0x525   : > { %v5503_v16 = vadd.f32 %v12149_v20, %v5471_v11  ;;  %v5774_v41 = vsel %vm1904_vm3, 0.0, %v5773_v48 }
 0x526   : > { %v5786_v36 = vsel %vm1904_vm3, 0.0, %v5785_v47  ;;  %v5782_v55 = vperm.slane %v5774_v41, %v9897_v2  ;;  %v5788_v25 = vsel %vm1904_vm3, 0.0, %v5787_v32 }
 0x527   : > { %7101 = vrot.lane.b32.xlu0 %v5702_v8, %s9096_s27  ;;  %7165 = vrot.lane.b32.xlu1 %v5712_v12, %s9098_s30  ;;  %v5502_v8 = vadd.f32 %v12149_v20, %v5470_v52  ;;  %v5258_v58 = vpop.f32.mrf.mxu2  ;;  %v12648_v52 = vpop.permute.xlu2 %5563 }
 0x528   : > { %v5789_v6 = vrot.slane %v5782_v55, 4 }
 0x52a   : > { %7229 = vrot.lane.b32.xlu2 %v5706_v17, %s9097_s28  ;;  %v5648_v17 = vsel %vm1870_vm2, %v4914_v54, %v5556_v19  ;;  %v5790_v28 = vsel %vm1904_vm3, 0.0, %v5789_v6  ;;  %v5414_v60 = vpop.f32.mrf.mxu3  ;;  %v5562_v54 = vpop.permute.xlu1 %5561 }
 0x52b   : > { %v5796_v12 = vperm.slane %v5648_v17, %v9893_v4  ;;  %v5791_v37 = vrot.slane %v5648_v17, 4  ;;  %v5027_v19 = vpop.f32.mrf.mxu0  ;;  %v14469_v17 = vld [vmem:[#allocation44_spill] sm:$0xff] }
 0x52d   : > { %v5801_v5 = vrot.slane %v5796_v12, 4  ;;  %v5792_v22 = vsel %vm1904_vm3, 0.0, %v5791_v37 }
 0x52e   : > { %v5800_v57 = vperm.slane %v5792_v22, %v9893_v4  ;;  %v12685_v22 = vpop.permute.xlu0 %5565 }
 0x52f   : > { %7293 = vrot.lane.b32.xlu0 %v5714_v3, %s9099_s4  ;;  %7357 = vrot.lane.b32.xlu1 %v5746_v9, %s9093_s21  ;;  %v5802_v3 = vsel %vm1904_vm3, 0.0, %v5801_v5  ;;  %v14467_v9 = vld [vmem:[#allocation43_spill] sm:$0xff]  ;;  %v12672_v48 = vpop.permute.xlu2 %5569 }
 0x530   : > { %v4915_v39 = vadd.f32 %v12149_v20, %v14467_v9  ;;  %v5141_v20 = vadd.f32 %v5140_v44, %v5024_v14  ;;  %v5816_v34 = vperm.slane %v5800_v57, %v9897_v2  ;;  %v5811_v31 = vrot.slane %v5800_v57, 4 }
 0x532   : > { %5581 = vrot.lane.b32.xlu2 %v5501_v40, %s9090_s5  ;;  %v5810_v40 = vperm.slane %v5802_v3, %v9897_v2  ;;  %v5649_v61 = vsel %vm1870_vm2, %v4915_v39, %v5558_v1  ;;  %v5316_v50 = vadd.f32 %v5258_v58, %v5141_v20  ;;  %v5825_v46 = vrot.slane %v5816_v34, 4 }
 0x533   : > { %v5829_v51 = vrot.slane %v5649_v61, 4  ;;  %v5812_v0 = vsel %vm1904_vm3, 0.0, %v5811_v31  ;;  %v5030_v20 = vpop.f32.mrf.mxu0 }
 0x534   : > { %v5472_v38 = vadd.f32 %v5414_v60, %v5316_v50  ;;  %v5826_v30 = vsel %vm1904_vm3, 0.0, %v5825_v46  ;;  %v12656_v13 = vperm.slane %v5812_v0, %v9897_v2 }
 0x535   : > { %v5830_v63 = vsel %vm1904_vm3, 0.0, %v5829_v51 }
 0x536   : > { %v12705_v58 = vpop.permute.xlu0 %5571 }
 0x537   : > { %7485 = vrot.lane.b32.xlu0 %v5748_v56, %s9094_s23  ;;  %7549 = vrot.lane.b32.xlu1 %v5740_v43, %s9096_s27  ;;  %v5823_v56 = vrot.slane %v5810_v40, 4  ;;  %v5834_v43 = vperm.slane %v5649_v61, %v9893_v4  ;;  %v12694_v61 = vpop.permute.xlu2 %5575 }
 0x539   : > { %v5824_v23 = vsel %vm1904_vm3, 0.0, %v5823_v56  ;;  %v5839_v45 = vrot.slane %v5834_v43, 4  ;;  %v12670_v10 = vperm.slane %v5834_v43, %v9897_v2 }
 0x53a   : > { %7421 = vrot.lane.b32.xlu2 %v5734_v59, %s9095_s26  ;;  %v12627_v59 = vperm.slane %v5796_v12, %v9897_v2 }
 0x53b   : > { %14468 = vst [vmem:[#allocation22_spill] sm:$0xff] %v12670_v10  ;;  %v5859_v5 = vrot.slane %v12670_v10, 4 }
 0x53c   : > { %v5821_v49 = vrot.slane %v12627_v59, 4 }
 0x53d   : > { %v5860_v9 = vsel %vm1904_vm3, 0.0, %v5859_v5 }
 0x53e   : > { %v5822_v7 = vsel %vm1904_vm3, 0.0, %v5821_v49 }
 0x53f   : > { %7677 = vrot.lane.b32.xlu0 %v12597_v18, %s9097_s28  ;;  %6911 = vrot.lane.b32.xlu1 %v5784_v42, %s9093_s21  ;;  %v5840_v42 = vsel %vm1904_vm3, 0.0, %v5839_v45 }
 0x540   : > { %v5848_v27 = vperm.slane %v5840_v42, %v9897_v2 }
 0x542   : > { %7613 = vrot.lane.b32.xlu2 %v5750_v24, %s9098_s30  ;;  %v12666_v24 = vld [vmem:[%s14330_s2] ss:$0 sm:$0xff] }
 0x543   : > { %v5504_v35 = vadd.f32 %v12666_v24, %v5472_v38  ;;  %v4916_v47 = vadd.f32 %v12666_v24, %v14469_v17  ;;  %v14472_v38 = vld [vmem:[#allocation45_spill] sm:$0xff] }
 0x547   : > { %5583 = vrot.lane.b32.xlu0 %v5502_v8, %s9090_s5  ;;  %7103 = vrot.lane.b32.xlu1 %v5778_v33, %s9096_s27  ;;  %v5838_v8 = vperm.slane %v5830_v63, %v9893_v4  ;;  %v5143_v33 = vpop.f32.mrf.mxu1 }
 0x548   : > { %v5144_v12 = vadd.f32 %v5143_v33, %v5027_v19  ;;  %v12726_v33 = vpop.permute.xlu0 %5577 }
 0x549   : > { %v5854_v11 = vperm.slane %v5838_v8, %v9897_v2 }
 0x54a   : > { %6975 = vrot.lane.b32.xlu2 %v5772_v21, %s9095_s26  ;;  %v5861_v21 = vrot.slane %v5848_v27, 4 }
 0x54b   : > { %v5863_v32 = vrot.slane %v5854_v11, 4 }
 0x54c   : > { %v5862_v41 = vsel %vm1904_vm3, 0.0, %v5861_v21 }
 0x54d   : > { %v5864_v39 = vsel %vm1904_vm3, 0.0, %v5863_v32 }
 0x54f   : > { %7039 = vrot.lane.b32.xlu0 %v5786_v36, %s9094_s23  ;;  %5585 = vrot.lane.b32.xlu1 %v5503_v16, %s9090_s5  ;;  %v5849_v16 = vrot.slane %v5838_v8, 4  ;;  %v5261_v36 = vpop.f32.mrf.mxu2 }
 0x550   : > { %v5317_v37 = vadd.f32 %v5261_v36, %v5144_v12 }
 0x551   : > { %v5850_v3 = vsel %vm1904_vm3, 0.0, %v5849_v16 }
 0x552   : > { %7167 = vrot.lane.b32.xlu2 %v5788_v25, %s9098_s30  ;;  %v5417_v25 = vpop.f32.mrf.mxu3 }
 0x553   : > { %v5473_v49 = vadd.f32 %v5417_v25, %v5317_v37 }
 0x555   : > { %v5505_v44 = vadd.f32 %v12666_v24, %v5473_v49 }
 0x557   : > { %7231 = vrot.lane.b32.xlu0 %v5782_v55, %s9097_s28  ;;  %7295 = vrot.lane.b32.xlu1 %v5790_v28, %s9099_s4  ;;  %v5650_v55 = vsel %vm1870_vm2, %v4916_v47, %v5560_v53  ;;  %v12690_v28 = vpop.permute.xlu1 %5567  ;;  %v5264_v0 = vpop.f32.mrf.mxu2 }
 0x558   : > { %v5872_v6 = vperm.slane %v5650_v55, %v9893_v4  ;;  %v5867_v1 = vrot.slane %v5650_v55, 4 }
 0x55a   : > { %7359 = vrot.lane.b32.xlu2 %v5822_v7, %s9093_s21  ;;  %v5877_v57 = vrot.slane %v5872_v6, 4  ;;  %v5868_v14 = vsel %vm1904_vm3, 0.0, %v5867_v1  ;;  %v12702_v7 = vperm.slane %v5872_v6, %v9897_v2  ;;  %v294_v6 = vld [vmem:[%s9213_s29 + $0x19a] sm:$0xff] }
 0x55b   : > { %v5876_v56 = vperm.slane %v5868_v14, %v9893_v4  ;;  %8782 = vmatmul.msk.f32.gmra.mxu3 %vm299_vm1, %v294_v6  ;;  %v14476_v14 = vld [vmem:[#allocation46_spill] sm:$0xff] }
 0x55c   : > { %v5878_v43 = vsel %vm1904_vm3, 0.0, %v5877_v57  ;;  %14470 = vst [vmem:[#allocation23_spill] sm:$0xff] %v12702_v7  ;;  %v5897_v60 = vrot.slane %v12702_v7, 4 }
 0x55d   : > { %v5886_v31 = vperm.slane %v5878_v43, %v9897_v2  ;;  %v5892_v45 = vperm.slane %v5876_v56, %v9897_v2 }
 0x55e   : > { %v5898_v8 = vsel %vm1904_vm3, 0.0, %v5897_v60 }
 0x55f   : > { %7423 = vrot.lane.b32.xlu0 %v5810_v40, %s9095_s26  ;;  %7487 = vrot.lane.b32.xlu1 %v5824_v23, %s9094_s23  ;;  %v5858_v40 = vperm.slane %v5850_v3, %v9897_v2  ;;  %v12712_v50 = vpop.permute.xlu1 %5573  ;;  %v5901_v42 = vrot.slane %v5892_v45, 4  ;;  %v5899_v17 = vrot.slane %v5886_v31, 4 }
 0x561   : > { %v5865_v46 = vrot.slane %v5858_v40, 4  ;;  %v5902_v19 = vsel %vm1904_vm3, 0.0, %v5901_v42  ;;  %v5900_v36 = vsel %vm1904_vm3, 0.0, %v5899_v17 }
 0x562   : > { %7551 = vrot.lane.b32.xlu2 %v5816_v34, %s9096_s27  ;;  %v5146_v34 = vpop.f32.mrf.mxu1 }
 0x563   : > { %v5147_v51 = vadd.f32 %v5146_v34, %v5030_v20  ;;  %v5866_v63 = vsel %vm1904_vm3, 0.0, %v5865_v46 }
 0x567   : > { %7615 = vrot.lane.b32.xlu0 %v5826_v30, %s9098_s30  ;;  %7679 = vrot.lane.b32.xlu1 %v12656_v13, %s9097_s28  ;;  %v4917_v30 = vadd.f32 %v12666_v24, %v14472_v38  ;;  %v12730_v12 = vpop.permute.xlu1 %5579 }
 0x569   : > { %v5651_v53 = vsel %vm1870_vm2, %v4917_v30, %v5562_v54 }
 0x56a   : > { %5587 = vrot.lane.b32.xlu2 %v5504_v35, %s9090_s5  ;;  %v5420_v35 = vpop.f32.mrf.mxu3  ;;  %v5910_v47 = vperm.slane %v5651_v53, %v9893_v4  ;;  %v5905_v16 = vrot.slane %v5651_v53, 4  ;;  %v5149_v42 = vpop.f32.mrf.mxu1 }
 0x56c   : > { %v5915_v55 = vrot.slane %v5910_v47, 4  ;;  %v12735_v5 = vperm.slane %v5910_v47, %v9897_v2  ;;  %v5906_v32 = vsel %vm1904_vm3, 0.0, %v5905_v16 }
 0x56e   : > { %14474 = vst [vmem:[#allocation26_spill] sm:$0xff] %v12735_v5  ;;  %v5916_v1 = vsel %vm1904_vm3, 0.0, %v5915_v55 }
 0x56f   : > { %6977 = vrot.lane.b32.xlu0 %v5848_v27, %s9095_s26  ;;  %7041 = vrot.lane.b32.xlu1 %v5862_v41, %s9094_s23  ;;  %v5318_v27 = vadd.f32 %v5264_v0, %v5147_v51  ;;  %v5887_v41 = vrot.slane %v5876_v56, 4  ;;  %v5924_v57 = vperm.slane %v5916_v1, %v9897_v2  ;;  %v5033_v51 = vpop.f32.mrf.mxu0 }
 0x571   : > { %v5888_v25 = vsel %vm1904_vm3, 0.0, %v5887_v41  ;;  %v5937_v46 = vrot.slane %v5924_v57, 4 }
 0x572   : > { %6913 = vrot.lane.b32.xlu2 %v5860_v9, %s9093_s21  ;;  %v5935_v9 = vrot.slane %v12735_v5, 4  ;;  %v12754_v49 = vperm.slane %v5888_v25, %v9897_v2  ;;  %v5423_v55 = vpop.f32.mrf.mxu3 }
 0x574   : > { %v5936_v56 = vsel %vm1904_vm3, 0.0, %v5935_v9  ;;  %v14484_v9 = vld [vmem:[#allocation47_spill] sm:$0xff] }
 0x577   : > { %7169 = vrot.lane.b32.xlu0 %v5864_v39, %s9098_s30  ;;  %7233 = vrot.lane.b32.xlu1 %v5858_v40, %s9097_s28  ;;  %v5914_v39 = vperm.slane %v5906_v32, %v9893_v4 }
 0x579   : > { %v5925_v43 = vrot.slane %v5914_v39, 4 }
 0x57a   : > { %7105 = vrot.lane.b32.xlu2 %v5854_v11, %s9096_s27  ;;  %v5474_v11 = vadd.f32 %v5420_v35, %v5318_v27  ;;  %v5267_v35 = vpop.f32.mrf.mxu2 }
 0x57b   : > { %v5926_v38 = vsel %vm1904_vm3, 0.0, %v5925_v43 }
 0x57c   : > { %v12709_v23 = vpop.permute.xlu2 %7037  ;;  %v5506_v54 = vadd.f32 %v12666_v24, %v5474_v11  ;;  %v5934_v27 = vperm.slane %v5926_v38, %v9897_v2  ;;  %v5152_v38 = vpop.f32.mrf.mxu1 }
 0x57d   : > { %14471 = vst [vmem:[#allocation24_spill] sm:$0xff] %v12709_v23 }
 0x57e   : > { %v5941_v16 = vrot.slane %v5934_v27, 4 }
 0x57f   : > { %5589 = vrot.lane.b32.xlu0 %v5505_v44, %s9090_s5  ;;  %7425 = vrot.lane.b32.xlu1 %v5886_v31, %s9095_s26  ;;  %v4918_v44 = vadd.f32 %v12666_v24, %v14476_v14  ;;  %v5930_v31 = vperm.slane %v5914_v39, %v9897_v2  ;;  %v4919_v39 = vadd.f32 %v12666_v24, %v14484_v9 }
 0x580   : > { %v5942_v25 = vsel %vm1904_vm3, 0.0, %v5941_v16 }
 0x581   : > { %v5652_v20 = vsel %vm1870_vm2, %v4918_v44, %v12648_v52  ;;  %v5939_v30 = vrot.slane %v5930_v31, 4  ;;  %v5938_v52 = vsel %vm1904_vm3, 0.0, %v5937_v46 }
 0x582   : > { %7297 = vrot.lane.b32.xlu2 %v5866_v63, %s9099_s4  ;;  %v5948_v60 = vperm.slane %v5652_v20, %v9893_v4  ;;  %v5150_v63 = vadd.f32 %v5149_v42, %v5033_v51  ;;  %v5943_v41 = vrot.slane %v5652_v20, 4  ;;  %v5036_v42 = vpop.f32.mrf.mxu0 }
 0x583   : > { %v5940_v11 = vsel %vm1904_vm3, 0.0, %v5939_v30 }
 0x584   : > { %v12723_v21 = vpop.permute.xlu2 %7229  ;;  %v12780_v53 = vperm.slane %v5948_v60, %v9897_v2  ;;  %v5319_v47 = vadd.f32 %v5267_v35, %v5150_v63  ;;  %v5153_v63 = vadd.f32 %v5152_v38, %v5036_v42 }
 0x585   : > { %14473 = vst [vmem:[#allocation25_spill] sm:$0xff] %v12723_v21 }
 0x586   : > { %14480 = vst [vmem:[#allocation31_spill] sm:$0xff] %v12780_v53  ;;  %v5973_v32 = vrot.slane %v12780_v53, 4  ;;  %v5475_v6 = vadd.f32 %v5423_v55, %v5319_v47 }
 0x587   : > { %7361 = vrot.lane.b32.xlu0 %v5898_v8, %s9093_s21  ;;  %7617 = vrot.lane.b32.xlu1 %v5902_v19, %s9098_s30  ;;  %v5953_v8 = vrot.slane %v5948_v60, 4 }
 0x588   : > { %v5974_v44 = vsel %vm1904_vm3, 0.0, %v5973_v32 }
 0x58a   : > { %7489 = vrot.lane.b32.xlu2 %v5900_v36, %s9094_s23  ;;  %v5039_v9 = vpop.f32.mrf.mxu0 }
 0x58c   : > { %v12740_v37 = vpop.permute.xlu2 %5581 }
 0x58f   : > { %7553 = vrot.lane.b32.xlu0 %v5892_v45, %s9096_s27  ;;  %5591 = vrot.lane.b32.xlu1 %v5506_v54, %s9090_s5  ;;  %v5954_v54 = vsel %vm1904_vm3, 0.0, %v5953_v8 }
 0x590   : > { %v5962_v1 = vperm.slane %v5954_v54, %v9897_v2 }
 0x591   : > { %v12744_v3 = vpop.permute.xlu0 %6909  ;;  %v12751_v40 = vpop.permute.xlu1 %6973 }
 0x592   : > { %14475 = vst [vmem:[#allocation27_spill] sm:$0xff] %v12751_v40  ;;  %7681 = vrot.lane.b32.xlu2 %v12754_v49, %s9097_s28  ;;  %v5975_v46 = vrot.slane %v5962_v1, 4 }
 0x594   : > { %v12765_v34 = vpop.permute.xlu2 %7421 }
 0x595   : > { %14477 = vst [vmem:[#allocation28_spill] sm:$0xff] %v12765_v34 }
 0x597   : > { %6915 = vrot.lane.b32.xlu0 %v5936_v56, %s9093_s21  ;;  %6979 = vrot.lane.b32.xlu1 %v5924_v57, %s9095_s26  ;;  %v5944_v57 = vsel %vm1904_vm3, 0.0, %v5943_v41  ;;  %v5653_v56 = vsel %vm1870_vm2, %v4919_v39, %v12685_v22  ;;  %v5976_v22 = vsel %vm1904_vm3, 0.0, %v5975_v46  ;;  %v5155_v39 = vpop.f32.mrf.mxu1 }
 0x598   : > { %v5952_v20 = vperm.slane %v5944_v57, %v9893_v4  ;;  %v5986_v60 = vperm.slane %v5653_v56, %v9893_v4  ;;  %v5981_v55 = vrot.slane %v5653_v56, 4  ;;  %v5156_v38 = vadd.f32 %v5155_v39, %v5039_v9 }
 0x599   : > { %v12769_v45 = vpop.permute.xlu0 %7101  ;;  %v12772_v0 = vpop.permute.xlu1 %7165 }
 0x59a   : > { %14478 = vst [vmem:[#allocation29_spill] sm:$0xff] %v12769_v45  ;;  %7043 = vrot.lane.b32.xlu2 %v5938_v52, %s9094_s23  ;;  %v5963_v30 = vrot.slane %v5952_v20, 4  ;;  %v5968_v52 = vperm.slane %v5952_v20, %v9897_v2  ;;  %v12818_v8 = vperm.slane %v5986_v60, %v9897_v2  ;;  %v5991_v57 = vrot.slane %v5986_v60, 4 }
 0x59b   : > { %14479 = vst [vmem:[#allocation30_spill] sm:$0xff] %v12772_v0  ;;  %v5982_v20 = vsel %vm1904_vm3, 0.0, %v5981_v55  ;;  %v14491_v55 = vld [vmem:[#allocation48_spill] sm:$0xff] }
 0x59c   : > { %v12782_v19 = vpop.permute.xlu2 %7613  ;;  %14487 = vst [vmem:[#allocation14_spill] sm:$0xff] %v12818_v8  ;;  %v5964_v16 = vsel %vm1904_vm3, 0.0, %v5963_v30  ;;  %v6011_v32 = vrot.slane %v12818_v8, 4  ;;  %v5977_v42 = vrot.slane %v5968_v52, 4  ;;  %v5990_v30 = vperm.slane %v5982_v20, %v9893_v4 }
 0x59d   : > { %14481 = vst [vmem:[#allocation32_spill] sm:$0xff] %v12782_v19  ;;  %v5992_v60 = vsel %vm1904_vm3, 0.0, %v5991_v57 }
 0x59e   : > { %v6012_v56 = vsel %vm1904_vm3, 0.0, %v6011_v32  ;;  %v4920_v32 = vadd.f32 %v12666_v24, %v14491_v55  ;;  %v6001_v9 = vrot.slane %v5990_v30, 4 }
 0x59f   : > { %7107 = vrot.lane.b32.xlu0 %v5930_v31, %s9096_s27  ;;  %7171 = vrot.lane.b32.xlu1 %v5940_v11, %s9098_s30  ;;  %v5507_v31 = vadd.f32 %v12666_v24, %v5475_v6  ;;  %v5270_v11 = vpop.f32.mrf.mxu2  ;;  %v5426_v6 = vpop.f32.mrf.mxu3 }
 0x5a0   : > { %v5320_v54 = vadd.f32 %v5270_v11, %v5153_v63 }
 0x5a1   : > { %v12786_v17 = vpop.permute.xlu0 %7293  ;;  %v12789_v36 = vpop.permute.xlu1 %7357 }
 0x5a2   : > { %14482 = vst [vmem:[#allocation33_spill] sm:$0xff] %v12786_v17  ;;  %7235 = vrot.lane.b32.xlu2 %v5934_v27, %s9097_s28  ;;  %v295_v27 = vld [vmem:[%s9213_s29 + $0x1a2] sm:$0xff] }
 0x5a3   : > { %14483 = vst [vmem:[#allocation34_spill] sm:$0xff] %v12789_v36  ;;  %8783 = vmatmul.msk.f32.gmra.mxu3 %vm299_vm1, %v295_v27  ;;  %v5978_v27 = vsel %vm1904_vm3, 0.0, %v5977_v42  ;;  %v14561_v36 = vld [vmem:[#allocation7_spill] sm:$0xff] }
 0x5a4   : > { %v12799_v14 = vpop.permute.xlu2 %6975 }
 0x5a7   : > { %7299 = vrot.lane.b32.xlu0 %v5942_v25, %s9099_s4  ;;  %7363 = vrot.lane.b32.xlu1 %v5974_v44, %s9093_s21  ;;  %v12831_v25 = vperm.slane %v5964_v16, %v9897_v2  ;;  %v5476_v44 = vadd.f32 %v5426_v6, %v5320_v54  ;;  %v5429_v16 = vpop.f32.mrf.mxu3  ;;  %v6000_v54 = vperm.slane %v5992_v60, %v9897_v2  ;;  %v14493_v60 = vld [vmem:[#allocation49_spill] sm:$0xff] }
 0x5a9   : > { %v12805_v43 = vpop.permute.xlu0 %7485  ;;  %v12809_v51 = vpop.permute.xlu1 %7549  ;;  %v5508_v63 = vadd.f32 %v12666_v24, %v5476_v44  ;;  %v5654_v44 = vsel %vm1870_vm2, %v4920_v32, %v12690_v28  ;;  %v6013_v20 = vrot.slane %v6000_v54, 4 }
 0x5aa   : > { %14485 = vst [vmem:[#allocation20_spill] sm:$0xff] %v12805_v43  ;;  %5593 = vrot.lane.b32.xlu2 %v5507_v31, %s9090_s5  ;;  %v6024_v42 = vperm.slane %v5654_v44, %v9893_v4  ;;  %v6019_v32 = vrot.slane %v5654_v44, 4 }
 0x5ab   : > { %14486 = vst [vmem:[#allocation19_spill] sm:$0xff] %v12809_v51 }
 0x5ac   : > { %v12820_v35 = vpop.permute.xlu2 %7167 }
 0x5ad   : > { %14488 = vst [vmem:[#allocation16_spill] sm:$0xff] %v12820_v35 }
 0x5af   : > { %7491 = vrot.lane.b32.xlu0 %v5976_v22, %s9094_s23  ;;  %7555 = vrot.lane.b32.xlu1 %v5968_v52, %s9096_s27  ;;  %v6006_v52 = vperm.slane %v5990_v30, %v9897_v2  ;;  %v6014_v30 = vsel %vm1904_vm3, 0.0, %v6013_v20 }
 0x5b1   : > { %v12824_v47 = vpop.permute.xlu0 %7677  ;;  %v12827_v41 = vpop.permute.xlu1 %6911  ;;  %v6015_v55 = vrot.slane %v6006_v52, 4 }
 0x5b2   : > { %14489 = vst [vmem:[#allocation17_spill] sm:$0xff] %v12824_v47  ;;  %7427 = vrot.lane.b32.xlu2 %v5962_v1, %s9095_s26  ;;  %v5273_v1 = vpop.f32.mrf.mxu2 }
 0x5b3   : > { %v5321_v11 = vadd.f32 %v5273_v1, %v5156_v38  ;;  %v6002_v1 = vsel %vm1904_vm3, 0.0, %v6001_v9 }
 0x5b4   : > { %v12837_v31 = vpop.permute.xlu2 %7359  ;;  %v6010_v28 = vperm.slane %v6002_v1, %v9897_v2  ;;  %v6016_v1 = vsel %vm1904_vm3, 0.0, %v6015_v55 }
 0x5b5   : > { %v5477_v57 = vadd.f32 %v5429_v16, %v5321_v11  ;;  %v6029_v11 = vrot.slane %v6024_v42, 4 }
 0x5b7   : > { %7683 = vrot.lane.b32.xlu0 %v12831_v25, %s9097_s28  ;;  %6917 = vrot.lane.b32.xlu1 %v6012_v56, %s9093_s21  ;;  %v5509_v38 = vadd.f32 %v12666_v24, %v5477_v57  ;;  %v6017_v57 = vrot.slane %v6010_v28, 4 }
 0x5b9   : > { %v12841_v46 = vpop.permute.xlu0 %5583  ;;  %v12845_v22 = vpop.permute.xlu1 %7103  ;;  %v6018_v44 = vsel %vm1904_vm3, 0.0, %v6017_v57 }
 0x5ba   : > { %14490 = vst [vmem:[#allocation18_spill] sm:$0xff] %v12845_v22  ;;  %7619 = vrot.lane.b32.xlu2 %v5978_v27, %s9098_s30 }
 0x5bc   : > { %v12855_v6 = vpop.permute.xlu2 %7551 }
 0x5bd   : > { %14492 = vst [vmem:[#allocation39_spill] sm:$0xff] %v12855_v6  ;;  %v14567_v6 = vld [vmem:[#allocation37_spill] sm:$0xff] }
 0x5bf   : > { %5595 = vrot.lane.b32.xlu0 %v5508_v63, %s9090_s5  ;;  %7109 = vrot.lane.b32.xlu1 %v6006_v52, %s9096_s27  ;;  %v4921_v63 = vadd.f32 %v12666_v24, %v14493_v60  ;;  %v12885_v60 = vperm.slane %v6024_v42, %v9897_v2  ;;  %v6020_v52 = vsel %vm1904_vm3, 0.0, %v6019_v32 }
 0x5c0   : > { %v12900_v55 = vperm.slane %v6020_v52, %v9893_v4  ;;  %v5276_v52 = vpop.f32.mrf.mxu2 }
 0x5c1   : > { %v12858_v39 = vpop.permute.xlu0 %7039  ;;  %v12862_v56 = vpop.permute.xlu1 %5585  ;;  %14496 = vst [vmem:[#allocation42_spill] sm:$0xff] %v12885_v60  ;;  %v6049_v42 = vrot.slane %v12885_v60, 4  ;;  %v14559_v60 = vld [vmem:[#allocation11_spill] sm:$0xff] }
 0x5c2   : > { %6981 = vrot.lane.b32.xlu2 %v6000_v54, %s9095_s26  ;;  %v5655_v54 = vsel %vm1870_vm2, %v4921_v63, %v12672_v48  ;;  %v6044_v19 = vperm.slane %v12900_v55, %v9897_v2 }
 0x5c3   : > { %v6062_v20 = vperm.slane %v5655_v54, %v9893_v4  ;;  %v6057_v47 = vrot.slane %v5655_v54, 4 }
 0x5c4   : > { %v12872_v27 = vpop.permute.xlu2 %5587 }
 0x5c5   : > { %v6067_v63 = vrot.slane %v6062_v20, 4  ;;  %v6058_v54 = vsel %vm1904_vm3, 0.0, %v6057_v47 }
 0x5c7   : > { %7045 = vrot.lane.b32.xlu0 %v6014_v30, %s9094_s23  ;;  %5597 = vrot.lane.b32.xlu1 %v5509_v38, %s9090_s5  ;;  %v6030_v30 = vsel %vm1904_vm3, 0.0, %v6029_v11  ;;  %v6068_v57 = vsel %vm1904_vm3, 0.0, %v6067_v63 }
 0x5c8   : > { %v6038_v38 = vperm.slane %v6030_v30, %v9897_v2  ;;  %v6050_v30 = vsel %vm1904_vm3, 0.0, %v6049_v42  ;;  %v6076_v5 = vperm.slane %v6068_v57, %v9897_v2  ;;  %v14501_v57 = vld [vmem:[#allocation50_spill] sm:$0xff] }
 0x5c9   : > { %v12876_v16 = vpop.permute.xlu0 %7231  ;;  %v12880_v9 = vpop.permute.xlu1 %7295  ;;  %v4922_v47 = vadd.f32 %v12666_v24, %v14501_v57 }
 0x5ca   : > { %14494 = vst [vmem:[#allocation40_spill] sm:$0xff] %v12876_v16  ;;  %7173 = vrot.lane.b32.xlu2 %v6016_v1, %s9098_s30  ;;  %v5042_v1 = vpop.f32.mrf.mxu0  ;;  %v6051_v17 = vrot.slane %v6038_v38, 4  ;;  %v6089_v51 = vrot.slane %v6076_v5, 4 }
 0x5cb   : > { %14495 = vst [vmem:[#allocation41_spill] sm:$0xff] %v12880_v9 }
 0x5cc   : > { %v12891_v48 = vpop.permute.xlu2 %6913  ;;  %v6052_v53 = vsel %vm1904_vm3, 0.0, %v6051_v17 }
 0x5cd   : > { %14497 = vst [vmem:[#allocation43_spill] sm:$0xff] %v12891_v48 }
 0x5cf   : > { %7237 = vrot.lane.b32.xlu0 %v6010_v28, %s9097_s28  ;;  %7301 = vrot.lane.b32.xlu1 %v6018_v44, %s9099_s4  ;;  %v5158_v28 = vpop.f32.mrf.mxu1 }
 0x5d0   : > { %v5159_v44 = vadd.f32 %v5158_v28, %v5042_v1  ;;  %v6053_v1 = vrot.slane %v6044_v19, 4 }
 0x5d1   : > { %v12896_v11 = vpop.permute.xlu0 %7423  ;;  %v12902_v32 = vpop.permute.xlu1 %7487 }
 0x5d2   : > { %7365 = vrot.lane.b32.xlu2 %v6050_v30, %s9093_s21  ;;  %v5322_v42 = vadd.f32 %v5276_v52, %v5159_v44  ;;  %v5432_v30 = vpop.f32.mrf.mxu3  ;;  %v6054_v17 = vsel %vm1904_vm3, 0.0, %v6053_v1  ;;  %v6090_v44 = vsel %vm1904_vm3, 0.0, %v6089_v51  ;;  %v5656_v52 = vsel %vm1870_vm2, %v4922_v47, %v12705_v58 }
 0x5d3   : > { %v6100_v1 = vperm.slane %v5656_v52, %v9893_v4  ;;  %v6095_v51 = vrot.slane %v5656_v52, 4 }
 0x5d4   : > { %v12910_v21 = vpop.permute.xlu2 %7105 }
 0x5d5   : > { %14498 = vst [vmem:[#allocation44_spill] sm:$0xff] %v12910_v21  ;;  %v5478_v21 = vadd.f32 %v5432_v30, %v5322_v42 }
 0x5d7   : > { %7429 = vrot.lane.b32.xlu0 %v6038_v38, %s9095_s26  ;;  %7493 = vrot.lane.b32.xlu1 %v6052_v53, %s9094_s23  ;;  %v6066_v38 = vperm.slane %v6058_v54, %v9893_v4  ;;  %v5161_v57 = vpop.f32.mrf.mxu1 }
 0x5d9   : > { %v12916_v63 = vpop.permute.xlu0 %7615  ;;  %v12918_v28 = vpop.permute.xlu1 %7679  ;;  %v6077_v53 = vrot.slane %v6066_v38, 4  ;;  %v6082_v58 = vperm.slane %v6066_v38, %v9897_v2 }
 0x5da   : > { %14499 = vst [vmem:[#allocation45_spill] sm:$0xff] %v12916_v63  ;;  %7557 = vrot.lane.b32.xlu2 %v6044_v19, %s9096_s27  ;;  %v5510_v19 = vadd.f32 %v12666_v24, %v5478_v21 }
 0x5db   : > { %14500 = vst [vmem:[#allocation46_spill] sm:$0xff] %v12918_v28  ;;  %v6078_v30 = vsel %vm1904_vm3, 0.0, %v6077_v53  ;;  %v6096_v53 = vsel %vm1904_vm3, 0.0, %v6095_v51 }
 0x5dc   : > { %v12926_v0 = vpop.permute.xlu2 %7297  ;;  %v6086_v21 = vperm.slane %v6078_v30, %v9897_v2 }
 0x5dd   : > { %14502 = vst [vmem:[#allocation47_spill] sm:$0xff] %v12926_v0  ;;  %v12940_v0 = vperm.slane %v6062_v20, %v9897_v2 }
 0x5df   : > { %7621 = vrot.lane.b32.xlu0 %v6054_v17, %s9098_s30  ;;  %7047 = vrot.lane.b32.xlu1 %v6090_v44, %s9094_s23  ;;  %v5045_v17 = vpop.f32.mrf.mxu0  ;;  %14505 = vst [vmem:[#allocation50_spill] sm:$0xff] %v12940_v0  ;;  %v6105_v44 = vrot.slane %v6100_v1, 4  ;;  %v6087_v52 = vrot.slane %v12940_v0, 4 }
 0x5e0   : > { %v5162_v47 = vadd.f32 %v5161_v57, %v5045_v17  ;;  %v5435_v17 = vpop.f32.mrf.mxu3 }
 0x5e1   : > { %v12932_v54 = vpop.permute.xlu0 %6977  ;;  %v12935_v42 = vpop.permute.xlu1 %7041  ;;  %v6106_v30 = vsel %vm1904_vm3, 0.0, %v6105_v44  ;;  %v6088_v57 = vsel %vm1904_vm3, 0.0, %v6087_v52 }
 0x5e2   : > { %14503 = vst [vmem:[#allocation48_spill] sm:$0xff] %v12932_v54  ;;  %5599 = vrot.lane.b32.xlu2 %v5510_v19, %s9090_s5  ;;  %v5279_v54 = vpop.f32.mrf.mxu2  ;;  %v6091_v19 = vrot.slane %v6082_v58, 4  ;;  %v6114_v0 = vperm.slane %v6106_v30, %v9897_v2 }
 0x5e3   : > { %14504 = vst [vmem:[#allocation49_spill] sm:$0xff] %v12935_v42  ;;  %v5323_v38 = vadd.f32 %v5279_v54, %v5162_v47 }
 0x5e4   : > { %v12946_v42 = vpop.permute.xlu2 %7489  ;;  %v6092_v51 = vsel %vm1904_vm3, 0.0, %v6091_v19 }
 0x5e5   : > { %14506 = vst [vmem:[#allocation58_spill] sm:$0xff] %v12946_v42 }
 0x5e7   : > { %6983 = vrot.lane.b32.xlu0 %v6076_v5, %s9095_s26  ;;  %7239 = vrot.lane.b32.xlu1 %v6086_v21, %s9097_s28  ;;  %v12956_v5 = vperm.slane %v6096_v53, %v9893_v4  ;;  %v5048_v42 = vpop.f32.mrf.mxu0 }
 0x5e9   : > { %v12950_v20 = vpop.permute.xlu0 %7169  ;;  %v12953_v29 = vpop.permute.xlu1 %7233  ;;  %v6120_v47 = vperm.slane %v12956_v5, %v9897_v2 }
 0x5ea   : > { %14507 = vst [vmem:[#allocation59_spill] sm:$0xff] %v12950_v20  ;;  %6919 = vrot.lane.b32.xlu2 %v6088_v57, %s9093_s21  ;;  %v5164_v20 = vpop.f32.mrf.mxu1  ;;  %v5282_v52 = vpop.f32.mrf.mxu2 }
 0x5eb   : > { %14508 = vst [vmem:[#allocation60_spill] sm:$0xff] %v12953_v29  ;;  %v5479_v29 = vadd.f32 %v5435_v17, %v5323_v38  ;;  %v5165_v53 = vadd.f32 %v5164_v20, %v5048_v42  ;;  %v6129_v10 = vrot.slane %v6120_v47, 4  ;;  %v12977_v17 = vperm.slane %v6100_v1, %v9897_v2 }
 0x5ec   : > { %v12964_v54 = vpop.permute.xlu2 %7681 }
 0x5ed   : > { %14509 = vst [vmem:[#allocation61_spill] sm:$0xff] %v12964_v54  ;;  %v5511_v19 = vadd.f32 %v12666_v24, %v5479_v29  ;;  %v5324_v38 = vadd.f32 %v5282_v52, %v5165_v53  ;;  %v5438_v54 = vpop.f32.mrf.mxu3  ;;  %v6130_v29 = vsel %vm1904_vm3, 0.0, %v6129_v10  ;;  %v6093_v52 = vrot.slane %v6086_v21, 4 }
 0x5ef   : > { %7175 = vrot.lane.b32.xlu0 %v6092_v51, %s9098_s30  ;;  %7431 = vrot.lane.b32.xlu1 %v6114_v0, %s9095_s26  ;;  %v14511_v51 = vld [vmem:[#allocation51_spill] sm:$0xff]  ;;  %v5480_v53 = vadd.f32 %v5438_v54, %v5324_v38 }
 0x5f0   : > { %v4923_v30 = vadd.f32 %v12666_v24, %v14511_v51  ;;  %14512 = vst [vmem:[#allocation51_spill] sm:$0xff] %v12977_v17 }
 0x5f1   : > { %v12969_v44 = vpop.permute.xlu0 %5589  ;;  %v12971_v57 = vpop.permute.xlu1 %7425 }
 0x5f2   : > { %14510 = vst [vmem:[#allocation62_spill] sm:$0xff] %v12971_v57  ;;  %7111 = vrot.lane.b32.xlu2 %v6082_v58, %s9096_s27  ;;  %v5657_v48 = vsel %vm1870_vm2, %v4923_v30, %v12712_v50  ;;  %v6125_v58 = vrot.slane %v12977_v17, 4  ;;  %v5512_v50 = vadd.f32 %v12666_v24, %v5480_v53 }
 0x5f3   : > { %v6138_v1 = vperm.slane %v5657_v48, %v9893_v4  ;;  %v6133_v57 = vrot.slane %v5657_v48, 4  ;;  %v6127_v48 = vrot.slane %v6114_v0, 4 }
 0x5f4   : > { %v12983_v42 = vpop.permute.xlu2 %7043  ;;  %v6126_v10 = vsel %vm1904_vm3, 0.0, %v6125_v58 }
 0x5f5   : > { %14513 = vst [vmem:[#allocation63_spill] sm:$0xff] %v12983_v42  ;;  %v6143_v30 = vrot.slane %v6138_v1, 4  ;;  %v6134_v21 = vsel %vm1904_vm3, 0.0, %v6133_v57  ;;  %v14518_v57 = vld [vmem:[#allocation52_spill] sm:$0xff] }
 0x5f7   : > { %5601 = vrot.lane.b32.xlu0 %v5511_v19, %s9090_s5  ;;  %7623 = vrot.lane.b32.xlu1 %v6130_v29, %s9098_s30  ;;  %v6094_v19 = vsel %vm1904_vm3, 0.0, %v6093_v52  ;;  %v6144_v29 = vsel %vm1904_vm3, 0.0, %v6143_v30  ;;  %v6142_v52 = vperm.slane %v6134_v21, %v9893_v4 }
 0x5f8   : > { %v6152_v58 = vperm.slane %v6144_v29, %v9897_v2 }
 0x5f9   : > { %v12987_v20 = vpop.permute.xlu0 %7361  ;;  %v12991_v51 = vpop.permute.xlu1 %7617  ;;  %v6158_v30 = vperm.slane %v6142_v52, %v9897_v2 }
 0x5fa   : > { %14514 = vst [vmem:[#allocation64_spill] sm:$0xff] %v12987_v20  ;;  %7303 = vrot.lane.b32.xlu2 %v6094_v19, %s9099_s4  ;;  %v6128_v19 = vsel %vm1904_vm3, 0.0, %v6127_v48  ;;  %v14524_v20 = vld [vmem:[#allocation53_spill] sm:$0xff] }
 0x5fb   : > { %14515 = vst [vmem:[#allocation65_spill] sm:$0xff] %v12991_v51  ;;  %v6167_v17 = vrot.slane %v6158_v30, 4  ;;  %v6153_v51 = vrot.slane %v6142_v52, 4 }
 0x5fc   : > { %v12998_v54 = vpop.permute.xlu2 %7235 }
 0x5fd   : > { %14516 = vst [vmem:[#allocation66_spill] sm:$0xff] %v12998_v54 }
 0x5ff   : > { %7367 = vrot.lane.b32.xlu0 %v6126_v10, %s9093_s21  ;;  %5603 = vrot.lane.b32.xlu1 %v5512_v50, %s9090_s5  ;;  %v13011_v10 = vperm.slane %v6138_v1, %v9897_v2  ;;  %v4924_v50 = vadd.f32 %v12666_v24, %v14518_v57  ;;  %v6165_v1 = vrot.slane %v6152_v58, 4  ;;  %v5167_v57 = vpop.f32.mrf.mxu1 }
 0x601   : > { %v13002_v38 = vpop.permute.xlu0 %7553  ;;  %v13005_v53 = vpop.permute.xlu1 %5591  ;;  %v5658_v21 = vsel %vm1870_vm2, %v4924_v50, %v12694_v61  ;;  %v6163_v29 = vrot.slane %v13011_v10, 4  ;;  %v6166_v42 = vsel %vm1904_vm3, 0.0, %v6165_v1  ;;  %v6154_v1 = vsel %vm1904_vm3, 0.0, %v6153_v51 }
 0x602   : > { %14517 = vst [vmem:[#allocation67_spill] sm:$0xff] %v13002_v38  ;;  %7495 = vrot.lane.b32.xlu2 %v6128_v19, %s9094_s23  ;;  %v5051_v19 = vpop.f32.mrf.mxu0 }
 0x603   : > { %v6164_v61 = vsel %vm1904_vm3, 0.0, %v6163_v29  ;;  %v5168_v50 = vadd.f32 %v5167_v57, %v5051_v19  ;;  %v5441_v29 = vpop.f32.mrf.mxu3  ;;  %v6171_v19 = vrot.slane %v5658_v21, 4  ;;  %v6162_v57 = vperm.slane %v6154_v1, %v9897_v2 }
 0x604   : > { %v13017_v0 = vpop.permute.xlu2 %5593 }
 0x605   : > { %v6172_v51 = vsel %vm1904_vm3, 0.0, %v6171_v19 }
 0x607   : > { %7559 = vrot.lane.b32.xlu0 %v6120_v47, %s9096_s27  ;;  %6985 = vrot.lane.b32.xlu1 %v6152_v58, %s9095_s26  ;;  %v6176_v47 = vperm.slane %v5658_v21, %v9893_v4  ;;  %v5285_v58 = vpop.f32.mrf.mxu2 }
 0x609   : > { %v13023_v48 = vpop.permute.xlu0 %6915  ;;  %v13026_v54 = vpop.permute.xlu1 %6979  ;;  %v13034_v38 = vperm.slane %v6176_v47, %v9897_v2 }
 0x60a   : > { %14519 = vst [vmem:[#allocation52_spill] sm:$0xff] %v13023_v48  ;;  %7049 = vrot.lane.b32.xlu2 %v6166_v42, %s9094_s23  ;;  %v5325_v42 = vadd.f32 %v5285_v58, %v5168_v50 }
 0x60b   : > { %14520 = vst [vmem:[#allocation68_spill] sm:$0xff] %v13026_v54  ;;  %v6168_v54 = vsel %vm1904_vm3, 0.0, %v6167_v17  ;;  %v4925_v17 = vadd.f32 %v12666_v24, %v14524_v20  ;;  %v13062_v20 = vperm.slane %v6172_v51, %v9893_v4 }
 0x60c   : > { %v13036_v48 = vpop.permute.xlu2 %7427 }
 0x60d   : > { %14521 = vst [vmem:[#allocation69_spill] sm:$0xff] %v13036_v48  ;;  %v5481_v48 = vadd.f32 %v5441_v29, %v5325_v42  ;;  %v5659_v21 = vsel %vm1870_vm2, %v4925_v17, %v12726_v33  ;;  %v6169_v29 = vrot.slane %v6162_v57, 4 }
 0x60e   : > { %v6214_v19 = vperm.slane %v5659_v21, %v9893_v4 }
 0x60f   : > { %6921 = vrot.lane.b32.xlu0 %v6164_v61, %s9093_s21  ;;  %7177 = vrot.lane.b32.xlu1 %v6168_v54, %s9098_s30  ;;  %v6201_v61 = vrot.slane %v13034_v38, 4  ;;  %v6181_v54 = vrot.slane %v6176_v47, 4  ;;  %v5513_v42 = vadd.f32 %v12666_v24, %v5481_v48  ;;  %v6170_v33 = vsel %vm1904_vm3, 0.0, %v6169_v29 }
 0x610   : > { %v6196_v48 = vperm.slane %v13062_v20, %v9897_v2  ;;  %v6219_v9 = vrot.slane %v6214_v19, 4 }
 0x611   : > { %v13040_v52 = vpop.permute.xlu0 %7107  ;;  %v13043_v7 = vpop.permute.xlu1 %7171  ;;  %v6202_v58 = vsel %vm1904_vm3, 0.0, %v6201_v61 }
 0x612   : > { %14522 = vst [vmem:[#allocation70_spill] sm:$0xff] %v13040_v52  ;;  %7241 = vrot.lane.b32.xlu2 %v6162_v57, %s9097_s28  ;;  %v5054_v61 = vpop.f32.mrf.mxu0  ;;  %v5444_v52 = vpop.f32.mrf.mxu3 }
 0x613   : > { %14523 = vst [vmem:[#allocation71_spill] sm:$0xff] %v13043_v7  ;;  %v6209_v7 = vrot.slane %v5659_v21, 4 }
 0x614   : > { %v13052_v50 = vpop.permute.xlu2 %7619 }
 0x615   : > { %14525 = vst [vmem:[#allocation53_spill] sm:$0xff] %v13052_v50  ;;  %v5170_v50 = vpop.f32.mrf.mxu1 }
 0x616   : > { %v5171_v57 = vadd.f32 %v5170_v50, %v5054_v61 }
 0x617   : > { %7113 = vrot.lane.b32.xlu0 %v6158_v30, %s9096_s27  ;;  %7369 = vrot.lane.b32.xlu1 %v6202_v58, %s9093_s21  ;;  %v6182_v30 = vsel %vm1904_vm3, 0.0, %v6181_v54  ;;  %v13075_v54 = vperm.slane %v6214_v19, %v9897_v2  ;;  %v5288_v58 = vpop.f32.mrf.mxu2  ;;  %v6220_v19 = vsel %vm1904_vm3, 0.0, %v6219_v9 }
 0x618   : > { %v6190_v17 = vperm.slane %v6182_v30, %v9897_v2  ;;  %v5326_v30 = vadd.f32 %v5288_v58, %v5171_v57  ;;  %v6205_v58 = vrot.slane %v6196_v48, 4 }
 0x619   : > { %v13058_v1 = vpop.permute.xlu0 %7299  ;;  %v13065_v47 = vpop.permute.xlu1 %7363 }
 0x61a   : > { %14526 = vst [vmem:[#allocation72_spill] sm:$0xff] %v13058_v1  ;;  %5605 = vrot.lane.b32.xlu2 %v5513_v42, %s9090_s5  ;;  %v6203_v42 = vrot.slane %v6190_v17, 4  ;;  %v5057_v61 = vpop.f32.mrf.mxu0  ;;  %v5482_v43 = vadd.f32 %v5444_v52, %v5326_v30 }
 0x61b   : > { %14527 = vst [vmem:[#allocation73_spill] sm:$0xff] %v13065_v47 }
 0x61c   : > { %v13077_v51 = vpop.permute.xlu2 %6981  ;;  %v6204_v50 = vsel %vm1904_vm3, 0.0, %v6203_v42  ;;  %v5514_v52 = vadd.f32 %v12666_v24, %v5482_v43 }
 0x61d   : > { %14528 = vst [vmem:[#allocation74_spill] sm:$0xff] %v13077_v51  ;;  %v5173_v47 = vpop.f32.mrf.mxu1 }
 0x61f   : > { %7305 = vrot.lane.b32.xlu0 %v6170_v33, %s9099_s4  ;;  %7561 = vrot.lane.b32.xlu1 %v6196_v48, %s9096_s27  ;;  %v6239_v33 = vrot.slane %v13075_v54, 4  ;;  %v14534_v48 = vld [vmem:[#allocation5_spill] sm:$0xff] }
 0x621   : > { %v13080_v1 = vpop.permute.xlu0 %7491  ;;  %v13082_v29 = vpop.permute.xlu1 %7555  ;;  %v6240_v57 = vsel %vm1904_vm3, 0.0, %v6239_v33 }
 0x622   : > { %14529 = vst [vmem:[#allocation75_spill] sm:$0xff] %v13080_v1  ;;  %7433 = vrot.lane.b32.xlu2 %v6190_v17, %s9095_s26  ;;  %v6210_v1 = vsel %vm1904_vm3, 0.0, %v6209_v7  ;;  %v5174_v17 = vadd.f32 %v5173_v47, %v5057_v61  ;;  %v6206_v7 = vsel %vm1904_vm3, 0.0, %v6205_v58  ;;  %v5447_v33 = vpop.f32.mrf.mxu3 }
 0x623   : > { %14530 = vst [vmem:[#allocation76_spill] sm:$0xff] %v13082_v29  ;;  %v5291_v29 = vpop.f32.mrf.mxu2  ;;  %v6218_v42 = vperm.slane %v6210_v1, %v9893_v4  ;;  %v4926_v1 = vadd.f32 %v12666_v24, %v14534_v48  ;;  %v14537_v48 = vld [vmem:[#allocation54_spill] sm:$0xff] }
 0x624   : > { %v13089_v45 = vpop.permute.xlu2 %7173  ;;  %v5327_v30 = vadd.f32 %v5291_v29, %v5174_v17 }
 0x625   : > { %14531 = vst [vmem:[#allocation77_spill] sm:$0xff] %v13089_v45  ;;  %v6234_v47 = vperm.slane %v6218_v42, %v9897_v2  ;;  %v6229_v61 = vrot.slane %v6218_v42, 4 }
 0x626   : > { %v5483_v29 = vadd.f32 %v5447_v33, %v5327_v30  ;;  %v4927_v30 = vadd.f32 %v12666_v24, %v14537_v48 }
 0x627   : > { %7497 = vrot.lane.b32.xlu0 %v6204_v50, %s9094_s23  ;;  %6923 = vrot.lane.b32.xlu1 %v6240_v57, %s9093_s21  ;;  %v6228_v50 = vperm.slane %v6220_v19, %v9897_v2  ;;  %v5660_v57 = vsel %vm1870_vm2, %v4926_v1, %v12730_v12 }
 0x628   : > { %v6252_v19 = vperm.slane %v5660_v57, %v9893_v4 }
 0x629   : > { %v13093_v21 = vpop.permute.xlu0 %7683  ;;  %v13097_v34 = vpop.permute.xlu1 %6917  ;;  %v6241_v58 = vrot.slane %v6228_v50, 4 }
 0x62a   : > { %14532 = vst [vmem:[#allocation78_spill] sm:$0xff] %v13093_v21  ;;  %7625 = vrot.lane.b32.xlu2 %v6206_v7, %s9098_s30  ;;  %v6230_v7 = vsel %vm1904_vm3, 0.0, %v6229_v61  ;;  %v6257_v1 = vrot.slane %v6252_v19, 4  ;;  %v6247_v61 = vrot.slane %v5660_v57, 4  ;;  %v13136_v48 = vperm.slane %v6252_v19, %v9897_v2 }
 0x62b   : > { %14533 = vst [vmem:[#allocation79_spill] sm:$0xff] %v13097_v34  ;;  %v6242_v42 = vsel %vm1904_vm3, 0.0, %v6241_v58  ;;  %v6238_v12 = vperm.slane %v6230_v7, %v9897_v2 }
 0x62c   : > { %v13107_v9 = vpop.permute.xlu2 %7365  ;;  %v6258_v45 = vsel %vm1904_vm3, 0.0, %v6257_v1  ;;  %v6277_v1 = vrot.slane %v13136_v48, 4 }
 0x62d   : > { %14535 = vst [vmem:[#allocation5_spill] sm:$0xff] %v13107_v9 }
 0x62f   : > { %5607 = vrot.lane.b32.xlu0 %v5514_v52, %s9090_s5  ;;  %7115 = vrot.lane.b32.xlu1 %v6234_v47, %s9096_s27  ;;  %v5515_v52 = vadd.f32 %v12666_v24, %v5483_v29  ;;  %v6243_v29 = vrot.slane %v6234_v47, 4  ;;  %v6248_v47 = vsel %vm1904_vm3, 0.0, %v6247_v61 }
 0x631   : > { %v13110_v43 = vpop.permute.xlu0 %5595  ;;  %v13114_v17 = vpop.permute.xlu1 %7109 }
 0x632   : > { %14536 = vst [vmem:[#allocation80_spill] sm:$0xff] %v13114_v17  ;;  %6987 = vrot.lane.b32.xlu2 %v6228_v50, %s9095_s26  ;;  %v5661_v50 = vsel %vm1870_vm2, %v4927_v30, %v12740_v37 }
 0x633   : > { %v6290_v7 = vperm.slane %v5661_v50, %v9893_v4  ;;  %v6285_v23 = vrot.slane %v5661_v50, 4 }
 0x634   : > { %v13124_v33 = vpop.permute.xlu2 %7557 }
 0x635   : > { %14538 = vst [vmem:[#allocation54_spill] sm:$0xff] %v13124_v33  ;;  %v6244_v33 = vsel %vm1904_vm3, 0.0, %v6243_v29  ;;  %v6295_v30 = vrot.slane %v6290_v7, 4  ;;  %v13152_v29 = vperm.slane %v6248_v47, %v9893_v4  ;;  %v5294_v47 = vpop.f32.mrf.mxu2  ;;  %v6286_v50 = vsel %vm1904_vm3, 0.0, %v6285_v23 }
 0x637   : > { %7051 = vrot.lane.b32.xlu0 %v6242_v42, %s9094_s23  ;;  %5609 = vrot.lane.b32.xlu1 %v5515_v52, %s9090_s5  ;;  %v6245_v42 = vrot.slane %v6238_v12, 4  ;;  %v6266_v52 = vperm.slane %v6258_v45, %v9897_v2  ;;  %v6278_v45 = vsel %vm1904_vm3, 0.0, %v6277_v1 }
 0x639   : > { %v13128_v21 = vpop.permute.xlu0 %7045  ;;  %v13132_v58 = vpop.permute.xlu1 %5597  ;;  %v6246_v57 = vsel %vm1904_vm3, 0.0, %v6245_v42  ;;  %v6279_v17 = vrot.slane %v6266_v52, 4  ;;  %v6296_v42 = vsel %vm1904_vm3, 0.0, %v6295_v30 }
 0x63a   : > { %14539 = vst [vmem:[#allocation81_spill] sm:$0xff] %v13128_v21  ;;  %7179 = vrot.lane.b32.xlu2 %v6244_v33, %s9098_s30  ;;  %v5060_v33 = vpop.f32.mrf.mxu0  ;;  %v6304_v28 = vperm.slane %v6296_v42, %v9897_v2  ;;  %v14545_v42 = vld [vmem:[#allocation55_spill] sm:$0xff] }
 0x63b   : > { %v4928_v23 = vadd.f32 %v12666_v24, %v14545_v42 }
 0x63c   : > { %v13143_v37 = vpop.permute.xlu2 %5599  ;;  %v6317_v51 = vrot.slane %v6304_v28, 4 }
 0x63f   : > { %7243 = vrot.lane.b32.xlu0 %v6238_v12, %s9097_s28  ;;  %7307 = vrot.lane.b32.xlu1 %v6246_v57, %s9099_s4  ;;  %v5176_v12 = vpop.f32.mrf.mxu1 }
 0x640   : > { %v5177_v57 = vadd.f32 %v5176_v12, %v5060_v33 }
 0x641   : > { %v13148_v19 = vpop.permute.xlu0 %7237  ;;  %v13154_v61 = vpop.permute.xlu1 %7301 }
 0x642   : > { %14540 = vst [vmem:[#allocation82_spill] sm:$0xff] %v13148_v19  ;;  %7371 = vrot.lane.b32.xlu2 %v6278_v45, %s9093_s21  ;;  %v6272_v19 = vperm.slane %v13152_v29, %v9897_v2  ;;  %v5328_v1 = vadd.f32 %v5294_v47, %v5177_v57  ;;  %v5450_v45 = vpop.f32.mrf.mxu3  ;;  %v6318_v57 = vsel %vm1904_vm3, 0.0, %v6317_v51  ;;  %v5662_v47 = vsel %vm1870_vm2, %v4928_v23, %v12841_v46 }
 0x643   : > { %14541 = vst [vmem:[#allocation83_spill] sm:$0xff] %v13154_v61  ;;  %v6280_v61 = vsel %vm1904_vm3, 0.0, %v6279_v17  ;;  %v6323_v46 = vrot.slane %v5662_v47, 4 }
 0x644   : > { %v13162_v21 = vpop.permute.xlu2 %6919  ;;  %v6281_v33 = vrot.slane %v6272_v19, 4 }
 0x645   : > { %14542 = vst [vmem:[#allocation84_spill] sm:$0xff] %v13162_v21  ;;  %v5484_v21 = vadd.f32 %v5450_v45, %v5328_v1  ;;  %v13197_v45 = vperm.slane %v6290_v7, %v9897_v2 }
 0x646   : > { %v6282_v17 = vsel %vm1904_vm3, 0.0, %v6281_v33  ;;  %v6328_v33 = vperm.slane %v5662_v47, %v9893_v4 }
 0x647   : > { %7435 = vrot.lane.b32.xlu0 %v6266_v52, %s9095_s26  ;;  %7499 = vrot.lane.b32.xlu1 %v6280_v61, %s9094_s23  ;;  %v6294_v52 = vperm.slane %v6286_v50, %v9893_v4  ;;  %v6315_v7 = vrot.slane %v13197_v45, 4 }
 0x648   : > { %v6333_v23 = vrot.slane %v6328_v33, 4 }
 0x649   : > { %v13168_v30 = vpop.permute.xlu0 %7429  ;;  %v13170_v12 = vpop.permute.xlu1 %7493  ;;  %v6305_v61 = vrot.slane %v6294_v52, 4 }
 0x64a   : > { %14543 = vst [vmem:[#allocation85_spill] sm:$0xff] %v13168_v30  ;;  %7563 = vrot.lane.b32.xlu2 %v6272_v19, %s9096_s27  ;;  %v13189_v19 = vld [vmem:[%s14330_s2] ss:$0 sm:$0xff] }
 0x64b   : > { %14544 = vst [vmem:[#allocation86_spill] sm:$0xff] %v13170_v12  ;;  %v5516_v24 = vadd.f32 %v13189_v19, %v5484_v21  ;;  %v6306_v51 = vsel %vm1904_vm3, 0.0, %v6305_v61  ;;  %v4931_v40 = vadd.f32 %v13189_v19, %v14561_v36 }
 0x64c   : > { %v13178_v30 = vpop.permute.xlu2 %7111  ;;  %v6314_v42 = vperm.slane %v6306_v51, %v9897_v2  ;;  %v13218_v51 = vperm.slane %v6328_v33, %v9897_v2 }
 0x64d   : > { %14546 = vst [vmem:[#allocation55_spill] sm:$0xff] %v13178_v30 }
 0x64f   : > { %7627 = vrot.lane.b32.xlu0 %v6282_v17, %s9098_s30  ;;  %7053 = vrot.lane.b32.xlu1 %v6318_v57, %s9094_s23  ;;  %v6310_v17 = vperm.slane %v6294_v52, %v9897_v2  ;;  %v6324_v57 = vsel %vm1904_vm3, 0.0, %v6323_v46 }
 0x650   : > { %v13213_v52 = vperm.slane %v6324_v57, %v9893_v4 }
 0x651   : > { %v13184_v50 = vpop.permute.xlu0 %7621  ;;  %v13192_v1 = vpop.permute.xlu1 %7047  ;;  %v6319_v47 = vrot.slane %v6310_v17, 4 }
 0x652   : > { %14547 = vst [vmem:[#allocation87_spill] sm:$0xff] %v13184_v50  ;;  %5611 = vrot.lane.b32.xlu2 %v5516_v24, %s9090_s5  ;;  %v6316_v24 = vsel %vm1904_vm3, 0.0, %v6315_v7  ;;  %v6321_v50 = vrot.slane %v6314_v42, 4  ;;  %s8805_s5 = sshll.u32 %s9080_s15, 6  ;;  %s8141_s15 = sshll.u32 %s10323_s10, 4  ;;  %s8142_s15 = int_to_ptr.vmem [resolvable:$true] %s8141_s15 }
 0x653   : > { %14548 = vst [vmem:[#allocation88_spill] sm:$0xff] %v13192_v1  ;;  %v6320_v46 = vsel %vm1904_vm3, 0.0, %v6319_v47  ;;  %v6353_v47 = vrot.slane %v13218_v51, 4 }
 0x654   : > { %v13203_v21 = vpop.permute.xlu2 %7303 }
 0x655   : > { %14549 = vst [vmem:[#allocation89_spill] sm:$0xff] %v13203_v21  ;;  %v14552_v21 = vld [vmem:[#allocation6_spill] sm:$0xff] }
 0x656   : > { %v4929_v1 = vadd.f32 %v13189_v19, %v14552_v21 }
 0x657   : > { %6989 = vrot.lane.b32.xlu0 %v6304_v28, %s9095_s26  ;;  %7245 = vrot.lane.b32.xlu1 %v6314_v42, %s9097_s28  ;;  %v6334_v28 = vsel %vm1904_vm3, 0.0, %v6333_v23  ;;  %v6348_v23 = vperm.slane %v13213_v52, %v9897_v2 }
 0x658   : > { %v5663_v33 = vsel %vm1870_vm2, %v4929_v1, %v12862_v56 }
 0x659   : > { %v13207_v61 = vpop.permute.xlu0 %6983  ;;  %v13210_v30 = vpop.permute.xlu1 %7239  ;;  %v6366_v21 = vperm.slane %v5663_v33, %v9893_v4 }
 0x65a   : > { %14550 = vst [vmem:[#allocation90_spill] sm:$0xff] %v13207_v61  ;;  %6925 = vrot.lane.b32.xlu2 %v6316_v24, %s9093_s21 }
 0x65b   : > { %14551 = vst [vmem:[#allocation91_spill] sm:$0xff] %v13210_v30  ;;  %v6342_v30 = vperm.slane %v6334_v28, %v9897_v2  ;;  %v6361_v28 = vrot.slane %v5663_v33, 4  ;;  %v6371_v61 = vrot.slane %v6366_v21, 4 }
 0x65c   : > { %v13226_v57 = vpop.permute.xlu2 %7495 }
 0x65d   : > { %14553 = vst [vmem:[#allocation6_spill] sm:$0xff] %v13226_v57  ;;  %v6354_v57 = vsel %vm1904_vm3, 0.0, %v6353_v47  ;;  %v6372_v33 = vsel %vm1904_vm3, 0.0, %v6371_v61  ;;  %v13255_v47 = vperm.slane %v6366_v21, %v9897_v2  ;;  %v6355_v21 = vrot.slane %v6342_v30, 4 }
 0x65e   : > { %v6380_v42 = vperm.slane %v6372_v33, %v9897_v2 }
 0x65f   : > { %7181 = vrot.lane.b32.xlu0 %v6320_v46, %s9098_s30  ;;  %7437 = vrot.lane.b32.xlu1 %v6342_v30, %s9095_s26  ;;  %v6357_v46 = vrot.slane %v6348_v23, 4  ;;  %v6356_v33 = vsel %vm1904_vm3, 0.0, %v6355_v21 }
 0x661   : > { %v13233_v7 = vpop.permute.xlu0 %7175  ;;  %v13236_v24 = vpop.permute.xlu1 %7431  ;;  %v6358_v1 = vsel %vm1904_vm3, 0.0, %v6357_v46  ;;  %v14557_v46 = vld [vmem:[#allocation36_spill] sm:$0xff] }
 0x662   : > { %14554 = vst [vmem:[#allocation92_spill] sm:$0xff] %v13233_v7  ;;  %7117 = vrot.lane.b32.xlu2 %v6310_v17, %s9096_s27  ;;  %v6362_v7 = vsel %vm1904_vm3, 0.0, %v6361_v28  ;;  %v4930_v28 = vadd.f32 %v13189_v19, %v14557_v46 }
 0x663   : > { %14555 = vst [vmem:[#allocation93_spill] sm:$0xff] %v13236_v24  ;;  %v6370_v17 = vperm.slane %v6362_v7, %v9893_v4 }
 0x664   : > { %v13242_v56 = vpop.permute.xlu2 %7049  ;;  %v5664_v61 = vsel %vm1870_vm2, %v4930_v28, %v12872_v27  ;;  %v4939_v27 = vadd.f32 %v13189_v19, %v14559_v60 }
 0x665   : > { %v6386_v7 = vperm.slane %v6370_v17, %v9897_v2  ;;  %v6381_v28 = vrot.slane %v6370_v17, 4  ;;  %v6399_v17 = vrot.slane %v5664_v61, 4 }
 0x667   : > { %7373 = vrot.lane.b32.xlu0 %v6354_v57, %s9093_s21  ;;  %7629 = vrot.lane.b32.xlu1 %v6358_v1, %s9098_s30  ;;  %v6322_v57 = vsel %vm1904_vm3, 0.0, %v6321_v50  ;;  %v6395_v46 = vrot.slane %v6386_v7, 4  ;;  %v6382_v60 = vsel %vm1904_vm3, 0.0, %v6381_v28 }
 0x669   : > { %v13247_v24 = vpop.permute.xlu0 %5601  ;;  %v13249_v12 = vpop.permute.xlu1 %7623  ;;  %v6396_v9 = vsel %vm1904_vm3, 0.0, %v6395_v46 }
 0x66a   : > { %14556 = vst [vmem:[#allocation94_spill] sm:$0xff] %v13249_v12  ;;  %7309 = vrot.lane.b32.xlu2 %v6322_v57, %s9099_s4  ;;  %v6391_v57 = vrot.slane %v13255_v47, 4 }
 0x66c   : > { %v13262_v1 = vpop.permute.xlu2 %7241  ;;  %v6392_v16 = vsel %vm1904_vm3, 0.0, %v6391_v57  ;;  %v6393_v57 = vrot.slane %v6380_v42, 4 }
 0x66e   : > { %v6394_v62 = vsel %vm1904_vm3, 0.0, %v6393_v57 }
 0x66f   : > { %7565 = vrot.lane.b32.xlu0 %v6348_v23, %s9096_s27  ;;  %6991 = vrot.lane.b32.xlu1 %v6380_v42, %s9095_s26  ;;  %v6404_v23 = vperm.slane %v5664_v61, %v9893_v4  ;;  %v5665_v42 = vsel %vm1870_vm2, %v4931_v40, %v12969_v44 }
 0x671   : > { %v13268_v50 = vpop.permute.xlu0 %7367  ;;  %v13271_v12 = vpop.permute.xlu1 %5603  ;;  %v13281_v30 = vperm.slane %v6404_v23, %v9897_v2  ;;  %v6409_v46 = vrot.slane %v6404_v23, 4  ;;  %v6442_v23 = vperm.slane %v5665_v42, %v9893_v4 }
 0x672   : > { %14558 = vst [vmem:[#allocation36_spill] sm:$0xff] %v13268_v50  ;;  %7501 = vrot.lane.b32.xlu2 %v6356_v33, %s9094_s23 }
 0x674   : > { %v5606_v50 = vpop.permute.xlu2 %5605 }
 0x675   : > { %v13285_v35 = vsel %vm1870_vm2, %v4939_v27, %v5606_v50  ;;  %v6390_v50 = vperm.slane %v6382_v60, %v9897_v2 }
 0x677   : > { %6927 = vrot.lane.b32.xlu0 %v6392_v16, %s9093_s21  ;;  %7183 = vrot.lane.b32.xlu1 %v6396_v9, %s9098_s30  ;;  %v6429_v16 = vrot.slane %v13281_v30, 4  ;;  %v6400_v9 = vsel %vm1904_vm3, 0.0, %v6399_v17  ;;  %v6397_v57 = vrot.slane %v6390_v50, 4  ;;  %v6437_v17 = vrot.slane %v5665_v42, 4 }
 0x678   : > { %v13304_v36 = vperm.slane %v6400_v9, %v9893_v4  ;;  %v13318_v9 = vperm.slane %v6442_v23, %v9897_v2 }
 0x679   : > { %v13288_v21 = vpop.permute.xlu0 %7559  ;;  %v6986_v33 = vpop.permute.xlu1 %6985  ;;  %v6430_v27 = vsel %vm1904_vm3, 0.0, %v6429_v16  ;;  %v6398_v40 = vsel %vm1904_vm3, 0.0, %v6397_v57  ;;  %v6447_v16 = vrot.slane %v6442_v23, 4 }
 0x67a   : > { %14560 = vst [vmem:[#allocation11_spill] sm:$0xff] %v13288_v21  ;;  %7055 = vrot.lane.b32.xlu2 %v6394_v62, %s9094_s23  ;;  %v6410_v62 = vsel %vm1904_vm3, 0.0, %v6409_v46  ;;  %v6424_v46 = vperm.slane %v13304_v36, %v9897_v2 }
 0x67b   : > { %v6418_v44 = vperm.slane %v6410_v62, %v9897_v2 }
 0x67c   : > { %v7434_v61 = vpop.permute.xlu2 %7433 }
 0x67f   : > { %7119 = vrot.lane.b32.xlu0 %v6386_v7, %s9096_s27  ;;  %7375 = vrot.lane.b32.xlu1 %v6430_v27, %s9093_s21 }
 0x681   : > { %v6922_v28 = vpop.permute.xlu0 %6921  ;;  %v7178_v7 = vpop.permute.xlu1 %7177 }
 0x682   : > { %v7795_v60 = vsel %vm4016_vm4, %v13011_v10, %v6922_v28  ;;  %7247 = vrot.lane.b32.xlu2 %v6390_v50, %s9097_s28  ;;  %v6438_v50 = vsel %vm1904_vm3, 0.0, %v6437_v17  ;;  %v6431_v28 = vrot.slane %v6418_v44, 4 }
 0x683   : > { %v7811_v27 = vsel %vm4033_vm5, %v7795_v60, %v6986_v33  ;;  %v6448_v33 = vsel %vm1904_vm3, 0.0, %v6447_v16  ;;  %v6467_v60 = vrot.slane %v13318_v9, 4 }
 0x684   : > { %v13320_v21 = vpop.permute.xlu2 %7625  ;;  %v7827_v42 = vsel %vm4050_vm6, %v7811_v27, %v13242_v56  ;;  %v6432_v56 = vsel %vm1904_vm3, 0.0, %v6431_v28  ;;  %v6456_v16 = vperm.slane %v6448_v33, %v9897_v2  ;;  %v14562_v27 = vld [vmem:[#allocation38_spill] sm:$0xff] }
 0x686   : > { %v6469_v33 = vrot.slane %v6456_v16, 4 }
 0x687   : > { %7311 = vrot.lane.b32.xlu0 %v6398_v40, %s9099_s4  ;;  %7567 = vrot.lane.b32.xlu1 %v6424_v46, %s9096_s27  ;;  %v6446_v40 = vperm.slane %v6438_v50, %v9893_v4 }
 0x689   : > { %v7114_v10 = vpop.permute.xlu0 %7113  ;;  %v7370_v62 = vpop.permute.xlu1 %7369 }
 0x68a   : > { %v7843_v57 = vsel %vm4067_vm7, %v7827_v42, %v7114_v10  ;;  %v7907_v23 = vsel %vm4016_vm4, %v13034_v38, %v7370_v62  ;;  %7439 = vrot.lane.b32.xlu2 %v6418_v44, %s9095_s26  ;;  %v4932_v10 = vadd.f32 %v13189_v19, %v14562_v27  ;;  %v6468_v42 = vsel %vm1904_vm3, 0.0, %v6467_v60 }
 0x68b   : > { %v7923_v8 = vsel %vm4033_vm5, %v7907_v23, %v7434_v61  ;;  %v7859_v17 = vsel %vm4084_vm8, %v7843_v57, %v7178_v7  ;;  %v6457_v62 = vrot.slane %v6446_v40, 4  ;;  %v6433_v44 = vrot.slane %v6424_v46, 4 }
 0x68c   : > { %v6988_v38 = vpop.permute.xlu2 %6987  ;;  %v7875_v7 = vsel %vm4101_vm9, %v7859_v17, %v13262_v1  ;;  %v5666_v50 = vsel %vm1870_vm2, %v4932_v10, %v13005_v53  ;;  %v6470_v27 = vsel %vm1904_vm3, 0.0, %v6469_v33  ;;  %v6462_v1 = vperm.slane %v6446_v40, %v9897_v2  ;;  %v14564_v53 = vld [vmem:[#allocation8_spill] sm:$0xff] }
 0x68d   : > { %v6480_v23 = vperm.slane %v5666_v50, %v9893_v4  ;;  %v6434_v60 = vsel %vm1904_vm3, 0.0, %v6433_v44  ;;  %v4933_v46 = vadd.f32 %v13189_v19, %v14564_v53  ;;  %v6475_v44 = vrot.slane %v5666_v50, 4 }
 0x68f   : > { %7503 = vrot.lane.b32.xlu0 %v6432_v56, %s9094_s23  ;;  %6929 = vrot.lane.b32.xlu1 %v6468_v42, %s9093_s21  ;;  %v6458_v56 = vsel %vm1904_vm3, 0.0, %v6457_v62  ;;  %v6485_v42 = vrot.slane %v6480_v23, 4  ;;  %v5667_v62 = vsel %vm1870_vm2, %v4933_v46, %v13017_v0  ;;  %v6476_v0 = vsel %vm1904_vm3, 0.0, %v6475_v44 }
 0x690   : > { %v6466_v10 = vperm.slane %v6458_v56, %v9897_v2  ;;  %v6518_v53 = vperm.slane %v5667_v62, %v9893_v4 }
 0x691   : > { %v7306_v61 = vpop.permute.xlu0 %7305  ;;  %v7562_v57 = vpop.permute.xlu1 %7561  ;;  %v6486_v56 = vsel %vm1904_vm3, 0.0, %v6485_v42 }
 0x692   : > { %v13347_v28 = vsel %vm4118_vm10, %v7875_v7, %v7306_v61  ;;  %7631 = vrot.lane.b32.xlu2 %v6434_v60, %s9098_s30 }
 0x693   : > { %14563 = vst [vmem:[#allocation7_spill] sm:$0xff] %v13347_v28 }
 0x694   : > { %v7180_v17 = vpop.permute.xlu2 %7179 }
 0x697   : > { %7057 = vrot.lane.b32.xlu0 %v6470_v27, %s9094_s23  ;;  %7121 = vrot.lane.b32.xlu1 %v6462_v1, %s9096_s27  ;;  %v6473_v27 = vrot.slane %v6466_v10, 4 }
 0x699   : > { %v7498_v61 = vpop.permute.xlu0 %7497  ;;  %v6924_v40 = vpop.permute.xlu1 %6923  ;;  %v6474_v46 = vsel %vm1904_vm3, 0.0, %v6473_v27 }
 0x69a   : > { %v7939_v7 = vsel %vm4050_vm6, %v7923_v8, %v7498_v61  ;;  %v7796_v60 = vsel %vm4016_vm4, %v13075_v54, %v6924_v40  ;;  %6993 = vrot.lane.b32.xlu2 %v6456_v16, %s9095_s26  ;;  %v14565_v8 = vld [vmem:[#allocation12_spill] sm:$0xff]  ;;  %v6494_v54 = vperm.slane %v6486_v56, %v9897_v2  ;;  %v6523_v61 = vrot.slane %v6518_v53, 4 }
 0x69b   : > { %v13364_v33 = vsel %vm4067_vm7, %v7939_v7, %v7562_v57  ;;  %v7812_v28 = vsel %vm4033_vm5, %v7796_v60, %v6988_v38  ;;  %v4940_v50 = vadd.f32 %v13189_v19, %v14565_v8  ;;  %v6471_v7 = vrot.slane %v6462_v1, 4 }
 0x69c   : > { %v7372_v57 = vpop.permute.xlu2 %7371  ;;  %v13380_v38 = vperm.slane %v6476_v0, %v9893_v4  ;;  %v6507_v44 = vrot.slane %v6494_v54, 4  ;;  %v13386_v40 = vperm.slane %v6480_v23, %v9897_v2  ;;  %v6513_v60 = vrot.slane %v5667_v62, 4 }
 0x69d   : > { %v6524_v27 = vsel %vm1904_vm3, 0.0, %v6523_v61  ;;  %v6472_v56 = vsel %vm1904_vm3, 0.0, %v6471_v7  ;;  %v14566_v61 = vld [vmem:[#allocation13_spill] sm:$0xff] }
 0x69e   : > { %v6500_v1 = vperm.slane %v13380_v38, %v9897_v2  ;;  %v6508_v8 = vsel %vm1904_vm3, 0.0, %v6507_v44  ;;  %v6514_v23 = vsel %vm1904_vm3, 0.0, %v6513_v60 }
 0x69f   : > { %7249 = vrot.lane.b32.xlu0 %v6466_v10, %s9097_s28  ;;  %7313 = vrot.lane.b32.xlu1 %v6474_v46, %s9099_s4  ;;  %v6505_v46 = vrot.slane %v13386_v40, 4  ;;  %v6522_v44 = vperm.slane %v6514_v23, %v9893_v4 }
 0x6a1   : > { %v5608_v42 = vpop.permute.xlu0 %5607  ;;  %v7116_v10 = vpop.permute.xlu1 %7115  ;;  %v6506_v63 = vsel %vm1904_vm3, 0.0, %v6505_v46  ;;  %v6533_v23 = vrot.slane %v6522_v44, 4 }
 0x6a2   : > { %v13383_v16 = vsel %vm1870_vm2, %v4940_v50, %v5608_v42  ;;  %7185 = vrot.lane.b32.xlu2 %v6472_v56, %s9098_s30  ;;  %v6532_v50 = vperm.slane %v6524_v27, %v9897_v2  ;;  %v4941_v42 = vadd.f32 %v13189_v19, %v14566_v61  ;;  %v6509_v56 = vrot.slane %v6500_v1, 4 }
 0x6a4   : > { %v7564_v0 = vpop.permute.xlu2 %7563  ;;  %v6545_v60 = vrot.slane %v6532_v50, 4  ;;  %v6510_v61 = vsel %vm1904_vm3, 0.0, %v6509_v56 }
 0x6a7   : > { %7441 = vrot.lane.b32.xlu0 %v6494_v54, %s9095_s26  ;;  %7505 = vrot.lane.b32.xlu1 %v6508_v8, %s9094_s23 }
 0x6a9   : > { %v7052_v62 = vpop.permute.xlu0 %7051  ;;  %v5610_v34 = vpop.permute.xlu1 %5609 }
 0x6aa   : > { %v7828_v7 = vsel %vm4050_vm6, %v7812_v28, %v7052_v62  ;;  %v13405_v27 = vsel %vm1870_vm2, %v4941_v42, %v5610_v34  ;;  %7377 = vrot.lane.b32.xlu2 %v6506_v63, %s9093_s21  ;;  %v4934_v28 = vadd.f32 %v13189_v19, %v14567_v6  ;;  %v14568_v62 = vld [vmem:[#allocation15_spill] sm:$0xff]  ;;  %v6546_v42 = vsel %vm1904_vm3, 0.0, %v6545_v60 }
 0x6ab   : > { %v7844_v54 = vsel %vm4067_vm7, %v7828_v7, %v7116_v10  ;;  %v4942_v10 = vadd.f32 %v13189_v19, %v14568_v62  ;;  %v13430_v60 = vperm.slane %v6518_v53, %v9897_v2 }
 0x6ac   : > { %v7860_v8 = vsel %vm4084_vm8, %v7844_v54, %v7180_v17  ;;  %v5612_v34 = vpop.permute.xlu2 %5611  ;;  %v5668_v17 = vsel %vm1870_vm2, %v4934_v28, %v13110_v43  ;;  %v6538_v28 = vperm.slane %v6522_v44, %v9897_v2 }
 0x6ad   : > { %v13420_v46 = vsel %vm1870_vm2, %v4942_v10, %v5612_v34  ;;  %v6556_v56 = vperm.slane %v5668_v17, %v9893_v4  ;;  %v6551_v43 = vrot.slane %v5668_v17, 4 }
 0x6ae   : > { %v6547_v17 = vrot.slane %v6538_v28, 4 }
 0x6af   : > { %7633 = vrot.lane.b32.xlu0 %v6510_v61, %s9098_s30  ;;  %7059 = vrot.lane.b32.xlu1 %v6546_v42, %s9094_s23  ;;  %v6534_v61 = vsel %vm1904_vm3, 0.0, %v6533_v23  ;;  %v6561_v62 = vrot.slane %v6556_v56, 4  ;;  %v6552_v34 = vsel %vm1904_vm3, 0.0, %v6551_v43  ;;  %v7908_v42 = vsel %vm4016_vm4, %v13136_v48, %v7372_v57  ;;  %v14570_v43 = vld [vmem:[#allocation56_spill] sm:$0xff] }
 0x6b0   : > { %v6543_v23 = vrot.slane %v13430_v60, 4  ;;  %v13450_v57 = vperm.slane %v6556_v56, %v9897_v2 }
 0x6b1   : > { %v7244_v63 = vpop.permute.xlu0 %7243  ;;  %v7308_v7 = vpop.permute.xlu1 %7307 }
 0x6b2   : > { %v7876_v6 = vsel %vm4101_vm9, %v7860_v8, %v7244_v63  ;;  %7569 = vrot.lane.b32.xlu2 %v6500_v1, %s9096_s27  ;;  %v6542_v8 = vperm.slane %v6534_v61, %v9897_v2  ;;  %v6562_v63 = vsel %vm1904_vm3, 0.0, %v6561_v62  ;;  %v6548_v61 = vsel %vm1904_vm3, 0.0, %v6547_v17 }
 0x6b3   : > { %v13426_v54 = vsel %vm4118_vm10, %v7876_v6, %v7308_v7  ;;  %v6544_v7 = vsel %vm1904_vm3, 0.0, %v6543_v23  ;;  %v6570_v62 = vperm.slane %v6562_v63, %v9897_v2 }
 0x6b4   : > { %14569 = vst [vmem:[#allocation38_spill] sm:$0xff] %v13426_v54  ;;  %v6926_v10 = vpop.permute.xlu2 %6925  ;;  %v6549_v54 = vrot.slane %v6542_v8, 4 }
 0x6b7   : > { %6995 = vrot.lane.b32.xlu0 %v6532_v50, %s9095_s26  ;;  %7251 = vrot.lane.b32.xlu1 %v6542_v8, %s9097_s28  ;;  %v13443_v50 = vperm.slane %v6552_v34, %v9893_v4 }
 0x6b9   : > { %v7436_v53 = vpop.permute.xlu0 %7435  ;;  %v7500_v44 = vpop.permute.xlu1 %7499 }
 0x6ba   : > { %v7924_v1 = vsel %vm4033_vm5, %v7908_v42, %v7436_v53  ;;  %6931 = vrot.lane.b32.xlu2 %v6544_v7, %s9093_s21  ;;  %v4935_v42 = vadd.f32 %v13189_v19, %v14570_v43  ;;  %v6576_v53 = vperm.slane %v13443_v50, %v9897_v2 }
 0x6bb   : > { %v7940_v6 = vsel %vm4050_vm6, %v7924_v1, %v7500_v44  ;;  %v6581_v1 = vrot.slane %v13450_v57, 4 }
 0x6bc   : > { %v7956_v48 = vsel %vm4067_vm7, %v7940_v6, %v7564_v0  ;;  %v7118_v34 = vpop.permute.xlu2 %7117  ;;  %v5669_v0 = vsel %vm1870_vm2, %v4935_v42, %v13132_v58  ;;  %v6585_v6 = vrot.slane %v6576_v53, 4  ;;  %v7797_v42 = vsel %vm4016_vm4, %v13197_v45, %v6926_v10  ;;  %v14572_v45 = vld [vmem:[#allocation9_spill] sm:$0xff] }
 0x6bd   : > { %v6594_v44 = vperm.slane %v5669_v0, %v9893_v4  ;;  %v6589_v63 = vrot.slane %v5669_v0, 4  ;;  %v6582_v7 = vsel %vm1904_vm3, 0.0, %v6581_v1  ;;  %v4936_v8 = vadd.f32 %v13189_v19, %v14572_v45 }
 0x6be   : > { %v6586_v43 = vsel %vm1904_vm3, 0.0, %v6585_v6 }
 0x6bf   : > { %7187 = vrot.lane.b32.xlu0 %v6548_v61, %s9098_s30  ;;  %7443 = vrot.lane.b32.xlu1 %v6570_v62, %s9095_s26  ;;  %v6599_v58 = vrot.slane %v6594_v44, 4  ;;  %v13483_v22 = vperm.slane %v6594_v44, %v9897_v2 }
 0x6c1   : > { %v7628_v56 = vpop.permute.xlu0 %7627  ;;  %v7054_v17 = vpop.permute.xlu1 %7053 }
 0x6c2   : > { %v13464_v23 = vsel %vm4084_vm8, %v7956_v48, %v7628_v56  ;;  %7123 = vrot.lane.b32.xlu2 %v6538_v28, %s9096_s27  ;;  %v6590_v48 = vsel %vm1904_vm3, 0.0, %v6589_v63  ;;  %v6550_v63 = vsel %vm1904_vm3, 0.0, %v6549_v54  ;;  %v5670_v54 = vsel %vm1870_vm2, %v4936_v8, %v13143_v37 }
 0x6c3   : > { %14571 = vst [vmem:[#allocation8_spill] sm:$0xff] %v13464_v23  ;;  %v6600_v23 = vsel %vm1904_vm3, 0.0, %v6599_v58  ;;  %v6583_v58 = vrot.slane %v6570_v62, 4 }
 0x6c4   : > { %v7310_v61 = vpop.permute.xlu2 %7309  ;;  %v6608_v10 = vperm.slane %v6600_v23, %v9897_v2 }
 0x6c7   : > { %7379 = vrot.lane.b32.xlu0 %v6582_v7, %s9093_s21  ;;  %7635 = vrot.lane.b32.xlu1 %v6586_v43, %s9098_s30  ;;  %v6598_v7 = vperm.slane %v6590_v48, %v9893_v4 }
 0x6c9   : > { %v6990_v56 = vpop.permute.xlu0 %6989  ;;  %v7246_v1 = vpop.permute.xlu1 %7245  ;;  %v6614_v43 = vperm.slane %v6598_v7, %v9897_v2  ;;  %v6609_v62 = vrot.slane %v6598_v7, 4 }
 0x6ca   : > { %v7813_v0 = vsel %vm4033_vm5, %v7797_v42, %v6990_v56  ;;  %7315 = vrot.lane.b32.xlu2 %v6550_v63, %s9099_s4  ;;  %v6632_v56 = vperm.slane %v5670_v54, %v9893_v4  ;;  %v6621_v63 = vrot.slane %v6608_v10, 4 }
 0x6cb   : > { %v7829_v28 = vsel %vm4050_vm6, %v7813_v0, %v7054_v17  ;;  %v6610_v7 = vsel %vm1904_vm3, 0.0, %v6609_v62 }
 0x6cc   : > { %v7845_v6 = vsel %vm4067_vm7, %v7829_v28, %v7118_v34  ;;  %v7502_v17 = vpop.permute.xlu2 %7501  ;;  %v13494_v34 = vsel %vm4084_vm8, %v13364_v33, %v13320_v21  ;;  %v6623_v21 = vrot.slane %v6614_v43, 4  ;;  %v6584_v33 = vsel %vm1904_vm3, 0.0, %v6583_v58 }
 0x6cd   : > { %v13511_v28 = vperm.slane %v6632_v56, %v9897_v2  ;;  %v6627_v58 = vrot.slane %v5670_v54, 4 }
 0x6cf   : > { %7571 = vrot.lane.b32.xlu0 %v6576_v53, %s9096_s27  ;;  %6997 = vrot.lane.b32.xlu1 %v6608_v10, %s9095_s26  ;;  %v6619_v53 = vrot.slane %v13483_v22, 4  ;;  %v6637_v10 = vrot.slane %v6632_v56, 4 }
 0x6d1   : > { %v7182_v44 = vpop.permute.xlu0 %7181  ;;  %v7438_v42 = vpop.permute.xlu1 %7437  ;;  %v6620_v37 = vsel %vm1904_vm3, 0.0, %v6619_v53 }
 0x6d2   : > { %v7861_v48 = vsel %vm4084_vm8, %v7845_v6, %v7182_v44  ;;  %7507 = vrot.lane.b32.xlu2 %v6584_v33, %s9094_s23  ;;  %v6624_v6 = vsel %vm1904_vm3, 0.0, %v6623_v21  ;;  %v14574_v21 = vld [vmem:[#allocation57_spill] sm:$0xff] }
 0x6d3   : > { %v7877_v23 = vsel %vm4101_vm9, %v7861_v48, %v7246_v1  ;;  %v6657_v48 = vrot.slane %v13511_v28, 4  ;;  %v4937_v33 = vadd.f32 %v13189_v19, %v14574_v21 }
 0x6d4   : > { %v13504_v0 = vsel %vm4118_vm10, %v7877_v23, %v7310_v61  ;;  %v7056_v1 = vpop.permute.xlu2 %7055  ;;  %v6622_v23 = vsel %vm1904_vm3, 0.0, %v6621_v63 }
 0x6d5   : > { %14573 = vst [vmem:[#allocation12_spill] sm:$0xff] %v13504_v0  ;;  %v5671_v54 = vsel %vm1870_vm2, %v4937_v33, %v13247_v24 }
 0x6d6   : > { %v6670_v56 = vperm.slane %v5671_v54, %v9893_v4 }
 0x6d7   : > { %6933 = vrot.lane.b32.xlu0 %v6620_v37, %s9093_s21  ;;  %7189 = vrot.lane.b32.xlu1 %v6624_v6, %s9098_s30 }
 0x6d9   : > { %v7374_v61 = vpop.permute.xlu0 %7373  ;;  %v13518_v44 = vpop.permute.xlu1 %7629 }
 0x6da   : > { %v7909_v45 = vsel %vm4016_vm4, %v13218_v51, %v7374_v61  ;;  %7061 = vrot.lane.b32.xlu2 %v6622_v23, %s9094_s23  ;;  %v6618_v51 = vperm.slane %v6610_v7, %v9897_v2 }
 0x6db   : > { %v7925_v8 = vsel %vm4033_vm5, %v7909_v45, %v7438_v42  ;;  %v6628_v42 = vsel %vm1904_vm3, 0.0, %v6627_v58  ;;  %v6675_v58 = vrot.slane %v6670_v56, 4 }
 0x6dc   : > { %v7941_v53 = vsel %vm4050_vm6, %v7925_v8, %v7502_v17  ;;  %v7248_v37 = vpop.permute.xlu2 %7247  ;;  %v6658_v17 = vsel %vm1904_vm3, 0.0, %v6657_v48  ;;  %v6625_v61 = vrot.slane %v6618_v51, 4  ;;  %v13538_v63 = vperm.slane %v6628_v42, %v9893_v4 }
 0x6dd   : > { %v6665_v8 = vrot.slane %v5671_v54, 4  ;;  %v6676_v42 = vsel %vm1904_vm3, 0.0, %v6675_v58 }
 0x6de   : > { %v6626_v24 = vsel %vm1904_vm3, 0.0, %v6625_v61  ;;  %v6652_v48 = vperm.slane %v13538_v63, %v9897_v2 }
 0x6df   : > { %7125 = vrot.lane.b32.xlu0 %v6614_v43, %s9096_s27  ;;  %7381 = vrot.lane.b32.xlu1 %v6658_v17, %s9093_s21  ;;  %v6638_v43 = vsel %vm1904_vm3, 0.0, %v6637_v10  ;;  %v6666_v33 = vsel %vm1904_vm3, 0.0, %v6665_v8  ;;  %v6684_v8 = vperm.slane %v6676_v42, %v9897_v2 }
 0x6e0   : > { %v6646_v7 = vperm.slane %v6638_v43, %v9897_v2  ;;  %v6674_v43 = vperm.slane %v6666_v33, %v9893_v4  ;;  %v6661_v33 = vrot.slane %v6652_v48, 4 }
 0x6e1   : > { %v7566_v62 = vpop.permute.xlu0 %7565  ;;  %v6992_v45 = vpop.permute.xlu1 %6991 }
 0x6e2   : > { %v13535_v6 = vsel %vm4067_vm7, %v7941_v53, %v7566_v62  ;;  %7253 = vrot.lane.b32.xlu2 %v6618_v51, %s9097_s28  ;;  %v13549_v53 = vperm.slane %v6670_v56, %v9897_v2  ;;  %v6659_v10 = vrot.slane %v6646_v7, 4 }
 0x6e4   : > { %v7440_v23 = vpop.permute.xlu2 %7439  ;;  %v6695_v62 = vrot.slane %v13549_v53, 4  ;;  %v6660_v56 = vsel %vm1904_vm3, 0.0, %v6659_v10  ;;  %v6697_v10 = vrot.slane %v6684_v8, 4 }
 0x6e7   : > { %7317 = vrot.lane.b32.xlu0 %v6626_v24, %s9099_s4  ;;  %7573 = vrot.lane.b32.xlu1 %v6652_v48, %s9096_s27 }
 0x6e9   : > { %v6928_v21 = vpop.permute.xlu0 %6927  ;;  %v7184_v17 = vpop.permute.xlu1 %7183 }
 0x6ea   : > { %v7798_v51 = vsel %vm4016_vm4, %v13255_v47, %v6928_v21  ;;  %7445 = vrot.lane.b32.xlu2 %v6646_v7, %s9095_s26  ;;  %v14575_v47 = vld [vmem:[#allocation10_spill] sm:$0xff]  ;;  %v6685_v21 = vrot.slane %v6674_v43, 4 }
 0x6eb   : > { %v7814_v54 = vsel %vm4033_vm5, %v7798_v51, %v6992_v45  ;;  %v4938_v24 = vadd.f32 %v13189_v19, %v14575_v47  ;;  %v6696_v45 = vsel %vm1904_vm3, 0.0, %v6695_v62  ;;  %v6662_v47 = vsel %vm1904_vm3, 0.0, %v6661_v33 }
 0x6ec   : > { %v7830_v61 = vsel %vm4050_vm6, %v7814_v54, %v7056_v1  ;;  %v13566_v58 = vpop.permute.xlu2 %7631  ;;  %v6686_v48 = vsel %vm1904_vm3, 0.0, %v6685_v21 }
 0x6ed   : > { %v5672_v7 = vsel %vm1870_vm2, %v4938_v24, %v13271_v12  ;;  %v6698_v12 = vsel %vm1904_vm3, 0.0, %v6697_v10  ;;  %v6746_v10 = vperm.slane %v13285_v35, %v9893_v4 }
 0x6ee   : > { %v6708_v62 = vperm.slane %v5672_v7, %v9893_v4  ;;  %v6703_v21 = vrot.slane %v5672_v7, 4 }
 0x6ef   : > { %7509 = vrot.lane.b32.xlu0 %v6660_v56, %s9094_s23  ;;  %6935 = vrot.lane.b32.xlu1 %v6696_v45, %s9093_s21 }
 0x6f1   : > { %v7120_v1 = vpop.permute.xlu0 %7119  ;;  %v7376_v54 = vpop.permute.xlu1 %7375 }
 0x6f2   : > { %v7846_v51 = vsel %vm4067_vm7, %v7830_v61, %v7120_v1  ;;  %v7910_v19 = vsel %vm4016_vm4, %v13281_v30, %v7376_v54  ;;  %7637 = vrot.lane.b32.xlu2 %v6662_v47, %s9098_s30  ;;  %v6694_v30 = vperm.slane %v6686_v48, %v9897_v2 }
 0x6f3   : > { %v7862_v42 = vsel %vm4084_vm8, %v7846_v51, %v7184_v17  ;;  %v7926_v45 = vsel %vm4033_vm5, %v7910_v19, %v7440_v23  ;;  %v6690_v17 = vperm.slane %v6674_v43, %v9897_v2  ;;  %v6704_v43 = vsel %vm1904_vm3, 0.0, %v6703_v21 }
 0x6f4   : > { %v7878_v56 = vsel %vm4101_vm9, %v7862_v42, %v7248_v37  ;;  %v6994_v61 = vpop.permute.xlu2 %6993  ;;  %v6713_v37 = vrot.slane %v6708_v62, 4  ;;  %v6701_v33 = vrot.slane %v6694_v30, 4  ;;  %v13600_v48 = vperm.slane %v6704_v43, %v9893_v4 }
 0x6f5   : > { %v6699_v47 = vrot.slane %v6690_v17, 4 }
 0x6f6   : > { %v6714_v51 = vsel %vm1904_vm3, 0.0, %v6713_v37  ;;  %v6702_v54 = vsel %vm1904_vm3, 0.0, %v6701_v33  ;;  %v6741_v33 = vrot.slane %v13285_v35, 4 }
 0x6f7   : > { %7063 = vrot.lane.b32.xlu0 %v6698_v12, %s9094_s23  ;;  %7127 = vrot.lane.b32.xlu1 %v6690_v17, %s9096_s27  ;;  %v6722_v19 = vperm.slane %v6714_v51, %v9897_v2  ;;  %v6700_v51 = vsel %vm1904_vm3, 0.0, %v6699_v47 }
 0x6f8   : > { %v6742_v35 = vsel %vm1904_vm3, 0.0, %v6741_v33 }
 0x6f9   : > { %v7312_v24 = vpop.permute.xlu0 %7311  ;;  %v7568_v23 = vpop.permute.xlu1 %7567  ;;  %v6735_v21 = vrot.slane %v6722_v19, 4 }
 0x6fa   : > { %v13588_v1 = vsel %vm4118_vm10, %v7878_v56, %v7312_v24  ;;  %6999 = vrot.lane.b32.xlu2 %v6684_v8, %s9095_s26  ;;  %v6751_v56 = vrot.slane %v6746_v10, 4 }
 0x6fb   : > { %14576 = vst [vmem:[#allocation13_spill] sm:$0xff] %v13588_v1 }
 0x6fc   : > { %v7186_v42 = vpop.permute.xlu2 %7185  ;;  %v6752_v17 = vsel %vm1904_vm3, 0.0, %v6751_v56 }
 0x6ff   : > { %7255 = vrot.lane.b32.xlu0 %v6694_v30, %s9097_s28  ;;  %7319 = vrot.lane.b32.xlu1 %v6702_v54, %s9099_s4  ;;  %v13607_v30 = vperm.slane %v6708_v62, %v9897_v2 }
 0x701   : > { %v7504_v7 = vpop.permute.xlu0 %7503  ;;  %v6930_v37 = vpop.permute.xlu1 %6929  ;;  %v6733_v56 = vrot.slane %v13607_v30, 4 }
 0x702   : > { %v7942_v12 = vsel %vm4050_vm6, %v7926_v45, %v7504_v7  ;;  %v7799_v24 = vsel %vm4016_vm4, %v13318_v9, %v6930_v37  ;;  %7191 = vrot.lane.b32.xlu2 %v6700_v51, %s9098_s30  ;;  %v6728_v45 = vperm.slane %v13600_v48, %v9897_v2  ;;  %v6760_v9 = vperm.slane %v6752_v17, %v9897_v2 }
 0x703   : > { %v13604_v8 = vsel %vm4067_vm7, %v7942_v12, %v7568_v23  ;;  %v7815_v43 = vsel %vm4033_vm5, %v7799_v24, %v6994_v61  ;;  %v6736_v23 = vsel %vm1904_vm3, 0.0, %v6735_v21  ;;  %v6750_v12 = vperm.slane %v6742_v35, %v9893_v4 }
 0x704   : > { %v7378_v62 = vpop.permute.xlu2 %7377  ;;  %v6737_v7 = vrot.slane %v6728_v45, 4  ;;  %v6773_v37 = vrot.slane %v6760_v9, 4  ;;  %v6734_v24 = vsel %vm1904_vm3, 0.0, %v6733_v56  ;;  %v6784_v56 = vperm.slane %v13383_v16, %v9893_v4 }
 0x705   : > { %v6761_v17 = vrot.slane %v6750_v12, 4 }
 0x706   : > { %v6738_v33 = vsel %vm1904_vm3, 0.0, %v6737_v7  ;;  %v13642_v7 = vperm.slane %v6746_v10, %v9897_v2 }
 0x707   : > { %7447 = vrot.lane.b32.xlu0 %v6722_v19, %s9095_s26  ;;  %7511 = vrot.lane.b32.xlu1 %v6736_v23, %s9094_s23 }
 0x709   : > { %v7058_v54 = vpop.permute.xlu0 %7057  ;;  %v7122_v47 = vpop.permute.xlu1 %7121 }
 0x70a   : > { %v7831_v61 = vsel %vm4050_vm6, %v7815_v43, %v7058_v54  ;;  %7383 = vrot.lane.b32.xlu2 %v6734_v24, %s9093_s21  ;;  %v6774_v43 = vsel %vm1904_vm3, 0.0, %v6773_v37  ;;  %v13652_v24 = vsel %vm4084_vm8, %v13535_v6, %v13518_v44 }
 0x70b   : > { %v7847_v19 = vsel %vm4067_vm7, %v7831_v61, %v7122_v47  ;;  %v6762_v61 = vsel %vm1904_vm3, 0.0, %v6761_v17  ;;  %v6779_v47 = vrot.slane %v13383_v16, 4  ;;  %v7911_v16 = vsel %vm4016_vm4, %v13386_v40, %v7378_v62 }
 0x70c   : > { %v7863_v21 = vsel %vm4084_vm8, %v7847_v19, %v7186_v42  ;;  %v7570_v51 = vpop.permute.xlu2 %7569  ;;  %v6766_v19 = vperm.slane %v6750_v12, %v9897_v2  ;;  %v6770_v37 = vperm.slane %v6762_v61, %v9897_v2  ;;  %v6771_v12 = vrot.slane %v13642_v7, 4 }
 0x70d   : > { %v6780_v10 = vsel %vm1904_vm3, 0.0, %v6779_v47  ;;  %v13668_v62 = vperm.slane %v6784_v56, %v9897_v2 }
 0x70e   : > { %v6775_v17 = vrot.slane %v6766_v19, 4 }
 0x70f   : > { %7639 = vrot.lane.b32.xlu0 %v6738_v33, %s9098_s30  ;;  %7065 = vrot.lane.b32.xlu1 %v6774_v43, %s9094_s23 }
 0x711   : > { %v7250_v23 = vpop.permute.xlu0 %7249  ;;  %v7314_v54 = vpop.permute.xlu1 %7313 }
 0x712   : > { %v7879_v35 = vsel %vm4101_vm9, %v7863_v21, %v7250_v23  ;;  %7575 = vrot.lane.b32.xlu2 %v6728_v45, %s9096_s27  ;;  %v6789_v21 = vrot.slane %v6784_v56, 4  ;;  %v13661_v23 = vperm.slane %v6780_v10, %v9893_v4  ;;  %v6809_v56 = vrot.slane %v13668_v62, 4 }
 0x713   : > { %v13638_v42 = vsel %vm4118_vm10, %v7879_v35, %v7314_v54  ;;  %v6772_v35 = vsel %vm1904_vm3, 0.0, %v6771_v12  ;;  %v6776_v54 = vsel %vm1904_vm3, 0.0, %v6775_v17 }
 0x714   : > { %v6932_v33 = vpop.permute.xlu2 %6931  ;;  %v6790_v44 = vsel %vm1904_vm3, 0.0, %v6789_v21  ;;  %v6804_v21 = vperm.slane %v13661_v23, %v9897_v2  ;;  %v6810_v17 = vsel %vm1904_vm3, 0.0, %v6809_v56 }
 0x715   : > { %v6798_v61 = vperm.slane %v6790_v44, %v9897_v2 }
 0x716   : > { %v6813_v12 = vrot.slane %v6804_v21, 4 }
 0x717   : > { %7001 = vrot.lane.b32.xlu0 %v6760_v9, %s9095_s26  ;;  %7257 = vrot.lane.b32.xlu1 %v6770_v37, %s9097_s28 }
 0x719   : > { %v7442_v45 = vpop.permute.xlu0 %7441  ;;  %v7506_v43 = vpop.permute.xlu1 %7505 }
 0x71a   : > { %v7927_v9 = vsel %vm4033_vm5, %v7911_v16, %v7442_v45  ;;  %6937 = vrot.lane.b32.xlu2 %v6772_v35, %s9093_s21  ;;  %v6822_v45 = vperm.slane %v13405_v27, %v9893_v4 }
 0x71b   : > { %v7943_v6 = vsel %vm4050_vm6, %v7927_v9, %v7506_v43  ;;  %v6817_v9 = vrot.slane %v13405_v27, 4 }
 0x71c   : > { %v7959_v40 = vsel %vm4067_vm7, %v7943_v6, %v7570_v51  ;;  %v7124_v47 = vpop.permute.xlu2 %7123  ;;  %v6827_v43 = vrot.slane %v6822_v45, 4  ;;  %v6814_v6 = vsel %vm1904_vm3, 0.0, %v6813_v12  ;;  %v13699_v0 = vperm.slane %v6822_v45, %v9897_v2 }
 0x71d   : > { %v6818_v35 = vsel %vm1904_vm3, 0.0, %v6817_v9 }
 0x71e   : > { %v6828_v1 = vsel %vm1904_vm3, 0.0, %v6827_v43  ;;  %v6811_v43 = vrot.slane %v6798_v61, 4 }
 0x71f   : > { %7193 = vrot.lane.b32.xlu0 %v6776_v54, %s9098_s30  ;;  %7449 = vrot.lane.b32.xlu1 %v6798_v61, %s9095_s26 }
 0x721   : > { %v7634_v10 = vpop.permute.xlu0 %7633  ;;  %v7060_v16 = vpop.permute.xlu1 %7059 }
 0x722   : > { %v13678_v51 = vsel %vm4084_vm8, %v7959_v40, %v7634_v10  ;;  %7129 = vrot.lane.b32.xlu2 %v6766_v19, %s9096_s27  ;;  %v7800_v40 = vsel %vm4016_vm4, %v13430_v60, %v6932_v33  ;;  %v6777_v10 = vrot.slane %v6770_v37, 4  ;;  %v6836_v60 = vperm.slane %v6828_v1, %v9897_v2 }
 0x724   : > { %v7316_v44 = vpop.permute.xlu2 %7315  ;;  %v6778_v9 = vsel %vm1904_vm3, 0.0, %v6777_v10 }
 0x727   : > { %7385 = vrot.lane.b32.xlu0 %v6810_v17, %s9093_s21  ;;  %7641 = vrot.lane.b32.xlu1 %v6814_v6, %s9098_s30  ;;  %v6826_v17 = vperm.slane %v6818_v35, %v9893_v4  ;;  %v6847_v6 = vrot.slane %v13699_v0, 4 }
 0x729   : > { %v6996_v54 = vpop.permute.xlu0 %6995  ;;  %v7252_v56 = vpop.permute.xlu1 %7251  ;;  %v6842_v33 = vperm.slane %v6826_v17, %v9897_v2  ;;  %v6848_v61 = vsel %vm1904_vm3, 0.0, %v6847_v6  ;;  %v6837_v10 = vrot.slane %v6826_v17, 4  ;;  %v6855_v6 = vrot.slane %v13420_v46, 4 }
 0x72a   : > { %v7816_v27 = vsel %vm4033_vm5, %v7800_v40, %v6996_v54  ;;  %7321 = vrot.lane.b32.xlu2 %v6778_v9, %s9099_s4  ;;  %v6860_v40 = vperm.slane %v13420_v46, %v9893_v4  ;;  %v6812_v54 = vsel %vm1904_vm3, 0.0, %v6811_v43  ;;  %v6849_v9 = vrot.slane %v6836_v60, 4 }
 0x72b   : > { %v7832_v19 = vsel %vm4050_vm6, %v7816_v27, %v7060_v16  ;;  %v6851_v1 = vrot.slane %v6842_v33, 4 }
 0x72c   : > { %v7848_v12 = vsel %vm4067_vm7, %v7832_v19, %v7124_v47  ;;  %v7508_v37 = vpop.permute.xlu2 %7507  ;;  %v13719_v27 = vperm.slane %v6860_v40, %v9897_v2 }
 0x72f   : > { %7577 = vrot.lane.b32.xlu0 %v6804_v21, %s9096_s27  ;;  %7003 = vrot.lane.b32.xlu1 %v6836_v60, %s9095_s26 }
 0x731   : > { %v7188_v16 = vpop.permute.xlu0 %7187  ;;  %v7444_v35 = vpop.permute.xlu1 %7443 }
 0x732   : > { %v7864_v47 = vsel %vm4084_vm8, %v7848_v12, %v7188_v16  ;;  %7513 = vrot.lane.b32.xlu2 %v6812_v54, %s9094_s23 }
 0x733   : > { %v7880_v45 = vsel %vm4101_vm9, %v7864_v47, %v7252_v56  ;;  %v6852_v56 = vsel %vm1904_vm3, 0.0, %v6851_v1  ;;  %v6838_v47 = vsel %vm1904_vm3, 0.0, %v6837_v10  ;;  %v6865_v1 = vrot.slane %v6860_v40, 4 }
 0x734   : > { %v13712_v21 = vsel %vm4118_vm10, %v7880_v45, %v7316_v44  ;;  %v7062_v19 = vpop.permute.xlu2 %7061  ;;  %v13725_v44 = vsel %vm4084_vm8, %v13604_v8, %v13566_v58  ;;  %v6885_v45 = vrot.slane %v13719_v27, 4  ;;  %v6850_v8 = vsel %vm1904_vm3, 0.0, %v6849_v9 }
 0x735   : > { %v6846_v60 = vperm.slane %v6838_v47, %v9897_v2 }
 0x736   : > { %v6886_v54 = vsel %vm1904_vm3, 0.0, %v6885_v45 }
 0x737   : > { %6939 = vrot.lane.b32.xlu0 %v6848_v61, %s9093_s21  ;;  %7195 = vrot.lane.b32.xlu1 %v6852_v56, %s9098_s30  ;;  %v6866_v56 = vsel %vm1904_vm3, 0.0, %v6865_v1  ;;  %v6115_v1 = vrot.slane %v12956_v5, 4 }
 0x739   : > { %v7380_v12 = vpop.permute.xlu0 %7379  ;;  %v13731_v43 = vpop.permute.xlu1 %7635  ;;  %v6116_v5 = vsel %vm1904_vm3, 0.0, %v6115_v1 }
 0x73a   : > { %v7912_v17 = vsel %vm4016_vm4, %v13450_v57, %v7380_v12  ;;  %7067 = vrot.lane.b32.xlu2 %v6850_v8, %s9094_s23  ;;  %v6856_v57 = vsel %vm1904_vm3, 0.0, %v6855_v6  ;;  %v6874_v12 = vperm.slane %v6866_v56, %v9897_v2 }
 0x73b   : > { %v7928_v16 = vsel %vm4033_vm5, %v7912_v17, %v7444_v35  ;;  %v13748_v10 = vperm.slane %v6856_v57, %v9893_v4  ;;  %v6039_v17 = vrot.slane %v12900_v55, 4  ;;  %v6191_v57 = vrot.slane %v13062_v20, 4 }
 0x73c   : > { %v7944_v58 = vsel %vm4050_vm6, %v7928_v16, %v7508_v37  ;;  %v7254_v35 = vpop.permute.xlu2 %7253  ;;  %v6853_v37 = vrot.slane %v6846_v60, 4  ;;  %v6887_v6 = vrot.slane %v6874_v12, 4 }
 0x73d   : > { %v6880_v9 = vperm.slane %v13748_v10, %v9897_v2  ;;  %v6040_v8 = vsel %vm1904_vm3, 0.0, %v6039_v17 }
 0x73e   : > { %v6888_v55 = vsel %vm1904_vm3, 0.0, %v6887_v6  ;;  %v6419_v6 = vrot.slane %v13304_v36, 4 }
 0x73f   : > { %7131 = vrot.lane.b32.xlu0 %v6842_v33, %s9096_s27  ;;  %7387 = vrot.lane.b32.xlu1 %v6886_v54, %s9093_s21  ;;  %v6854_v33 = vsel %vm1904_vm3, 0.0, %v6853_v37  ;;  %v6267_v54 = vrot.slane %v13152_v29, 4  ;;  %v6192_v37 = vsel %vm1904_vm3, 0.0, %v6191_v57  ;;  %v13784_v29 = vperm.slane %v6116_v5, %v9897_v2 }
 0x740   : > { %v6420_v36 = vsel %vm1904_vm3, 0.0, %v6419_v6  ;;  %v6343_v57 = vrot.slane %v13213_v52, 4 }
 0x741   : > { %v7572_v46 = vpop.permute.xlu0 %7571  ;;  %v6998_v40 = vpop.permute.xlu1 %6997 }
 0x742   : > { %v13745_v61 = vsel %vm4067_vm7, %v7944_v58, %v7572_v46  ;;  %7259 = vrot.lane.b32.xlu2 %v6846_v60, %s9097_s28 }
 0x744   : > { %v7446_v16 = vpop.permute.xlu2 %7445 }
 0x747   : > { %7323 = vrot.lane.b32.xlu0 %v6854_v33, %s9099_s4  ;;  %7579 = vrot.lane.b32.xlu1 %v6880_v9, %s9096_s27 }
 0x749   : > { %v6934_v4 = vpop.permute.xlu0 %6933  ;;  %v7190_v58 = vpop.permute.xlu1 %7189 }
 0x74a   : > { %v7801_v47 = vsel %vm4016_vm4, %v13483_v22, %v6934_v4  ;;  %7451 = vrot.lane.b32.xlu2 %v6874_v12, %s9095_s26  ;;  %v13770_v22 = vperm.slane %v6040_v8, %v9897_v2  ;;  %v6268_v12 = vsel %vm1904_vm3, 0.0, %v6267_v54  ;;  %v13789_v4 = vperm.slane %v6192_v37, %v9897_v2  ;;  %s8140_s26 = scalar_lea.hbm %s14331_s3, %s8805_s5 }
 0x74b   : > { %v7817_v45 = vsel %vm4033_vm5, %v7801_v47, %v6998_v40  ;;  %v6889_v8 = vrot.slane %v6880_v9, 4  ;;  %v6647_v54 = vrot.slane %v13538_v63, 4 }
 0x74c   : > { %v7833_v60 = vsel %vm4050_vm6, %v7817_v45, %v7062_v19  ;;  %v13773_v46 = vpop.permute.xlu2 %7637  ;;  %v6495_v45 = vrot.slane %v13380_v38, 4  ;;  %v13811_v38 = vperm.slane %v6420_v36, %v9897_v2 }
 0x74d   : > { %v6648_v63 = vsel %vm1904_vm3, 0.0, %v6647_v54 }
 0x74e   : > { %v6496_v1 = vsel %vm1904_vm3, 0.0, %v6495_v45  ;;  %v13837_v6 = vperm.slane %v6648_v63, %v9897_v2  ;;  %v6875_v45 = vrot.slane %v13748_v10, 4  ;;  %v5903_v63 = vrot.slane %v12754_v49, 4 }
 0x74f   : > { %7515 = vrot.lane.b32.xlu0 %v6888_v55, %s9094_s23  ;;  %7685 = vrot.lane.b32.xlu1 %v13770_v22, %s9097_s28  ;;  %v6890_v55 = vsel %vm1904_vm3, 0.0, %v6889_v8  ;;  %v13818_v9 = vperm.slane %v6496_v1, %v9897_v2  ;;  %v13886_v49 = vsel %vm4084_vm8, %v13745_v61, %v13731_v43  ;;  %v6207_v43 = vrot.slane %v13789_v4, 4 }
 0x750   : > { %v6876_v10 = vsel %vm1904_vm3, 0.0, %v6875_v45 }
 0x751   : > { %v7126_v19 = vpop.permute.xlu0 %7125  ;;  %v7382_v40 = vpop.permute.xlu1 %7381  ;;  %v13860_v54 = vperm.slane %v6876_v10, %v9897_v2 }
 0x752   : > { %v7849_v20 = vsel %vm4067_vm7, %v7833_v60, %v7126_v19  ;;  %v7913_v33 = vsel %vm4016_vm4, %v13511_v28, %v7382_v40  ;;  %7687 = vrot.lane.b32.xlu2 %v13784_v29, %s9097_s28  ;;  %v13798_v28 = vperm.slane %v6268_v12, %v9897_v2  ;;  %v6723_v19 = vrot.slane %v13600_v48, 4 }
 0x753   : > { %v7865_v56 = vsel %vm4084_vm8, %v7849_v20, %v7190_v58  ;;  %v7929_v47 = vsel %vm4033_vm5, %v7913_v33, %v7446_v16  ;;  %v6344_v20 = vsel %vm1904_vm3, 0.0, %v6343_v57  ;;  %v5751_v57 = vrot.slane %v12597_v18, 4 }
 0x754   : > { %v7881_v17 = vsel %vm4101_vm9, %v7865_v56, %v7254_v35  ;;  %v7000_v58 = vpop.permute.xlu2 %6999  ;;  %v13832_v48 = vperm.slane %v6344_v20, %v9897_v2  ;;  %v6724_v12 = vsel %vm1904_vm3, 0.0, %v6723_v19 }
 0x755   : > { %v5752_v20 = vsel %vm1904_vm3, 0.0, %v5751_v57  ;;  %v6055_v57 = vrot.slane %v13770_v22, 4 }
 0x757   : > { %7689 = vrot.lane.b32.xlu0 %v13789_v4, %s9097_s28  ;;  %7691 = vrot.lane.b32.xlu1 %v13798_v28, %s9097_s28 }
 0x759   : > { %v7318_v35 = vpop.permute.xlu0 %7317  ;;  %v7574_v60 = vpop.permute.xlu1 %7573 }
 0x75a   : > { %v13804_v16 = vsel %vm4118_vm10, %v7881_v17, %v7318_v35  ;;  %7643 = vrot.lane.b32.xlu2 %v6890_v55, %s9098_s30  ;;  %v6571_v17 = vrot.slane %v13443_v50, 4  ;;  %v6799_v55 = vrot.slane %v13661_v23, 4  ;;  %s8126_s30 = scalar_lea.sflag [#allocation3], %s175_s8 }
 0x75c   : > { %v7192_v5 = vpop.permute.xlu2 %7191  ;;  %v6572_v8 = vsel %vm1904_vm3, 0.0, %v6571_v17  ;;  %v6800_v18 = vsel %vm1904_vm3, 0.0, %v6799_v55  ;;  %v5904_v17 = vsel %vm1904_vm3, 0.0, %v5903_v63  ;;  %v6359_v55 = vrot.slane %v13832_v48, 4 }
 0x75d   : > { %v13855_v1 = vperm.slane %v6572_v8, %v9897_v2  ;;  %v6283_v63 = vrot.slane %v13798_v28, 4 }
 0x75f   : > { %7695 = vrot.lane.b32.xlu0 %v13811_v38, %s9097_s28  ;;  %7697 = vrot.lane.b32.xlu1 %v13818_v9, %s9097_s28 }
 0x761   : > { %v7510_v52 = vpop.permute.xlu0 %7509  ;;  %v6936_v40 = vpop.permute.xlu1 %6935 }
 0x762   : > { %v7945_v37 = vsel %vm4050_vm6, %v7929_v47, %v7510_v52  ;;  %v7802_v33 = vsel %vm4016_vm4, %v13549_v53, %v6936_v40  ;;  %7693 = vrot.lane.b32.xlu2 %v13832_v48, %s9097_s28  ;;  %v13846_v53 = vperm.slane %v6724_v12, %v9897_v2  ;;  %v5979_v12 = vrot.slane %v12831_v25, 4 }
 0x763   : > { %v13827_v56 = vsel %vm4067_vm7, %v7945_v37, %v7574_v60  ;;  %v7818_v47 = vsel %vm4033_vm5, %v7802_v33, %v7000_v58  ;;  %v13876_v33 = vperm.slane %v6800_v18, %v9897_v2 }
 0x764   : > { %v7384_v35 = vpop.permute.xlu2 %7383  ;;  %v5980_v45 = vsel %vm1904_vm3, 0.0, %v5979_v12 }
 0x765   : > { %v7914_v2 = vsel %vm4016_vm4, %v13607_v30, %v7384_v35  ;;  %v6208_v35 = vsel %vm1904_vm3, 0.0, %v6207_v43  ;;  %v6891_v43 = vrot.slane %v13860_v54, 4 }
 0x767   : > { %7701 = vrot.lane.b32.xlu0 %v13837_v6, %s9097_s28  ;;  %7703 = vrot.lane.b32.xlu1 %v13846_v53, %s9097_s28 }
 0x769   : > { %v7064_v50 = vpop.permute.xlu0 %7063  ;;  %v7128_v36 = vpop.permute.xlu1 %7127 }
 0x76a   : > { %v7834_v58 = vsel %vm4050_vm6, %v7818_v47, %v7064_v50  ;;  %7699 = vrot.lane.b32.xlu2 %v13855_v1, %s9097_s28  ;;  %v5827_v50 = vrot.slane %v12656_v13, 4 }
 0x76b   : > { %v7850_v60 = vsel %vm4067_vm7, %v7834_v58, %v7128_v36  ;;  %v6131_v58 = vrot.slane %v13784_v29, 4 }
 0x76c   : > { %v7866_v19 = vsel %vm4084_vm8, %v7850_v60, %v7192_v5  ;;  %v7576_v52 = vpop.permute.xlu2 %7575  ;;  %v5828_v61 = vsel %vm1904_vm3, 0.0, %v5827_v50  ;;  %v6511_v50 = vrot.slane %v13818_v9, 4 }
 0x76d   : > { %v6132_v30 = vsel %vm1904_vm3, 0.0, %v6131_v58 }
 0x76f   : > { %7707 = vrot.lane.b32.xlu0 %v13860_v54, %s9097_s28  ;;  %7741 = vrot.lane.b32.xlu1 %v5752_v20, %s9099_s4  ;;  %v6056_v20 = vsel %vm1904_vm3, 0.0, %v6055_v57  ;;  %v6739_v54 = vrot.slane %v13846_v53, 4 }
 0x771   : > { %v7256_v37 = vpop.permute.xlu0 %7255  ;;  %v7320_v40 = vpop.permute.xlu1 %7319 }
 0x772   : > { %v7882_v23 = vsel %vm4101_vm9, %v7866_v19, %v7256_v37  ;;  %7705 = vrot.lane.b32.xlu2 %v13876_v33, %s9097_s28  ;;  %v6360_v37 = vsel %vm1904_vm3, 0.0, %v6359_v55  ;;  %s8143_s28 = sshll.u32 %s8140_s26, 4  ;;  %s8144_s28 = int_to_ptr.hbm [resolvable:$true] %s8143_s28 }
 0x773   : > { %v13873_v5 = vsel %vm4118_vm10, %v7882_v23, %v7320_v40  ;;  %v6587_v40 = vrot.slane %v13855_v1, 4 }
 0x774   : > { %v6938_v47 = vpop.permute.xlu2 %6937 }
 0x775   : > { %v7803_v22 = vsel %vm4016_vm4, %v13642_v7, %v6938_v47  ;;  %v6588_v7 = vsel %vm1904_vm3, 0.0, %v6587_v40 }
 0x777   : > { %7745 = vrot.lane.b32.xlu0 %v5904_v17, %s9099_s4  ;;  %7747 = vrot.lane.b32.xlu1 %v5980_v45, %s9099_s4  ;;  %v6663_v45 = vrot.slane %v13837_v6, 4 }
 0x779   : > { %v7448_v25 = vpop.permute.xlu0 %7447  ;;  %v7512_v10 = vpop.permute.xlu1 %7511  ;;  %v6664_v47 = vsel %vm1904_vm3, 0.0, %v6663_v45 }
 0x77a   : > { %v7930_v8 = vsel %vm4033_vm5, %v7914_v2, %v7448_v25  ;;  %7743 = vrot.lane.b32.xlu2 %v5828_v61, %s9099_s4  ;;  %v6284_v25 = vsel %vm1904_vm3, 0.0, %v6283_v63  ;;  %v6512_v61 = vsel %vm1904_vm3, 0.0, %v6511_v50 }
 0x77b   : > { %v7946_v36 = vsel %vm4050_vm6, %v7930_v8, %v7512_v10  ;;  %v6815_v8 = vrot.slane %v13876_v33, 4  ;;  %v13946_v33 = vsel %vm4084_vm8, %v13827_v56, %v13773_v46 }
 0x77c   : > { %v7962_v60 = vsel %vm4067_vm7, %v7946_v36, %v7576_v52  ;;  %v7130_v13 = vpop.permute.xlu2 %7129  ;;  %v6435_v52 = vrot.slane %v13811_v38, 4 }
 0x77e   : > { %v6436_v23 = vsel %vm1904_vm3, 0.0, %v6435_v52 }
 0x77f   : > { %7751 = vrot.lane.b32.xlu0 %v6132_v30, %s9099_s4  ;;  %7753 = vrot.lane.b32.xlu1 %v6208_v35, %s9099_s4  ;;  %v6892_v30 = vsel %vm1904_vm3, 0.0, %v6891_v43 }
 0x781   : > { %v7640_v29 = vpop.permute.xlu0 %7639  ;;  %v7066_v19 = vpop.permute.xlu1 %7065 }
 0x782   : > { %v13906_v4 = vsel %vm4084_vm8, %v7962_v60, %v7640_v29  ;;  %7749 = vrot.lane.b32.xlu2 %v6056_v20, %s9099_s4  ;;  %v6816_v60 = vsel %vm1904_vm3, 0.0, %v6815_v8 }
 0x784   : > { %v7322_v18 = vpop.permute.xlu2 %7321 }
 0x787   : > { %7757 = vrot.lane.b32.xlu0 %v6360_v37, %s9099_s4  ;;  %7759 = vrot.lane.b32.xlu1 %v6436_v23, %s9099_s4 }
 0x789   : > { %v7002_v48 = vpop.permute.xlu0 %7001  ;;  %v7258_v17 = vpop.permute.xlu1 %7257 }
 0x78a   : > { %v7819_v38 = vsel %vm4033_vm5, %v7803_v22, %v7002_v48  ;;  %7755 = vrot.lane.b32.xlu2 %v6284_v25, %s9099_s4 }
 0x78b   : > { %v7835_v12 = vsel %vm4050_vm6, %v7819_v38, %v7066_v19  ;;  %v6740_v19 = vsel %vm1904_vm3, 0.0, %v6739_v54 }
 0x78c   : > { %v7851_v2 = vsel %vm4067_vm7, %v7835_v12, %v7130_v13  ;;  %v7514_v28 = vpop.permute.xlu2 %7513 }
 0x78f   : > { %7763 = vrot.lane.b32.xlu0 %v6588_v7, %s9099_s4  ;;  %7765 = vrot.lane.b32.xlu1 %v6664_v47, %s9099_s4 }
 0x791   : > { %v7194_v1 = vpop.permute.xlu0 %7193  ;;  %v7450_v10 = vpop.permute.xlu1 %7449 }
 0x792   : > { %v7867_v6 = vsel %vm4084_vm8, %v7851_v2, %v7194_v1  ;;  %7761 = vrot.lane.b32.xlu2 %v6512_v61, %s9099_s4 }
 0x793   : > { %v7883_v58 = vsel %vm4101_vm9, %v7867_v6, %v7258_v17 }
 0x794   : > { %v13935_v36 = vsel %vm4118_vm10, %v7883_v58, %v7322_v18  ;;  %v7068_v9 = vpop.permute.xlu2 %7067 }
 0x797   : > { %7769 = vrot.lane.b32.xlu0 %v6816_v60, %s9099_s4  ;;  %7771 = vrot.lane.b32.xlu1 %v6892_v30, %s9099_s4  ;;  %v7790_v60 = vsel %vm4016_vm4, %v12591_v26, %v12827_v41  ;;  %v14577_v41 = vld [vmem:[#allocation18_spill] sm:$0xff] }
 0x799   : > { %v7386_v13 = vpop.permute.xlu0 %7385  ;;  %v7642_v57 = vpop.permute.xlu1 %7641 }
 0x79a   : > { %v7915_v35 = vsel %vm4016_vm4, %v13668_v62, %v7386_v13  ;;  %7767 = vrot.lane.b32.xlu2 %v6740_v19, %s9099_s4  ;;  %v7806_v13 = vsel %vm4033_vm5, %v7790_v60, %v12799_v14  ;;  %v14578_v14 = vld [vmem:[#allocation39_spill] sm:$0xff]  ;;  %s9024_s4 = sshra.s32 %s8144_s28, 4  ;;  %s9025_s4 = int_to_ptr.hbm [resolvable:$true] %s9024_s4 }
 0x79b   : > { %v7931_v29 = vsel %vm4033_vm5, %v7915_v35, %v7450_v10  ;;  %v7822_v35 = vsel %vm4050_vm6, %v7806_v13, %v12858_v39  ;;  %v14580_v19 = vld [vmem:[#allocation79_spill] sm:$0xff]  ;;  %s9026_s9 = scalar_lea.hbm %s9025_s4, 64  ;;  %p9031_p1 = scmp.lt.s32.totalorder %s9025_s4, %s14331_s3 }
 0x79c   : > { %v7947_v55 = vsel %vm4050_vm6, %v7931_v29, %v7514_v28  ;;  %v7260_v52 = vpop.permute.xlu2 %7259  ;;  %p9027_p12 = scmp.ne.s32.totalorder %s9025_s4, %s9026_s9  ;;  %p9032_p2 = scmp.lt.s32.totalorder %s9030_s19, %s9026_s9 }
 0x79e   : > { %p9028_p13 = pnand %p9027_p12, %p9161_p4  ;;  %p9033_p3 = por %p9032_p2, %p9031_p1 }
 0x7a0   : > { %p9029_p0 = pneg %p9028_p13 }
 0x7a1   : > { %v7578_v46 = vpop.permute.xlu0 %7577  ;;  %v7004_v20 = vpop.permute.xlu1 %7003 }
 0x7a2   : > { %v7963_v56 = vsel %vm4067_vm7, %v7947_v55, %v7578_v46  ;;  %v14579_v55 = vld [vmem:[#allocation45_spill] sm:$0xff]  ;;  %v14582_v46 = vld [vmem:[#allocation27_spill] sm:$0xff]  ;;  %p9034_p5 = pnand %p9033_p3, %p9029_p0 }
 0x7a3   : > { %v13962_v48 = vsel %vm4084_vm8, %v7963_v56, %v7642_v57 }
 0x7a4   : > { %v7452_v37 = vpop.permute.xlu2 %7451 }
 0x7a9   : > { %v6940_v18 = vpop.permute.xlu0 %6939  ;;  %v7196_v23 = vpop.permute.xlu1 %7195 }
 0x7aa   : > { %v7804_v53 = vsel %vm4016_vm4, %v13699_v0, %v6940_v18 }
 0x7ab   : > { %v7820_v62 = vsel %vm4033_vm5, %v7804_v53, %v7004_v20  ;;  %v14583_v20 = vld [vmem:[#allocation34_spill] sm:$0xff]  ;;  %v14586_v53 = vld [vmem:[#allocation5_spill] sm:$0xff] }
 0x7ac   : > { %v7836_v22 = vsel %vm4050_vm6, %v7820_v62, %v7068_v9  ;;  %v13964_v63 = vpop.permute.xlu2 %7687  ;;  %v7902_v9 = vsel %vm4016_vm4, %v12627_v59, %v12837_v31  ;;  %v7789_v59 = vsel %vm4016_vm4, %v12547_v15, %v12744_v3  ;;  %v7838_v31 = vsel %vm4067_vm7, %v7822_v35, %v14577_v41  ;;  %v14585_v3 = vld [vmem:[#allocation16_spill] sm:$0xff]  ;;  %v14587_v62 = vld [vmem:[#allocation42_spill] sm:$0xff]  ;;  %v14595_v35 = vld [vmem:[#allocation29_spill] sm:$0xff] }
 0x7ad   : > { %v7918_v30 = vsel %vm4033_vm5, %v7902_v9, %v12896_v11  ;;  %v7805_v56 = vsel %vm4033_vm5, %v7789_v59, %v14582_v46  ;;  %v7854_v18 = vsel %vm4084_vm8, %v7838_v31, %v14585_v3  ;;  %v14594_v9 = vld [vmem:[#allocation28_spill] sm:$0xff]  ;;  %v14597_v31 = vld [vmem:[#allocation41_spill] sm:$0xff] }
 0x7ae   : > { %v7934_v29 = vsel %vm4050_vm6, %v7918_v30, %v12902_v32  ;;  %v14596_v59 = vld [vmem:[#allocation20_spill] sm:$0xff] }
 0x7af   : > { %v7950_v11 = vsel %vm4067_vm7, %v7934_v29, %v14578_v14  ;;  %v14601_v46 = vld [vmem:[#allocation80_spill] sm:$0xff] }
 0x7b0   : > { %v7966_v39 = vsel %vm4084_vm8, %v7950_v11, %v14579_v55  ;;  %v14598_v11 = vld [vmem:[#allocation86_spill] sm:$0xff] }
 0x7b1   : > { %v7132_v38 = vpop.permute.xlu0 %7131  ;;  %v7388_v17 = vpop.permute.xlu1 %7387 }
 0x7b2   : > { %v7852_v40 = vsel %vm4067_vm7, %v7836_v22, %v7132_v38  ;;  %v7916_v45 = vsel %vm4016_vm4, %v13719_v27, %v7388_v17  ;;  %v14588_v22 = vld [vmem:[#allocation40_spill] sm:$0xff]  ;;  %v14590_v17 = vld [vmem:[#allocation85_spill] sm:$0xff] }
 0x7b3   : > { %v7868_v12 = vsel %vm4084_vm8, %v7852_v40, %v7196_v23  ;;  %v7932_v2 = vsel %vm4033_vm5, %v7916_v45, %v7452_v37  ;;  %v14584_v37 = vld [vmem:[#allocation21_spill] sm:$0xff]  ;;  %v7905_v23 = vsel %vm4016_vm4, %v14587_v62, %v14586_v53  ;;  %v7870_v38 = vsel %vm4101_vm9, %v7854_v18, %v14588_v22  ;;  %v14589_v40 = vld [vmem:[#allocation74_spill] sm:$0xff] }
 0x7b4   : > { %v7884_v0 = vsel %vm4101_vm9, %v7868_v12, %v7260_v52  ;;  %v7644_v25 = vpop.permute.xlu2 %7643  ;;  %v14581_v52 = vld [vmem:[#allocation14_spill] sm:$0xff]  ;;  %v7901_v15 = vsel %vm4016_vm4, %v14584_v37, %v14583_v20  ;;  %v7921_v45 = vsel %vm4033_vm5, %v7905_v23, %v14590_v17  ;;  %v7886_v14 = vsel %vm4118_vm10, %v7870_v38, %v14597_v31  ;;  %v14602_v37 = vld [vmem:[#allocation43_spill] sm:$0xff]  ;;  %v14607_v38 = vld [vmem:[#allocation48_spill] sm:$0xff] }
 0x7b5   : > { %v7793_v32 = vsel %vm4016_vm4, %v14581_v52, %v14580_v19  ;;  %v7917_v30 = vsel %vm4033_vm5, %v7901_v15, %v14594_v9  ;;  %v7937_v55 = vsel %vm4050_vm6, %v7921_v45, %v14598_v11  ;;  %v14599_v19 = vld [vmem:[#allocation64_spill] sm:$0xff]  ;;  %v14600_v52 = vld [vmem:[#allocation23_spill] sm:$0xff]  ;;  %v14603_v15 = vld [vmem:[#allocation22_spill] sm:$0xff] }
 0x7b6   : > { %v7809_v12 = vsel %vm4033_vm5, %v7793_v32, %v14589_v40  ;;  %v7933_v41 = vsel %vm4050_vm6, %v7917_v30, %v14596_v59  ;;  %v7903_v32 = vsel %vm4016_vm4, %v14600_v52, %v14599_v19  ;;  %v7791_v3 = vsel %vm4016_vm4, %v14603_v15, %v14602_v37  ;;  %v14605_v53 = vld [vmem:[#allocation30_spill] sm:$0xff]  ;;  %v14606_v23 = vld [vmem:[#allocation19_spill] sm:$0xff]  ;;  %v14614_v9 = vld [vmem:[#allocation73_spill] sm:$0xff] }
 0x7b7   : > { %v7949_v22 = vsel %vm4067_vm7, %v7933_v41, %v14606_v23  ;;  %v7807_v40 = vsel %vm4033_vm5, %v7791_v3, %v14607_v38  ;;  %v14609_v45 = vld [vmem:[#allocation62_spill] sm:$0xff]  ;;  %v14615_v30 = vld [vmem:[#allocation31_spill] sm:$0xff]  ;;  %v14617_v31 = vld [vmem:[#allocation25_spill] sm:$0xff] }
 0x7b8   : > { %v14618_v11 = vld [vmem:[#allocation49_spill] sm:$0xff]  ;;  %v14621_v37 = vld [vmem:[#allocation68_spill] sm:$0xff] }
 0x7b9   : > { %v7324_v7 = vpop.permute.xlu0 %7323  ;;  %v7580_v47 = vpop.permute.xlu1 %7579  ;;  %v14622_v3 = vld [vmem:[#allocation17_spill] sm:$0xff] }
 0x7ba   : > { %v13973_v28 = vsel %vm4118_vm10, %v7884_v0, %v7324_v7  ;;  %v14591_v0 = vld [vmem:[#allocation46_spill] sm:$0xff]  ;;  %v14592_v7 = vld [vmem:[#allocation81_spill] sm:$0xff] }
 0x7bb   : > { %v14624_v38 = vld [vmem:[#allocation69_spill] sm:$0xff] }
 0x7bc   : > { %v13975_v1 = vpop.permute.xlu2 %7693 }
 0x7c1   : > { %v7516_v50 = vpop.permute.xlu0 %7515  ;;  %v7686_v58 = vpop.permute.xlu1 %7685 }
 0x7c2   : > { %v7948_v6 = vsel %vm4050_vm6, %v7932_v2, %v7516_v50  ;;  %v7982_v2 = vsel %vm4101_vm9, %v7966_v39, %v14591_v0  ;;  %v7919_v0 = vsel %vm4033_vm5, %v7903_v32, %v14609_v45  ;;  %v14619_v32 = vld [vmem:[#allocation32_spill] sm:$0xff] }
 0x7c3   : > { %v7964_v8 = vsel %vm4067_vm7, %v7948_v6, %v7580_v47  ;;  %v7825_v47 = vsel %vm4050_vm6, %v7809_v12, %v14592_v7  ;;  %v14608_v12 = vld [vmem:[#allocation54_spill] sm:$0xff]  ;;  %v14626_v45 = vld [vmem:[#allocation44_spill] sm:$0xff] }
 0x7c4   : > { %v13979_v10 = vpop.permute.xlu2 %7699  ;;  %v13982_v27 = vsel %vm4084_vm8, %v7964_v8, %v7644_v25  ;;  %v14593_v8 = vld [vmem:[#allocation24_spill] sm:$0xff]  ;;  %v7953_v17 = vsel %vm4067_vm7, %v7937_v55, %v14608_v12  ;;  %v7823_v55 = vsel %vm4050_vm6, %v7807_v40, %v14618_v11  ;;  %v14625_v12 = vld [vmem:[#allocation83_spill] sm:$0xff] }
 0x7c5   : > { %v7821_v60 = vsel %vm4050_vm6, %v7805_v56, %v14593_v8  ;;  %v7841_v56 = vsel %vm4067_vm7, %v7825_v47, %v14601_v46  ;;  %v14612_v47 = vld [vmem:[#allocation77_spill] sm:$0xff]  ;;  %v14613_v8 = vld [vmem:[#allocation87_spill] sm:$0xff]  ;;  %v7965_v46 = vsel %vm4084_vm8, %v7949_v22, %v14619_v32  ;;  %v14633_v11 = vld [vmem:[#allocation84_spill] sm:$0xff] }
 0x7c6   : > { %v7837_v29 = vsel %vm4067_vm7, %v7821_v60, %v14595_v35  ;;  %v7969_v60 = vsel %vm4084_vm8, %v7953_v17, %v14613_v8  ;;  %v14616_v35 = vld [vmem:[#allocation82_spill] sm:$0xff]  ;;  %v14636_v32 = vld [vmem:[#allocation51_spill] sm:$0xff] }
 0x7c7   : > { %v7853_v62 = vsel %vm4084_vm8, %v7837_v29, %v14605_v53  ;;  %v7985_v59 = vsel %vm4101_vm9, %v7969_v60, %v7686_v58  ;;  %v7981_v53 = vsel %vm4101_vm9, %v7965_v46, %v14622_v3  ;;  %v14629_v60 = vld [vmem:[#allocation59_spill] sm:$0xff]  ;;  %v14639_v3 = vld [vmem:[#allocation60_spill] sm:$0xff] }
 0x7c9   : > { %v13984_v43 = vpop.permute.xlu0 %7689  ;;  %v13986_v61 = vpop.permute.xlu1 %7691 }
 0x7cc   : > { %v13998_v54 = vpop.permute.xlu2 %7705 }
 0x7d1   : > { %v14004_v57 = vpop.permute.xlu0 %7695  ;;  %v14006_v26 = vpop.permute.xlu1 %7697 }
 0x7d4   : > { %v7744_v25 = vpop.permute.xlu2 %7743 }
 0x7d5   : > { %v7998_v50 = vsel %vm4118_vm10, %v7982_v2, %v7744_v25  ;;  %v14610_v2 = vld [vmem:[#allocation52_spill] sm:$0xff]  ;;  %v14611_v25 = vld [vmem:[#allocation26_spill] sm:$0xff] }
 0x7d6   : > { %v8046_v13 = vrot.slane %v7998_v50, 7  ;;  %v7792_v7 = vsel %vm4016_vm4, %v14611_v25, %v14610_v2  ;;  %v7857_v50 = vsel %vm4084_vm8, %v7841_v56, %v14612_v47  ;;  %v14620_v56 = vld [vmem:[#allocation58_spill] sm:$0xff]  ;;  %v14627_v2 = vld [vmem:[#allocation75_spill] sm:$0xff] }
 0x7d7   : > { %v7873_v29 = vsel %vm4101_vm9, %v7857_v50, %v14616_v35  ;;  %v7808_v58 = vsel %vm4033_vm5, %v7792_v7, %v14621_v37  ;;  %v14628_v50 = vld [vmem:[#allocation33_spill] sm:$0xff]  ;;  %v14638_v37 = vld [vmem:[#allocation90_spill] sm:$0xff] }
 0x7d8   : > { %v8062_v20 = vsel %vm4295_vm11, %v7886_v14, %v8046_v13  ;;  %v7904_v13 = vsel %vm4016_vm4, %v14615_v30, %v14614_v9  ;;  %v7869_v14 = vsel %vm4101_vm9, %v7853_v62, %v14617_v31  ;;  %v14623_v62 = vld [vmem:[#allocation67_spill] sm:$0xff]  ;;  %v7889_v22 = vsel %vm4118_vm10, %v7873_v29, %v14625_v12  ;;  %v14631_v29 = vld [vmem:[#allocation65_spill] sm:$0xff] }
 0x7d9   : > { %v14041_v6 = vpop.permute.xlu0 %7701  ;;  %v14055_v39 = vpop.permute.xlu1 %7703  ;;  %8785 = vst.msk [vmem:[%s10323_s10 + $0x5] ss:$2 sm:$0x3] %vm10310_vm12, %v8062_v20  ;;  %v7935_v20 = vsel %vm4050_vm6, %v7919_v0, %v14620_v56  ;;  %v7920_v40 = vsel %vm4033_vm5, %v7904_v13, %v14624_v38  ;;  %v7839_v0 = vsel %vm4067_vm7, %v7823_v55, %v14626_v45  ;;  %v7885_v8 = vsel %vm4118_vm10, %v7869_v14, %v14628_v50  ;;  %v14630_v30 = vld [vmem:[#allocation63_spill] sm:$0xff]  ;;  %v14634_v55 = vld [vmem:[#allocation50_spill] sm:$0xff]  ;;  %v14637_v56 = vld [vmem:[#allocation76_spill] sm:$0xff] }
 0x7da   : > { %v7951_v23 = vsel %vm4067_vm7, %v7935_v20, %v14623_v62  ;;  %v7936_v25 = vsel %vm4050_vm6, %v7920_v40, %v14627_v2  ;;  %v7855_v9 = vsel %vm4084_vm8, %v7839_v0, %v14629_v60  ;;  %v7824_v13 = vsel %vm4050_vm6, %v7808_v58, %v14630_v30  ;;  %v14640_v62 = vld [vmem:[#allocation8_spill] sm:$0xff]  ;;  %v14641_v40 = vld [vmem:[#allocation71_spill] sm:$0xff]  ;;  %v14643_v0 = vld [vmem:[#allocation61_spill] sm:$0xff] }
 0x7db   : > { %v7794_v14 = vsel %vm4016_vm4, %v14634_v55, %v14633_v11  ;;  %v7952_v20 = vsel %vm4067_vm7, %v7936_v25, %v14637_v56  ;;  %v14649_v11 = vld [vmem:[#allocation6_spill] sm:$0xff] }
 0x7dc   : > { %v7750_v41 = vpop.permute.xlu2 %7749  ;;  %v7810_v58 = vsel %vm4033_vm5, %v7794_v14, %v14638_v37  ;;  %v14650_v14 = vld [vmem:[#allocation38_spill] sm:$0xff] }
 0x7dd   : > { %v8001_v19 = vsel %vm4118_vm10, %v7985_v59, %v7750_v41  ;;  %v7967_v59 = vsel %vm4084_vm8, %v7951_v23, %v14631_v29  ;;  %v14632_v41 = vld [vmem:[#allocation70_spill] sm:$0xff]  ;;  %v7988_v23 = vsel %vm4101_vm9, %v14640_v62, %v13986_v61  ;;  %v14654_v62 = vld [vmem:[#allocation92_spill] sm:$0xff] }
 0x7de   : > { %v8049_v15 = vrot.slane %v8001_v19, 7  ;;  %v7840_v31 = vsel %vm4067_vm7, %v7824_v13, %v14632_v41  ;;  %v14635_v19 = vld [vmem:[#allocation36_spill] sm:$0xff]  ;;  %v7983_v2 = vsel %vm4101_vm9, %v7967_v59, %v14643_v0  ;;  %v14647_v13 = vld [vmem:[#allocation78_spill] sm:$0xff] }
 0x7df   : > { %v7906_v46 = vsel %vm4016_vm4, %v14636_v32, %v14635_v19  ;;  %v7856_v12 = vsel %vm4084_vm8, %v7840_v31, %v14641_v40  ;;  %v14648_v41 = vld [vmem:[#allocation66_spill] sm:$0xff] }
 0x7e0   : > { %v8065_v7 = vsel %vm4295_vm11, %v7889_v22, %v8049_v15  ;;  %v14642_v22 = vld [vmem:[#allocation93_spill] sm:$0xff]  ;;  %v7872_v31 = vsel %vm4101_vm9, %v7856_v12, %v14648_v41  ;;  %v14655_v40 = vld [vmem:[#allocation94_spill] sm:$0xff] }
 0x7e1   : > { %v14097_v52 = vpop.permute.xlu0 %7707  ;;  %v7742_v17 = vpop.permute.xlu1 %7741  ;;  %8788 = vst.msk [vmem:[%s10323_s10 + $0x11] ss:$2 sm:$0x3] %vm10310_vm12, %v8065_v7  ;;  %v14644_v7 = vld [vmem:[#allocation53_spill] sm:$0xff] }
 0x7e2   : > { %v7997_v47 = vsel %vm4118_vm10, %v7981_v53, %v7742_v17  ;;  %v7871_v53 = vsel %vm4101_vm9, %v7855_v9, %v14639_v3  ;;  %v7922_v17 = vsel %vm4033_vm5, %v7906_v46, %v14642_v22  ;;  %v7968_v61 = vsel %vm4084_vm8, %v7952_v20, %v14644_v7  ;;  %v14646_v9 = vld [vmem:[#allocation47_spill] sm:$0xff]  ;;  %v14653_v3 = vld [vmem:[#allocation72_spill] sm:$0xff] }
 0x7e3   : > { %v8045_v35 = vrot.slane %v7997_v47, 7  ;;  %v14645_v47 = vld [vmem:[#allocation88_spill] sm:$0xff]  ;;  %v7887_v30 = vsel %vm4118_vm10, %v7871_v53, %v14646_v9  ;;  %v7938_v55 = vsel %vm4050_vm6, %v7922_v17, %v14649_v11  ;;  %v14651_v46 = vld [vmem:[#allocation55_spill] sm:$0xff]  ;;  %v7888_v53 = vsel %vm4118_vm10, %v7872_v31, %v14653_v3 }
 0x7e4   : > { %v7756_v38 = vpop.permute.xlu2 %7755  ;;  %v7826_v50 = vsel %vm4050_vm6, %v7810_v58, %v14645_v47  ;;  %v14652_v20 = vld [vmem:[#allocation11_spill] sm:$0xff]  ;;  %v7991_v22 = vsel %vm4101_vm9, %v13678_v51, %v14006_v26  ;;  %v7987_v51 = vsel %vm4101_vm9, %v13494_v34, %v13984_v43 }
 0x7e5   : > { %v8061_v15 = vsel %vm4295_vm11, %v7885_v8, %v8045_v35  ;;  %v8004_v45 = vsel %vm4118_vm10, %v7988_v23, %v7756_v38  ;;  %v7984_v35 = vsel %vm4101_vm9, %v7968_v61, %v14647_v13  ;;  %v7842_v56 = vsel %vm4067_vm7, %v7826_v50, %v14651_v46  ;;  %v14658_v34 = vld [vmem:[#allocation7_spill] sm:$0xff] }
 0x7e6   : > { %8784 = vst.msk [vmem:[%s10323_s10 + $0x1] ss:$2 sm:$0x3] %vm10310_vm12, %v8061_v15  ;;  %v8052_v8 = vrot.slane %v8004_v45, 7  ;;  %v7954_v37 = vsel %vm4067_vm7, %v7938_v55, %v14652_v20  ;;  %v7858_v23 = vsel %vm4084_vm8, %v7842_v56, %v14654_v62  ;;  %v14656_v45 = vld [vmem:[#allocation91_spill] sm:$0xff]  ;;  %v7993_v20 = vsel %vm4101_vm9, %v13946_v33, %v14041_v6 }
 0x7e7   : > { %v7970_v12 = vsel %vm4084_vm8, %v7954_v37, %v14655_v40  ;;  %v7874_v0 = vsel %vm4101_vm9, %v7858_v23, %v14656_v45 }
 0x7e8   : > { %v8068_v19 = vsel %vm4295_vm11, %v14650_v14, %v8052_v8  ;;  %v14657_v8 = vld [vmem:[#allocation89_spill] sm:$0xff] }
 0x7e9   : > { %v7746_v25 = vpop.permute.xlu0 %7745  ;;  %v7748_v29 = vpop.permute.xlu1 %7747  ;;  %8791 = vst.msk [vmem:[%s10323_s10 + $0x1d] ss:$2 sm:$0x3] %vm10310_vm12, %v8068_v19 }
 0x7ea   : > { %v7999_v60 = vsel %vm4118_vm10, %v7983_v2, %v7746_v25  ;;  %v8000_v32 = vsel %vm4118_vm10, %v7984_v35, %v7748_v29  ;;  %v7986_v2 = vsel %vm4101_vm9, %v7970_v12, %v13964_v63  ;;  %v7994_v35 = vsel %vm4101_vm9, %v13906_v4, %v14055_v39 }
 0x7eb   : > { %v8047_v59 = vrot.slane %v7999_v60, 7  ;;  %v8048_v58 = vrot.slane %v8000_v32, 7  ;;  %v7890_v60 = vsel %vm4118_vm10, %v7874_v0, %v14657_v8  ;;  %v7989_v29 = vsel %vm4101_vm9, %v13652_v24, %v13975_v1  ;;  %v14659_v1 = vld [vmem:[#allocation12_spill] sm:$0xff] }
 0x7ec   : > { %v7762_v17 = vpop.permute.xlu2 %7761  ;;  %v7990_v4 = vsel %vm4101_vm9, %v13725_v44, %v14004_v57  ;;  %v14660_v44 = vld [vmem:[#allocation13_spill] sm:$0xff] }
 0x7ed   : > { %v8063_v15 = vsel %vm4295_vm11, %v7887_v30, %v8047_v59  ;;  %v8064_v38 = vsel %vm4295_vm11, %v7888_v53, %v8048_v58  ;;  %v8007_v25 = vsel %vm4118_vm10, %v7991_v22, %v7762_v17 }
 0x7ee   : > { %8786 = vst.msk [vmem:[%s10323_s10 + $0x9] ss:$2 sm:$0x3] %vm10310_vm12, %v8063_v15  ;;  %v8055_v61 = vrot.slane %v8007_v25, 7 }
 0x7ef   : > { %8787 = vst.msk [vmem:[%s10323_s10 + $0xd] ss:$2 sm:$0x3] %vm10310_vm12, %v8064_v38 }
 0x7f0   : > { %v8071_v9 = vsel %vm4295_vm11, %v13638_v42, %v8055_v61 }
 0x7f1   : > { %v7752_v7 = vpop.permute.xlu0 %7751  ;;  %v7754_v26 = vpop.permute.xlu1 %7753  ;;  %8794 = vst.msk [vmem:[%s10323_s10 + $0x29] ss:$2 sm:$0x3] %vm10310_vm12, %v8071_v9 }
 0x7f2   : > { %v8002_v47 = vsel %vm4118_vm10, %v7986_v2, %v7752_v7  ;;  %v8003_v63 = vsel %vm4118_vm10, %v7987_v51, %v7754_v26 }
 0x7f3   : > { %v8050_v50 = vrot.slane %v8002_v47, 7  ;;  %v8051_v30 = vrot.slane %v8003_v63, 7 }
 0x7f4   : > { %v7768_v42 = vpop.permute.xlu2 %7767 }
 0x7f5   : > { %v8066_v13 = vsel %vm4295_vm11, %v7890_v60, %v8050_v50  ;;  %v8067_v43 = vsel %vm4295_vm11, %v14658_v34, %v8051_v30  ;;  %v8010_v59 = vsel %vm4118_vm10, %v7994_v35, %v7768_v42 }
 0x7f6   : > { %8789 = vst.msk [vmem:[%s10323_s10 + $0x15] ss:$2 sm:$0x3] %vm10310_vm12, %v8066_v13  ;;  %v8058_v31 = vrot.slane %v8010_v59, 7 }
 0x7f7   : > { %8790 = vst.msk [vmem:[%s10323_s10 + $0x19] ss:$2 sm:$0x3] %vm10310_vm12, %v8067_v43 }
 0x7f8   : > { %v8074_v14 = vsel %vm4295_vm11, %v13873_v5, %v8058_v31  ;;  %v7992_v5 = vsel %vm4101_vm9, %v13886_v49, %v13979_v10 }
 0x7f9   : > { %v7758_v41 = vpop.permute.xlu0 %7757  ;;  %v7760_v39 = vpop.permute.xlu1 %7759  ;;  %8797 = vst.msk [vmem:[%s10323_s10 + $0x35] ss:$2 sm:$0x3] %vm10310_vm12, %v8074_v14 }
 0x7fa   : > { %v8005_v11 = vsel %vm4118_vm10, %v7989_v29, %v7758_v41  ;;  %v8006_v19 = vsel %vm4118_vm10, %v7990_v4, %v7760_v39 }
 0x7fb   : > { %v8053_v55 = vrot.slane %v8005_v11, 7  ;;  %v8054_v24 = vrot.slane %v8006_v19, 7 }
 0x7fd   : > { %v8069_v32 = vsel %vm4295_vm11, %v14659_v1, %v8053_v55  ;;  %v8070_v57 = vsel %vm4295_vm11, %v14660_v44, %v8054_v24 }
 0x7fe   : > { %8792 = vst.msk [vmem:[%s10323_s10 + $0x21] ss:$2 sm:$0x3] %vm10310_vm12, %v8069_v32 }
 0x7ff   : > { %8793 = vst.msk [vmem:[%s10323_s10 + $0x25] ss:$2 sm:$0x3] %vm10310_vm12, %v8070_v57 }
 0x801   : > { %v7764_v46 = vpop.permute.xlu0 %7763  ;;  %v7766_v37 = vpop.permute.xlu1 %7765 }
 0x802   : > { %v8008_v56 = vsel %vm4118_vm10, %v7992_v5, %v7764_v46  ;;  %v8009_v15 = vsel %vm4118_vm10, %v7993_v20, %v7766_v37 }
 0x803   : > { %v8056_v58 = vrot.slane %v8008_v56, 7  ;;  %v8057_v3 = vrot.slane %v8009_v15, 7 }
 0x805   : > { %v8072_v53 = vsel %vm4295_vm11, %v13712_v21, %v8056_v58  ;;  %v8073_v49 = vsel %vm4295_vm11, %v13804_v16, %v8057_v3  ;;  %v7995_v21 = vsel %vm4101_vm9, %v13962_v48, %v13998_v54  ;;  %v7996_v16 = vsel %vm4101_vm9, %v13982_v27, %v14097_v52 }
 0x806   : > { %8795 = vst.msk [vmem:[%s10323_s10 + $0x2d] ss:$2 sm:$0x3] %vm10310_vm12, %v8072_v53 }
 0x807   : > { %8796 = vst.msk [vmem:[%s10323_s10 + $0x31] ss:$2 sm:$0x3] %vm10310_vm12, %v8073_v49 }
 0x809   : > { %v7770_v33 = vpop.permute.xlu0 %7769  ;;  %v7772_v62 = vpop.permute.xlu1 %7771 }
 0x80a   : > { %v8011_v10 = vsel %vm4118_vm10, %v7995_v21, %v7770_v33  ;;  %v8012_v23 = vsel %vm4118_vm10, %v7996_v16, %v7772_v62 }
 0x80b   : > { %v8059_v6 = vrot.slane %v8011_v10, 7  ;;  %v8060_v40 = vrot.slane %v8012_v23, 7 }
 0x80d   : > { %v8075_v38 = vsel %vm4295_vm11, %v13935_v36, %v8059_v6  ;;  %v8076_v48 = vsel %vm4295_vm11, %v13973_v28, %v8060_v40 }
 0x80e   : > { %8798 = vst.msk [vmem:[%s10323_s10 + $0x39] ss:$2 sm:$0x3] %vm10310_vm12, %v8075_v38 }
 0x80f   : > { %8799 = vst.msk [vmem:[%s10323_s10 + $0x3d] ss:$2 sm:$0x3] %vm10310_vm12, %v8076_v48 }
 0x810   : > { %9037 = shalt.err (!%p9034_p5)
}
 0x811   : > { %s9100_s8 = smov 4  }
 0x812   : > { %8807 = dma.vmem_to_hbm [thread:$0]  (%p9161_p4), %s8142_s15, 1024, %s8144_s28, %s8126_s30, %s9096_s27, %s9096_s27, %s9100_s8  }
 0x813 PF: > { %p8813_p6 = scmp.ge.s32.totalorder %s9088_s17, 2  ;;  %s8158_s10 = sand.u32 1, %s9068_s12  }
 0x814   : > { %s8159_s7 = scalar_lea.sflag [#allocation3], %s8158_s10 }
 0x815   : > { %p8810_p7 = pnand %p8813_p6, %p9168_p8 }
 0x817   : > { %p8811_p9 = pneg %p8810_p7 }
 0x819   : > { %9063 = dma.done.wait (%p8811_p9), %s8159_s7, 1024  }
 0x81a   : > { %9065 = vsyncadd (%p8811_p9), %s8159_s7, 4294966272  ;;  %s16_s17 = sadd.s32 1, %s9088_s17   ;;  %s14661_s12 = smov %s9072_s13 }
 0x81b   : > { %p13_p10 = scmp.ge.s32.totalorder %s16_s17, 4   ;;  %s14662_s13 = smov %s9076_s14 }
 0x81c   : > { %s14663_s14 = smov %s9174_s25  ;;  %s14664_s15 = smov %s9084_s16 }
 0x81d   : > { %s14665_s16 = smov %s14667_s20  ;;  %15 = sbr.rel (!%p13_p10) target bundleno = 4 (0x4), region = 114 }
 0x822   :  { %8165 = vsyncpa [#allocation3], 1 }
 0x823   :  { %8167 = vsyncpa [#allocation3 + $0x1], 1 }

</bundles_post_ra>
